<compile_context>
chip_gen: v6e
topology: v6e:2x2x1
jax: 0.10.0
libtpu: 0.0.40
codegen_flags: <defaults>
</compile_context>

<pallas_src>
import functools

import numpy as np
import jax
import jax.numpy as jnp
from jax.experimental import pallas as pl
from jax.experimental.pallas import tpu as pltpu

BN_EPS = 1e-5
F32 = jnp.float32


def _round_up(x, m):
    return (x + m - 1) // m * m


# ---------------------------------------------------------------------------
# The fused kernel
# ---------------------------------------------------------------------------
def _downblock_kernel(xp_ref, rxp_ref, mask_ref, s2_ref, w_x_ref, b_x_ref,
                      w_ref, b_ref, out_ref, res_out_ref, *rest,
                      c, cc, wp, ls, lf, bb, has_proj, final):
    if final:
        x2_out_ref, x1_out_ref, taps, hf, x1f, x2f = rest
    else:
        taps, hf, x1f, x2f = rest

    # Frames' pad ring + tail must be zero (scratch persists across grid steps).
    hf[...] = jnp.zeros_like(hf)
    x1f[...] = jnp.zeros_like(x1f)
    x2f[...] = jnp.zeros_like(x2f)

    # Interior mask (zeroes the "wrap" slab columns), hoisted broadcast.
    mask = jnp.broadcast_to(mask_ref[...], (c, ls))
    s2 = s2_ref[...]                                   # (ls, 128) 0/1 selection

    def stage(window):
        # In-kernel im2col: 9 shifted lane windows stacked along contraction K.
        for t in range(9):
            off = (t // 3) * wp + (t % 3)
            for n in range(bb):
                taps[t * c:(t + 1) * c, n * ls:(n + 1) * ls] = window(n, off)

    def conv(w, b):
        # One MXU matmul per conv: (c, 9c) @ (9c, bb*ls) + bias.
        return jnp.dot(w, taps[...], preferred_element_type=F32) + b

    def fwin(frame, n, off=None):
        o = (wp + 1) if off is None else off
        return frame[:, n * lf + o: n * lf + o + ls]

    def place(frame, n, value):
        # Masked lane-shifted store: slab column h -> frame position h + wp + 1.
        frame[:, n * lf + wp + 1: n * lf + wp + 1 + ls] = value

    # ---- res1: relu( proj(x) + conv2(relu(conv1(x))) ), Dropout = identity ---
    stage(lambda n, off: xp_ref[n, :, off:off + ls])
    s_x = jnp.dot(w_x_ref[...], taps[...], preferred_element_type=F32) + b_x_ref[...]
    c1 = s_x[0:c]                                       # conv1 slab
    for n in range(bb):
        place(hf, n, jnp.maximum(c1[:, n * ls:(n + 1) * ls], 0.0) * mask)

    stage(lambda n, off: fwin(hf, n, off))
    c2 = conv(w_ref[0], b_ref[0])                       # r1.conv2
    for n in range(bb):
        if has_proj:
            sc = s_x[c:2 * c, n * ls:(n + 1) * ls]      # 1x1 proj slab
        else:
            sc = xp_ref[n, :, wp + 1: wp + 1 + ls]      # identity shortcut
        place(x1f, n, jnp.maximum(c2[:, n * ls:(n + 1) * ls] + sc, 0.0) * mask)

    # ---- res2 conv1 + res_conv head (both consume x1: shared tap staging) ----
    stage(lambda n, off: fwin(x1f, n, off))
    r2c1 = conv(w_ref[1], b_ref[1])
    hd_r = conv(w_ref[5], b_ref[5])                     # res_conv slab
    for n in range(bb):
        res_out_ref[n] = jnp.dot(hd_r[0:cc, n * ls:(n + 1) * ls], s2,
                                 preferred_element_type=F32)
        place(hf, n, jnp.maximum(r2c1[:, n * ls:(n + 1) * ls], 0.0) * mask)

    # ---- res2 conv2 (+ identity shortcut) ------------------------------------
    stage(lambda n, off: fwin(hf, n, off))
    r2c2 = conv(w_ref[2], b_ref[2])
    for n in range(bb):
        place(x2f, n, jnp.maximum(r2c2[:, n * ls:(n + 1) * ls] + fwin(x1f, n),
                                  0.0) * mask)

    # ---- res3 (+ identity shortcut), then + res_x ----------------------------
    stage(lambda n, off: fwin(x2f, n, off))
    r3c1 = conv(w_ref[3], b_ref[3])
    for n in range(bb):
        place(hf, n, jnp.maximum(r3c1[:, n * ls:(n + 1) * ls], 0.0) * mask)

    stage(lambda n, off: fwin(hf, n, off))
    r3c2 = conv(w_ref[4], b_ref[4])
    for n in range(bb):
        # x2' = relu(conv2 + x2) + res_x  (Dropout = identity, eval mode);
        # hf is free again, reuse it to hold the x2' frame.
        place(hf, n,
              jnp.maximum(r3c2[:, n * ls:(n + 1) * ls] + fwin(x2f, n), 0.0) * mask
              + rxp_ref[n, :, wp + 1: wp + 1 + ls])

    # ---- out_conv head (consumes x2') ----------------------------------------
    stage(lambda n, off: fwin(hf, n, off))
    hd_o = conv(w_ref[6], b_ref[6])
    for n in range(bb):
        out_ref[n] = jnp.dot(hd_o[0:cc, n * ls:(n + 1) * ls], s2,
                             preferred_element_type=F32)

    if final:
        for n in range(bb):
            x1_out_ref[n] = x1f[:, n * lf:(n + 1) * lf]
            x2_out_ref[n] = hf[:, n * lf:(n + 1) * lf]


# ---------------------------------------------------------------------------
# Host-side layout plumbing (wrapper-only reshapes/pads, no compute hoisting)
# ---------------------------------------------------------------------------
def _to_frame(x_nchw, lf, cpad):
    """NCHW -> (N, cpad, LF): zero-padded (pad=1) row-major flattened frame."""
    n, cin, h, w = x_nchw.shape
    xp = jnp.pad(x_nchw, ((0, 0), (0, cpad - cin), (1, 1), (1, 1)))
    flat = xp.reshape(n, cpad, (h + 2) * (w + 2))
    return jnp.pad(flat, ((0, 0), (0, 0), (0, lf - flat.shape[-1]))).astype(F32)


def _from_frame(xf, cout, h, w):
    n = xf.shape[0]
    hp, wp = h + 2, w + 2
    fr = xf[:, :cout, :hp * wp].reshape(n, cout, hp, wp)
    return fr[:, :, 1:h + 1, 1:w + 1]


def _fold_bn(conv, bn):
    if bn is None:
        return jnp.ones_like(conv["b"]), conv["b"]
    scale = bn["gamma"] / jnp.sqrt(bn["var"] + BN_EPS)
    bias = bn["beta"] + (conv["b"] - bn["mean"]) * scale
    return scale, bias


def _pack3x3(conv, bn, cin_pad, cout_pad):
    """HWIO (3,3,ci,co) -> (cout_pad, 9*cin_pad) stacked-K, BN folded in."""
    scale, bias = _fold_bn(conv, bn)
    wgt = conv["w"] * scale                               # broadcast over Cout
    _, _, ci, co = wgt.shape
    wgt = jnp.pad(wgt, ((0, 0), (0, 0), (0, cin_pad - ci), (0, cout_pad - co)))
    bias = jnp.pad(bias, ((0, cout_pad - co),))
    wk = jnp.transpose(wgt, (3, 0, 1, 2)).reshape(cout_pad, 9 * cin_pad)
    return wk.astype(F32), bias.reshape(cout_pad, 1).astype(F32)


def _pack1x1(conv, bn, cin_pad, cout_pad):
    """1x1 conv embedded in the centre tap of the 3x3 stacked-K layout."""
    scale, bias = _fold_bn(conv, bn)
    wgt = conv["w"][0, 0] * scale                          # (ci, co)
    ci, co = wgt.shape
    w3 = jnp.zeros((3, 3, cin_pad, cout_pad), F32).at[1, 1, :ci, :co].set(wgt)
    bias = jnp.pad(bias, ((0, cout_pad - co),))
    wk = jnp.transpose(w3, (3, 0, 1, 2)).reshape(cout_pad, 9 * cin_pad)
    return wk.astype(F32), bias.reshape(cout_pad, 1).astype(F32)


# ---------------------------------------------------------------------------
# Deterministic parameter construction (matches nn.Module shapes, eval mode)
# ---------------------------------------------------------------------------
def make_conv(key, kh, kw, cin, cout):
    k1, k2 = jax.random.split(key)
    fan_in = kh * kw * cin
    return {
        "w": jax.random.normal(k1, (kh, kw, cin, cout), F32) / jnp.sqrt(fan_in),
        "b": 0.1 * jax.random.normal(k2, (cout,), F32),
    }


def make_bn(key, c):
    k1, k2, k3, k4 = jax.random.split(key, 4)
    return {
        "gamma": 1.0 + 0.1 * jax.random.normal(k1, (c,), F32),
        "beta": 0.1 * jax.random.normal(k2, (c,), F32),
        "mean": 0.1 * jax.random.normal(k3, (c,), F32),
        "var": 1.0 + 0.1 * jax.random.uniform(k4, (c,), F32),
    }


def make_resblock(key, cin, cout, stride=1):
    ks = jax.random.split(key, 6)
    p = {
        "conv1": make_conv(ks[0], 3, 3, cin, cout),
        "bn1": make_bn(ks[1], cout),
        "conv2": make_conv(ks[2], 3, 3, cout, cout),
        "bn2": make_bn(ks[3], cout),
        "proj": None,
    }
    if stride != 1 or cin != cout:
        p["proj"] = {"conv": make_conv(ks[4], 1, 1, cin, cout),
                     "bn": make_bn(ks[5], cout)}
    return p


def make_downblock(key, cin, cout):
    assert cout % 2 == 0
    ks = jax.random.split(key, 5)
    return {
        "res1": make_resblock(ks[0], cin, cout),
        "res2": make_resblock(ks[1], cout, cout),
        "res3": make_resblock(ks[2], cout, cout),
        "res_conv": make_conv(ks[3], 3, 3, cout, cout // 2),
        "out_conv": make_conv(ks[4], 3, 3, cout, cout // 2),
    }


# ---------------------------------------------------------------------------
# Forward pass (single fused Pallas kernel)
# ---------------------------------------------------------------------------
def downblock_fwd(params, x_nchw, res_x_nchw, final=False, batch_block=None):
    n, cin, h, w = x_nchw.shape
    cout = params["res1"]["conv1"]["w"].shape[-1]
    cpad = max(cin, cout)                     # uniform channel padding
    cc = cout // 2
    wp, hp = w + 2, h + 2
    ls = h * wp                               # conv "slab" length per image
    lf = _round_up(hp * wp + wp, 128)         # lane-dense padded-frame length
    ho, wo = (h - 3) // 2 + 1, (w - 3) // 2 + 1
    so = _round_up(ho * wo, 128)              # lane-padded head-output length
    bb = n if batch_block is None else batch_block   # v7x: set to ceil(n/2)
    assert n % bb == 0

    xp = _to_frame(x_nchw, lf, cpad)
    rxp = _to_frame(res_x_nchw, lf, cpad)

    # Interior mask (1 iff slab column is a valid output pixel, not a wrap col).
    mask = jnp.asarray((np.arange(ls) % wp < w).astype(np.float32)[None, :])
    # Stride-2 head output-pixel selection, padded to 128 lanes.
    s2_np = np.zeros((ls, so), np.float32)
    for i in range(ho):
        for j in range(wo):
            s2_np[(2 * i + 1) * wp + (2 * j + 1), i * wo + j] = 1.0
    s2 = jnp.asarray(s2_np)

    r1, r2, r3 = params["res1"], params["res2"], params["res3"]
    has_proj = r1["proj"] is not None

    w_c1, b_c1 = _pack3x3(r1["conv1"], r1["bn1"], cpad, cpad)
    if has_proj:
        w_p, b_p = _pack1x1(r1["proj"]["conv"], r1["proj"]["bn"], cpad, cpad)
    else:
        w_p = jnp.zeros((cpad, 9 * cpad), F32)
        b_p = jnp.zeros((cpad, 1), F32)
    w_x = jnp.concatenate([w_c1, w_p], axis=0)            # (2*cpad, 9*cpad)
    b_x = jnp.concatenate([b_c1, b_p], axis=0)            # (2*cpad, 1)

    packs = [
        _pack3x3(r1["conv2"], r1["bn2"], cpad, cpad),      # 0: r1.conv2
        _pack3x3(r2["conv1"], r2["bn1"], cpad, cpad),      # 1: r2.conv1
        _pack3x3(r2["conv2"], r2["bn2"], cpad, cpad),      # 2: r2.conv2
        _pack3x3(r3["conv1"], r3["bn1"], cpad, cpad),      # 3: r3.conv1
        _pack3x3(r3["conv2"], r3["bn2"], cpad, cpad),      # 4: r3.conv2
        _pack3x3(params["res_conv"], None, cpad, cpad),    # 5: res_conv head
        _pack3x3(params["out_conv"], None, cpad, cpad),    # 6: out_conv head
    ]
    w_main = jnp.stack([p[0] for p in packs])              # (7, cpad, 9*cpad)
    b_main = jnp.stack([p[1] for p in packs])              # (7, cpad, 1)

    in_arrays = [xp, rxp, mask, s2, w_x, b_x, w_main, b_main]

    def batched(ch, width):
        return pl.BlockSpec((bb, ch, width), lambda i: (i, 0, 0))

    def broadcast_spec(a):
        zeros = (0,) * a.ndim
        return pl.BlockSpec(a.shape, lambda i: zeros)

    in_specs = ([batched(cpad, lf), batched(cpad, lf)]
                + [broadcast_spec(a) for a in in_arrays[2:]])

    out_shapes = [jax.ShapeDtypeStruct((n, cc, so), F32),      # out (padded)
                  jax.ShapeDtypeStruct((n, cc, so), F32)]      # res_out (padded)
    out_specs = [batched(cc, so), batched(cc, so)]
    if final:
        out_shapes += [jax.ShapeDtypeStruct((n, cpad, lf), F32),   # x2 frame
                       jax.ShapeDtypeStruct((n, cpad, lf), F32)]   # x1 frame
        out_specs += [batched(cpad, lf), batched(cpad, lf)]

    kernel = functools.partial(_downblock_kernel, c=cpad, cc=cc, wp=wp, ls=ls,
                               lf=lf, bb=bb, has_proj=has_proj, final=final)

    results = pl.pallas_call(
        kernel,
        out_shape=tuple(out_shapes),
        grid=(n // bb,),
        in_specs=in_specs,
        out_specs=tuple(out_specs),
        scratch_shapes=[
            pltpu.VMEM((9 * cpad, bb * ls), F32),   # stacked-K tap staging
            pltpu.VMEM((cpad, bb * lf), F32),       # hidden / x2' frames
            pltpu.VMEM((cpad, bb * lf), F32),       # x1 frames
            pltpu.VMEM((cpad, bb * lf), F32),       # x2 frames
        ],
        compiler_params=pltpu.CompilerParams(
            dimension_semantics=("parallel",),
            vmem_limit_bytes=32 * 1024 * 1024),
    )(*in_arrays)

    if final:
        out_raw, res_raw, x2f_raw, x1f_raw = results
    else:
        out_raw, res_raw = results

    out = out_raw[:, :, :ho * wo].reshape(n, cc, ho, wo)
    res_out = res_raw[:, :, :ho * wo].reshape(n, cc, ho, wo)
    if final:
        x2 = _from_frame(x2f_raw, cout, h, w)
        x1 = _from_frame(x1f_raw, cout, h, w)
        return out, res_out, x2, x1
    return out, res_out


# ---------------------------------------------------------------------------
# Pure-JAX reference (lax.conv) for correctness checking
# ---------------------------------------------------------------------------
def _conv_ref(x, w, b, stride, pad):
    y = jax.lax.conv_general_dilated(
        x, w, window_strides=(stride, stride),
        padding=((pad, pad), (pad, pad)),
        dimension_numbers=("NHWC", "HWIO", "NHWC"))
    return y + b


def _bn_ref(y, bn):
    scale = bn["gamma"] / jnp.sqrt(bn["var"] + BN_EPS)
    return (y - bn["mean"]) * scale + bn["beta"]


def _resblock_ref(x, p):
    hid = jax.nn.relu(_bn_ref(_conv_ref(x, p["conv1"]["w"], p["conv1"]["b"], 1, 1), p["bn1"]))
    hid = _bn_ref(_conv_ref(hid, p["conv2"]["w"], p["conv2"]["b"], 1, 1), p["bn2"])
    if p["proj"] is not None:
        sc = _bn_ref(_conv_ref(x, p["proj"]["conv"]["w"], p["proj"]["conv"]["b"], 1, 0),
                     p["proj"]["bn"])
    else:
        sc = x
    return jax.nn.relu(sc + hid)


def downblock_ref(params, x_nchw, res_x_nchw):
    x = jnp.transpose(x_nchw, (0, 2, 3, 1))
    res_x = jnp.transpose(res_x_nchw, (0, 2, 3, 1))
    x1 = _resblock_ref(x, params["res1"])
    x2 = _resblock_ref(x1, params["res2"])
    x2 = _resblock_ref(x2, params["res3"]) + res_x
    res_out = _conv_ref(x1, params["res_conv"]["w"], params["res_conv"]["b"], 2, 0)
    out = _conv_ref(x2, params["out_conv"]["w"], params["out_conv"]["b"], 2, 0)
    to_nchw = lambda t: jnp.transpose(t, (0, 3, 1, 2))
    return to_nchw(out), to_nchw(res_out), to_nchw(x2), to_nchw(x1)


if __name__ == "__main__":
    key = jax.random.PRNGKey(0)
    k_params, k_x, k_res = jax.random.split(key, 3)

    N, C_in, C_out, H, W = 2, 4, 8, 16, 16
    params = make_downblock(k_params, C_in, C_out)
    x = jax.random.normal(k_x, (N, C_in, H, W), jnp.float32)        # NCHW, like PyTorch
    res_x = jax.random.normal(k_res, (N, C_out, H, W), jnp.float32)

    fwd = jax.jit(downblock_fwd, static_argnames=("final", "batch_block"))

    out, res_out = jax.block_until_ready(fwd(params, x, res_x))
    assert out.shape == (N, C_out // 2, 7, 7), out.shape
    assert res_out.shape == (N, C_out // 2, 7, 7), res_out.shape
    assert bool(jnp.all(jnp.isfinite(out))) and bool(jnp.all(jnp.isfinite(res_out)))

    ref_out, ref_res_out, ref_x2, ref_x1 = downblock_ref(params, x, res_x)
    # Both sides use default MXU matmul precision; tolerance covers bf16-pass
    # rounding accumulated across the fused conv chain.
    tol = dict(atol=2e-2, rtol=2e-2)
    assert jnp.allclose(out, ref_out, **tol)
    assert jnp.allclose(res_out, ref_res_out, **tol)

    # final=True path: also returns the intermediate activations x2, x1.
    out_f, res_out_f, x2_f, x1_f = jax.block_until_ready(
        fwd(params, x, res_x, final=True))
    assert jnp.allclose(out_f, ref_out, **tol)
    assert jnp.allclose(res_out_f, ref_res_out, **tol)
    assert jnp.allclose(x2_f, ref_x2, **tol)
    assert jnp.allclose(x1_f, ref_x1, **tol)

    print("KERNEL_OK")
</pallas_src>

<mosaic_0001>
module attributes {stable_mosaic.version = 11 : i64} {
  func.func @_downblock_kernel(%arg0: i32, %arg1: memref<2x8x384xf32, #tpu.memory_space<vmem>>, %arg2: memref<2x8x384xf32, #tpu.memory_space<vmem>>, %arg3: memref<1x288xf32, #tpu.memory_space<vmem>>, %arg4: memref<288x128xf32, #tpu.memory_space<vmem>>, %arg5: memref<16x72xf32, #tpu.memory_space<vmem>>, %arg6: memref<16x1xf32, #tpu.memory_space<vmem>>, %arg7: memref<7x8x72xf32, #tpu.memory_space<vmem>>, %arg8: memref<7x8x1xf32, #tpu.memory_space<vmem>>, %arg9: memref<2x4x128xf32, #tpu.memory_space<vmem>>, %arg10: memref<2x4x128xf32, #tpu.memory_space<vmem>>, %arg11: memref<72x576xf32, #tpu.memory_space<vmem>>, %arg12: memref<8x768xf32, #tpu.memory_space<vmem>>, %arg13: memref<8x768xf32, #tpu.memory_space<vmem>>, %arg14: memref<8x768xf32, #tpu.memory_space<vmem>>) attributes {dimension_semantics = [#tpu.dimension_semantics<parallel>], iteration_bounds = array<i64: 1>, scalar_prefetch = 0 : i64, scratch_operands = 4 : i64, tpu.core_type = #tpu.core_type<tc>, window_params = [{transform_indices = @transform_0, window_bounds = array<i64: 2, 8, 384>}, {transform_indices = @transform_1, window_bounds = array<i64: 2, 8, 384>}, {pipeline_mode = #tpu.pipeline_mode<synchronous>, transform_indices = @transform_2, window_bounds = array<i64: 1, 288>}, {pipeline_mode = #tpu.pipeline_mode<synchronous>, transform_indices = @transform_3, window_bounds = array<i64: 288, 128>}, {pipeline_mode = #tpu.pipeline_mode<synchronous>, transform_indices = @transform_4, window_bounds = array<i64: 16, 72>}, {pipeline_mode = #tpu.pipeline_mode<synchronous>, transform_indices = @transform_5, window_bounds = array<i64: 16, 1>}, {pipeline_mode = #tpu.pipeline_mode<synchronous>, transform_indices = @transform_6, window_bounds = array<i64: 7, 8, 72>}, {pipeline_mode = #tpu.pipeline_mode<synchronous>, transform_indices = @transform_7, window_bounds = array<i64: 7, 8, 1>}, {transform_indices = @transform_8, window_bounds = array<i64: 2, 4, 128>}, {transform_indices = @transform_9, window_bounds = array<i64: 2, 4, 128>}]} {
    %cst = arith.constant 0.000000e+00 : f32
    %0 = vector.broadcast %cst : f32 to vector<8x768xf32>
    %c0 = arith.constant 0 : index
    %c0_0 = arith.constant 0 : index
    %1 = vector.load %arg12[%c0, %c0_0] : memref<8x768xf32, #tpu.memory_space<vmem>>, vector<8x768xf32>
    tpu.vector_store %arg12[%c0, %c0_0], %0 {strides = array<i32>} : memref<8x768xf32, #tpu.memory_space<vmem>>, vector<8x768xf32>,
    %cst_1 = arith.constant 0.000000e+00 : f32
    %2 = vector.broadcast %cst_1 : f32 to vector<8x768xf32>
    %c0_2 = arith.constant 0 : index
    %c0_3 = arith.constant 0 : index
    %3 = vector.load %arg13[%c0_2, %c0_3] : memref<8x768xf32, #tpu.memory_space<vmem>>, vector<8x768xf32>
    tpu.vector_store %arg13[%c0_2, %c0_3], %2 {strides = array<i32>} : memref<8x768xf32, #tpu.memory_space<vmem>>, vector<8x768xf32>,
    %cst_4 = arith.constant 0.000000e+00 : f32
    %4 = vector.broadcast %cst_4 : f32 to vector<8x768xf32>
    %c0_5 = arith.constant 0 : index
    %c0_6 = arith.constant 0 : index
    %5 = vector.load %arg14[%c0_5, %c0_6] : memref<8x768xf32, #tpu.memory_space<vmem>>, vector<8x768xf32>
    tpu.vector_store %arg14[%c0_5, %c0_6], %4 {strides = array<i32>} : memref<8x768xf32, #tpu.memory_space<vmem>>, vector<8x768xf32>,
    %c0_7 = arith.constant 0 : index
    %c0_8 = arith.constant 0 : index
    %6 = vector.load %arg3[%c0_7, %c0_8] : memref<1x288xf32, #tpu.memory_space<vmem>>, vector<1x288xf32>
    %7 = vector.shape_cast %6 : vector<1x288xf32> to vector<1x288xf32>
    %8 = vector.broadcast %7 : vector<1x288xf32> to vector<8x288xf32>
    %c0_9 = arith.constant 0 : index
    %c0_10 = arith.constant 0 : index
    %9 = vector.load %arg4[%c0_9, %c0_10] : memref<288x128xf32, #tpu.memory_space<vmem>>, vector<288x128xf32>
    %c0_11 = arith.constant 0 : index
    %c0_12 = arith.constant 0 : index
    %c0_13 = arith.constant 0 : index
    %10 = vector.load %arg1[%c0_11, %c0_12, %c0_13] : memref<2x8x384xf32, #tpu.memory_space<vmem>>, vector<1x8x288xf32>
    %11 = vector.shape_cast %10 : vector<1x8x288xf32> to vector<8x288xf32>
    %c0_14 = arith.constant 0 : index
    %c0_15 = arith.constant 0 : index
    %12 = vector.load %arg11[%c0_14, %c0_15] : memref<72x576xf32, #tpu.memory_space<vmem>>, vector<8x288xf32>
    tpu.vector_store %arg11[%c0_14, %c0_15], %11 {strides = array<i32>} : memref<72x576xf32, #tpu.memory_space<vmem>>, vector<8x288xf32>,
    %c1 = arith.constant 1 : index
    %c0_16 = arith.constant 0 : index
    %c0_17 = arith.constant 0 : index
    %13 = vector.load %arg1[%c1, %c0_16, %c0_17] : memref<2x8x384xf32, #tpu.memory_space<vmem>>, vector<1x8x288xf32>
    %14 = vector.shape_cast %13 : vector<1x8x288xf32> to vector<8x288xf32>
    %c0_18 = arith.constant 0 : index
    %c288 = arith.constant 288 : index
    %15 = vector.load %arg11[%c0_18, %c288] : memref<72x576xf32, #tpu.memory_space<vmem>>, vector<8x288xf32>
    tpu.vector_store %arg11[%c0_18, %c288], %14 {strides = array<i32>} : memref<72x576xf32, #tpu.memory_space<vmem>>, vector<8x288xf32>,
    %c0_19 = arith.constant 0 : index
    %c0_20 = arith.constant 0 : index
    %c1_21 = arith.constant 1 : index
    %16 = vector.load %arg1[%c0_19, %c0_20, %c1_21] : memref<2x8x384xf32, #tpu.memory_space<vmem>>, vector<1x8x288xf32>
    %17 = vector.shape_cast %16 : vector<1x8x288xf32> to vector<8x288xf32>
    %c8 = arith.constant 8 : index
    %c0_22 = arith.constant 0 : index
    %18 = vector.load %arg11[%c8, %c0_22] : memref<72x576xf32, #tpu.memory_space<vmem>>, vector<8x288xf32>
    tpu.vector_store %arg11[%c8, %c0_22], %17 {strides = array<i32>} : memref<72x576xf32, #tpu.memory_space<vmem>>, vector<8x288xf32>,
    %c1_23 = arith.constant 1 : index
    %c0_24 = arith.constant 0 : index
    %c1_25 = arith.constant 1 : index
    %19 = vector.load %arg1[%c1_23, %c0_24, %c1_25] : memref<2x8x384xf32, #tpu.memory_space<vmem>>, vector<1x8x288xf32>
    %20 = vector.shape_cast %19 : vector<1x8x288xf32> to vector<8x288xf32>
    %c8_26 = arith.constant 8 : index
    %c288_27 = arith.constant 288 : index
    %21 = vector.load %arg11[%c8_26, %c288_27] : memref<72x576xf32, #tpu.memory_space<vmem>>, vector<8x288xf32>
    tpu.vector_store %arg11[%c8_26, %c288_27], %20 {strides = array<i32>} : memref<72x576xf32, #tpu.memory_space<vmem>>, vector<8x288xf32>,
    %c0_28 = arith.constant 0 : index
    %c0_29 = arith.constant 0 : index
    %c2 = arith.constant 2 : index
    %22 = vector.load %arg1[%c0_28, %c0_29, %c2] : memref<2x8x384xf32, #tpu.memory_space<vmem>>, vector<1x8x288xf32>
    %23 = vector.shape_cast %22 : vector<1x8x288xf32> to vector<8x288xf32>
    %c16 = arith.constant 16 : index
    %c0_30 = arith.constant 0 : index
    %24 = vector.load %arg11[%c16, %c0_30] : memref<72x576xf32, #tpu.memory_space<vmem>>, vector<8x288xf32>
    tpu.vector_store %arg11[%c16, %c0_30], %23 {strides = array<i32>} : memref<72x576xf32, #tpu.memory_space<vmem>>, vector<8x288xf32>,
    %c1_31 = arith.constant 1 : index
    %c0_32 = arith.constant 0 : index
    %c2_33 = arith.constant 2 : index
    %25 = vector.load %arg1[%c1_31, %c0_32, %c2_33] : memref<2x8x384xf32, #tpu.memory_space<vmem>>, vector<1x8x288xf32>
    %26 = vector.shape_cast %25 : vector<1x8x288xf32> to vector<8x288xf32>
    %c16_34 = arith.constant 16 : index
    %c288_35 = arith.constant 288 : index
    %27 = vector.load %arg11[%c16_34, %c288_35] : memref<72x576xf32, #tpu.memory_space<vmem>>, vector<8x288xf32>
    tpu.vector_store %arg11[%c16_34, %c288_35], %26 {strides = array<i32>} : memref<72x576xf32, #tpu.memory_space<vmem>>, vector<8x288xf32>,
    %c0_36 = arith.constant 0 : index
    %c0_37 = arith.constant 0 : index
    %c18 = arith.constant 18 : index
    %28 = vector.load %arg1[%c0_36, %c0_37, %c18] : memref<2x8x384xf32, #tpu.memory_space<vmem>>, vector<1x8x288xf32>
    %29 = vector.shape_cast %28 : vector<1x8x288xf32> to vector<8x288xf32>
    %c24 = arith.constant 24 : index
    %c0_38 = arith.constant 0 : index
    %30 = vector.load %arg11[%c24, %c0_38] : memref<72x576xf32, #tpu.memory_space<vmem>>, vector<8x288xf32>
    tpu.vector_store %arg11[%c24, %c0_38], %29 {strides = array<i32>} : memref<72x576xf32, #tpu.memory_space<vmem>>, vector<8x288xf32>,
    %c1_39 = arith.constant 1 : index
    %c0_40 = arith.constant 0 : index
    %c18_41 = arith.constant 18 : index
    %31 = vector.load %arg1[%c1_39, %c0_40, %c18_41] : memref<2x8x384xf32, #tpu.memory_space<vmem>>, vector<1x8x288xf32>
    %32 = vector.shape_cast %31 : vector<1x8x288xf32> to vector<8x288xf32>
    %c24_42 = arith.constant 24 : index
    %c288_43 = arith.constant 288 : index
    %33 = vector.load %arg11[%c24_42, %c288_43] : memref<72x576xf32, #tpu.memory_space<vmem>>, vector<8x288xf32>
    tpu.vector_store %arg11[%c24_42, %c288_43], %32 {strides = array<i32>} : memref<72x576xf32, #tpu.memory_space<vmem>>, vector<8x288xf32>,
    %c0_44 = arith.constant 0 : index
    %c0_45 = arith.constant 0 : index
    %c19 = arith.constant 19 : index
    %34 = vector.load %arg1[%c0_44, %c0_45, %c19] : memref<2x8x384xf32, #tpu.memory_space<vmem>>, vector<1x8x288xf32>
    %35 = vector.shape_cast %34 : vector<1x8x288xf32> to vector<8x288xf32>
    %c32 = arith.constant 32 : index
    %c0_46 = arith.constant 0 : index
    %36 = vector.load %arg11[%c32, %c0_46] : memref<72x576xf32, #tpu.memory_space<vmem>>, vector<8x288xf32>
    tpu.vector_store %arg11[%c32, %c0_46], %35 {strides = array<i32>} : memref<72x576xf32, #tpu.memory_space<vmem>>, vector<8x288xf32>,
    %c1_47 = arith.constant 1 : index
    %c0_48 = arith.constant 0 : index
    %c19_49 = arith.constant 19 : index
    %37 = vector.load %arg1[%c1_47, %c0_48, %c19_49] : memref<2x8x384xf32, #tpu.memory_space<vmem>>, vector<1x8x288xf32>
    %38 = vector.shape_cast %37 : vector<1x8x288xf32> to vector<8x288xf32>
    %c32_50 = arith.constant 32 : index
    %c288_51 = arith.constant 288 : index
    %39 = vector.load %arg11[%c32_50, %c288_51] : memref<72x576xf32, #tpu.memory_space<vmem>>, vector<8x288xf32>
    tpu.vector_store %arg11[%c32_50, %c288_51], %38 {strides = array<i32>} : memref<72x576xf32, #tpu.memory_space<vmem>>, vector<8x288xf32>,
    %c0_52 = arith.constant 0 : index
    %c0_53 = arith.constant 0 : index
    %c20 = arith.constant 20 : index
    %40 = vector.load %arg1[%c0_52, %c0_53, %c20] : memref<2x8x384xf32, #tpu.memory_space<vmem>>, vector<1x8x288xf32>
    %41 = vector.shape_cast %40 : vector<1x8x288xf32> to vector<8x288xf32>
    %c40 = arith.constant 40 : index
    %c0_54 = arith.constant 0 : index
    %42 = vector.load %arg11[%c40, %c0_54] : memref<72x576xf32, #tpu.memory_space<vmem>>, vector<8x288xf32>
    tpu.vector_store %arg11[%c40, %c0_54], %41 {strides = array<i32>} : memref<72x576xf32, #tpu.memory_space<vmem>>, vector<8x288xf32>,
    %c1_55 = arith.constant 1 : index
    %c0_56 = arith.constant 0 : index
    %c20_57 = arith.constant 20 : index
    %43 = vector.load %arg1[%c1_55, %c0_56, %c20_57] : memref<2x8x384xf32, #tpu.memory_space<vmem>>, vector<1x8x288xf32>
    %44 = vector.shape_cast %43 : vector<1x8x288xf32> to vector<8x288xf32>
    %c40_58 = arith.constant 40 : index
    %c288_59 = arith.constant 288 : index
    %45 = vector.load %arg11[%c40_58, %c288_59] : memref<72x576xf32, #tpu.memory_space<vmem>>, vector<8x288xf32>
    tpu.vector_store %arg11[%c40_58, %c288_59], %44 {strides = array<i32>} : memref<72x576xf32, #tpu.memory_space<vmem>>, vector<8x288xf32>,
    %c0_60 = arith.constant 0 : index
    %c0_61 = arith.constant 0 : index
    %c36 = arith.constant 36 : index
    %46 = vector.load %arg1[%c0_60, %c0_61, %c36] : memref<2x8x384xf32, #tpu.memory_space<vmem>>, vector<1x8x288xf32>
    %47 = vector.shape_cast %46 : vector<1x8x288xf32> to vector<8x288xf32>
    %c48 = arith.constant 48 : index
    %c0_62 = arith.constant 0 : index
    %48 = vector.load %arg11[%c48, %c0_62] : memref<72x576xf32, #tpu.memory_space<vmem>>, vector<8x288xf32>
    tpu.vector_store %arg11[%c48, %c0_62], %47 {strides = array<i32>} : memref<72x576xf32, #tpu.memory_space<vmem>>, vector<8x288xf32>,
    %c1_63 = arith.constant 1 : index
    %c0_64 = arith.constant 0 : index
    %c36_65 = arith.constant 36 : index
    %49 = vector.load %arg1[%c1_63, %c0_64, %c36_65] : memref<2x8x384xf32, #tpu.memory_space<vmem>>, vector<1x8x288xf32>
    %50 = vector.shape_cast %49 : vector<1x8x288xf32> to vector<8x288xf32>
    %c48_66 = arith.constant 48 : index
    %c288_67 = arith.constant 288 : index
    %51 = vector.load %arg11[%c48_66, %c288_67] : memref<72x576xf32, #tpu.memory_space<vmem>>, vector<8x288xf32>
    tpu.vector_store %arg11[%c48_66, %c288_67], %50 {strides = array<i32>} : memref<72x576xf32, #tpu.memory_space<vmem>>, vector<8x288xf32>,
    %c0_68 = arith.constant 0 : index
    %c0_69 = arith.constant 0 : index
    %c37 = arith.constant 37 : index
    %52 = vector.load %arg1[%c0_68, %c0_69, %c37] : memref<2x8x384xf32, #tpu.memory_space<vmem>>, vector<1x8x288xf32>
    %53 = vector.shape_cast %52 : vector<1x8x288xf32> to vector<8x288xf32>
    %c56 = arith.constant 56 : index
    %c0_70 = arith.constant 0 : index
    %54 = vector.load %arg11[%c56, %c0_70] : memref<72x576xf32, #tpu.memory_space<vmem>>, vector<8x288xf32>
    tpu.vector_store %arg11[%c56, %c0_70], %53 {strides = array<i32>} : memref<72x576xf32, #tpu.memory_space<vmem>>, vector<8x288xf32>,
    %c1_71 = arith.constant 1 : index
    %c0_72 = arith.constant 0 : index
    %c37_73 = arith.constant 37 : index
    %55 = vector.load %arg1[%c1_71, %c0_72, %c37_73] : memref<2x8x384xf32, #tpu.memory_space<vmem>>, vector<1x8x288xf32>
    %56 = vector.shape_cast %55 : vector<1x8x288xf32> to vector<8x288xf32>
    %c56_74 = arith.constant 56 : index
    %c288_75 = arith.constant 288 : index
    %57 = vector.load %arg11[%c56_74, %c288_75] : memref<72x576xf32, #tpu.memory_space<vmem>>, vector<8x288xf32>
    tpu.vector_store %arg11[%c56_74, %c288_75], %56 {strides = array<i32>} : memref<72x576xf32, #tpu.memory_space<vmem>>, vector<8x288xf32>,
    %c0_76 = arith.constant 0 : index
    %c0_77 = arith.constant 0 : index
    %c38 = arith.constant 38 : index
    %58 = vector.load %arg1[%c0_76, %c0_77, %c38] : memref<2x8x384xf32, #tpu.memory_space<vmem>>, vector<1x8x288xf32>
    %59 = vector.shape_cast %58 : vector<1x8x288xf32> to vector<8x288xf32>
    %c64 = arith.constant 64 : index
    %c0_78 = arith.constant 0 : index
    %60 = vector.load %arg11[%c64, %c0_78] : memref<72x576xf32, #tpu.memory_space<vmem>>, vector<8x288xf32>
    tpu.vector_store %arg11[%c64, %c0_78], %59 {strides = array<i32>} : memref<72x576xf32, #tpu.memory_space<vmem>>, vector<8x288xf32>,
    %c1_79 = arith.constant 1 : index
    %c0_80 = arith.constant 0 : index
    %c38_81 = arith.constant 38 : index
    %61 = vector.load %arg1[%c1_79, %c0_80, %c38_81] : memref<2x8x384xf32, #tpu.memory_space<vmem>>, vector<1x8x288xf32>
    %62 = vector.shape_cast %61 : vector<1x8x288xf32> to vector<8x288xf32>
    %c64_82 = arith.constant 64 : index
    %c288_83 = arith.constant 288 : index
    %63 = vector.load %arg11[%c64_82, %c288_83] : memref<72x576xf32, #tpu.memory_space<vmem>>, vector<8x288xf32>
    tpu.vector_store %arg11[%c64_82, %c288_83], %62 {strides = array<i32>} : memref<72x576xf32, #tpu.memory_space<vmem>>, vector<8x288xf32>,
    %c0_84 = arith.constant 0 : index
    %c0_85 = arith.constant 0 : index
    %64 = vector.load %arg5[%c0_84, %c0_85] : memref<16x72xf32, #tpu.memory_space<vmem>>, vector<16x72xf32>
    %c0_86 = arith.constant 0 : index
    %c0_87 = arith.constant 0 : index
    %65 = vector.load %arg11[%c0_86, %c0_87] : memref<72x576xf32, #tpu.memory_space<vmem>>, vector<72x576xf32>
    %cst_88 = arith.constant dense<0.000000e+00> : vector<16x576xf32>
    %66 = tpu.matmul %64, %65, %cst_88 {dimension_numbers = #tpu.dot_dimension_numbers<[1], [0], [0], [1], [0, 0, 1, 1], [], []>} : vector<16x72xf32>, vector<72x576xf32>, vector<16x576xf32> -> vector<16x576xf32>
    %c0_89 = arith.constant 0 : index
    %c0_90 = arith.constant 0 : index
    %67 = vector.load %arg6[%c0_89, %c0_90] : memref<16x1xf32, #tpu.memory_space<vmem>>, vector<16x1xf32>
    %68 = vector.broadcast %67 : vector<16x1xf32> to vector<16x576xf32>
    %69 = arith.addf %66, %68 : vector<16x576xf32>
    %70 = vector.extract_strided_slice %69 {offsets = [0, 0], sizes = [8, 576], strides = [1, 1]} : vector<16x576xf32> to vector<8x576xf32>
    %71 = vector.extract_strided_slice %70 {offsets = [0, 0], sizes = [8, 288], strides = [1, 1]} : vector<8x576xf32> to vector<8x288xf32>
    %cst_91 = arith.constant 0.000000e+00 : f32
    %72 = vector.broadcast %cst_91 : f32 to vector<8x288xf32>
    %73 = arith.maximumf %71, %72 : vector<8x288xf32>
    %74 = arith.mulf %73, %8 : vector<8x288xf32>
    %c0_92 = arith.constant 0 : index
    %c19_93 = arith.constant 19 : index
    %75 = vector.load %arg12[%c0_92, %c19_93] : memref<8x768xf32, #tpu.memory_space<vmem>>, vector<8x288xf32>
    tpu.vector_store %arg12[%c0_92, %c19_93], %74 {strides = array<i32>} : memref<8x768xf32, #tpu.memory_space<vmem>>, vector<8x288xf32>,
    %76 = vector.extract_strided_slice %70 {offsets = [0, 288], sizes = [8, 288], strides = [1, 1]} : vector<8x576xf32> to vector<8x288xf32>
    %cst_94 = arith.constant 0.000000e+00 : f32
    %77 = vector.broadcast %cst_94 : f32 to vector<8x288xf32>
    %78 = arith.maximumf %76, %77 : vector<8x288xf32>
    %79 = arith.mulf %78, %8 : vector<8x288xf32>
    %c0_95 = arith.constant 0 : index
    %c403 = arith.constant 403 : index
    %80 = vector.load %arg12[%c0_95, %c403] : memref<8x768xf32, #tpu.memory_space<vmem>>, vector<8x288xf32>
    tpu.vector_store %arg12[%c0_95, %c403], %79 {strides = array<i32>} : memref<8x768xf32, #tpu.memory_space<vmem>>, vector<8x288xf32>,
    %c0_96 = arith.constant 0 : index
    %c0_97 = arith.constant 0 : index
    %81 = vector.load %arg12[%c0_96, %c0_97] : memref<8x768xf32, #tpu.memory_space<vmem>>, vector<8x288xf32>
    %c0_98 = arith.constant 0 : index
    %c0_99 = arith.constant 0 : index
    %82 = vector.load %arg11[%c0_98, %c0_99] : memref<72x576xf32, #tpu.memory_space<vmem>>, vector<8x288xf32>
    tpu.vector_store %arg11[%c0_98, %c0_99], %81 {strides = array<i32>} : memref<72x576xf32, #tpu.memory_space<vmem>>, vector<8x288xf32>,
    %c0_100 = arith.constant 0 : index
    %c384 = arith.constant 384 : index
    %83 = vector.load %arg12[%c0_100, %c384] : memref<8x768xf32, #tpu.memory_space<vmem>>, vector<8x288xf32>
    %c0_101 = arith.constant 0 : index
    %c288_102 = arith.constant 288 : index
    %84 = vector.load %arg11[%c0_101, %c288_102] : memref<72x576xf32, #tpu.memory_space<vmem>>, vector<8x288xf32>
    tpu.vector_store %arg11[%c0_101, %c288_102], %83 {strides = array<i32>} : memref<72x576xf32, #tpu.memory_space<vmem>>, vector<8x288xf32>,
    %c0_103 = arith.constant 0 : index
    %c1_104 = arith.constant 1 : index
    %85 = vector.load %arg12[%c0_103, %c1_104] : memref<8x768xf32, #tpu.memory_space<vmem>>, vector<8x288xf32>
    %c8_105 = arith.constant 8 : index
    %c0_106 = arith.constant 0 : index
    %86 = vector.load %arg11[%c8_105, %c0_106] : memref<72x576xf32, #tpu.memory_space<vmem>>, vector<8x288xf32>
    tpu.vector_store %arg11[%c8_105, %c0_106], %85 {strides = array<i32>} : memref<72x576xf32, #tpu.memory_space<vmem>>, vector<8x288xf32>,
    %c0_107 = arith.constant 0 : index
    %c385 = arith.constant 385 : index
    %87 = vector.load %arg12[%c0_107, %c385] : memref<8x768xf32, #tpu.memory_space<vmem>>, vector<8x288xf32>
    %c8_108 = arith.constant 8 : index
    %c288_109 = arith.constant 288 : index
    %88 = vector.load %arg11[%c8_108, %c288_109] : memref<72x576xf32, #tpu.memory_space<vmem>>, vector<8x288xf32>
    tpu.vector_store %arg11[%c8_108, %c288_109], %87 {strides = array<i32>} : memref<72x576xf32, #tpu.memory_space<vmem>>, vector<8x288xf32>,
    %c0_110 = arith.constant 0 : index
    %c2_111 = arith.constant 2 : index
    %89 = vector.load %arg12[%c0_110, %c2_111] : memref<8x768xf32, #tpu.memory_space<vmem>>, vector<8x288xf32>
    %c16_112 = arith.constant 16 : index
    %c0_113 = arith.constant 0 : index
    %90 = vector.load %arg11[%c16_112, %c0_113] : memref<72x576xf32, #tpu.memory_space<vmem>>, vector<8x288xf32>
    tpu.vector_store %arg11[%c16_112, %c0_113], %89 {strides = array<i32>} : memref<72x576xf32, #tpu.memory_space<vmem>>, vector<8x288xf32>,
    %c0_114 = arith.constant 0 : index
    %c386 = arith.constant 386 : index
    %91 = vector.load %arg12[%c0_114, %c386] : memref<8x768xf32, #tpu.memory_space<vmem>>, vector<8x288xf32>
    %c16_115 = arith.constant 16 : index
    %c288_116 = arith.constant 288 : index
    %92 = vector.load %arg11[%c16_115, %c288_116] : memref<72x576xf32, #tpu.memory_space<vmem>>, vector<8x288xf32>
    tpu.vector_store %arg11[%c16_115, %c288_116], %91 {strides = array<i32>} : memref<72x576xf32, #tpu.memory_space<vmem>>, vector<8x288xf32>,
    %c0_117 = arith.constant 0 : index
    %c18_118 = arith.constant 18 : index
    %93 = vector.load %arg12[%c0_117, %c18_118] : memref<8x768xf32, #tpu.memory_space<vmem>>, vector<8x288xf32>
    %c24_119 = arith.constant 24 : index
    %c0_120 = arith.constant 0 : index
    %94 = vector.load %arg11[%c24_119, %c0_120] : memref<72x576xf32, #tpu.memory_space<vmem>>, vector<8x288xf32>
    tpu.vector_store %arg11[%c24_119, %c0_120], %93 {strides = array<i32>} : memref<72x576xf32, #tpu.memory_space<vmem>>, vector<8x288xf32>,
    %c0_121 = arith.constant 0 : index
    %c402 = arith.constant 402 : index
    %95 = vector.load %arg12[%c0_121, %c402] : memref<8x768xf32, #tpu.memory_space<vmem>>, vector<8x288xf32>
    %c24_122 = arith.constant 24 : index
    %c288_123 = arith.constant 288 : index
    %96 = vector.load %arg11[%c24_122, %c288_123] : memref<72x576xf32, #tpu.memory_space<vmem>>, vector<8x288xf32>
    tpu.vector_store %arg11[%c24_122, %c288_123], %95 {strides = array<i32>} : memref<72x576xf32, #tpu.memory_space<vmem>>, vector<8x288xf32>,
    %c0_124 = arith.constant 0 : index
    %c19_125 = arith.constant 19 : index
    %97 = vector.load %arg12[%c0_124, %c19_125] : memref<8x768xf32, #tpu.memory_space<vmem>>, vector<8x288xf32>
    %c32_126 = arith.constant 32 : index
    %c0_127 = arith.constant 0 : index
    %98 = vector.load %arg11[%c32_126, %c0_127] : memref<72x576xf32, #tpu.memory_space<vmem>>, vector<8x288xf32>
    tpu.vector_store %arg11[%c32_126, %c0_127], %97 {strides = array<i32>} : memref<72x576xf32, #tpu.memory_space<vmem>>, vector<8x288xf32>,
    %c0_128 = arith.constant 0 : index
    %c403_129 = arith.constant 403 : index
    %99 = vector.load %arg12[%c0_128, %c403_129] : memref<8x768xf32, #tpu.memory_space<vmem>>, vector<8x288xf32>
    %c32_130 = arith.constant 32 : index
    %c288_131 = arith.constant 288 : index
    %100 = vector.load %arg11[%c32_130, %c288_131] : memref<72x576xf32, #tpu.memory_space<vmem>>, vector<8x288xf32>
    tpu.vector_store %arg11[%c32_130, %c288_131], %99 {strides = array<i32>} : memref<72x576xf32, #tpu.memory_space<vmem>>, vector<8x288xf32>,
    %c0_132 = arith.constant 0 : index
    %c20_133 = arith.constant 20 : index
    %101 = vector.load %arg12[%c0_132, %c20_133] : memref<8x768xf32, #tpu.memory_space<vmem>>, vector<8x288xf32>
    %c40_134 = arith.constant 40 : index
    %c0_135 = arith.constant 0 : index
    %102 = vector.load %arg11[%c40_134, %c0_135] : memref<72x576xf32, #tpu.memory_space<vmem>>, vector<8x288xf32>
    tpu.vector_store %arg11[%c40_134, %c0_135], %101 {strides = array<i32>} : memref<72x576xf32, #tpu.memory_space<vmem>>, vector<8x288xf32>,
    %c0_136 = arith.constant 0 : index
    %c404 = arith.constant 404 : index
    %103 = vector.load %arg12[%c0_136, %c404] : memref<8x768xf32, #tpu.memory_space<vmem>>, vector<8x288xf32>
    %c40_137 = arith.constant 40 : index
    %c288_138 = arith.constant 288 : index
    %104 = vector.load %arg11[%c40_137, %c288_138] : memref<72x576xf32, #tpu.memory_space<vmem>>, vector<8x288xf32>
    tpu.vector_store %arg11[%c40_137, %c288_138], %103 {strides = array<i32>} : memref<72x576xf32, #tpu.memory_space<vmem>>, vector<8x288xf32>,
    %c0_139 = arith.constant 0 : index
    %c36_140 = arith.constant 36 : index
    %105 = vector.load %arg12[%c0_139, %c36_140] : memref<8x768xf32, #tpu.memory_space<vmem>>, vector<8x288xf32>
    %c48_141 = arith.constant 48 : index
    %c0_142 = arith.constant 0 : index
    %106 = vector.load %arg11[%c48_141, %c0_142] : memref<72x576xf32, #tpu.memory_space<vmem>>, vector<8x288xf32>
    tpu.vector_store %arg11[%c48_141, %c0_142], %105 {strides = array<i32>} : memref<72x576xf32, #tpu.memory_space<vmem>>, vector<8x288xf32>,
    %c0_143 = arith.constant 0 : index
    %c420 = arith.constant 420 : index
    %107 = vector.load %arg12[%c0_143, %c420] : memref<8x768xf32, #tpu.memory_space<vmem>>, vector<8x288xf32>
    %c48_144 = arith.constant 48 : index
    %c288_145 = arith.constant 288 : index
    %108 = vector.load %arg11[%c48_144, %c288_145] : memref<72x576xf32, #tpu.memory_space<vmem>>, vector<8x288xf32>
    tpu.vector_store %arg11[%c48_144, %c288_145], %107 {strides = array<i32>} : memref<72x576xf32, #tpu.memory_space<vmem>>, vector<8x288xf32>,
    %c0_146 = arith.constant 0 : index
    %c37_147 = arith.constant 37 : index
    %109 = vector.load %arg12[%c0_146, %c37_147] : memref<8x768xf32, #tpu.memory_space<vmem>>, vector<8x288xf32>
    %c56_148 = arith.constant 56 : index
    %c0_149 = arith.constant 0 : index
    %110 = vector.load %arg11[%c56_148, %c0_149] : memref<72x576xf32, #tpu.memory_space<vmem>>, vector<8x288xf32>
    tpu.vector_store %arg11[%c56_148, %c0_149], %109 {strides = array<i32>} : memref<72x576xf32, #tpu.memory_space<vmem>>, vector<8x288xf32>,
    %c0_150 = arith.constant 0 : index
    %c421 = arith.constant 421 : index
    %111 = vector.load %arg12[%c0_150, %c421] : memref<8x768xf32, #tpu.memory_space<vmem>>, vector<8x288xf32>
    %c56_151 = arith.constant 56 : index
    %c288_152 = arith.constant 288 : index
    %112 = vector.load %arg11[%c56_151, %c288_152] : memref<72x576xf32, #tpu.memory_space<vmem>>, vector<8x288xf32>
    tpu.vector_store %arg11[%c56_151, %c288_152], %111 {strides = array<i32>} : memref<72x576xf32, #tpu.memory_space<vmem>>, vector<8x288xf32>,
    %c0_153 = arith.constant 0 : index
    %c38_154 = arith.constant 38 : index
    %113 = vector.load %arg12[%c0_153, %c38_154] : memref<8x768xf32, #tpu.memory_space<vmem>>, vector<8x288xf32>
    %c64_155 = arith.constant 64 : index
    %c0_156 = arith.constant 0 : index
    %114 = vector.load %arg11[%c64_155, %c0_156] : memref<72x576xf32, #tpu.memory_space<vmem>>, vector<8x288xf32>
    tpu.vector_store %arg11[%c64_155, %c0_156], %113 {strides = array<i32>} : memref<72x576xf32, #tpu.memory_space<vmem>>, vector<8x288xf32>,
    %c0_157 = arith.constant 0 : index
    %c422 = arith.constant 422 : index
    %115 = vector.load %arg12[%c0_157, %c422] : memref<8x768xf32, #tpu.memory_space<vmem>>, vector<8x288xf32>
    %c64_158 = arith.constant 64 : index
    %c288_159 = arith.constant 288 : index
    %116 = vector.load %arg11[%c64_158, %c288_159] : memref<72x576xf32, #tpu.memory_space<vmem>>, vector<8x288xf32>
    tpu.vector_store %arg11[%c64_158, %c288_159], %115 {strides = array<i32>} : memref<72x576xf32, #tpu.memory_space<vmem>>, vector<8x288xf32>,
    %c0_160 = arith.constant 0 : index
    %c0_161 = arith.constant 0 : index
    %c0_162 = arith.constant 0 : index
    %117 = vector.load %arg7[%c0_160, %c0_161, %c0_162] : memref<7x8x72xf32, #tpu.memory_space<vmem>>, vector<1x8x72xf32>
    %118 = vector.shape_cast %117 : vector<1x8x72xf32> to vector<8x72xf32>
    %c0_163 = arith.constant 0 : index
    %c0_164 = arith.constant 0 : index
    %c0_165 = arith.constant 0 : index
    %119 = vector.load %arg8[%c0_163, %c0_164, %c0_165] : memref<7x8x1xf32, #tpu.memory_space<vmem>>, vector<1x8x1xf32>
    %120 = vector.shape_cast %119 : vector<1x8x1xf32> to vector<8x1xf32>
    %c0_166 = arith.constant 0 : index
    %c0_167 = arith.constant 0 : index
    %121 = vector.load %arg11[%c0_166, %c0_167] : memref<72x576xf32, #tpu.memory_space<vmem>>, vector<72x576xf32>
    %cst_168 = arith.constant dense<0.000000e+00> : vector<8x576xf32>
    %122 = tpu.matmul %118, %121, %cst_168 {dimension_numbers = #tpu.dot_dimension_numbers<[1], [0], [0], [1], [0, 0, 1, 1], [], []>} : vector<8x72xf32>, vector<72x576xf32>, vector<8x576xf32> -> vector<8x576xf32>
    %123 = vector.broadcast %120 : vector<8x1xf32> to vector<8x576xf32>
    %124 = arith.addf %122, %123 : vector<8x576xf32>
    %125 = vector.extract_strided_slice %69 {offsets = [8, 0], sizes = [8, 288], strides = [1, 1]} : vector<16x576xf32> to vector<8x288xf32>
    %126 = vector.extract_strided_slice %124 {offsets = [0, 0], sizes = [8, 288], strides = [1, 1]} : vector<8x576xf32> to vector<8x288xf32>
    %127 = arith.addf %126, %125 : vector<8x288xf32>
    %cst_169 = arith.constant 0.000000e+00 : f32
    %128 = vector.broadcast %cst_169 : f32 to vector<8x288xf32>
    %129 = arith.maximumf %127, %128 : vector<8x288xf32>
    %130 = arith.mulf %129, %8 : vector<8x288xf32>
    %c0_170 = arith.constant 0 : index
    %c19_171 = arith.constant 19 : index
    %131 = vector.load %arg13[%c0_170, %c19_171] : memref<8x768xf32, #tpu.memory_space<vmem>>, vector<8x288xf32>
    tpu.vector_store %arg13[%c0_170, %c19_171], %130 {strides = array<i32>} : memref<8x768xf32, #tpu.memory_space<vmem>>, vector<8x288xf32>,
    %132 = vector.extract_strided_slice %69 {offsets = [8, 288], sizes = [8, 288], strides = [1, 1]} : vector<16x576xf32> to vector<8x288xf32>
    %133 = vector.extract_strided_slice %124 {offsets = [0, 288], sizes = [8, 288], strides = [1, 1]} : vector<8x576xf32> to vector<8x288xf32>
    %134 = arith.addf %133, %132 : vector<8x288xf32>
    %cst_172 = arith.constant 0.000000e+00 : f32
    %135 = vector.broadcast %cst_172 : f32 to vector<8x288xf32>
    %136 = arith.maximumf %134, %135 : vector<8x288xf32>
    %137 = arith.mulf %136, %8 : vector<8x288xf32>
    %c0_173 = arith.constant 0 : index
    %c403_174 = arith.constant 403 : index
    %138 = vector.load %arg13[%c0_173, %c403_174] : memref<8x768xf32, #tpu.memory_space<vmem>>, vector<8x288xf32>
    tpu.vector_store %arg13[%c0_173, %c403_174], %137 {strides = array<i32>} : memref<8x768xf32, #tpu.memory_space<vmem>>, vector<8x288xf32>,
    %c0_175 = arith.constant 0 : index
    %c0_176 = arith.constant 0 : index
    %139 = vector.load %arg13[%c0_175, %c0_176] : memref<8x768xf32, #tpu.memory_space<vmem>>, vector<8x288xf32>
    %c0_177 = arith.constant 0 : index
    %c0_178 = arith.constant 0 : index
    %140 = vector.load %arg11[%c0_177, %c0_178] : memref<72x576xf32, #tpu.memory_space<vmem>>, vector<8x288xf32>
    tpu.vector_store %arg11[%c0_177, %c0_178], %139 {strides = array<i32>} : memref<72x576xf32, #tpu.memory_space<vmem>>, vector<8x288xf32>,
    %c0_179 = arith.constant 0 : index
    %c384_180 = arith.constant 384 : index
    %141 = vector.load %arg13[%c0_179, %c384_180] : memref<8x768xf32, #tpu.memory_space<vmem>>, vector<8x288xf32>
    %c0_181 = arith.constant 0 : index
    %c288_182 = arith.constant 288 : index
    %142 = vector.load %arg11[%c0_181, %c288_182] : memref<72x576xf32, #tpu.memory_space<vmem>>, vector<8x288xf32>
    tpu.vector_store %arg11[%c0_181, %c288_182], %141 {strides = array<i32>} : memref<72x576xf32, #tpu.memory_space<vmem>>, vector<8x288xf32>,
    %c0_183 = arith.constant 0 : index
    %c1_184 = arith.constant 1 : index
    %143 = vector.load %arg13[%c0_183, %c1_184] : memref<8x768xf32, #tpu.memory_space<vmem>>, vector<8x288xf32>
    %c8_185 = arith.constant 8 : index
    %c0_186 = arith.constant 0 : index
    %144 = vector.load %arg11[%c8_185, %c0_186] : memref<72x576xf32, #tpu.memory_space<vmem>>, vector<8x288xf32>
    tpu.vector_store %arg11[%c8_185, %c0_186], %143 {strides = array<i32>} : memref<72x576xf32, #tpu.memory_space<vmem>>, vector<8x288xf32>,
    %c0_187 = arith.constant 0 : index
    %c385_188 = arith.constant 385 : index
    %145 = vector.load %arg13[%c0_187, %c385_188] : memref<8x768xf32, #tpu.memory_space<vmem>>, vector<8x288xf32>
    %c8_189 = arith.constant 8 : index
    %c288_190 = arith.constant 288 : index
    %146 = vector.load %arg11[%c8_189, %c288_190] : memref<72x576xf32, #tpu.memory_space<vmem>>, vector<8x288xf32>
    tpu.vector_store %arg11[%c8_189, %c288_190], %145 {strides = array<i32>} : memref<72x576xf32, #tpu.memory_space<vmem>>, vector<8x288xf32>,
    %c0_191 = arith.constant 0 : index
    %c2_192 = arith.constant 2 : index
    %147 = vector.load %arg13[%c0_191, %c2_192] : memref<8x768xf32, #tpu.memory_space<vmem>>, vector<8x288xf32>
    %c16_193 = arith.constant 16 : index
    %c0_194 = arith.constant 0 : index
    %148 = vector.load %arg11[%c16_193, %c0_194] : memref<72x576xf32, #tpu.memory_space<vmem>>, vector<8x288xf32>
    tpu.vector_store %arg11[%c16_193, %c0_194], %147 {strides = array<i32>} : memref<72x576xf32, #tpu.memory_space<vmem>>, vector<8x288xf32>,
    %c0_195 = arith.constant 0 : index
    %c386_196 = arith.constant 386 : index
    %149 = vector.load %arg13[%c0_195, %c386_196] : memref<8x768xf32, #tpu.memory_space<vmem>>, vector<8x288xf32>
    %c16_197 = arith.constant 16 : index
    %c288_198 = arith.constant 288 : index
    %150 = vector.load %arg11[%c16_197, %c288_198] : memref<72x576xf32, #tpu.memory_space<vmem>>, vector<8x288xf32>
    tpu.vector_store %arg11[%c16_197, %c288_198], %149 {strides = array<i32>} : memref<72x576xf32, #tpu.memory_space<vmem>>, vector<8x288xf32>,
    %c0_199 = arith.constant 0 : index
    %c18_200 = arith.constant 18 : index
    %151 = vector.load %arg13[%c0_199, %c18_200] : memref<8x768xf32, #tpu.memory_space<vmem>>, vector<8x288xf32>
    %c24_201 = arith.constant 24 : index
    %c0_202 = arith.constant 0 : index
    %152 = vector.load %arg11[%c24_201, %c0_202] : memref<72x576xf32, #tpu.memory_space<vmem>>, vector<8x288xf32>
    tpu.vector_store %arg11[%c24_201, %c0_202], %151 {strides = array<i32>} : memref<72x576xf32, #tpu.memory_space<vmem>>, vector<8x288xf32>,
    %c0_203 = arith.constant 0 : index
    %c402_204 = arith.constant 402 : index
    %153 = vector.load %arg13[%c0_203, %c402_204] : memref<8x768xf32, #tpu.memory_space<vmem>>, vector<8x288xf32>
    %c24_205 = arith.constant 24 : index
    %c288_206 = arith.constant 288 : index
    %154 = vector.load %arg11[%c24_205, %c288_206] : memref<72x576xf32, #tpu.memory_space<vmem>>, vector<8x288xf32>
    tpu.vector_store %arg11[%c24_205, %c288_206], %153 {strides = array<i32>} : memref<72x576xf32, #tpu.memory_space<vmem>>, vector<8x288xf32>,
    %c0_207 = arith.constant 0 : index
    %c19_208 = arith.constant 19 : index
    %155 = vector.load %arg13[%c0_207, %c19_208] : memref<8x768xf32, #tpu.memory_space<vmem>>, vector<8x288xf32>
    %c32_209 = arith.constant 32 : index
    %c0_210 = arith.constant 0 : index
    %156 = vector.load %arg11[%c32_209, %c0_210] : memref<72x576xf32, #tpu.memory_space<vmem>>, vector<8x288xf32>
    tpu.vector_store %arg11[%c32_209, %c0_210], %155 {strides = array<i32>} : memref<72x576xf32, #tpu.memory_space<vmem>>, vector<8x288xf32>,
    %c0_211 = arith.constant 0 : index
    %c403_212 = arith.constant 403 : index
    %157 = vector.load %arg13[%c0_211, %c403_212] : memref<8x768xf32, #tpu.memory_space<vmem>>, vector<8x288xf32>
    %c32_213 = arith.constant 32 : index
    %c288_214 = arith.constant 288 : index
    %158 = vector.load %arg11[%c32_213, %c288_214] : memref<72x576xf32, #tpu.memory_space<vmem>>, vector<8x288xf32>
    tpu.vector_store %arg11[%c32_213, %c288_214], %157 {strides = array<i32>} : memref<72x576xf32, #tpu.memory_space<vmem>>, vector<8x288xf32>,
    %c0_215 = arith.constant 0 : index
    %c20_216 = arith.constant 20 : index
    %159 = vector.load %arg13[%c0_215, %c20_216] : memref<8x768xf32, #tpu.memory_space<vmem>>, vector<8x288xf32>
    %c40_217 = arith.constant 40 : index
    %c0_218 = arith.constant 0 : index
    %160 = vector.load %arg11[%c40_217, %c0_218] : memref<72x576xf32, #tpu.memory_space<vmem>>, vector<8x288xf32>
    tpu.vector_store %arg11[%c40_217, %c0_218], %159 {strides = array<i32>} : memref<72x576xf32, #tpu.memory_space<vmem>>, vector<8x288xf32>,
    %c0_219 = arith.constant 0 : index
    %c404_220 = arith.constant 404 : index
    %161 = vector.load %arg13[%c0_219, %c404_220] : memref<8x768xf32, #tpu.memory_space<vmem>>, vector<8x288xf32>
    %c40_221 = arith.constant 40 : index
    %c288_222 = arith.constant 288 : index
    %162 = vector.load %arg11[%c40_221, %c288_222] : memref<72x576xf32, #tpu.memory_space<vmem>>, vector<8x288xf32>
    tpu.vector_store %arg11[%c40_221, %c288_222], %161 {strides = array<i32>} : memref<72x576xf32, #tpu.memory_space<vmem>>, vector<8x288xf32>,
    %c0_223 = arith.constant 0 : index
    %c36_224 = arith.constant 36 : index
    %163 = vector.load %arg13[%c0_223, %c36_224] : memref<8x768xf32, #tpu.memory_space<vmem>>, vector<8x288xf32>
    %c48_225 = arith.constant 48 : index
    %c0_226 = arith.constant 0 : index
    %164 = vector.load %arg11[%c48_225, %c0_226] : memref<72x576xf32, #tpu.memory_space<vmem>>, vector<8x288xf32>
    tpu.vector_store %arg11[%c48_225, %c0_226], %163 {strides = array<i32>} : memref<72x576xf32, #tpu.memory_space<vmem>>, vector<8x288xf32>,
    %c0_227 = arith.constant 0 : index
    %c420_228 = arith.constant 420 : index
    %165 = vector.load %arg13[%c0_227, %c420_228] : memref<8x768xf32, #tpu.memory_space<vmem>>, vector<8x288xf32>
    %c48_229 = arith.constant 48 : index
    %c288_230 = arith.constant 288 : index
    %166 = vector.load %arg11[%c48_229, %c288_230] : memref<72x576xf32, #tpu.memory_space<vmem>>, vector<8x288xf32>
    tpu.vector_store %arg11[%c48_229, %c288_230], %165 {strides = array<i32>} : memref<72x576xf32, #tpu.memory_space<vmem>>, vector<8x288xf32>,
    %c0_231 = arith.constant 0 : index
    %c37_232 = arith.constant 37 : index
    %167 = vector.load %arg13[%c0_231, %c37_232] : memref<8x768xf32, #tpu.memory_space<vmem>>, vector<8x288xf32>
    %c56_233 = arith.constant 56 : index
    %c0_234 = arith.constant 0 : index
    %168 = vector.load %arg11[%c56_233, %c0_234] : memref<72x576xf32, #tpu.memory_space<vmem>>, vector<8x288xf32>
    tpu.vector_store %arg11[%c56_233, %c0_234], %167 {strides = array<i32>} : memref<72x576xf32, #tpu.memory_space<vmem>>, vector<8x288xf32>,
    %c0_235 = arith.constant 0 : index
    %c421_236 = arith.constant 421 : index
    %169 = vector.load %arg13[%c0_235, %c421_236] : memref<8x768xf32, #tpu.memory_space<vmem>>, vector<8x288xf32>
    %c56_237 = arith.constant 56 : index
    %c288_238 = arith.constant 288 : index
    %170 = vector.load %arg11[%c56_237, %c288_238] : memref<72x576xf32, #tpu.memory_space<vmem>>, vector<8x288xf32>
    tpu.vector_store %arg11[%c56_237, %c288_238], %169 {strides = array<i32>} : memref<72x576xf32, #tpu.memory_space<vmem>>, vector<8x288xf32>,
    %c0_239 = arith.constant 0 : index
    %c38_240 = arith.constant 38 : index
    %171 = vector.load %arg13[%c0_239, %c38_240] : memref<8x768xf32, #tpu.memory_space<vmem>>, vector<8x288xf32>
    %c64_241 = arith.constant 64 : index
    %c0_242 = arith.constant 0 : index
    %172 = vector.load %arg11[%c64_241, %c0_242] : memref<72x576xf32, #tpu.memory_space<vmem>>, vector<8x288xf32>
    tpu.vector_store %arg11[%c64_241, %c0_242], %171 {strides = array<i32>} : memref<72x576xf32, #tpu.memory_space<vmem>>, vector<8x288xf32>,
    %c0_243 = arith.constant 0 : index
    %c422_244 = arith.constant 422 : index
    %173 = vector.load %arg13[%c0_243, %c422_244] : memref<8x768xf32, #tpu.memory_space<vmem>>, vector<8x288xf32>
    %c64_245 = arith.constant 64 : index
    %c288_246 = arith.constant 288 : index
    %174 = vector.load %arg11[%c64_245, %c288_246] : memref<72x576xf32, #tpu.memory_space<vmem>>, vector<8x288xf32>
    tpu.vector_store %arg11[%c64_245, %c288_246], %173 {strides = array<i32>} : memref<72x576xf32, #tpu.memory_space<vmem>>, vector<8x288xf32>,
    %c1_247 = arith.constant 1 : index
    %c0_248 = arith.constant 0 : index
    %c0_249 = arith.constant 0 : index
    %175 = vector.load %arg7[%c1_247, %c0_248, %c0_249] : memref<7x8x72xf32, #tpu.memory_space<vmem>>, vector<1x8x72xf32>
    %176 = vector.shape_cast %175 : vector<1x8x72xf32> to vector<8x72xf32>
    %c1_250 = arith.constant 1 : index
    %c0_251 = arith.constant 0 : index
    %c0_252 = arith.constant 0 : index
    %177 = vector.load %arg8[%c1_250, %c0_251, %c0_252] : memref<7x8x1xf32, #tpu.memory_space<vmem>>, vector<1x8x1xf32>
    %178 = vector.shape_cast %177 : vector<1x8x1xf32> to vector<8x1xf32>
    %c0_253 = arith.constant 0 : index
    %c0_254 = arith.constant 0 : index
    %179 = vector.load %arg11[%c0_253, %c0_254] : memref<72x576xf32, #tpu.memory_space<vmem>>, vector<72x576xf32>
    %cst_255 = arith.constant dense<0.000000e+00> : vector<8x576xf32>
    %180 = tpu.matmul %176, %179, %cst_255 {dimension_numbers = #tpu.dot_dimension_numbers<[1], [0], [0], [1], [0, 0, 1, 1], [], []>} : vector<8x72xf32>, vector<72x576xf32>, vector<8x576xf32> -> vector<8x576xf32>
    %181 = vector.broadcast %178 : vector<8x1xf32> to vector<8x576xf32>
    %182 = arith.addf %180, %181 : vector<8x576xf32>
    %c5 = arith.constant 5 : index
    %c0_256 = arith.constant 0 : index
    %c0_257 = arith.constant 0 : index
    %183 = vector.load %arg7[%c5, %c0_256, %c0_257] : memref<7x8x72xf32, #tpu.memory_space<vmem>>, vector<1x8x72xf32>
    %184 = vector.shape_cast %183 : vector<1x8x72xf32> to vector<8x72xf32>
    %c5_258 = arith.constant 5 : index
    %c0_259 = arith.constant 0 : index
    %c0_260 = arith.constant 0 : index
    %185 = vector.load %arg8[%c5_258, %c0_259, %c0_260] : memref<7x8x1xf32, #tpu.memory_space<vmem>>, vector<1x8x1xf32>
    %186 = vector.shape_cast %185 : vector<1x8x1xf32> to vector<8x1xf32>
    %c0_261 = arith.constant 0 : index
    %c0_262 = arith.constant 0 : index
    %187 = vector.load %arg11[%c0_261, %c0_262] : memref<72x576xf32, #tpu.memory_space<vmem>>, vector<72x576xf32>
    %cst_263 = arith.constant dense<0.000000e+00> : vector<8x576xf32>
    %188 = tpu.matmul %184, %187, %cst_263 {dimension_numbers = #tpu.dot_dimension_numbers<[1], [0], [0], [1], [0, 0, 1, 1], [], []>} : vector<8x72xf32>, vector<72x576xf32>, vector<8x576xf32> -> vector<8x576xf32>
    %189 = vector.broadcast %186 : vector<8x1xf32> to vector<8x576xf32>
    %190 = arith.addf %188, %189 : vector<8x576xf32>
    %191 = vector.extract_strided_slice %190 {offsets = [0, 0], sizes = [4, 288], strides = [1, 1]} : vector<8x576xf32> to vector<4x288xf32>
    %cst_264 = arith.constant dense<0.000000e+00> : vector<4x128xf32>
    %192 = tpu.matmul %191, %9, %cst_264 {dimension_numbers = #tpu.dot_dimension_numbers<[1], [0], [0], [1], [0, 0, 1, 1], [], []>} : vector<4x288xf32>, vector<288x128xf32>, vector<4x128xf32> -> vector<4x128xf32>
    %c0_265 = arith.constant 0 : index
    %c0_266 = arith.constant 0 : index
    %c0_267 = arith.constant 0 : index
    %193 = vector.load %arg10[%c0_265, %c0_266, %c0_267] : memref<2x4x128xf32, #tpu.memory_space<vmem>>, vector<1x4x128xf32>
    %194 = vector.shape_cast %193 : vector<1x4x128xf32> to vector<4x128xf32>
    %195 = vector.shape_cast %192 : vector<4x128xf32> to vector<1x4x128xf32>
    tpu.vector_store %arg10[%c0_265, %c0_266, %c0_267], %195 {strides = array<i32>} : memref<2x4x128xf32, #tpu.memory_space<vmem>>, vector<1x4x128xf32>,
    %196 = vector.extract_strided_slice %182 {offsets = [0, 0], sizes = [8, 288], strides = [1, 1]} : vector<8x576xf32> to vector<8x288xf32>
    %cst_268 = arith.constant 0.000000e+00 : f32
    %197 = vector.broadcast %cst_268 : f32 to vector<8x288xf32>
    %198 = arith.maximumf %196, %197 : vector<8x288xf32>
    %199 = arith.mulf %198, %8 : vector<8x288xf32>
    %c0_269 = arith.constant 0 : index
    %c19_270 = arith.constant 19 : index
    %200 = vector.load %arg12[%c0_269, %c19_270] : memref<8x768xf32, #tpu.memory_space<vmem>>, vector<8x288xf32>
    tpu.vector_store %arg12[%c0_269, %c19_270], %199 {strides = array<i32>} : memref<8x768xf32, #tpu.memory_space<vmem>>, vector<8x288xf32>,
    %201 = vector.extract_strided_slice %190 {offsets = [0, 288], sizes = [4, 288], strides = [1, 1]} : vector<8x576xf32> to vector<4x288xf32>
    %cst_271 = arith.constant dense<0.000000e+00> : vector<4x128xf32>
    %202 = tpu.matmul %201, %9, %cst_271 {dimension_numbers = #tpu.dot_dimension_numbers<[1], [0], [0], [1], [0, 0, 1, 1], [], []>} : vector<4x288xf32>, vector<288x128xf32>, vector<4x128xf32> -> vector<4x128xf32>
    %c1_272 = arith.constant 1 : index
    %c0_273 = arith.constant 0 : index
    %c0_274 = arith.constant 0 : index
    %203 = vector.load %arg10[%c1_272, %c0_273, %c0_274] : memref<2x4x128xf32, #tpu.memory_space<vmem>>, vector<1x4x128xf32>
    %204 = vector.shape_cast %203 : vector<1x4x128xf32> to vector<4x128xf32>
    %205 = vector.shape_cast %202 : vector<4x128xf32> to vector<1x4x128xf32>
    tpu.vector_store %arg10[%c1_272, %c0_273, %c0_274], %205 {strides = array<i32>} : memref<2x4x128xf32, #tpu.memory_space<vmem>>, vector<1x4x128xf32>,
    %206 = vector.extract_strided_slice %182 {offsets = [0, 288], sizes = [8, 288], strides = [1, 1]} : vector<8x576xf32> to vector<8x288xf32>
    %cst_275 = arith.constant 0.000000e+00 : f32
    %207 = vector.broadcast %cst_275 : f32 to vector<8x288xf32>
    %208 = arith.maximumf %206, %207 : vector<8x288xf32>
    %209 = arith.mulf %208, %8 : vector<8x288xf32>
    %c0_276 = arith.constant 0 : index
    %c403_277 = arith.constant 403 : index
    %210 = vector.load %arg12[%c0_276, %c403_277] : memref<8x768xf32, #tpu.memory_space<vmem>>, vector<8x288xf32>
    tpu.vector_store %arg12[%c0_276, %c403_277], %209 {strides = array<i32>} : memref<8x768xf32, #tpu.memory_space<vmem>>, vector<8x288xf32>,
    %c0_278 = arith.constant 0 : index
    %c0_279 = arith.constant 0 : index
    %211 = vector.load %arg12[%c0_278, %c0_279] : memref<8x768xf32, #tpu.memory_space<vmem>>, vector<8x288xf32>
    %c0_280 = arith.constant 0 : index
    %c0_281 = arith.constant 0 : index
    %212 = vector.load %arg11[%c0_280, %c0_281] : memref<72x576xf32, #tpu.memory_space<vmem>>, vector<8x288xf32>
    tpu.vector_store %arg11[%c0_280, %c0_281], %211 {strides = array<i32>} : memref<72x576xf32, #tpu.memory_space<vmem>>, vector<8x288xf32>,
    %c0_282 = arith.constant 0 : index
    %c384_283 = arith.constant 384 : index
    %213 = vector.load %arg12[%c0_282, %c384_283] : memref<8x768xf32, #tpu.memory_space<vmem>>, vector<8x288xf32>
    %c0_284 = arith.constant 0 : index
    %c288_285 = arith.constant 288 : index
    %214 = vector.load %arg11[%c0_284, %c288_285] : memref<72x576xf32, #tpu.memory_space<vmem>>, vector<8x288xf32>
    tpu.vector_store %arg11[%c0_284, %c288_285], %213 {strides = array<i32>} : memref<72x576xf32, #tpu.memory_space<vmem>>, vector<8x288xf32>,
    %c0_286 = arith.constant 0 : index
    %c1_287 = arith.constant 1 : index
    %215 = vector.load %arg12[%c0_286, %c1_287] : memref<8x768xf32, #tpu.memory_space<vmem>>, vector<8x288xf32>
    %c8_288 = arith.constant 8 : index
    %c0_289 = arith.constant 0 : index
    %216 = vector.load %arg11[%c8_288, %c0_289] : memref<72x576xf32, #tpu.memory_space<vmem>>, vector<8x288xf32>
    tpu.vector_store %arg11[%c8_288, %c0_289], %215 {strides = array<i32>} : memref<72x576xf32, #tpu.memory_space<vmem>>, vector<8x288xf32>,
    %c0_290 = arith.constant 0 : index
    %c385_291 = arith.constant 385 : index
    %217 = vector.load %arg12[%c0_290, %c385_291] : memref<8x768xf32, #tpu.memory_space<vmem>>, vector<8x288xf32>
    %c8_292 = arith.constant 8 : index
    %c288_293 = arith.constant 288 : index
    %218 = vector.load %arg11[%c8_292, %c288_293] : memref<72x576xf32, #tpu.memory_space<vmem>>, vector<8x288xf32>
    tpu.vector_store %arg11[%c8_292, %c288_293], %217 {strides = array<i32>} : memref<72x576xf32, #tpu.memory_space<vmem>>, vector<8x288xf32>,
    %c0_294 = arith.constant 0 : index
    %c2_295 = arith.constant 2 : index
    %219 = vector.load %arg12[%c0_294, %c2_295] : memref<8x768xf32, #tpu.memory_space<vmem>>, vector<8x288xf32>
    %c16_296 = arith.constant 16 : index
    %c0_297 = arith.constant 0 : index
    %220 = vector.load %arg11[%c16_296, %c0_297] : memref<72x576xf32, #tpu.memory_space<vmem>>, vector<8x288xf32>
    tpu.vector_store %arg11[%c16_296, %c0_297], %219 {strides = array<i32>} : memref<72x576xf32, #tpu.memory_space<vmem>>, vector<8x288xf32>,
    %c0_298 = arith.constant 0 : index
    %c386_299 = arith.constant 386 : index
    %221 = vector.load %arg12[%c0_298, %c386_299] : memref<8x768xf32, #tpu.memory_space<vmem>>, vector<8x288xf32>
    %c16_300 = arith.constant 16 : index
    %c288_301 = arith.constant 288 : index
    %222 = vector.load %arg11[%c16_300, %c288_301] : memref<72x576xf32, #tpu.memory_space<vmem>>, vector<8x288xf32>
    tpu.vector_store %arg11[%c16_300, %c288_301], %221 {strides = array<i32>} : memref<72x576xf32, #tpu.memory_space<vmem>>, vector<8x288xf32>,
    %c0_302 = arith.constant 0 : index
    %c18_303 = arith.constant 18 : index
    %223 = vector.load %arg12[%c0_302, %c18_303] : memref<8x768xf32, #tpu.memory_space<vmem>>, vector<8x288xf32>
    %c24_304 = arith.constant 24 : index
    %c0_305 = arith.constant 0 : index
    %224 = vector.load %arg11[%c24_304, %c0_305] : memref<72x576xf32, #tpu.memory_space<vmem>>, vector<8x288xf32>
    tpu.vector_store %arg11[%c24_304, %c0_305], %223 {strides = array<i32>} : memref<72x576xf32, #tpu.memory_space<vmem>>, vector<8x288xf32>,
    %c0_306 = arith.constant 0 : index
    %c402_307 = arith.constant 402 : index
    %225 = vector.load %arg12[%c0_306, %c402_307] : memref<8x768xf32, #tpu.memory_space<vmem>>, vector<8x288xf32>
    %c24_308 = arith.constant 24 : index
    %c288_309 = arith.constant 288 : index
    %226 = vector.load %arg11[%c24_308, %c288_309] : memref<72x576xf32, #tpu.memory_space<vmem>>, vector<8x288xf32>
    tpu.vector_store %arg11[%c24_308, %c288_309], %225 {strides = array<i32>} : memref<72x576xf32, #tpu.memory_space<vmem>>, vector<8x288xf32>,
    %c0_310 = arith.constant 0 : index
    %c19_311 = arith.constant 19 : index
    %227 = vector.load %arg12[%c0_310, %c19_311] : memref<8x768xf32, #tpu.memory_space<vmem>>, vector<8x288xf32>
    %c32_312 = arith.constant 32 : index
    %c0_313 = arith.constant 0 : index
    %228 = vector.load %arg11[%c32_312, %c0_313] : memref<72x576xf32, #tpu.memory_space<vmem>>, vector<8x288xf32>
    tpu.vector_store %arg11[%c32_312, %c0_313], %227 {strides = array<i32>} : memref<72x576xf32, #tpu.memory_space<vmem>>, vector<8x288xf32>,
    %c0_314 = arith.constant 0 : index
    %c403_315 = arith.constant 403 : index
    %229 = vector.load %arg12[%c0_314, %c403_315] : memref<8x768xf32, #tpu.memory_space<vmem>>, vector<8x288xf32>
    %c32_316 = arith.constant 32 : index
    %c288_317 = arith.constant 288 : index
    %230 = vector.load %arg11[%c32_316, %c288_317] : memref<72x576xf32, #tpu.memory_space<vmem>>, vector<8x288xf32>
    tpu.vector_store %arg11[%c32_316, %c288_317], %229 {strides = array<i32>} : memref<72x576xf32, #tpu.memory_space<vmem>>, vector<8x288xf32>,
    %c0_318 = arith.constant 0 : index
    %c20_319 = arith.constant 20 : index
    %231 = vector.load %arg12[%c0_318, %c20_319] : memref<8x768xf32, #tpu.memory_space<vmem>>, vector<8x288xf32>
    %c40_320 = arith.constant 40 : index
    %c0_321 = arith.constant 0 : index
    %232 = vector.load %arg11[%c40_320, %c0_321] : memref<72x576xf32, #tpu.memory_space<vmem>>, vector<8x288xf32>
    tpu.vector_store %arg11[%c40_320, %c0_321], %231 {strides = array<i32>} : memref<72x576xf32, #tpu.memory_space<vmem>>, vector<8x288xf32>,
    %c0_322 = arith.constant 0 : index
    %c404_323 = arith.constant 404 : index
    %233 = vector.load %arg12[%c0_322, %c404_323] : memref<8x768xf32, #tpu.memory_space<vmem>>, vector<8x288xf32>
    %c40_324 = arith.constant 40 : index
    %c288_325 = arith.constant 288 : index
    %234 = vector.load %arg11[%c40_324, %c288_325] : memref<72x576xf32, #tpu.memory_space<vmem>>, vector<8x288xf32>
    tpu.vector_store %arg11[%c40_324, %c288_325], %233 {strides = array<i32>} : memref<72x576xf32, #tpu.memory_space<vmem>>, vector<8x288xf32>,
    %c0_326 = arith.constant 0 : index
    %c36_327 = arith.constant 36 : index
    %235 = vector.load %arg12[%c0_326, %c36_327] : memref<8x768xf32, #tpu.memory_space<vmem>>, vector<8x288xf32>
    %c48_328 = arith.constant 48 : index
    %c0_329 = arith.constant 0 : index
    %236 = vector.load %arg11[%c48_328, %c0_329] : memref<72x576xf32, #tpu.memory_space<vmem>>, vector<8x288xf32>
    tpu.vector_store %arg11[%c48_328, %c0_329], %235 {strides = array<i32>} : memref<72x576xf32, #tpu.memory_space<vmem>>, vector<8x288xf32>,
    %c0_330 = arith.constant 0 : index
    %c420_331 = arith.constant 420 : index
    %237 = vector.load %arg12[%c0_330, %c420_331] : memref<8x768xf32, #tpu.memory_space<vmem>>, vector<8x288xf32>
    %c48_332 = arith.constant 48 : index
    %c288_333 = arith.constant 288 : index
    %238 = vector.load %arg11[%c48_332, %c288_333] : memref<72x576xf32, #tpu.memory_space<vmem>>, vector<8x288xf32>
    tpu.vector_store %arg11[%c48_332, %c288_333], %237 {strides = array<i32>} : memref<72x576xf32, #tpu.memory_space<vmem>>, vector<8x288xf32>,
    %c0_334 = arith.constant 0 : index
    %c37_335 = arith.constant 37 : index
    %239 = vector.load %arg12[%c0_334, %c37_335] : memref<8x768xf32, #tpu.memory_space<vmem>>, vector<8x288xf32>
    %c56_336 = arith.constant 56 : index
    %c0_337 = arith.constant 0 : index
    %240 = vector.load %arg11[%c56_336, %c0_337] : memref<72x576xf32, #tpu.memory_space<vmem>>, vector<8x288xf32>
    tpu.vector_store %arg11[%c56_336, %c0_337], %239 {strides = array<i32>} : memref<72x576xf32, #tpu.memory_space<vmem>>, vector<8x288xf32>,
    %c0_338 = arith.constant 0 : index
    %c421_339 = arith.constant 421 : index
    %241 = vector.load %arg12[%c0_338, %c421_339] : memref<8x768xf32, #tpu.memory_space<vmem>>, vector<8x288xf32>
    %c56_340 = arith.constant 56 : index
    %c288_341 = arith.constant 288 : index
    %242 = vector.load %arg11[%c56_340, %c288_341] : memref<72x576xf32, #tpu.memory_space<vmem>>, vector<8x288xf32>
    tpu.vector_store %arg11[%c56_340, %c288_341], %241 {strides = array<i32>} : memref<72x576xf32, #tpu.memory_space<vmem>>, vector<8x288xf32>,
    %c0_342 = arith.constant 0 : index
    %c38_343 = arith.constant 38 : index
    %243 = vector.load %arg12[%c0_342, %c38_343] : memref<8x768xf32, #tpu.memory_space<vmem>>, vector<8x288xf32>
    %c64_344 = arith.constant 64 : index
    %c0_345 = arith.constant 0 : index
    %244 = vector.load %arg11[%c64_344, %c0_345] : memref<72x576xf32, #tpu.memory_space<vmem>>, vector<8x288xf32>
    tpu.vector_store %arg11[%c64_344, %c0_345], %243 {strides = array<i32>} : memref<72x576xf32, #tpu.memory_space<vmem>>, vector<8x288xf32>,
    %c0_346 = arith.constant 0 : index
    %c422_347 = arith.constant 422 : index
    %245 = vector.load %arg12[%c0_346, %c422_347] : memref<8x768xf32, #tpu.memory_space<vmem>>, vector<8x288xf32>
    %c64_348 = arith.constant 64 : index
    %c288_349 = arith.constant 288 : index
    %246 = vector.load %arg11[%c64_348, %c288_349] : memref<72x576xf32, #tpu.memory_space<vmem>>, vector<8x288xf32>
    tpu.vector_store %arg11[%c64_348, %c288_349], %245 {strides = array<i32>} : memref<72x576xf32, #tpu.memory_space<vmem>>, vector<8x288xf32>,
    %c2_350 = arith.constant 2 : index
    %c0_351 = arith.constant 0 : index
    %c0_352 = arith.constant 0 : index
    %247 = vector.load %arg7[%c2_350, %c0_351, %c0_352] : memref<7x8x72xf32, #tpu.memory_space<vmem>>, vector<1x8x72xf32>
    %248 = vector.shape_cast %247 : vector<1x8x72xf32> to vector<8x72xf32>
    %c2_353 = arith.constant 2 : index
    %c0_354 = arith.constant 0 : index
    %c0_355 = arith.constant 0 : index
    %249 = vector.load %arg8[%c2_353, %c0_354, %c0_355] : memref<7x8x1xf32, #tpu.memory_space<vmem>>, vector<1x8x1xf32>
    %250 = vector.shape_cast %249 : vector<1x8x1xf32> to vector<8x1xf32>
    %c0_356 = arith.constant 0 : index
    %c0_357 = arith.constant 0 : index
    %251 = vector.load %arg11[%c0_356, %c0_357] : memref<72x576xf32, #tpu.memory_space<vmem>>, vector<72x576xf32>
    %cst_358 = arith.constant dense<0.000000e+00> : vector<8x576xf32>
    %252 = tpu.matmul %248, %251, %cst_358 {dimension_numbers = #tpu.dot_dimension_numbers<[1], [0], [0], [1], [0, 0, 1, 1], [], []>} : vector<8x72xf32>, vector<72x576xf32>, vector<8x576xf32> -> vector<8x576xf32>
    %253 = vector.broadcast %250 : vector<8x1xf32> to vector<8x576xf32>
    %254 = arith.addf %252, %253 : vector<8x576xf32>
    %255 = vector.extract_strided_slice %254 {offsets = [0, 0], sizes = [8, 288], strides = [1, 1]} : vector<8x576xf32> to vector<8x288xf32>
    %c0_359 = arith.constant 0 : index
    %c19_360 = arith.constant 19 : index
    %256 = vector.load %arg13[%c0_359, %c19_360] : memref<8x768xf32, #tpu.memory_space<vmem>>, vector<8x288xf32>
    %257 = arith.addf %255, %256 : vector<8x288xf32>
    %cst_361 = arith.constant 0.000000e+00 : f32
    %258 = vector.broadcast %cst_361 : f32 to vector<8x288xf32>
    %259 = arith.maximumf %257, %258 : vector<8x288xf32>
    %260 = arith.mulf %259, %8 : vector<8x288xf32>
    %c0_362 = arith.constant 0 : index
    %c19_363 = arith.constant 19 : index
    %261 = vector.load %arg14[%c0_362, %c19_363] : memref<8x768xf32, #tpu.memory_space<vmem>>, vector<8x288xf32>
    tpu.vector_store %arg14[%c0_362, %c19_363], %260 {strides = array<i32>} : memref<8x768xf32, #tpu.memory_space<vmem>>, vector<8x288xf32>,
    %262 = vector.extract_strided_slice %254 {offsets = [0, 288], sizes = [8, 288], strides = [1, 1]} : vector<8x576xf32> to vector<8x288xf32>
    %c0_364 = arith.constant 0 : index
    %c403_365 = arith.constant 403 : index
    %263 = vector.load %arg13[%c0_364, %c403_365] : memref<8x768xf32, #tpu.memory_space<vmem>>, vector<8x288xf32>
    %264 = arith.addf %262, %263 : vector<8x288xf32>
    %cst_366 = arith.constant 0.000000e+00 : f32
    %265 = vector.broadcast %cst_366 : f32 to vector<8x288xf32>
    %266 = arith.maximumf %264, %265 : vector<8x288xf32>
    %267 = arith.mulf %266, %8 : vector<8x288xf32>
    %c0_367 = arith.constant 0 : index
    %c403_368 = arith.constant 403 : index
    %268 = vector.load %arg14[%c0_367, %c403_368] : memref<8x768xf32, #tpu.memory_space<vmem>>, vector<8x288xf32>
    tpu.vector_store %arg14[%c0_367, %c403_368], %267 {strides = array<i32>} : memref<8x768xf32, #tpu.memory_space<vmem>>, vector<8x288xf32>,
    %c0_369 = arith.constant 0 : index
    %c0_370 = arith.constant 0 : index
    %269 = vector.load %arg14[%c0_369, %c0_370] : memref<8x768xf32, #tpu.memory_space<vmem>>, vector<8x288xf32>
    %c0_371 = arith.constant 0 : index
    %c0_372 = arith.constant 0 : index
    %270 = vector.load %arg11[%c0_371, %c0_372] : memref<72x576xf32, #tpu.memory_space<vmem>>, vector<8x288xf32>
    tpu.vector_store %arg11[%c0_371, %c0_372], %269 {strides = array<i32>} : memref<72x576xf32, #tpu.memory_space<vmem>>, vector<8x288xf32>,
    %c0_373 = arith.constant 0 : index
    %c384_374 = arith.constant 384 : index
    %271 = vector.load %arg14[%c0_373, %c384_374] : memref<8x768xf32, #tpu.memory_space<vmem>>, vector<8x288xf32>
    %c0_375 = arith.constant 0 : index
    %c288_376 = arith.constant 288 : index
    %272 = vector.load %arg11[%c0_375, %c288_376] : memref<72x576xf32, #tpu.memory_space<vmem>>, vector<8x288xf32>
    tpu.vector_store %arg11[%c0_375, %c288_376], %271 {strides = array<i32>} : memref<72x576xf32, #tpu.memory_space<vmem>>, vector<8x288xf32>,
    %c0_377 = arith.constant 0 : index
    %c1_378 = arith.constant 1 : index
    %273 = vector.load %arg14[%c0_377, %c1_378] : memref<8x768xf32, #tpu.memory_space<vmem>>, vector<8x288xf32>
    %c8_379 = arith.constant 8 : index
    %c0_380 = arith.constant 0 : index
    %274 = vector.load %arg11[%c8_379, %c0_380] : memref<72x576xf32, #tpu.memory_space<vmem>>, vector<8x288xf32>
    tpu.vector_store %arg11[%c8_379, %c0_380], %273 {strides = array<i32>} : memref<72x576xf32, #tpu.memory_space<vmem>>, vector<8x288xf32>,
    %c0_381 = arith.constant 0 : index
    %c385_382 = arith.constant 385 : index
    %275 = vector.load %arg14[%c0_381, %c385_382] : memref<8x768xf32, #tpu.memory_space<vmem>>, vector<8x288xf32>
    %c8_383 = arith.constant 8 : index
    %c288_384 = arith.constant 288 : index
    %276 = vector.load %arg11[%c8_383, %c288_384] : memref<72x576xf32, #tpu.memory_space<vmem>>, vector<8x288xf32>
    tpu.vector_store %arg11[%c8_383, %c288_384], %275 {strides = array<i32>} : memref<72x576xf32, #tpu.memory_space<vmem>>, vector<8x288xf32>,
    %c0_385 = arith.constant 0 : index
    %c2_386 = arith.constant 2 : index
    %277 = vector.load %arg14[%c0_385, %c2_386] : memref<8x768xf32, #tpu.memory_space<vmem>>, vector<8x288xf32>
    %c16_387 = arith.constant 16 : index
    %c0_388 = arith.constant 0 : index
    %278 = vector.load %arg11[%c16_387, %c0_388] : memref<72x576xf32, #tpu.memory_space<vmem>>, vector<8x288xf32>
    tpu.vector_store %arg11[%c16_387, %c0_388], %277 {strides = array<i32>} : memref<72x576xf32, #tpu.memory_space<vmem>>, vector<8x288xf32>,
    %c0_389 = arith.constant 0 : index
    %c386_390 = arith.constant 386 : index
    %279 = vector.load %arg14[%c0_389, %c386_390] : memref<8x768xf32, #tpu.memory_space<vmem>>, vector<8x288xf32>
    %c16_391 = arith.constant 16 : index
    %c288_392 = arith.constant 288 : index
    %280 = vector.load %arg11[%c16_391, %c288_392] : memref<72x576xf32, #tpu.memory_space<vmem>>, vector<8x288xf32>
    tpu.vector_store %arg11[%c16_391, %c288_392], %279 {strides = array<i32>} : memref<72x576xf32, #tpu.memory_space<vmem>>, vector<8x288xf32>,
    %c0_393 = arith.constant 0 : index
    %c18_394 = arith.constant 18 : index
    %281 = vector.load %arg14[%c0_393, %c18_394] : memref<8x768xf32, #tpu.memory_space<vmem>>, vector<8x288xf32>
    %c24_395 = arith.constant 24 : index
    %c0_396 = arith.constant 0 : index
    %282 = vector.load %arg11[%c24_395, %c0_396] : memref<72x576xf32, #tpu.memory_space<vmem>>, vector<8x288xf32>
    tpu.vector_store %arg11[%c24_395, %c0_396], %281 {strides = array<i32>} : memref<72x576xf32, #tpu.memory_space<vmem>>, vector<8x288xf32>,
    %c0_397 = arith.constant 0 : index
    %c402_398 = arith.constant 402 : index
    %283 = vector.load %arg14[%c0_397, %c402_398] : memref<8x768xf32, #tpu.memory_space<vmem>>, vector<8x288xf32>
    %c24_399 = arith.constant 24 : index
    %c288_400 = arith.constant 288 : index
    %284 = vector.load %arg11[%c24_399, %c288_400] : memref<72x576xf32, #tpu.memory_space<vmem>>, vector<8x288xf32>
    tpu.vector_store %arg11[%c24_399, %c288_400], %283 {strides = array<i32>} : memref<72x576xf32, #tpu.memory_space<vmem>>, vector<8x288xf32>,
    %c0_401 = arith.constant 0 : index
    %c19_402 = arith.constant 19 : index
    %285 = vector.load %arg14[%c0_401, %c19_402] : memref<8x768xf32, #tpu.memory_space<vmem>>, vector<8x288xf32>
    %c32_403 = arith.constant 32 : index
    %c0_404 = arith.constant 0 : index
    %286 = vector.load %arg11[%c32_403, %c0_404] : memref<72x576xf32, #tpu.memory_space<vmem>>, vector<8x288xf32>
    tpu.vector_store %arg11[%c32_403, %c0_404], %285 {strides = array<i32>} : memref<72x576xf32, #tpu.memory_space<vmem>>, vector<8x288xf32>,
    %c0_405 = arith.constant 0 : index
    %c403_406 = arith.constant 403 : index
    %287 = vector.load %arg14[%c0_405, %c403_406] : memref<8x768xf32, #tpu.memory_space<vmem>>, vector<8x288xf32>
    %c32_407 = arith.constant 32 : index
    %c288_408 = arith.constant 288 : index
    %288 = vector.load %arg11[%c32_407, %c288_408] : memref<72x576xf32, #tpu.memory_space<vmem>>, vector<8x288xf32>
    tpu.vector_store %arg11[%c32_407, %c288_408], %287 {strides = array<i32>} : memref<72x576xf32, #tpu.memory_space<vmem>>, vector<8x288xf32>,
    %c0_409 = arith.constant 0 : index
    %c20_410 = arith.constant 20 : index
    %289 = vector.load %arg14[%c0_409, %c20_410] : memref<8x768xf32, #tpu.memory_space<vmem>>, vector<8x288xf32>
    %c40_411 = arith.constant 40 : index
    %c0_412 = arith.constant 0 : index
    %290 = vector.load %arg11[%c40_411, %c0_412] : memref<72x576xf32, #tpu.memory_space<vmem>>, vector<8x288xf32>
    tpu.vector_store %arg11[%c40_411, %c0_412], %289 {strides = array<i32>} : memref<72x576xf32, #tpu.memory_space<vmem>>, vector<8x288xf32>,
    %c0_413 = arith.constant 0 : index
    %c404_414 = arith.constant 404 : index
    %291 = vector.load %arg14[%c0_413, %c404_414] : memref<8x768xf32, #tpu.memory_space<vmem>>, vector<8x288xf32>
    %c40_415 = arith.constant 40 : index
    %c288_416 = arith.constant 288 : index
    %292 = vector.load %arg11[%c40_415, %c288_416] : memref<72x576xf32, #tpu.memory_space<vmem>>, vector<8x288xf32>
    tpu.vector_store %arg11[%c40_415, %c288_416], %291 {strides = array<i32>} : memref<72x576xf32, #tpu.memory_space<vmem>>, vector<8x288xf32>,
    %c0_417 = arith.constant 0 : index
    %c36_418 = arith.constant 36 : index
    %293 = vector.load %arg14[%c0_417, %c36_418] : memref<8x768xf32, #tpu.memory_space<vmem>>, vector<8x288xf32>
    %c48_419 = arith.constant 48 : index
    %c0_420 = arith.constant 0 : index
    %294 = vector.load %arg11[%c48_419, %c0_420] : memref<72x576xf32, #tpu.memory_space<vmem>>, vector<8x288xf32>
    tpu.vector_store %arg11[%c48_419, %c0_420], %293 {strides = array<i32>} : memref<72x576xf32, #tpu.memory_space<vmem>>, vector<8x288xf32>,
    %c0_421 = arith.constant 0 : index
    %c420_422 = arith.constant 420 : index
    %295 = vector.load %arg14[%c0_421, %c420_422] : memref<8x768xf32, #tpu.memory_space<vmem>>, vector<8x288xf32>
    %c48_423 = arith.constant 48 : index
    %c288_424 = arith.constant 288 : index
    %296 = vector.load %arg11[%c48_423, %c288_424] : memref<72x576xf32, #tpu.memory_space<vmem>>, vector<8x288xf32>
    tpu.vector_store %arg11[%c48_423, %c288_424], %295 {strides = array<i32>} : memref<72x576xf32, #tpu.memory_space<vmem>>, vector<8x288xf32>,
    %c0_425 = arith.constant 0 : index
    %c37_426 = arith.constant 37 : index
    %297 = vector.load %arg14[%c0_425, %c37_426] : memref<8x768xf32, #tpu.memory_space<vmem>>, vector<8x288xf32>
    %c56_427 = arith.constant 56 : index
    %c0_428 = arith.constant 0 : index
    %298 = vector.load %arg11[%c56_427, %c0_428] : memref<72x576xf32, #tpu.memory_space<vmem>>, vector<8x288xf32>
    tpu.vector_store %arg11[%c56_427, %c0_428], %297 {strides = array<i32>} : memref<72x576xf32, #tpu.memory_space<vmem>>, vector<8x288xf32>,
    %c0_429 = arith.constant 0 : index
    %c421_430 = arith.constant 421 : index
    %299 = vector.load %arg14[%c0_429, %c421_430] : memref<8x768xf32, #tpu.memory_space<vmem>>, vector<8x288xf32>
    %c56_431 = arith.constant 56 : index
    %c288_432 = arith.constant 288 : index
    %300 = vector.load %arg11[%c56_431, %c288_432] : memref<72x576xf32, #tpu.memory_space<vmem>>, vector<8x288xf32>
    tpu.vector_store %arg11[%c56_431, %c288_432], %299 {strides = array<i32>} : memref<72x576xf32, #tpu.memory_space<vmem>>, vector<8x288xf32>,
    %c0_433 = arith.constant 0 : index
    %c38_434 = arith.constant 38 : index
    %301 = vector.load %arg14[%c0_433, %c38_434] : memref<8x768xf32, #tpu.memory_space<vmem>>, vector<8x288xf32>
    %c64_435 = arith.constant 64 : index
    %c0_436 = arith.constant 0 : index
    %302 = vector.load %arg11[%c64_435, %c0_436] : memref<72x576xf32, #tpu.memory_space<vmem>>, vector<8x288xf32>
    tpu.vector_store %arg11[%c64_435, %c0_436], %301 {strides = array<i32>} : memref<72x576xf32, #tpu.memory_space<vmem>>, vector<8x288xf32>,
    %c0_437 = arith.constant 0 : index
    %c422_438 = arith.constant 422 : index
    %303 = vector.load %arg14[%c0_437, %c422_438] : memref<8x768xf32, #tpu.memory_space<vmem>>, vector<8x288xf32>
    %c64_439 = arith.constant 64 : index
    %c288_440 = arith.constant 288 : index
    %304 = vector.load %arg11[%c64_439, %c288_440] : memref<72x576xf32, #tpu.memory_space<vmem>>, vector<8x288xf32>
    tpu.vector_store %arg11[%c64_439, %c288_440], %303 {strides = array<i32>} : memref<72x576xf32, #tpu.memory_space<vmem>>, vector<8x288xf32>,
    %c3 = arith.constant 3 : index
    %c0_441 = arith.constant 0 : index
    %c0_442 = arith.constant 0 : index
    %305 = vector.load %arg7[%c3, %c0_441, %c0_442] : memref<7x8x72xf32, #tpu.memory_space<vmem>>, vector<1x8x72xf32>
    %306 = vector.shape_cast %305 : vector<1x8x72xf32> to vector<8x72xf32>
    %c3_443 = arith.constant 3 : index
    %c0_444 = arith.constant 0 : index
    %c0_445 = arith.constant 0 : index
    %307 = vector.load %arg8[%c3_443, %c0_444, %c0_445] : memref<7x8x1xf32, #tpu.memory_space<vmem>>, vector<1x8x1xf32>
    %308 = vector.shape_cast %307 : vector<1x8x1xf32> to vector<8x1xf32>
    %c0_446 = arith.constant 0 : index
    %c0_447 = arith.constant 0 : index
    %309 = vector.load %arg11[%c0_446, %c0_447] : memref<72x576xf32, #tpu.memory_space<vmem>>, vector<72x576xf32>
    %cst_448 = arith.constant dense<0.000000e+00> : vector<8x576xf32>
    %310 = tpu.matmul %306, %309, %cst_448 {dimension_numbers = #tpu.dot_dimension_numbers<[1], [0], [0], [1], [0, 0, 1, 1], [], []>} : vector<8x72xf32>, vector<72x576xf32>, vector<8x576xf32> -> vector<8x576xf32>
    %311 = vector.broadcast %308 : vector<8x1xf32> to vector<8x576xf32>
    %312 = arith.addf %310, %311 : vector<8x576xf32>
    %313 = vector.extract_strided_slice %312 {offsets = [0, 0], sizes = [8, 288], strides = [1, 1]} : vector<8x576xf32> to vector<8x288xf32>
    %cst_449 = arith.constant 0.000000e+00 : f32
    %314 = vector.broadcast %cst_449 : f32 to vector<8x288xf32>
    %315 = arith.maximumf %313, %314 : vector<8x288xf32>
    %316 = arith.mulf %315, %8 : vector<8x288xf32>
    %c0_450 = arith.constant 0 : index
    %c19_451 = arith.constant 19 : index
    %317 = vector.load %arg12[%c0_450, %c19_451] : memref<8x768xf32, #tpu.memory_space<vmem>>, vector<8x288xf32>
    tpu.vector_store %arg12[%c0_450, %c19_451], %316 {strides = array<i32>} : memref<8x768xf32, #tpu.memory_space<vmem>>, vector<8x288xf32>,
    %318 = vector.extract_strided_slice %312 {offsets = [0, 288], sizes = [8, 288], strides = [1, 1]} : vector<8x576xf32> to vector<8x288xf32>
    %cst_452 = arith.constant 0.000000e+00 : f32
    %319 = vector.broadcast %cst_452 : f32 to vector<8x288xf32>
    %320 = arith.maximumf %318, %319 : vector<8x288xf32>
    %321 = arith.mulf %320, %8 : vector<8x288xf32>
    %c0_453 = arith.constant 0 : index
    %c403_454 = arith.constant 403 : index
    %322 = vector.load %arg12[%c0_453, %c403_454] : memref<8x768xf32, #tpu.memory_space<vmem>>, vector<8x288xf32>
    tpu.vector_store %arg12[%c0_453, %c403_454], %321 {strides = array<i32>} : memref<8x768xf32, #tpu.memory_space<vmem>>, vector<8x288xf32>,
    %c0_455 = arith.constant 0 : index
    %c0_456 = arith.constant 0 : index
    %323 = vector.load %arg12[%c0_455, %c0_456] : memref<8x768xf32, #tpu.memory_space<vmem>>, vector<8x288xf32>
    %c0_457 = arith.constant 0 : index
    %c0_458 = arith.constant 0 : index
    %324 = vector.load %arg11[%c0_457, %c0_458] : memref<72x576xf32, #tpu.memory_space<vmem>>, vector<8x288xf32>
    tpu.vector_store %arg11[%c0_457, %c0_458], %323 {strides = array<i32>} : memref<72x576xf32, #tpu.memory_space<vmem>>, vector<8x288xf32>,
    %c0_459 = arith.constant 0 : index
    %c384_460 = arith.constant 384 : index
    %325 = vector.load %arg12[%c0_459, %c384_460] : memref<8x768xf32, #tpu.memory_space<vmem>>, vector<8x288xf32>
    %c0_461 = arith.constant 0 : index
    %c288_462 = arith.constant 288 : index
    %326 = vector.load %arg11[%c0_461, %c288_462] : memref<72x576xf32, #tpu.memory_space<vmem>>, vector<8x288xf32>
    tpu.vector_store %arg11[%c0_461, %c288_462], %325 {strides = array<i32>} : memref<72x576xf32, #tpu.memory_space<vmem>>, vector<8x288xf32>,
    %c0_463 = arith.constant 0 : index
    %c1_464 = arith.constant 1 : index
    %327 = vector.load %arg12[%c0_463, %c1_464] : memref<8x768xf32, #tpu.memory_space<vmem>>, vector<8x288xf32>
    %c8_465 = arith.constant 8 : index
    %c0_466 = arith.constant 0 : index
    %328 = vector.load %arg11[%c8_465, %c0_466] : memref<72x576xf32, #tpu.memory_space<vmem>>, vector<8x288xf32>
    tpu.vector_store %arg11[%c8_465, %c0_466], %327 {strides = array<i32>} : memref<72x576xf32, #tpu.memory_space<vmem>>, vector<8x288xf32>,
    %c0_467 = arith.constant 0 : index
    %c385_468 = arith.constant 385 : index
    %329 = vector.load %arg12[%c0_467, %c385_468] : memref<8x768xf32, #tpu.memory_space<vmem>>, vector<8x288xf32>
    %c8_469 = arith.constant 8 : index
    %c288_470 = arith.constant 288 : index
    %330 = vector.load %arg11[%c8_469, %c288_470] : memref<72x576xf32, #tpu.memory_space<vmem>>, vector<8x288xf32>
    tpu.vector_store %arg11[%c8_469, %c288_470], %329 {strides = array<i32>} : memref<72x576xf32, #tpu.memory_space<vmem>>, vector<8x288xf32>,
    %c0_471 = arith.constant 0 : index
    %c2_472 = arith.constant 2 : index
    %331 = vector.load %arg12[%c0_471, %c2_472] : memref<8x768xf32, #tpu.memory_space<vmem>>, vector<8x288xf32>
    %c16_473 = arith.constant 16 : index
    %c0_474 = arith.constant 0 : index
    %332 = vector.load %arg11[%c16_473, %c0_474] : memref<72x576xf32, #tpu.memory_space<vmem>>, vector<8x288xf32>
    tpu.vector_store %arg11[%c16_473, %c0_474], %331 {strides = array<i32>} : memref<72x576xf32, #tpu.memory_space<vmem>>, vector<8x288xf32>,
    %c0_475 = arith.constant 0 : index
    %c386_476 = arith.constant 386 : index
    %333 = vector.load %arg12[%c0_475, %c386_476] : memref<8x768xf32, #tpu.memory_space<vmem>>, vector<8x288xf32>
    %c16_477 = arith.constant 16 : index
    %c288_478 = arith.constant 288 : index
    %334 = vector.load %arg11[%c16_477, %c288_478] : memref<72x576xf32, #tpu.memory_space<vmem>>, vector<8x288xf32>
    tpu.vector_store %arg11[%c16_477, %c288_478], %333 {strides = array<i32>} : memref<72x576xf32, #tpu.memory_space<vmem>>, vector<8x288xf32>,
    %c0_479 = arith.constant 0 : index
    %c18_480 = arith.constant 18 : index
    %335 = vector.load %arg12[%c0_479, %c18_480] : memref<8x768xf32, #tpu.memory_space<vmem>>, vector<8x288xf32>
    %c24_481 = arith.constant 24 : index
    %c0_482 = arith.constant 0 : index
    %336 = vector.load %arg11[%c24_481, %c0_482] : memref<72x576xf32, #tpu.memory_space<vmem>>, vector<8x288xf32>
    tpu.vector_store %arg11[%c24_481, %c0_482], %335 {strides = array<i32>} : memref<72x576xf32, #tpu.memory_space<vmem>>, vector<8x288xf32>,
    %c0_483 = arith.constant 0 : index
    %c402_484 = arith.constant 402 : index
    %337 = vector.load %arg12[%c0_483, %c402_484] : memref<8x768xf32, #tpu.memory_space<vmem>>, vector<8x288xf32>
    %c24_485 = arith.constant 24 : index
    %c288_486 = arith.constant 288 : index
    %338 = vector.load %arg11[%c24_485, %c288_486] : memref<72x576xf32, #tpu.memory_space<vmem>>, vector<8x288xf32>
    tpu.vector_store %arg11[%c24_485, %c288_486], %337 {strides = array<i32>} : memref<72x576xf32, #tpu.memory_space<vmem>>, vector<8x288xf32>,
    %c0_487 = arith.constant 0 : index
    %c19_488 = arith.constant 19 : index
    %339 = vector.load %arg12[%c0_487, %c19_488] : memref<8x768xf32, #tpu.memory_space<vmem>>, vector<8x288xf32>
    %c32_489 = arith.constant 32 : index
    %c0_490 = arith.constant 0 : index
    %340 = vector.load %arg11[%c32_489, %c0_490] : memref<72x576xf32, #tpu.memory_space<vmem>>, vector<8x288xf32>
    tpu.vector_store %arg11[%c32_489, %c0_490], %339 {strides = array<i32>} : memref<72x576xf32, #tpu.memory_space<vmem>>, vector<8x288xf32>,
    %c0_491 = arith.constant 0 : index
    %c403_492 = arith.constant 403 : index
    %341 = vector.load %arg12[%c0_491, %c403_492] : memref<8x768xf32, #tpu.memory_space<vmem>>, vector<8x288xf32>
    %c32_493 = arith.constant 32 : index
    %c288_494 = arith.constant 288 : index
    %342 = vector.load %arg11[%c32_493, %c288_494] : memref<72x576xf32, #tpu.memory_space<vmem>>, vector<8x288xf32>
    tpu.vector_store %arg11[%c32_493, %c288_494], %341 {strides = array<i32>} : memref<72x576xf32, #tpu.memory_space<vmem>>, vector<8x288xf32>,
    %c0_495 = arith.constant 0 : index
    %c20_496 = arith.constant 20 : index
    %343 = vector.load %arg12[%c0_495, %c20_496] : memref<8x768xf32, #tpu.memory_space<vmem>>, vector<8x288xf32>
    %c40_497 = arith.constant 40 : index
    %c0_498 = arith.constant 0 : index
    %344 = vector.load %arg11[%c40_497, %c0_498] : memref<72x576xf32, #tpu.memory_space<vmem>>, vector<8x288xf32>
    tpu.vector_store %arg11[%c40_497, %c0_498], %343 {strides = array<i32>} : memref<72x576xf32, #tpu.memory_space<vmem>>, vector<8x288xf32>,
    %c0_499 = arith.constant 0 : index
    %c404_500 = arith.constant 404 : index
    %345 = vector.load %arg12[%c0_499, %c404_500] : memref<8x768xf32, #tpu.memory_space<vmem>>, vector<8x288xf32>
    %c40_501 = arith.constant 40 : index
    %c288_502 = arith.constant 288 : index
    %346 = vector.load %arg11[%c40_501, %c288_502] : memref<72x576xf32, #tpu.memory_space<vmem>>, vector<8x288xf32>
    tpu.vector_store %arg11[%c40_501, %c288_502], %345 {strides = array<i32>} : memref<72x576xf32, #tpu.memory_space<vmem>>, vector<8x288xf32>,
    %c0_503 = arith.constant 0 : index
    %c36_504 = arith.constant 36 : index
    %347 = vector.load %arg12[%c0_503, %c36_504] : memref<8x768xf32, #tpu.memory_space<vmem>>, vector<8x288xf32>
    %c48_505 = arith.constant 48 : index
    %c0_506 = arith.constant 0 : index
    %348 = vector.load %arg11[%c48_505, %c0_506] : memref<72x576xf32, #tpu.memory_space<vmem>>, vector<8x288xf32>
    tpu.vector_store %arg11[%c48_505, %c0_506], %347 {strides = array<i32>} : memref<72x576xf32, #tpu.memory_space<vmem>>, vector<8x288xf32>,
    %c0_507 = arith.constant 0 : index
    %c420_508 = arith.constant 420 : index
    %349 = vector.load %arg12[%c0_507, %c420_508] : memref<8x768xf32, #tpu.memory_space<vmem>>, vector<8x288xf32>
    %c48_509 = arith.constant 48 : index
    %c288_510 = arith.constant 288 : index
    %350 = vector.load %arg11[%c48_509, %c288_510] : memref<72x576xf32, #tpu.memory_space<vmem>>, vector<8x288xf32>
    tpu.vector_store %arg11[%c48_509, %c288_510], %349 {strides = array<i32>} : memref<72x576xf32, #tpu.memory_space<vmem>>, vector<8x288xf32>,
    %c0_511 = arith.constant 0 : index
    %c37_512 = arith.constant 37 : index
    %351 = vector.load %arg12[%c0_511, %c37_512] : memref<8x768xf32, #tpu.memory_space<vmem>>, vector<8x288xf32>
    %c56_513 = arith.constant 56 : index
    %c0_514 = arith.constant 0 : index
    %352 = vector.load %arg11[%c56_513, %c0_514] : memref<72x576xf32, #tpu.memory_space<vmem>>, vector<8x288xf32>
    tpu.vector_store %arg11[%c56_513, %c0_514], %351 {strides = array<i32>} : memref<72x576xf32, #tpu.memory_space<vmem>>, vector<8x288xf32>,
    %c0_515 = arith.constant 0 : index
    %c421_516 = arith.constant 421 : index
    %353 = vector.load %arg12[%c0_515, %c421_516] : memref<8x768xf32, #tpu.memory_space<vmem>>, vector<8x288xf32>
    %c56_517 = arith.constant 56 : index
    %c288_518 = arith.constant 288 : index
    %354 = vector.load %arg11[%c56_517, %c288_518] : memref<72x576xf32, #tpu.memory_space<vmem>>, vector<8x288xf32>
    tpu.vector_store %arg11[%c56_517, %c288_518], %353 {strides = array<i32>} : memref<72x576xf32, #tpu.memory_space<vmem>>, vector<8x288xf32>,
    %c0_519 = arith.constant 0 : index
    %c38_520 = arith.constant 38 : index
    %355 = vector.load %arg12[%c0_519, %c38_520] : memref<8x768xf32, #tpu.memory_space<vmem>>, vector<8x288xf32>
    %c64_521 = arith.constant 64 : index
    %c0_522 = arith.constant 0 : index
    %356 = vector.load %arg11[%c64_521, %c0_522] : memref<72x576xf32, #tpu.memory_space<vmem>>, vector<8x288xf32>
    tpu.vector_store %arg11[%c64_521, %c0_522], %355 {strides = array<i32>} : memref<72x576xf32, #tpu.memory_space<vmem>>, vector<8x288xf32>,
    %c0_523 = arith.constant 0 : index
    %c422_524 = arith.constant 422 : index
    %357 = vector.load %arg12[%c0_523, %c422_524] : memref<8x768xf32, #tpu.memory_space<vmem>>, vector<8x288xf32>
    %c64_525 = arith.constant 64 : index
    %c288_526 = arith.constant 288 : index
    %358 = vector.load %arg11[%c64_525, %c288_526] : memref<72x576xf32, #tpu.memory_space<vmem>>, vector<8x288xf32>
    tpu.vector_store %arg11[%c64_525, %c288_526], %357 {strides = array<i32>} : memref<72x576xf32, #tpu.memory_space<vmem>>, vector<8x288xf32>,
    %c4 = arith.constant 4 : index
    %c0_527 = arith.constant 0 : index
    %c0_528 = arith.constant 0 : index
    %359 = vector.load %arg7[%c4, %c0_527, %c0_528] : memref<7x8x72xf32, #tpu.memory_space<vmem>>, vector<1x8x72xf32>
    %360 = vector.shape_cast %359 : vector<1x8x72xf32> to vector<8x72xf32>
    %c4_529 = arith.constant 4 : index
    %c0_530 = arith.constant 0 : index
    %c0_531 = arith.constant 0 : index
    %361 = vector.load %arg8[%c4_529, %c0_530, %c0_531] : memref<7x8x1xf32, #tpu.memory_space<vmem>>, vector<1x8x1xf32>
    %362 = vector.shape_cast %361 : vector<1x8x1xf32> to vector<8x1xf32>
    %c0_532 = arith.constant 0 : index
    %c0_533 = arith.constant 0 : index
    %363 = vector.load %arg11[%c0_532, %c0_533] : memref<72x576xf32, #tpu.memory_space<vmem>>, vector<72x576xf32>
    %cst_534 = arith.constant dense<0.000000e+00> : vector<8x576xf32>
    %364 = tpu.matmul %360, %363, %cst_534 {dimension_numbers = #tpu.dot_dimension_numbers<[1], [0], [0], [1], [0, 0, 1, 1], [], []>} : vector<8x72xf32>, vector<72x576xf32>, vector<8x576xf32> -> vector<8x576xf32>
    %365 = vector.broadcast %362 : vector<8x1xf32> to vector<8x576xf32>
    %366 = arith.addf %364, %365 : vector<8x576xf32>
    %367 = vector.extract_strided_slice %366 {offsets = [0, 0], sizes = [8, 288], strides = [1, 1]} : vector<8x576xf32> to vector<8x288xf32>
    %c0_535 = arith.constant 0 : index
    %c19_536 = arith.constant 19 : index
    %368 = vector.load %arg14[%c0_535, %c19_536] : memref<8x768xf32, #tpu.memory_space<vmem>>, vector<8x288xf32>
    %369 = arith.addf %367, %368 : vector<8x288xf32>
    %cst_537 = arith.constant 0.000000e+00 : f32
    %370 = vector.broadcast %cst_537 : f32 to vector<8x288xf32>
    %371 = arith.maximumf %369, %370 : vector<8x288xf32>
    %372 = arith.mulf %371, %8 : vector<8x288xf32>
    %c0_538 = arith.constant 0 : index
    %c0_539 = arith.constant 0 : index
    %c19_540 = arith.constant 19 : index
    %373 = vector.load %arg2[%c0_538, %c0_539, %c19_540] : memref<2x8x384xf32, #tpu.memory_space<vmem>>, vector<1x8x288xf32>
    %374 = vector.shape_cast %373 : vector<1x8x288xf32> to vector<8x288xf32>
    %375 = arith.addf %372, %374 : vector<8x288xf32>
    %c0_541 = arith.constant 0 : index
    %c19_542 = arith.constant 19 : index
    %376 = vector.load %arg12[%c0_541, %c19_542] : memref<8x768xf32, #tpu.memory_space<vmem>>, vector<8x288xf32>
    tpu.vector_store %arg12[%c0_541, %c19_542], %375 {strides = array<i32>} : memref<8x768xf32, #tpu.memory_space<vmem>>, vector<8x288xf32>,
    %377 = vector.extract_strided_slice %366 {offsets = [0, 288], sizes = [8, 288], strides = [1, 1]} : vector<8x576xf32> to vector<8x288xf32>
    %c0_543 = arith.constant 0 : index
    %c403_544 = arith.constant 403 : index
    %378 = vector.load %arg14[%c0_543, %c403_544] : memref<8x768xf32, #tpu.memory_space<vmem>>, vector<8x288xf32>
    %379 = arith.addf %377, %378 : vector<8x288xf32>
    %cst_545 = arith.constant 0.000000e+00 : f32
    %380 = vector.broadcast %cst_545 : f32 to vector<8x288xf32>
    %381 = arith.maximumf %379, %380 : vector<8x288xf32>
    %382 = arith.mulf %381, %8 : vector<8x288xf32>
    %c1_546 = arith.constant 1 : index
    %c0_547 = arith.constant 0 : index
    %c19_548 = arith.constant 19 : index
    %383 = vector.load %arg2[%c1_546, %c0_547, %c19_548] : memref<2x8x384xf32, #tpu.memory_space<vmem>>, vector<1x8x288xf32>
    %384 = vector.shape_cast %383 : vector<1x8x288xf32> to vector<8x288xf32>
    %385 = arith.addf %382, %384 : vector<8x288xf32>
    %c0_549 = arith.constant 0 : index
    %c403_550 = arith.constant 403 : index
    %386 = vector.load %arg12[%c0_549, %c403_550] : memref<8x768xf32, #tpu.memory_space<vmem>>, vector<8x288xf32>
    tpu.vector_store %arg12[%c0_549, %c403_550], %385 {strides = array<i32>} : memref<8x768xf32, #tpu.memory_space<vmem>>, vector<8x288xf32>,
    %c0_551 = arith.constant 0 : index
    %c0_552 = arith.constant 0 : index
    %387 = vector.load %arg12[%c0_551, %c0_552] : memref<8x768xf32, #tpu.memory_space<vmem>>, vector<8x288xf32>
    %c0_553 = arith.constant 0 : index
    %c0_554 = arith.constant 0 : index
    %388 = vector.load %arg11[%c0_553, %c0_554] : memref<72x576xf32, #tpu.memory_space<vmem>>, vector<8x288xf32>
    tpu.vector_store %arg11[%c0_553, %c0_554], %387 {strides = array<i32>} : memref<72x576xf32, #tpu.memory_space<vmem>>, vector<8x288xf32>,
    %c0_555 = arith.constant 0 : index
    %c384_556 = arith.constant 384 : index
    %389 = vector.load %arg12[%c0_555, %c384_556] : memref<8x768xf32, #tpu.memory_space<vmem>>, vector<8x288xf32>
    %c0_557 = arith.constant 0 : index
    %c288_558 = arith.constant 288 : index
    %390 = vector.load %arg11[%c0_557, %c288_558] : memref<72x576xf32, #tpu.memory_space<vmem>>, vector<8x288xf32>
    tpu.vector_store %arg11[%c0_557, %c288_558], %389 {strides = array<i32>} : memref<72x576xf32, #tpu.memory_space<vmem>>, vector<8x288xf32>,
    %c0_559 = arith.constant 0 : index
    %c1_560 = arith.constant 1 : index
    %391 = vector.load %arg12[%c0_559, %c1_560] : memref<8x768xf32, #tpu.memory_space<vmem>>, vector<8x288xf32>
    %c8_561 = arith.constant 8 : index
    %c0_562 = arith.constant 0 : index
    %392 = vector.load %arg11[%c8_561, %c0_562] : memref<72x576xf32, #tpu.memory_space<vmem>>, vector<8x288xf32>
    tpu.vector_store %arg11[%c8_561, %c0_562], %391 {strides = array<i32>} : memref<72x576xf32, #tpu.memory_space<vmem>>, vector<8x288xf32>,
    %c0_563 = arith.constant 0 : index
    %c385_564 = arith.constant 385 : index
    %393 = vector.load %arg12[%c0_563, %c385_564] : memref<8x768xf32, #tpu.memory_space<vmem>>, vector<8x288xf32>
    %c8_565 = arith.constant 8 : index
    %c288_566 = arith.constant 288 : index
    %394 = vector.load %arg11[%c8_565, %c288_566] : memref<72x576xf32, #tpu.memory_space<vmem>>, vector<8x288xf32>
    tpu.vector_store %arg11[%c8_565, %c288_566], %393 {strides = array<i32>} : memref<72x576xf32, #tpu.memory_space<vmem>>, vector<8x288xf32>,
    %c0_567 = arith.constant 0 : index
    %c2_568 = arith.constant 2 : index
    %395 = vector.load %arg12[%c0_567, %c2_568] : memref<8x768xf32, #tpu.memory_space<vmem>>, vector<8x288xf32>
    %c16_569 = arith.constant 16 : index
    %c0_570 = arith.constant 0 : index
    %396 = vector.load %arg11[%c16_569, %c0_570] : memref<72x576xf32, #tpu.memory_space<vmem>>, vector<8x288xf32>
    tpu.vector_store %arg11[%c16_569, %c0_570], %395 {strides = array<i32>} : memref<72x576xf32, #tpu.memory_space<vmem>>, vector<8x288xf32>,
    %c0_571 = arith.constant 0 : index
    %c386_572 = arith.constant 386 : index
    %397 = vector.load %arg12[%c0_571, %c386_572] : memref<8x768xf32, #tpu.memory_space<vmem>>, vector<8x288xf32>
    %c16_573 = arith.constant 16 : index
    %c288_574 = arith.constant 288 : index
    %398 = vector.load %arg11[%c16_573, %c288_574] : memref<72x576xf32, #tpu.memory_space<vmem>>, vector<8x288xf32>
    tpu.vector_store %arg11[%c16_573, %c288_574], %397 {strides = array<i32>} : memref<72x576xf32, #tpu.memory_space<vmem>>, vector<8x288xf32>,
    %c0_575 = arith.constant 0 : index
    %c18_576 = arith.constant 18 : index
    %399 = vector.load %arg12[%c0_575, %c18_576] : memref<8x768xf32, #tpu.memory_space<vmem>>, vector<8x288xf32>
    %c24_577 = arith.constant 24 : index
    %c0_578 = arith.constant 0 : index
    %400 = vector.load %arg11[%c24_577, %c0_578] : memref<72x576xf32, #tpu.memory_space<vmem>>, vector<8x288xf32>
    tpu.vector_store %arg11[%c24_577, %c0_578], %399 {strides = array<i32>} : memref<72x576xf32, #tpu.memory_space<vmem>>, vector<8x288xf32>,
    %c0_579 = arith.constant 0 : index
    %c402_580 = arith.constant 402 : index
    %401 = vector.load %arg12[%c0_579, %c402_580] : memref<8x768xf32, #tpu.memory_space<vmem>>, vector<8x288xf32>
    %c24_581 = arith.constant 24 : index
    %c288_582 = arith.constant 288 : index
    %402 = vector.load %arg11[%c24_581, %c288_582] : memref<72x576xf32, #tpu.memory_space<vmem>>, vector<8x288xf32>
    tpu.vector_store %arg11[%c24_581, %c288_582], %401 {strides = array<i32>} : memref<72x576xf32, #tpu.memory_space<vmem>>, vector<8x288xf32>,
    %c0_583 = arith.constant 0 : index
    %c19_584 = arith.constant 19 : index
    %403 = vector.load %arg12[%c0_583, %c19_584] : memref<8x768xf32, #tpu.memory_space<vmem>>, vector<8x288xf32>
    %c32_585 = arith.constant 32 : index
    %c0_586 = arith.constant 0 : index
    %404 = vector.load %arg11[%c32_585, %c0_586] : memref<72x576xf32, #tpu.memory_space<vmem>>, vector<8x288xf32>
    tpu.vector_store %arg11[%c32_585, %c0_586], %403 {strides = array<i32>} : memref<72x576xf32, #tpu.memory_space<vmem>>, vector<8x288xf32>,
    %c0_587 = arith.constant 0 : index
    %c403_588 = arith.constant 403 : index
    %405 = vector.load %arg12[%c0_587, %c403_588] : memref<8x768xf32, #tpu.memory_space<vmem>>, vector<8x288xf32>
    %c32_589 = arith.constant 32 : index
    %c288_590 = arith.constant 288 : index
    %406 = vector.load %arg11[%c32_589, %c288_590] : memref<72x576xf32, #tpu.memory_space<vmem>>, vector<8x288xf32>
    tpu.vector_store %arg11[%c32_589, %c288_590], %405 {strides = array<i32>} : memref<72x576xf32, #tpu.memory_space<vmem>>, vector<8x288xf32>,
    %c0_591 = arith.constant 0 : index
    %c20_592 = arith.constant 20 : index
    %407 = vector.load %arg12[%c0_591, %c20_592] : memref<8x768xf32, #tpu.memory_space<vmem>>, vector<8x288xf32>
    %c40_593 = arith.constant 40 : index
    %c0_594 = arith.constant 0 : index
    %408 = vector.load %arg11[%c40_593, %c0_594] : memref<72x576xf32, #tpu.memory_space<vmem>>, vector<8x288xf32>
    tpu.vector_store %arg11[%c40_593, %c0_594], %407 {strides = array<i32>} : memref<72x576xf32, #tpu.memory_space<vmem>>, vector<8x288xf32>,
    %c0_595 = arith.constant 0 : index
    %c404_596 = arith.constant 404 : index
    %409 = vector.load %arg12[%c0_595, %c404_596] : memref<8x768xf32, #tpu.memory_space<vmem>>, vector<8x288xf32>
    %c40_597 = arith.constant 40 : index
    %c288_598 = arith.constant 288 : index
    %410 = vector.load %arg11[%c40_597, %c288_598] : memref<72x576xf32, #tpu.memory_space<vmem>>, vector<8x288xf32>
    tpu.vector_store %arg11[%c40_597, %c288_598], %409 {strides = array<i32>} : memref<72x576xf32, #tpu.memory_space<vmem>>, vector<8x288xf32>,
    %c0_599 = arith.constant 0 : index
    %c36_600 = arith.constant 36 : index
    %411 = vector.load %arg12[%c0_599, %c36_600] : memref<8x768xf32, #tpu.memory_space<vmem>>, vector<8x288xf32>
    %c48_601 = arith.constant 48 : index
    %c0_602 = arith.constant 0 : index
    %412 = vector.load %arg11[%c48_601, %c0_602] : memref<72x576xf32, #tpu.memory_space<vmem>>, vector<8x288xf32>
    tpu.vector_store %arg11[%c48_601, %c0_602], %411 {strides = array<i32>} : memref<72x576xf32, #tpu.memory_space<vmem>>, vector<8x288xf32>,
    %c0_603 = arith.constant 0 : index
    %c420_604 = arith.constant 420 : index
    %413 = vector.load %arg12[%c0_603, %c420_604] : memref<8x768xf32, #tpu.memory_space<vmem>>, vector<8x288xf32>
    %c48_605 = arith.constant 48 : index
    %c288_606 = arith.constant 288 : index
    %414 = vector.load %arg11[%c48_605, %c288_606] : memref<72x576xf32, #tpu.memory_space<vmem>>, vector<8x288xf32>
    tpu.vector_store %arg11[%c48_605, %c288_606], %413 {strides = array<i32>} : memref<72x576xf32, #tpu.memory_space<vmem>>, vector<8x288xf32>,
    %c0_607 = arith.constant 0 : index
    %c37_608 = arith.constant 37 : index
    %415 = vector.load %arg12[%c0_607, %c37_608] : memref<8x768xf32, #tpu.memory_space<vmem>>, vector<8x288xf32>
    %c56_609 = arith.constant 56 : index
    %c0_610 = arith.constant 0 : index
    %416 = vector.load %arg11[%c56_609, %c0_610] : memref<72x576xf32, #tpu.memory_space<vmem>>, vector<8x288xf32>
    tpu.vector_store %arg11[%c56_609, %c0_610], %415 {strides = array<i32>} : memref<72x576xf32, #tpu.memory_space<vmem>>, vector<8x288xf32>,
    %c0_611 = arith.constant 0 : index
    %c421_612 = arith.constant 421 : index
    %417 = vector.load %arg12[%c0_611, %c421_612] : memref<8x768xf32, #tpu.memory_space<vmem>>, vector<8x288xf32>
    %c56_613 = arith.constant 56 : index
    %c288_614 = arith.constant 288 : index
    %418 = vector.load %arg11[%c56_613, %c288_614] : memref<72x576xf32, #tpu.memory_space<vmem>>, vector<8x288xf32>
    tpu.vector_store %arg11[%c56_613, %c288_614], %417 {strides = array<i32>} : memref<72x576xf32, #tpu.memory_space<vmem>>, vector<8x288xf32>,
    %c0_615 = arith.constant 0 : index
    %c38_616 = arith.constant 38 : index
    %419 = vector.load %arg12[%c0_615, %c38_616] : memref<8x768xf32, #tpu.memory_space<vmem>>, vector<8x288xf32>
    %c64_617 = arith.constant 64 : index
    %c0_618 = arith.constant 0 : index
    %420 = vector.load %arg11[%c64_617, %c0_618] : memref<72x576xf32, #tpu.memory_space<vmem>>, vector<8x288xf32>
    tpu.vector_store %arg11[%c64_617, %c0_618], %419 {strides = array<i32>} : memref<72x576xf32, #tpu.memory_space<vmem>>, vector<8x288xf32>,
    %c0_619 = arith.constant 0 : index
    %c422_620 = arith.constant 422 : index
    %421 = vector.load %arg12[%c0_619, %c422_620] : memref<8x768xf32, #tpu.memory_space<vmem>>, vector<8x288xf32>
    %c64_621 = arith.constant 64 : index
    %c288_622 = arith.constant 288 : index
    %422 = vector.load %arg11[%c64_621, %c288_622] : memref<72x576xf32, #tpu.memory_space<vmem>>, vector<8x288xf32>
    tpu.vector_store %arg11[%c64_621, %c288_622], %421 {strides = array<i32>} : memref<72x576xf32, #tpu.memory_space<vmem>>, vector<8x288xf32>,
    %c6 = arith.constant 6 : index
    %c0_623 = arith.constant 0 : index
    %c0_624 = arith.constant 0 : index
    %423 = vector.load %arg7[%c6, %c0_623, %c0_624] : memref<7x8x72xf32, #tpu.memory_space<vmem>>, vector<1x8x72xf32>
    %424 = vector.shape_cast %423 : vector<1x8x72xf32> to vector<8x72xf32>
    %c6_625 = arith.constant 6 : index
    %c0_626 = arith.constant 0 : index
    %c0_627 = arith.constant 0 : index
    %425 = vector.load %arg8[%c6_625, %c0_626, %c0_627] : memref<7x8x1xf32, #tpu.memory_space<vmem>>, vector<1x8x1xf32>
    %426 = vector.shape_cast %425 : vector<1x8x1xf32> to vector<8x1xf32>
    %c0_628 = arith.constant 0 : index
    %c0_629 = arith.constant 0 : index
    %427 = vector.load %arg11[%c0_628, %c0_629] : memref<72x576xf32, #tpu.memory_space<vmem>>, vector<72x576xf32>
    %cst_630 = arith.constant dense<0.000000e+00> : vector<8x576xf32>
    %428 = tpu.matmul %424, %427, %cst_630 {dimension_numbers = #tpu.dot_dimension_numbers<[1], [0], [0], [1], [0, 0, 1, 1], [], []>} : vector<8x72xf32>, vector<72x576xf32>, vector<8x576xf32> -> vector<8x576xf32>
    %429 = vector.broadcast %426 : vector<8x1xf32> to vector<8x576xf32>
    %430 = arith.addf %428, %429 : vector<8x576xf32>
    %431 = vector.extract_strided_slice %430 {offsets = [0, 0], sizes = [4, 288], strides = [1, 1]} : vector<8x576xf32> to vector<4x288xf32>
    %cst_631 = arith.constant dense<0.000000e+00> : vector<4x128xf32>
    %432 = tpu.matmul %431, %9, %cst_631 {dimension_numbers = #tpu.dot_dimension_numbers<[1], [0], [0], [1], [0, 0, 1, 1], [], []>} : vector<4x288xf32>, vector<288x128xf32>, vector<4x128xf32> -> vector<4x128xf32>
    %c0_632 = arith.constant 0 : index
    %c0_633 = arith.constant 0 : index
    %c0_634 = arith.constant 0 : index
    %433 = vector.load %arg9[%c0_632, %c0_633, %c0_634] : memref<2x4x128xf32, #tpu.memory_space<vmem>>, vector<1x4x128xf32>
    %434 = vector.shape_cast %433 : vector<1x4x128xf32> to vector<4x128xf32>
    %435 = vector.shape_cast %432 : vector<4x128xf32> to vector<1x4x128xf32>
    tpu.vector_store %arg9[%c0_632, %c0_633, %c0_634], %435 {strides = array<i32>} : memref<2x4x128xf32, #tpu.memory_space<vmem>>, vector<1x4x128xf32>,
    %436 = vector.extract_strided_slice %430 {offsets = [0, 288], sizes = [4, 288], strides = [1, 1]} : vector<8x576xf32> to vector<4x288xf32>
    %cst_635 = arith.constant dense<0.000000e+00> : vector<4x128xf32>
    %437 = tpu.matmul %436, %9, %cst_635 {dimension_numbers = #tpu.dot_dimension_numbers<[1], [0], [0], [1], [0, 0, 1, 1], [], []>} : vector<4x288xf32>, vector<288x128xf32>, vector<4x128xf32> -> vector<4x128xf32>
    %c1_636 = arith.constant 1 : index
    %c0_637 = arith.constant 0 : index
    %c0_638 = arith.constant 0 : index
    %438 = vector.load %arg9[%c1_636, %c0_637, %c0_638] : memref<2x4x128xf32, #tpu.memory_space<vmem>>, vector<1x4x128xf32>
    %439 = vector.shape_cast %438 : vector<1x4x128xf32> to vector<4x128xf32>
    %440 = vector.shape_cast %437 : vector<4x128xf32> to vector<1x4x128xf32>
    tpu.vector_store %arg9[%c1_636, %c0_637, %c0_638], %440 {strides = array<i32>} : memref<2x4x128xf32, #tpu.memory_space<vmem>>, vector<1x4x128xf32>,
    return
  }
  func.func @transform_0(%arg0: i32) -> (i32, i32, i32) {
    %c0_i32 = arith.constant 0 : i32
    %c0_i32_0 = arith.constant 0 : i32
    %c0_i32_1 = arith.constant 0 : i32
    return %arg0, %c0_i32, %c0_i32_0 : i32, i32, i32
  }
  func.func @transform_1(%arg0: i32) -> (i32, i32, i32) {
    %c0_i32 = arith.constant 0 : i32
    %c0_i32_0 = arith.constant 0 : i32
    %c0_i32_1 = arith.constant 0 : i32
    return %arg0, %c0_i32, %c0_i32_0 : i32, i32, i32
  }
  func.func @transform_2(%arg0: i32) -> (i32, i32) {
    %c0_i32 = arith.constant 0 : i32
    %c0_i32_0 = arith.constant 0 : i32
    %c0_i32_1 = arith.constant 0 : i32
    return %c0_i32, %c0_i32_0 : i32, i32
  }
  func.func @transform_3(%arg0: i32) -> (i32, i32) {
    %c0_i32 = arith.constant 0 : i32
    %c0_i32_0 = arith.constant 0 : i32
    %c0_i32_1 = arith.constant 0 : i32
    return %c0_i32, %c0_i32_0 : i32, i32
  }
  func.func @transform_4(%arg0: i32) -> (i32, i32) {
    %c0_i32 = arith.constant 0 : i32
    %c0_i32_0 = arith.constant 0 : i32
    %c0_i32_1 = arith.constant 0 : i32
    return %c0_i32, %c0_i32_0 : i32, i32
  }
  func.func @transform_5(%arg0: i32) -> (i32, i32) {
    %c0_i32 = arith.constant 0 : i32
    %c0_i32_0 = arith.constant 0 : i32
    %c0_i32_1 = arith.constant 0 : i32
    return %c0_i32, %c0_i32_0 : i32, i32
  }
  func.func @transform_6(%arg0: i32) -> (i32, i32, i32) {
    %c0_i32 = arith.constant 0 : i32
    %c0_i32_0 = arith.constant 0 : i32
    %c0_i32_1 = arith.constant 0 : i32
    %c0_i32_2 = arith.constant 0 : i32
    return %c0_i32, %c0_i32_0, %c0_i32_1 : i32, i32, i32
  }
  func.func @transform_7(%arg0: i32) -> (i32, i32, i32) {
    %c0_i32 = arith.constant 0 : i32
    %c0_i32_0 = arith.constant 0 : i32
    %c0_i32_1 = arith.constant 0 : i32
    %c0_i32_2 = arith.constant 0 : i32
    return %c0_i32, %c0_i32_0, %c0_i32_1 : i32, i32, i32
  }
  func.func @transform_8(%arg0: i32) -> (i32, i32, i32) {
    %c0_i32 = arith.constant 0 : i32
    %c0_i32_0 = arith.constant 0 : i32
    %c0_i32_1 = arith.constant 0 : i32
    return %arg0, %c0_i32, %c0_i32_0 : i32, i32, i32
  }
  func.func @transform_9(%arg0: i32) -> (i32, i32, i32) {
    %c0_i32 = arith.constant 0 : i32
    %c0_i32_0 = arith.constant 0 : i32
    %c0_i32_1 = arith.constant 0 : i32
    return %arg0, %c0_i32, %c0_i32_0 : i32, i32, i32
  }
}

</mosaic_0001>

<bundles_post_ra>
// kernel: downblock_fwd.1
= control target key start
LH: loop header
LB: loop body
LE: loop exit
PB: predicated region body
PF: predicated region fallthrough
CT: control target
= control target key end

     0   :  { %vm107_vm0 = vcmask 261120   ;;  %s6298_s15 = smov 90   ;;  %s6299_s16 = smov 91   ;;  %v6306_v5 = vmov 0.0   ;;  %v51_v7 = vlaneseq  ;;  %v6316_v8 = vmov 0   ;;  %s8522_s0 = inlined_call_operand.vmem [shape: f32[2,8,384], index: 0, kind: input, shape index: {}]   ;;  %s8523_s5 = inlined_call_operand.vmem [shape: f32[16,1], index: 5, kind: input, shape index: {}]   ;;  %s8524_s2 = inlined_call_operand.vmem [shape: f32[1,288], index: 2, kind: input, shape index: {}]   ;;  %s8525_s4 = inlined_call_operand.vmem [shape: f32[16,72], index: 4, kind: input, shape index: {}]   ;;  %s8526_s7 = inlined_call_operand.vmem [shape: f32[7,8,1], index: 7, kind: input, shape index: {}]   ;;  %s8527_s6 = inlined_call_operand.vmem [shape: f32[7,8,72], index: 6, kind: input, shape index: {}]   ;;  %s8528_s3 = inlined_call_operand.vmem [shape: f32[288,128], index: 3, kind: input, shape index: {}]   ;;  %s8529_s9 = inlined_call_operand.vmem [shape: f32[2,4,128], index: 9, kind: output, shape index: {1}]   ;;  %s8530_s1 = inlined_call_operand.vmem [shape: f32[2,8,384], index: 1, kind: input, shape index: {}]   ;;  %s8531_s8 = inlined_call_operand.vmem [shape: f32[2,4,128], index: 8, kind: output, shape index: {0}]  }
   0x1   :  { %v6374_v0 = vld [vmem:[%s8522_s0 + $0x8] sm:$0xff]  ;;  %v6379_v1 = vld [vmem:[%s8522_s0] sm:$0xff]  ;;  %v428_v2 = vld [vmem:[%s8522_s0 + $0x10] sm:$0xff]  ;;  %s6300_s17 = smov 92   ;;  %s6301_s18 = smov 108   ;;  %598 = vmatprep.mubr.f32.mxu0 %v6306_v5  ;;  %31 = vst [vmem:[#allocation3] sm:$0xff] %v6306_v5  ;;  %675 = vmatprep.mubr.f32.mxu1 %v6306_v5 }
   0x2   :  { %434 = vrot.lane.b32.xlu0 %v6374_v0, %s6298_s15  ;;  %432 = vrot.lane.b32.xlu1 %v6379_v1, %s6298_s15  ;;  %108 = vst.msk [vmem:[#allocation2 + $0x10] sm:$0xff] %vm107_vm0, %v428_v2  ;;  %s6302_s19 = smov 109   ;;  %s6303_s20 = smov 110   ;;  %v5722_v3 = vld [vmem:[%s8522_s0 + $0x20] sm:$0xff]  ;;  %v5723_v4 = vld [vmem:[%s8522_s0 + $0x28] sm:$0xff]  ;;  %33 = vst [vmem:[#allocation3 + $0x10] sm:$0xff] %v6306_v5 }
   0x3   :  { %s6304_s21 = smov 126   ;;  %s6305_s22 = smov 127   ;;  %34 = vst [vmem:[#allocation3 + $0x18] sm:$0xff] %v6306_v5  ;;  %36 = vst [vmem:[#allocation3 + $0x28] sm:$0xff] %v6306_v5  ;;  %v5721_v6 = vld [vmem:[%s8522_s0 + $0x18] sm:$0xff]  ;;  %6248 = vset.pattern.permute.xlu1 %v6316_v8  ;;  %v515_v9 = vld [vmem:[%s8523_s5] sm:$0xff]  ;;  %6249 = vset.pattern.permute.xlu0 %v6316_v8 }
   0x4   :  { %37 = vst [vmem:[#allocation4] sm:$0xff] %v6306_v5  ;;  %39 = vst [vmem:[#allocation4 + $0x10] sm:$0xff] %v6306_v5  ;;  %s6307_s27 = smov 122   ;;  %s6308_s30 = smov 123   ;;  %v52_v10 = vshrl.u32 %v51_v7, 7  ;;  %vm438_vm1 = vcmask 736256  }
   0x5   :  { %40 = vst [vmem:[#allocation4 + $0x18] sm:$0xff] %v6306_v5  ;;  %42 = vst [vmem:[#allocation4 + $0x28] sm:$0xff] %v6306_v5  ;;  %s6309_s10 = smov 124   ;;  %s6310_s11 = smov 12   ;;  %v49_v11 = vld [vmem:[%s8524_s2] sm:$0x7] }
   0x6   :  { %436 = vrot.lane.b32.xlu0 %v428_v2, %s6298_s15  ;;  %392 = vrot.lane.b32.xlu1 %v6374_v0, %s6299_s16  ;;  %43 = vst [vmem:[#allocation5] sm:$0xff] %v6306_v5  ;;  %45 = vst [vmem:[#allocation5 + $0x10] sm:$0xff] %v6306_v5  ;;  %s6311_s0 = smov 13   ;;  %s6312_s12 = smov 14   ;;  %v57_v12 = vsub.s32 1, %v52_v10  ;;  %v53_v13 = vsub.s32 0, %v52_v10 }
   0x7   :  { %46 = vst [vmem:[#allocation5 + $0x18] sm:$0xff] %v6306_v5  ;;  %48 = vst [vmem:[#allocation5 + $0x28] sm:$0xff] %v6306_v5  ;;  %s8551_s13 = smov 30   ;;  %s6314_s14 = smov 31   ;;  %v61_v14 = vsub.s32 2, %v52_v10  ;;  %vm8554_vm2 = vcmask 744448  }
   0x8   :  { %s8549_s23 = smov 32   ;;  %v6481_v15 = vrot.slane %v49_v11, %v57_v12  ;;  %v6483_v16 = vrot.slane %v49_v11, %v53_v13  ;;  %vm8545_vm3 = vcmask 752640   ;;  %vm8544_vm4 = vcmask 883712   ;;  %v6520_v58 = vld [vmem:[%s8525_s4] sm:$0xff]  ;;  %v6532_v62 = vld [vmem:[%s8525_s4 + $0x8] sm:$0xff]  ;;  %s6317_s4 = smov 19  }
   0x9   :  { %v6489_v17 = vrot.slane %v49_v11, %v61_v14  ;;  %vm8543_vm5 = vcmask 891904   ;;  %vm8542_vm6 = vcmask 900096   ;;  %vm8541_vm7 = vcmask 1031168   ;;  %s6318_s26 = smov 115   ;;  %s6320_s29 = smov 96  }
   0xa   :  { %394 = vrot.lane.b32.xlu0 %v428_v2, %s6299_s16  ;;  %390 = vrot.lane.b32.xlu1 %v6379_v1, %s6299_s16  ;;  %vm8540_vm8 = vcmask 1039360   ;;  %vm8539_vm9 = vcmask 523264   ;;  %vm8548_vm10 = vcmask 998400   ;;  %vm527_vm11 = vcmask 588800   ;;  %s8610_s24 = smov 30  }
   0xb   :  { %vm127_vm12 = vcmask 1047808   ;;  %vm8533_vm13 = vcmask 1006592   ;;  %vm8532_vm14 = vcmask 1014784   ;;  %vm8538_vm15 = vcmask 97280  }
   0xe   :  { %352 = vrot.lane.b32.xlu1 %v428_v2, %s6300_s17  ;;  %350 = vrot.lane.b32.xlu0 %v6374_v0, %s6300_s17 }
  0x12   :  { %348 = vrot.lane.b32.xlu0 %v6379_v1, %s6300_s17  ;;  %308 = vrot.lane.b32.xlu1 %v6374_v0, %s6301_s18 }
  0x16   :  { %310 = vrot.lane.b32.xlu0 %v428_v2, %s6301_s18  ;;  %306 = vrot.lane.b32.xlu1 %v6379_v1, %s6301_s18 }
  0x1a   :  { %268 = vrot.lane.b32.xlu1 %v428_v2, %s6302_s19  ;;  %266 = vrot.lane.b32.xlu0 %v6374_v0, %s6302_s19 }
  0x1e   :  { %264 = vrot.lane.b32.xlu0 %v6379_v1, %s6302_s19  ;;  %224 = vrot.lane.b32.xlu1 %v6374_v0, %s6303_s20 }
  0x22   :  { %226 = vrot.lane.b32.xlu0 %v428_v2, %s6303_s20  ;;  %222 = vrot.lane.b32.xlu1 %v6379_v1, %s6303_s20 }
  0x26   :  { %184 = vrot.lane.b32.xlu1 %v428_v2, %s6304_s21  ;;  %182 = vrot.lane.b32.xlu0 %v6374_v0, %s6304_s21 }
  0x2a   :  { %180 = vrot.lane.b32.xlu0 %v6379_v1, %s6304_s21  ;;  %140 = vrot.lane.b32.xlu1 %v6374_v0, %s6305_s22 }
  0x2e   :  { %142 = vrot.lane.b32.xlu0 %v428_v2, %s6305_s22  ;;  %138 = vrot.lane.b32.xlu1 %v6379_v1, %s6305_s22 }
  0x32   :  { %455 = vrot.lane.b32.xlu0 %v5722_v3, %s6307_s27  ;;  %457 = vrot.lane.b32.xlu1 %v5723_v4, %s6307_s27 }
  0x36   :  { %453 = vrot.lane.b32.xlu0 %v5721_v6, %s6307_s27  ;;  %413 = vrot.lane.b32.xlu1 %v5722_v3, %s6308_s30 }
  0x3a   :  { %415 = vrot.lane.b32.xlu0 %v5723_v4, %s6308_s30  ;;  %411 = vrot.lane.b32.xlu1 %v5721_v6, %s6308_s30 }
  0x3e   :  { %371 = vrot.lane.b32.xlu0 %v5722_v3, %s6309_s10  ;;  %373 = vrot.lane.b32.xlu1 %v5723_v4, %s6309_s10 }
  0x42   :  { %369 = vrot.lane.b32.xlu0 %v5721_v6, %s6309_s10  ;;  %327 = vrot.lane.b32.xlu1 %v5721_v6, %s6310_s11 }
  0x46   :  { %329 = vrot.lane.b32.xlu0 %v5722_v3, %s6310_s11  ;;  %331 = vrot.lane.b32.xlu1 %v5723_v4, %s6310_s11 }
  0x4a   :  { %285 = vrot.lane.b32.xlu0 %v5721_v6, %s6311_s0  ;;  %287 = vrot.lane.b32.xlu1 %v5722_v3, %s6311_s0 }
  0x4e   :  { %289 = vrot.lane.b32.xlu0 %v5723_v4, %s6311_s0  ;;  %243 = vrot.lane.b32.xlu1 %v5721_v6, %s6312_s12 }
  0x52   :  { %245 = vrot.lane.b32.xlu0 %v5722_v3, %s6312_s12  ;;  %247 = vrot.lane.b32.xlu1 %v5723_v4, %s6312_s12 }
  0x56   :  { %201 = vrot.lane.b32.xlu0 %v5721_v6, %s8551_s13  ;;  %203 = vrot.lane.b32.xlu1 %v5722_v3, %s8551_s13 }
  0x5a   :  { %205 = vrot.lane.b32.xlu0 %v5723_v4, %s8551_s13  ;;  %159 = vrot.lane.b32.xlu1 %v5721_v6, %s6314_s14 }
  0x5e   :  { %161 = vrot.lane.b32.xlu0 %v5722_v3, %s6314_s14  ;;  %163 = vrot.lane.b32.xlu1 %v5723_v4, %s6314_s14 }
  0x62   :  { %118 = vrot.lane.b32.xlu1 %v5722_v3, %s8549_s23  ;;  %116 = vrot.lane.b32.xlu0 %v5721_v6, %s8549_s23 }
  0x66   :  { %120 = vrot.lane.b32.xlu0 %v5723_v4, %s8549_s23  ;;  %519 = vperm.xlu1 %6248, %v515_v9  }
  0x6a   :  { %793 = vrot.lane.b32.xlu1 %v6481_v15, %s8549_s23  ;;  %791 = vrot.lane.b32.xlu0 %v6483_v16, %s8549_s23 }
  0x6e   :  { %795 = vrot.lane.b32.xlu0 %v6489_v17, %s8549_s23 }
  0x74   :  { %v435_v18 = vpop.permute.xlu0 %434  ;;  %v433_v19 = vpop.permute.xlu1 %432 }
  0x75   :  { %v439_v23 = vsel %vm438_vm1, %v433_v19, %v435_v18 }
  0x78   :  { %v437_v20 = vpop.permute.xlu0 %436  ;;  %v393_v21 = vpop.permute.xlu1 %392 }
  0x79   :  { %v440_v22 = vsel %vm438_vm1, %v435_v18, %v437_v20  ;;  %446 = vst.msk [vmem:[#allocation2 + $0x150] sm:$0xff] %vm107_vm0, %v437_v20 }
  0x7a   :  { %548 = vmatprep.subr.mxu0 %v440_v22 }
  0x7b   :  { %549 = vmatpush1.msra.mxu0 %v439_v23 }
  0x7c   :  { %v395_v24 = vpop.permute.xlu0 %394  ;;  %v391_v25 = vpop.permute.xlu1 %390 }
  0x7d   :  { %v398_v26 = vsel %vm8554_vm2, %v393_v21, %v395_v24  ;;  %404 = vst.msk [vmem:[#allocation2 + $0x128] sm:$0xff] %vm107_vm0, %v395_v24  ;;  %v397_v27 = vsel %vm8554_vm2, %v391_v25, %v393_v21 }
  0x7e   :  { %550 = vmatprep.subr.mxu0 %v398_v26 }
  0x7f   :  { %551 = vmatpush1.msra.mxu0 %v397_v27 }
  0x80   :  { %v353_v28 = vpop.permute.xlu1 %352  ;;  %v351_v29 = vpop.permute.xlu0 %350 }
  0x81   :  { %362 = vst.msk [vmem:[#allocation2 + $0x100] sm:$0xff] %vm107_vm0, %v353_v28  ;;  %v356_v30 = vsel %vm8545_vm3, %v351_v29, %v353_v28 }
  0x82   :  { %552 = vmatprep.subr.mxu0 %v356_v30 }
  0x84   :  { %v349_v31 = vpop.permute.xlu0 %348  ;;  %v309_v32 = vpop.permute.xlu1 %308 }
  0x85   :  { %v355_v33 = vsel %vm8545_vm3, %v349_v31, %v351_v29 }
  0x86   :  { %553 = vmatpush1.msra.mxu0 %v355_v33 }
  0x88   :  { %v311_v34 = vpop.permute.xlu0 %310  ;;  %v307_v35 = vpop.permute.xlu1 %306 }
  0x89   :  { %v314_v36 = vsel %vm8544_vm4, %v309_v32, %v311_v34  ;;  %320 = vst.msk [vmem:[#allocation2 + $0xd8] sm:$0xff] %vm107_vm0, %v311_v34  ;;  %v313_v37 = vsel %vm8544_vm4, %v307_v35, %v309_v32 }
  0x8a   :  { %554 = vmatprep.subr.mxu0 %v314_v36 }
  0x8b   :  { %555 = vmatpush1.msra.mxu0 %v313_v37 }
  0x8c   :  { %v269_v38 = vpop.permute.xlu1 %268  ;;  %v267_v39 = vpop.permute.xlu0 %266 }
  0x8d   :  { %278 = vst.msk [vmem:[#allocation2 + $0xb0] sm:$0xff] %vm107_vm0, %v269_v38  ;;  %v272_v40 = vsel %vm8543_vm5, %v267_v39, %v269_v38 }
  0x8e   :  { %556 = vmatprep.subr.mxu0 %v272_v40 }
  0x90   :  { %v265_v41 = vpop.permute.xlu0 %264  ;;  %v225_v42 = vpop.permute.xlu1 %224 }
  0x91   :  { %v271_v43 = vsel %vm8543_vm5, %v265_v41, %v267_v39 }
  0x92   :  { %557 = vmatpush1.msra.mxu0 %v271_v43 }
  0x94   :  { %v227_v44 = vpop.permute.xlu0 %226  ;;  %v223_v45 = vpop.permute.xlu1 %222 }
  0x95   :  { %v230_v46 = vsel %vm8542_vm6, %v225_v42, %v227_v44  ;;  %236 = vst.msk [vmem:[#allocation2 + $0x88] sm:$0xff] %vm107_vm0, %v227_v44  ;;  %v229_v47 = vsel %vm8542_vm6, %v223_v45, %v225_v42 }
  0x96   :  { %558 = vmatprep.subr.mxu0 %v230_v46 }
  0x97   :  { %559 = vmatpush1.msra.mxu0 %v229_v47 }
  0x98   :  { %v185_v48 = vpop.permute.xlu1 %184  ;;  %v183_v49 = vpop.permute.xlu0 %182 }
  0x99   :  { %194 = vst.msk [vmem:[#allocation2 + $0x60] sm:$0xff] %vm107_vm0, %v185_v48  ;;  %v188_v50 = vsel %vm8541_vm7, %v183_v49, %v185_v48 }
  0x9a   :  { %560 = vmatprep.subr.mxu0 %v188_v50 }
  0x9c   :  { %v181_v51 = vpop.permute.xlu0 %180  ;;  %v141_v52 = vpop.permute.xlu1 %140 }
  0x9d   :  { %v187_v53 = vsel %vm8541_vm7, %v181_v51, %v183_v49 }
  0x9e   :  { %561 = vmatpush1.msra.mxu0 %v187_v53 }
  0xa0   :  { %v143_v54 = vpop.permute.xlu0 %142  ;;  %v139_v55 = vpop.permute.xlu1 %138 }
  0xa1   :  { %v146_v56 = vsel %vm8540_vm8, %v141_v52, %v143_v54  ;;  %152 = vst.msk [vmem:[#allocation2 + $0x38] sm:$0xff] %vm107_vm0, %v143_v54  ;;  %v145_v57 = vsel %vm8540_vm8, %v139_v55, %v141_v52 }
  0xa2   :  { %562 = vmatprep.subr.mxu0 %v146_v56 }
  0xa3   :  { %563 = vmatpush1.msra.mxu0 %v145_v57 }
  0xa4   :  { %v456_v59 = vpop.permute.xlu0 %455  ;;  %v458_v60 = vpop.permute.xlu1 %457  ;;  %564 = vmatprep.subr.mxu0 %v6374_v0 }
  0xa5   :  { %v461_v61 = vsel %vm8548_vm10, %v456_v59, %v458_v60  ;;  %467 = vst.msk [vmem:[#allocation2 + $0x160] sm:$0xff] %vm8539_vm9, %v458_v60  ;;  %565 = vmatpush1.msra.mxu0 %v6379_v1 }
  0xa6   :  { %625 = vmatprep.subr.mxu1 %v461_v61  ;;  %5724 = vmatmul.mubr.msk.f32.vlgmr.msra.gmra.mxu0 %vm527_vm11, %v6520_v58 }
  0xa7   :  { %604 = vmatprep.mubr.f32.mxu0 %v6306_v5 }
  0xa8   :  { %v454_v63 = vpop.permute.xlu0 %453  ;;  %v414_v0 = vpop.permute.xlu1 %413 }
  0xa9   :  { %v460_v2 = vsel %vm8548_vm10, %v454_v63, %v456_v59 }
  0xaa   :  { %465 = vst.msk [vmem:[#allocation2 + $0x150] sm:$0xff] %vm127_vm12, %v460_v2  ;;  %5725 = vmatmul.mubr.msk.f32.gmra.mxu0 %vm527_vm11, %v6532_v62 }
  0xab   :  { %6031 = vmatprep.mubr.msk.f32.mxu0 %vm527_vm11, %v6520_v58 }
  0xac   :  { %v416_v1 = vpop.permute.xlu0 %415  ;;  %v412_v3 = vpop.permute.xlu1 %411  ;;  %v514_v4 = vld [vmem:[#allocation2 + $0x160] sm:$0xff] }
  0xad   :  { %425 = vst.msk [vmem:[#allocation2 + $0x138] sm:$0xff] %vm8539_vm9, %v416_v1  ;;  %v418_v6 = vsel %vm8533_vm13, %v412_v3, %v414_v0  ;;  %6013 = vmatprep.subr.mxu0 %v514_v4  ;;  %v419_v10 = vsel %vm8533_vm13, %v414_v0, %v416_v1  ;;  %vm8535_vm13 = vcmask 113664  }
  0xae   :  { %423 = vst.msk [vmem:[#allocation2 + $0x128] sm:$0xff] %vm127_vm12, %v418_v6  ;;  %6014 = vmatpush3.msra.mxu0 %v514_v4 }
  0xb0   :  { %v372_v7 = vpop.permute.xlu0 %371  ;;  %v374_v8 = vpop.permute.xlu1 %373 }
  0xb1   :  { %383 = vst.msk [vmem:[#allocation2 + $0x110] sm:$0xff] %vm8539_vm9, %v374_v8  ;;  %v512_v9 = vld [vmem:[#allocation2 + $0x150] sm:$0xff]  ;;  %v377_v19 = vsel %vm8532_vm14, %v372_v7, %v374_v8 }
  0xb2   :  { %626 = vmatpush1.msra.mxu1 %v512_v9 }
  0xb3   :  { %627 = vmatprep.subr.mxu1 %v419_v10 }
  0xb4   :  { %v370_v11 = vpop.permute.xlu0 %369  ;;  %v328_v12 = vpop.permute.xlu1 %327  ;;  %v509_v13 = vld [vmem:[#allocation2 + $0x138] sm:$0xff] }
  0xb5   :  { %v376_v14 = vsel %vm8532_vm14, %v370_v11, %v372_v7  ;;  %339 = vst.msk [vmem:[#allocation2 + $0xd8] sm:$0xff] %vm127_vm12, %v328_v12  ;;  %6015 = vmatprep.subr.mxu0 %v509_v13  ;;  %v507_v18 = vld [vmem:[#allocation2 + $0x128] sm:$0xff]  ;;  %vm8534_vm14 = vcmask 105472  }
  0xb6   :  { %381 = vst.msk [vmem:[#allocation2 + $0x100] sm:$0xff] %vm127_vm12, %v376_v14  ;;  %6016 = vmatpush3.msra.mxu0 %v509_v13  ;;  %628 = vmatpush1.msra.mxu1 %v507_v18 }
  0xb7   :  { %629 = vmatprep.subr.mxu1 %v377_v19 }
  0xb8   :  { %v330_v20 = vpop.permute.xlu0 %329  ;;  %v332_v21 = vpop.permute.xlu1 %331  ;;  %v504_v22 = vld [vmem:[#allocation2 + $0x110] sm:$0xff] }
  0xb9   :  { %v335_v23 = vsel %vm8538_vm15, %v330_v20, %v332_v21  ;;  %6017 = vmatprep.subr.mxu0 %v504_v22  ;;  %v334_v28 = vsel %vm8538_vm15, %v328_v12, %v330_v20  ;;  %vm787_vm15 = vcmask 416768  }
  0xba   :  { %341 = vst.msk [vmem:[#allocation2 + $0xe8] sm:$0xff] %vm8539_vm9, %v335_v23  ;;  %6018 = vmatpush3.msra.mxu0 %v504_v22 }
  0xbc   :  { %v286_v24 = vpop.permute.xlu0 %285  ;;  %v288_v25 = vpop.permute.xlu1 %287  ;;  %v497_v27 = vld [vmem:[#allocation2 + $0xd8] sm:$0xff] }
  0xbd   :  { %297 = vst.msk [vmem:[#allocation2 + $0xb0] sm:$0xff] %vm127_vm12, %v286_v24  ;;  %v502_v26 = vld [vmem:[#allocation2 + $0x100] sm:$0xff]  ;;  %v292_v29 = vsel %vm8534_vm14, %v286_v24, %v288_v25 }
  0xbe   :  { %630 = vmatpush1.msra.mxu1 %v502_v26 }
  0xbf   :  { %631 = vmatprep.subr.mxu1 %v334_v28 }
  0xc0   :  { %v290_v30 = vpop.permute.xlu0 %289  ;;  %v244_v31 = vpop.permute.xlu1 %243  ;;  %632 = vmatpush1.msra.mxu1 %v497_v27 }
  0xc1   :  { %v293_v32 = vsel %vm8534_vm14, %v288_v25, %v290_v30  ;;  %255 = vst.msk [vmem:[#allocation2 + $0x88] sm:$0xff] %vm127_vm12, %v244_v31  ;;  %v499_v33 = vld [vmem:[#allocation2 + $0xe8] sm:$0xff]  ;;  %633 = vmatprep.subr.mxu1 %v292_v29  ;;  %vm8537_vm14 = vcmask 244736  }
  0xc2   :  { %299 = vst.msk [vmem:[#allocation2 + $0xc0] sm:$0xff] %vm8539_vm9, %v293_v32  ;;  %6019 = vmatprep.subr.mxu0 %v499_v33 }
  0xc3   :  { %6020 = vmatpush3.msra.mxu0 %v499_v33 }
  0xc4   :  { %v246_v34 = vpop.permute.xlu0 %245  ;;  %v248_v35 = vpop.permute.xlu1 %247  ;;  %v492_v36 = vld [vmem:[#allocation2 + $0xb0] sm:$0xff] }
  0xc5   :  { %v250_v37 = vsel %vm8535_vm13, %v244_v31, %v246_v34  ;;  %v251_v38 = vsel %vm8535_vm13, %v246_v34, %v248_v35  ;;  %634 = vmatpush1.msra.mxu1 %v492_v36  ;;  %vm8536_vm13 = vcmask 252928  }
  0xc6   :  { %257 = vst.msk [vmem:[#allocation2 + $0x98] sm:$0xff] %vm8539_vm9, %v251_v38  ;;  %635 = vmatprep.subr.mxu1 %v250_v37 }
  0xc8   :  { %v202_v39 = vpop.permute.xlu0 %201  ;;  %v204_v40 = vpop.permute.xlu1 %203  ;;  %v487_v41 = vld [vmem:[#allocation2 + $0x88] sm:$0xff] }
  0xc9   :  { %213 = vst.msk [vmem:[#allocation2 + $0x60] sm:$0xff] %vm127_vm12, %v202_v39  ;;  %v208_v42 = vsel %vm8537_vm14, %v202_v39, %v204_v40  ;;  %v494_v43 = vld [vmem:[#allocation2 + $0xc0] sm:$0xff]  ;;  %636 = vmatpush1.msra.mxu1 %v487_v41 }
  0xca   :  { %6021 = vmatprep.subr.mxu0 %v494_v43  ;;  %637 = vmatprep.subr.mxu1 %v208_v42 }
  0xcb   :  { %6022 = vmatpush3.msra.mxu0 %v494_v43 }
  0xcc   :  { %v206_v44 = vpop.permute.xlu0 %205  ;;  %v160_v45 = vpop.permute.xlu1 %159 }
  0xcd   :  { %v209_v46 = vsel %vm8537_vm14, %v204_v40, %v206_v44  ;;  %171 = vst.msk [vmem:[#allocation2 + $0x38] sm:$0xff] %vm127_vm12, %v160_v45  ;;  %v489_v47 = vld [vmem:[#allocation2 + $0x98] sm:$0xff]  ;;  %vm778_vm14 = vcmask 154624  }
  0xce   :  { %215 = vst.msk [vmem:[#allocation2 + $0x70] sm:$0xff] %vm8539_vm9, %v209_v46  ;;  %6023 = vmatprep.subr.mxu0 %v489_v47 }
  0xcf   :  { %6024 = vmatpush3.msra.mxu0 %v489_v47  ;;  %v516_v47 = vld [vmem:[%s8523_s5 + $0x8] sm:$0xff]  ;;  %s8611_s5 = smov 32  }
  0xd0   :  { %v162_v48 = vpop.permute.xlu0 %161  ;;  %v164_v49 = vpop.permute.xlu1 %163  ;;  %v482_v50 = vld [vmem:[#allocation2 + $0x60] sm:$0xff] }
  0xd1   :  { %v166_v51 = vsel %vm8536_vm13, %v160_v45, %v162_v48  ;;  %v167_v52 = vsel %vm8536_vm13, %v162_v48, %v164_v49  ;;  %638 = vmatpush1.msra.mxu1 %v482_v50  ;;  %vm784_vm13 = vcmask 1047704   ;;  %v1170_v48 = vld [vmem:[%s8526_s7] sm:$0xff] }
  0xd2   :  { %173 = vst.msk [vmem:[#allocation2 + $0x48] sm:$0xff] %vm8539_vm9, %v167_v52  ;;  %639 = vmatprep.subr.mxu1 %v166_v51 }
  0xd4   :  { %v119_v53 = vpop.permute.xlu1 %118  ;;  %v117_v54 = vpop.permute.xlu0 %116  ;;  %v477_v55 = vld [vmem:[#allocation2 + $0x38] sm:$0xff] }
  0xd5   :  { %v122_v56 = vsel %vm107_vm0, %v117_v54, %v119_v53  ;;  %128 = vst.msk [vmem:[#allocation2 + $0x10] sm:$0xff] %vm127_vm12, %v117_v54  ;;  %v484_v57 = vld [vmem:[#allocation2 + $0x70] sm:$0xff]  ;;  %640 = vmatpush1.msra.mxu1 %v477_v55 }
  0xd6   :  { %6025 = vmatprep.subr.mxu0 %v484_v57  ;;  %641 = vmatprep.subr.mxu1 %v122_v56 }
  0xd7   :  { %6026 = vmatpush3.msra.mxu0 %v484_v57 }
  0xd8   :  { %v121_v59 = vpop.permute.xlu0 %120 }
  0xd9   :  { %v123_v60 = vsel %vm107_vm0, %v119_v53, %v121_v59  ;;  %v479_v61 = vld [vmem:[#allocation2 + $0x48] sm:$0xff] }
  0xda   :  { %131 = vst.msk [vmem:[#allocation2 + $0x20] sm:$0xff] %vm8539_vm9, %v123_v60  ;;  %6027 = vmatprep.subr.mxu0 %v479_v61  ;;  %vm814_vm9 = vcmask 941056  }
  0xdb   :  { %6028 = vmatpush3.msra.mxu0 %v479_v61 }
  0xdc   :  { %v472_v63 = vld [vmem:[#allocation2 + $0x10] sm:$0xff]  ;;  %v6585_v11 = vpop.permute.xlu0 %791 }
  0xdd   :  { %642 = vmatpush1.msra.mxu1 %v472_v63 }
  0xde   :  { %5726 = vmatmul.mubr.msk.f32.vlgmr.msra.gmra.mxu1 %vm527_vm11, %v6520_v58 }
  0xdf   :  { %681 = vmatprep.mubr.f32.mxu1 %v6306_v5 }
  0xe0   :  { %v796_v23 = vpop.permute.xlu0 %795 }
  0xe1   :  { %v474_v0 = vld [vmem:[#allocation2 + $0x20] sm:$0xff]  ;;  %v520_v2 = vpop.permute.xlu1 %519 }
  0xe2   :  { %6029 = vmatprep.subr.mxu0 %v474_v0  ;;  %5727 = vmatmul.mubr.msk.f32.gmra.mxu1 %vm527_vm11, %v6532_v62 }
  0xe3   :  { %6030 = vmatpush3.msra.mxu0 %v474_v0  ;;  %1288 = vmatprep.mubr.f32.mxu1 %v6306_v5 }
  0xe4   :  { %6032 = vmatmul.mubr.msk.f32.vlgmr.msra.gmra.mxu0 %vm527_vm11, %v6532_v62 }
  0xe5   :  { %1359 = vmatprep.mubr.f32.mxu0 %v6306_v5  ;;  %v794_v22 = vpop.permute.xlu1 %793 }
  0xe6   :  { %v6597_v28 = vsel %vm107_vm0, %v794_v22, %v796_v23  ;;  %v6601_v29 = vsel %vm107_vm0, %v6585_v11, %v794_v22 }
 0x166   :  { %v600_v1 = vpop.f32.mrf.mxu0 }
 0x167   :  { %v601_v3 = vadd.f32 %v600_v1, %v520_v2 }
 0x168   :  { %v602_v6 = vpop.f32.mrf.mxu0 }
 0x169   :  { %v763_v4 = vmax.f32 %v601_v3, 0.0  ;;  %v603_v9 = vadd.f32 %v602_v6, %v520_v2 }
 0x16a   :  { %v6583_v7 = vpop.f32.mrf.mxu0 }
 0x16b   :  { %v766_v58 = vmul.f32 %v763_v4, %v6483_v16  ;;  %v764_v14 = vmax.f32 %v603_v9, 0.0 }
 0x16c   :  { %v6587_v62 = vpop.f32.mrf.mxu0 }
 0x16d   :  { %772 = vrot.lane.b32.xlu1 %v766_v58, %s6317_s4  ;;  %v767_v25 = vmul.f32 %v764_v14, %v6481_v15 }
 0x19e   :  { %v677_v8 = vpop.f32.mrf.mxu1 }
 0x19f   :  { %v678_v10 = vadd.f32 %v677_v8, %v520_v2 }
 0x1a0   :  { %v679_v12 = vpop.f32.mrf.mxu1 }
 0x1a1   :  { %v765_v13 = vmax.f32 %v678_v10, 0.0  ;;  %v680_v19 = vadd.f32 %v679_v12, %v520_v2 }
 0x1a3   :  { %v768_v18 = vmul.f32 %v765_v13, %v6489_v17  ;;  %v802_v20 = vmul.f32 %v6585_v11, %v765_v13  ;;  %v789_v26 = vmax.f32 %v680_v19, 0.0 }
 0x1a4   :  { %v6591_v21 = vpop.f32.mrf.mxu0 }
 0x1a5   :  { %808 = vrot.lane.b32.xlu0 %v802_v20, %s6318_s26  ;;  %776 = vrot.lane.b32.xlu1 %v768_v18, %s6317_s4  ;;  %v803_v32 = vmul.f32 %v6601_v29, %v789_v26 }
 0x1a6   :  { %v754_v24 = vpop.f32.mrf.mxu0 }
 0x1a7   :  { %v755_v27 = vadd.f32 %v754_v24, %v520_v2 }
 0x1a9   :  { %v790_v30 = vmax.f32 %v755_v27, 0.0  ;;  %774 = vrot.lane.b32.xlu0 %v767_v25, %s6317_s4 }
 0x1ab   :  { %v804_v31 = vmul.f32 %v6597_v28, %v790_v30 }
 0x1ad   :  { %812 = vrot.lane.b32.xlu1 %v804_v31, %s6318_s26  ;;  %810 = vrot.lane.b32.xlu0 %v803_v32, %s6318_s26 }
 0x1df   :  { %v773_v33 = vpop.permute.xlu1 %772 }
 0x1e0   :  { %785 = vst.msk [vmem:[#allocation3] sm:$0xff] %vm784_vm13, %v773_v33 }
 0x1e7   :  { %v6609_v34 = vld [vmem:[#allocation3] sm:$0xff] }
 0x1e8   :  { %1095 = vrot.lane.b32.xlu0 %v6609_v34, %s6299_s16  ;;  %1135 = vrot.lane.b32.xlu1 %v6609_v34, %s6298_s15 }
 0x1ec   :  { %1055 = vrot.lane.b32.xlu0 %v6609_v34, %s6300_s17  ;;  %935 = vrot.lane.b32.xlu1 %v6609_v34, %s6303_s20 }
 0x1f0   :  { %1015 = vrot.lane.b32.xlu0 %v6609_v34, %s6301_s18  ;;  %855 = vrot.lane.b32.xlu1 %v6609_v34, %s6305_s22 }
 0x1f4   :  { %975 = vrot.lane.b32.xlu0 %v6609_v34, %s6302_s19 }
 0x1f8   :  { %895 = vrot.lane.b32.xlu0 %v6609_v34, %s6304_s21 }
 0x217   :  { %v809_v35 = vpop.permute.xlu0 %808  ;;  %v777_v36 = vpop.permute.xlu1 %776 }
 0x21b   :  { %v775_v37 = vpop.permute.xlu0 %774 }
 0x21c   :  { %v6628_v38 = vsel %vm778_vm14, %v773_v33, %v775_v37  ;;  %v780_v39 = vsel %vm778_vm14, %v775_v37, %v777_v36 }
 0x21d   :  { %788 = vst.msk [vmem:[#allocation3 + $0x10] sm:$0xff] %vm787_vm15, %v780_v39  ;;  %1137 = vrot.lane.b32.xlu1 %v6628_v38, %s6298_s15 }
 0x21f   :  { %v813_v40 = vpop.permute.xlu1 %812  ;;  %v811_v41 = vpop.permute.xlu0 %810 }
 0x220   :  { %822 = vst.msk [vmem:[#allocation3 + $0x28] sm:$0xff] %vm787_vm15, %v813_v40  ;;  %v815_v42 = vsel %vm814_vm9, %v809_v35, %v811_v41  ;;  %v816_v45 = vsel %vm814_vm9, %v811_v41, %v813_v40 }
 0x221   :  { %820 = vst.msk [vmem:[#allocation3 + $0x18] sm:$0xff] %vm784_vm13, %v815_v42 }
 0x224   :  { %v1131_v43 = vld [vmem:[#allocation3 + $0x10] sm:$0xff] }
 0x225   :  { %1139 = vrot.lane.b32.xlu0 %v1131_v43, %s6298_s15  ;;  %1099 = vrot.lane.b32.xlu1 %v1131_v43, %s6299_s16  ;;  %828 = vst.msk [vmem:[#allocation2 + $0x10] sm:$0xff] %vm107_vm0, %v1131_v43 }
 0x227   :  { %v1151_v46 = vld [vmem:[#allocation3 + $0x28] sm:$0xff] }
 0x228   :  { %v1149_v44 = vld [vmem:[#allocation3 + $0x18] sm:$0xff] }
 0x229   :  { %1097 = vrot.lane.b32.xlu0 %v6628_v38, %s6299_s16  ;;  %1155 = vrot.lane.b32.xlu1 %v1149_v44, %s6307_s27 }
 0x22d   :  { %1057 = vrot.lane.b32.xlu0 %v6628_v38, %s6300_s17  ;;  %1059 = vrot.lane.b32.xlu1 %v1131_v43, %s6300_s17 }
 0x231   :  { %1017 = vrot.lane.b32.xlu0 %v6628_v38, %s6301_s18  ;;  %1115 = vrot.lane.b32.xlu1 %v1149_v44, %s6308_s30 }
 0x235   :  { %977 = vrot.lane.b32.xlu0 %v6628_v38, %s6302_s19  ;;  %1019 = vrot.lane.b32.xlu1 %v1131_v43, %s6301_s18 }
 0x239   :  { %1035 = vrot.lane.b32.xlu0 %v1149_v44, %s6310_s11  ;;  %1075 = vrot.lane.b32.xlu1 %v1149_v44, %s6309_s10 }
 0x23d   :  { %939 = vrot.lane.b32.xlu0 %v1131_v43, %s6303_s20  ;;  %979 = vrot.lane.b32.xlu1 %v1131_v43, %s6302_s19 }
 0x241   :  { %897 = vrot.lane.b32.xlu0 %v6628_v38, %s6304_s21  ;;  %937 = vrot.lane.b32.xlu1 %v6628_v38, %s6303_s20 }
 0x245   :  { %955 = vrot.lane.b32.xlu0 %v1149_v44, %s6312_s12  ;;  %995 = vrot.lane.b32.xlu1 %v1149_v44, %s6311_s0 }
 0x249   :  { %859 = vrot.lane.b32.xlu0 %v1131_v43, %s6305_s22  ;;  %899 = vrot.lane.b32.xlu1 %v1131_v43, %s6304_s21 }
 0x24d   :  { %875 = vrot.lane.b32.xlu0 %v1149_v44, %s6314_s14  ;;  %857 = vrot.lane.b32.xlu1 %v6628_v38, %s6305_s22 }
 0x251   :  { %1157 = vrot.lane.b32.xlu0 %v816_v45, %s6307_s27  ;;  %915 = vrot.lane.b32.xlu1 %v1149_v44, %s8551_s13 }
 0x255   :  { %1117 = vrot.lane.b32.xlu0 %v816_v45, %s6308_s30  ;;  %1159 = vrot.lane.b32.xlu1 %v1151_v46, %s6307_s27 }
 0x259   :  { %1077 = vrot.lane.b32.xlu0 %v816_v45, %s6309_s10  ;;  %1119 = vrot.lane.b32.xlu1 %v1151_v46, %s6308_s30 }
 0x25a   :  { %v1096_v49 = vpop.permute.xlu0 %1095  ;;  %v1136_v51 = vpop.permute.xlu1 %1135 }
 0x25d   :  { %997 = vrot.lane.b32.xlu0 %v816_v45, %s6311_s0  ;;  %1079 = vrot.lane.b32.xlu1 %v1151_v46, %s6309_s10 }
 0x25e   :  { %v1056_v50 = vpop.permute.xlu0 %1055  ;;  %v936_v53 = vpop.permute.xlu1 %935 }
 0x261   :  { %917 = vrot.lane.b32.xlu0 %v816_v45, %s8551_s13  ;;  %1037 = vrot.lane.b32.xlu1 %v816_v45, %s6310_s11 }
 0x262   :  { %v1016_v52 = vpop.permute.xlu0 %1015  ;;  %v6694_v55 = vpop.permute.xlu1 %855 }
 0x265   :  { %835 = vrot.lane.b32.xlu0 %v1149_v44, %s8549_s23  ;;  %957 = vrot.lane.b32.xlu1 %v816_v45, %s6312_s12  ;;  %v6742_v44 = vld [vmem:[%s8527_s6] sm:$0xff] }
 0x266   :  { %v976_v54 = vpop.permute.xlu0 %975 }
 0x269   :  { %1039 = vrot.lane.b32.xlu0 %v1151_v46, %s6310_s11  ;;  %877 = vrot.lane.b32.xlu1 %v816_v45, %s6314_s14 }
 0x26a   :  { %v896_v56 = vpop.permute.xlu0 %895 }
 0x26d   :  { %959 = vrot.lane.b32.xlu0 %v1151_v46, %s6312_s12  ;;  %837 = vrot.lane.b32.xlu1 %v816_v45, %s8549_s23 }
 0x271   :  { %879 = vrot.lane.b32.xlu0 %v1151_v46, %s6314_s14  ;;  %999 = vrot.lane.b32.xlu1 %v1151_v46, %s6311_s0 }
 0x275   :  { %524 = vperm.xlu0 %6249, %v516_v47   ;;  %919 = vrot.lane.b32.xlu1 %v1151_v46, %s8551_s13 }
 0x279   :  { %839 = vrot.lane.b32.xlu1 %v1151_v46, %s8549_s23 }
 0x27d   :  { %1218 = vperm.xlu1 %6248, %v1170_v48  }
 0x28f   :  { %v1138_v57 = vpop.permute.xlu1 %1137 }
 0x290   :  { %v1141_v63 = vsel %vm438_vm1, %v1136_v51, %v1138_v57 }
 0x297   :  { %v1140_v59 = vpop.permute.xlu0 %1139  ;;  %v1100_v60 = vpop.permute.xlu1 %1099 }
 0x298   :  { %1148 = vst.msk [vmem:[#allocation2 + $0x150] sm:$0xff] %vm107_vm0, %v1140_v59  ;;  %v1142_v61 = vsel %vm438_vm1, %v1138_v57, %v1140_v59  ;;  %1108 = vst.msk [vmem:[#allocation2 + $0x128] sm:$0xff] %vm107_vm0, %v1100_v60 }
 0x299   :  { %1238 = vmatprep.subr.mxu1 %v1142_v61 }
 0x29a   :  { %1239 = vmatpush1.msra.mxu1 %v1141_v63 }
 0x29b   :  { %v1098_v0 = vpop.permute.xlu0 %1097  ;;  %v6700_v2 = vpop.permute.xlu1 %1155 }
 0x29c   :  { %v1101_v1 = vsel %vm8554_vm2, %v1096_v49, %v1098_v0  ;;  %v1102_v3 = vsel %vm8554_vm2, %v1098_v0, %v1100_v60 }
 0x29d   :  { %1240 = vmatprep.subr.mxu1 %v1102_v3  ;;  %v6768_v3 = vld [vmem:[#allocation4] sm:$0xff] }
 0x29e   :  { %1241 = vmatpush1.msra.mxu1 %v1101_v1 }
 0x29f   :  { %v1058_v4 = vpop.permute.xlu0 %1057  ;;  %v1060_v58 = vpop.permute.xlu1 %1059 }
 0x2a0   :  { %v1061_v6 = vsel %vm8545_vm3, %v1056_v50, %v1058_v4  ;;  %v1062_v8 = vsel %vm8545_vm3, %v1058_v4, %v1060_v58  ;;  %1068 = vst.msk [vmem:[#allocation2 + $0x100] sm:$0xff] %vm107_vm0, %v1060_v58 }
 0x2a1   :  { %1242 = vmatprep.subr.mxu1 %v1062_v8 }
 0x2a2   :  { %1243 = vmatpush1.msra.mxu1 %v1061_v6 }
 0x2a3   :  { %v1018_v9 = vpop.permute.xlu0 %1017  ;;  %v1116_v10 = vpop.permute.xlu1 %1115 }
 0x2a4   :  { %v1021_v18 = vsel %vm8544_vm4, %v1016_v52, %v1018_v9 }
 0x2a7   :  { %v978_v12 = vpop.permute.xlu0 %977  ;;  %v1020_v13 = vpop.permute.xlu1 %1019 }
 0x2a8   :  { %v1022_v14 = vsel %vm8544_vm4, %v1018_v9, %v1020_v13  ;;  %1028 = vst.msk [vmem:[#allocation2 + $0xd8] sm:$0xff] %vm107_vm0, %v1020_v13  ;;  %v981_v25 = vsel %vm8543_vm5, %v976_v54, %v978_v12 }
 0x2a9   :  { %1244 = vmatprep.subr.mxu1 %v1022_v14 }
 0x2aa   :  { %1245 = vmatpush1.msra.mxu1 %v1021_v18 }
 0x2ab   :  { %v6710_v19 = vpop.permute.xlu0 %1035  ;;  %v1076_v20 = vpop.permute.xlu1 %1075 }
 0x2ac   :  { %1046 = vst.msk [vmem:[#allocation2 + $0xd8] sm:$0xff] %vm127_vm12, %v6710_v19 }
 0x2af   :  { %v940_v22 = vpop.permute.xlu0 %939  ;;  %v980_v23 = vpop.permute.xlu1 %979 }
 0x2b0   :  { %948 = vst.msk [vmem:[#allocation2 + $0x88] sm:$0xff] %vm107_vm0, %v940_v22  ;;  %v982_v24 = vsel %vm8543_vm5, %v978_v12, %v980_v23  ;;  %988 = vst.msk [vmem:[#allocation2 + $0xb0] sm:$0xff] %vm107_vm0, %v980_v23  ;;  %vm8557_vm5 = vcmask 1014784  }
 0x2b1   :  { %1246 = vmatprep.subr.mxu1 %v982_v24 }
 0x2b2   :  { %1247 = vmatpush1.msra.mxu1 %v981_v25 }
 0x2b3   :  { %v898_v26 = vpop.permute.xlu0 %897  ;;  %v938_v27 = vpop.permute.xlu1 %937  ;;  %v1198_v4 = vld [vmem:[#allocation2 + $0xd8] sm:$0xff] }
 0x2b4   :  { %v941_v30 = vsel %vm8542_vm6, %v936_v53, %v938_v27  ;;  %v942_v31 = vsel %vm8542_vm6, %v938_v27, %v940_v22  ;;  %v901_v39 = vsel %vm8541_vm7, %v896_v56, %v898_v26  ;;  %vm8556_vm6 = vcmask 523264  }
 0x2b5   :  { %1248 = vmatprep.subr.mxu1 %v942_v31  ;;  %vm8559_vm3 = vmmov %vm8556_vm6 }
 0x2b6   :  { %1249 = vmatpush1.msra.mxu1 %v941_v30 }
 0x2b7   :  { %v6720_v32 = vpop.permute.xlu0 %955  ;;  %v6722_v33 = vpop.permute.xlu1 %995 }
 0x2b8   :  { %966 = vst.msk [vmem:[#allocation2 + $0x88] sm:$0xff] %vm127_vm12, %v6720_v32  ;;  %1006 = vst.msk [vmem:[#allocation2 + $0xb0] sm:$0xff] %vm127_vm12, %v6722_v33 }
 0x2bb   :  { %v860_v35 = vpop.permute.xlu0 %859  ;;  %v900_v36 = vpop.permute.xlu1 %899 }
 0x2bc   :  { %868 = vst.msk [vmem:[#allocation2 + $0x38] sm:$0xff] %vm107_vm0, %v860_v35  ;;  %v902_v37 = vsel %vm8541_vm7, %v898_v26, %v900_v36  ;;  %908 = vst.msk [vmem:[#allocation2 + $0x60] sm:$0xff] %vm107_vm0, %v900_v36  ;;  %vm8555_vm7 = vcmask 1006592  }
 0x2bd   :  { %1250 = vmatprep.subr.mxu1 %v902_v37  ;;  %vm8558_vm4 = vmmov %vm8555_vm7 }
 0x2be   :  { %1251 = vmatpush1.msra.mxu1 %v901_v39 }
 0x2bf   :  { %v6732_v40 = vpop.permute.xlu0 %875  ;;  %v858_v41 = vpop.permute.xlu1 %857  ;;  %v1188_v12 = vld [vmem:[#allocation2 + $0x88] sm:$0xff] }
 0x2c0   :  { %886 = vst.msk [vmem:[#allocation2 + $0x38] sm:$0xff] %vm127_vm12, %v6732_v40  ;;  %v861_v42 = vsel %vm8540_vm8, %v6694_v55, %v858_v41  ;;  %v862_v43 = vsel %vm8540_vm8, %v858_v41, %v860_v35  ;;  %vm8546_vm8 = vmmov 0  }
 0x2c1   :  { %1252 = vmatprep.subr.mxu1 %v862_v43 }
 0x2c2   :  { %1253 = vmatpush1.msra.mxu1 %v861_v42 }
 0x2c3   :  { %v1158_v45 = vpop.permute.xlu0 %1157  ;;  %v916_v46 = vpop.permute.xlu1 %915  ;;  %1254 = vmatprep.subr.mxu1 %v6628_v38 }
 0x2c4   :  { %v1161_v47 = vsel %vm8548_vm10, %v6700_v2, %v1158_v45  ;;  %926 = vst.msk [vmem:[#allocation2 + $0x60] sm:$0xff] %vm127_vm12, %v916_v46  ;;  %1255 = vmatpush1.msra.mxu1 %v6609_v34 }
 0x2c5   :  { %1166 = vst.msk [vmem:[#allocation2 + $0x150] sm:$0xff] %vm127_vm12, %v1161_v47  ;;  %5730 = vmatmul.mubr.msk.f32.vlgmr.msra.gmra.mxu1 %vm527_vm11, %v6742_v44  ;;  %6034 = vmatprep.subr.mxu1 %v6306_v5 }
 0x2c6   :  { %6052 = vmatprep.mubr.msk.f32.mxu1 %vm8546_vm8, %v6306_v5 }
 0x2c7   :  { %v1118_v48 = vpop.permute.xlu0 %1117  ;;  %v1160_v38 = vpop.permute.xlu1 %1159  ;;  %v1178_v23 = vld [vmem:[#allocation2 + $0x38] sm:$0xff] }
 0x2c8   :  { %v1121_v49 = vsel %vm8555_vm7, %v1116_v10, %v1118_v48  ;;  %v1162_v50 = vsel %vm8548_vm10, %v1158_v45, %v1160_v38  ;;  %1168 = vst.msk [vmem:[#allocation2 + $0x160] sm:$0xff] %vm8556_vm6, %v1160_v38  ;;  %vm8560_vm6 = vmmov %vm8557_vm5  ;;  %v1193_v10 = vld [vmem:[#allocation2 + $0xb0] sm:$0xff] }
 0x2c9   :  { %1126 = vst.msk [vmem:[#allocation2 + $0x128] sm:$0xff] %vm127_vm12, %v1121_v49  ;;  %1309 = vmatprep.subr.mxu0 %v1162_v50  ;;  %vm8561_vm7 = vmmov %vm8559_vm3 }
 0x2cb   :  { %v1078_v34 = vpop.permute.xlu0 %1077  ;;  %v1120_v51 = vpop.permute.xlu1 %1119  ;;  %v1183_v22 = vld [vmem:[#allocation2 + $0x60] sm:$0xff] }
 0x2cc   :  { %v1081_v52 = vsel %vm8557_vm5, %v1076_v20, %v1078_v34  ;;  %v1122_v53 = vsel %vm8558_vm4, %v1118_v48, %v1120_v51  ;;  %1128 = vst.msk [vmem:[#allocation2 + $0x138] sm:$0xff] %vm8559_vm3, %v1120_v51  ;;  %v1213_v54 = vld [vmem:[#allocation2 + $0x150] sm:$0xff]  ;;  %vm8562_vm3 = vcmask 97280   ;;  %vm8563_vm4 = vcmask 105472   ;;  %v683_v48 = vpop.f32.mrf.mxu1 }
 0x2cd   :  { %1086 = vst.msk [vmem:[#allocation2 + $0x100] sm:$0xff] %vm127_vm12, %v1081_v52  ;;  %1310 = vmatpush1.msra.mxu0 %v1213_v54  ;;  %vm8564_vm5 = vcmask 113664  }
 0x2ce   :  { %1311 = vmatprep.subr.mxu0 %v1122_v53  ;;  %v685_v38 = vpop.f32.mrf.mxu1 }
 0x2cf   :  { %v998_v55 = vpop.permute.xlu0 %997  ;;  %v1080_v56 = vpop.permute.xlu1 %1079  ;;  %v1215_v57 = vld [vmem:[#allocation2 + $0x160] sm:$0xff] }
 0x2d0   :  { %v1082_v59 = vsel %vm8560_vm6, %v1078_v34, %v1080_v56  ;;  %1088 = vst.msk [vmem:[#allocation2 + $0x110] sm:$0xff] %vm8561_vm7, %v1080_v56  ;;  %6035 = vmatpush3.msra.mxu1 %v1215_v57  ;;  %v1208_v60 = vld [vmem:[#allocation2 + $0x128] sm:$0xff]  ;;  %vm8565_vm6 = vcmask 244736   ;;  %vm8566_vm7 = vmmov %vm8562_vm3 }
 0x2d1   :  { %6036 = vmatprep.subr.mxu1 %v6306_v5  ;;  %1312 = vmatpush1.msra.mxu0 %v1208_v60  ;;  %v1001_v5 = vsel %vm8563_vm4, %v6722_v33, %v998_v55  ;;  %vm8568_vm4 = vcmask 523264  }
 0x2d2   :  { %1313 = vmatprep.subr.mxu0 %v1082_v59  ;;  %vm8574_vm8 = vmmov %vm8568_vm4 }
 0x2d3   :  { %v918_v61 = vpop.permute.xlu0 %917  ;;  %v1038_v63 = vpop.permute.xlu1 %1037  ;;  %v1210_v0 = vld [vmem:[#allocation2 + $0x138] sm:$0xff] }
 0x2d4   :  { %v1041_v2 = vsel %vm8562_vm3, %v6710_v19, %v1038_v63  ;;  %6037 = vmatpush3.msra.mxu1 %v1210_v0  ;;  %v1203_v1 = vld [vmem:[#allocation2 + $0x100] sm:$0xff]  ;;  %v921_v13 = vsel %vm8565_vm6, %v916_v46, %v918_v61  ;;  %vm8567_vm3 = vcmask 252928   ;;  %vm8569_vm6 = vmmov %vm8568_vm4 }
 0x2d5   :  { %6038 = vmatprep.subr.mxu1 %v6768_v3  ;;  %1314 = vmatpush1.msra.mxu0 %v1203_v1 }
 0x2d6   :  { %1315 = vmatprep.subr.mxu0 %v1041_v2 }
 0x2d7   :  { %v836_v58 = vpop.permute.xlu0 %835  ;;  %v958_v6 = vpop.permute.xlu1 %957  ;;  %v1205_v8 = vld [vmem:[#allocation2 + $0x110] sm:$0xff]  ;;  %1316 = vmatpush1.msra.mxu0 %v1198_v4 }
 0x2d8   :  { %846 = vst.msk [vmem:[#allocation2 + $0x10] sm:$0xff] %vm127_vm12, %v836_v58  ;;  %v961_v9 = vsel %vm8564_vm5, %v6720_v32, %v958_v6  ;;  %6039 = vmatpush3.msra.mxu1 %v1205_v8  ;;  %1317 = vmatprep.subr.mxu0 %v1001_v5 }
 0x2d9   :  { %1318 = vmatpush1.msra.mxu0 %v1193_v10  ;;  %6040 = vmatprep.subr.mxu1 %v6768_v3 }
 0x2da   :  { %1319 = vmatprep.subr.mxu0 %v961_v9 }
 0x2db   :  { %v1040_v14 = vpop.permute.xlu0 %1039  ;;  %v878_v18 = vpop.permute.xlu1 %877  ;;  %1320 = vmatpush1.msra.mxu0 %v1188_v12 }
 0x2dc   :  { %v1042_v19 = vsel %vm8566_vm7, %v1038_v63, %v1040_v14  ;;  %v881_v20 = vsel %vm8567_vm3, %v6732_v40, %v878_v18  ;;  %1321 = vmatprep.subr.mxu0 %v921_v13  ;;  %vm8570_vm7 = vmmov %vm8567_vm3  ;;  %vm8571_vm3 = vcmask 105472  }
 0x2dd   :  { %1048 = vst.msk [vmem:[#allocation2 + $0xe8] sm:$0xff] %vm8568_vm4, %v1042_v19  ;;  %1322 = vmatpush1.msra.mxu0 %v1183_v22 }
 0x2de   :  { %1323 = vmatprep.subr.mxu0 %v881_v20 }
 0x2df   :  { %v960_v24 = vpop.permute.xlu0 %959  ;;  %v838_v25 = vpop.permute.xlu1 %837  ;;  %1324 = vmatpush1.msra.mxu0 %v1178_v23  ;;  %v1173_v30 = vld [vmem:[#allocation2 + $0x10] sm:$0xff] }
 0x2e0   :  { %v962_v26 = vsel %vm8564_vm5, %v958_v6, %v960_v24  ;;  %v841_v27 = vsel %vm107_vm0, %v836_v58, %v838_v25  ;;  %vm8572_vm5 = vmmov %vm8568_vm4 }
 0x2e1   :  { %968 = vst.msk [vmem:[#allocation2 + $0x98] sm:$0xff] %vm8569_vm6, %v962_v26  ;;  %1325 = vmatprep.subr.mxu0 %v841_v27  ;;  %vm8573_vm6 = vcmask 244736  }
 0x2e2   :  { %1326 = vmatpush1.msra.mxu0 %v1173_v30 }
 0x2e3   :  { %v880_v31 = vpop.permute.xlu0 %879  ;;  %v1000_v32 = vpop.permute.xlu1 %999  ;;  %5731 = vmatmul.mubr.msk.f32.vlgmr.msra.gmra.mxu0 %vm527_vm11, %v6742_v44 }
 0x2e4   :  { %v882_v33 = vsel %vm8570_vm7, %v878_v18, %v880_v31  ;;  %v1200_v35 = vld [vmem:[#allocation2 + $0xe8] sm:$0xff]  ;;  %v1002_v36 = vsel %vm8571_vm3, %v998_v55, %v1000_v32  ;;  %1953 = vmatprep.mubr.f32.mxu0 %v6768_v3  ;;  %vm8575_vm7 = vmmov %vm8568_vm4 }
 0x2e5   :  { %888 = vst.msk [vmem:[#allocation2 + $0x48] sm:$0xff] %vm8568_vm4, %v882_v33  ;;  %6041 = vmatpush3.msra.mxu1 %v1200_v35  ;;  %vm8577_vm3 = vmmov %vm8568_vm4 }
 0x2e6   :  { %1008 = vst.msk [vmem:[#allocation2 + $0xc0] sm:$0xff] %vm8572_vm5, %v1002_v36  ;;  %6042 = vmatprep.subr.mxu1 %v6768_v3  ;;  %vm8579_vm5 = vcmask 752640  }
 0x2e7   :  { %v920_v37 = vpop.permute.xlu1 %919 }
 0x2e8   :  { %v922_v39 = vsel %vm8573_vm6, %v918_v61, %v920_v37  ;;  %v1190_v43 = vld [vmem:[#allocation2 + $0x98] sm:$0xff]  ;;  %vm8580_vm6 = vmmov %vm8579_vm5 }
 0x2e9   :  { %928 = vst.msk [vmem:[#allocation2 + $0x70] sm:$0xff] %vm8574_vm8, %v922_v39  ;;  %vm8576_vm8 = vmmov %vm8568_vm4 }
 0x2ea   :  { %vm8578_vm4 = vmmov %vm8577_vm3 }
 0x2eb   :  { %v840_v40 = vpop.permute.xlu1 %839 }
 0x2ec   :  { %v842_v41 = vsel %vm107_vm0, %v838_v25, %v840_v40  ;;  %v1180_v46 = vld [vmem:[#allocation2 + $0x48] sm:$0xff] }
 0x2ed   :  { %v1195_v42 = vld [vmem:[#allocation2 + $0xc0] sm:$0xff]  ;;  %848 = vst.msk [vmem:[#allocation2 + $0x20] sm:$0xff] %vm8575_vm7, %v842_v41  ;;  %v5734_v40 = vld [vmem:[%s8526_s7 + $0x8] sm:$0xff]  ;;  %vm8581_vm7 = vcmask 883712  }
 0x2ee   :  { %6043 = vmatpush3.msra.mxu1 %v1195_v42 }
 0x2ef   :  { %6044 = vmatprep.subr.mxu1 %v6768_v3 }
 0x2f0   :  { %6045 = vmatpush3.msra.mxu1 %v1190_v43  ;;  %v1185_v45 = vld [vmem:[#allocation2 + $0x70] sm:$0xff]  ;;  %v525_v49 = vpop.permute.xlu0 %524  ;;  %v5739_v43 = vld [vmem:[%s8526_s7 + $0x28] sm:$0xff] }
 0x2f1   :  { %6046 = vmatprep.subr.mxu1 %v6768_v3  ;;  %v607_v51 = vadd.f32 %v6583_v7, %v525_v49  ;;  %v609_v55 = vadd.f32 %v6587_v62, %v525_v49  ;;  %v684_v0 = vadd.f32 %v683_v48, %v525_v49  ;;  %v686_v1 = vadd.f32 %v685_v38, %v525_v49 }
 0x2f2   :  { %6047 = vmatpush3.msra.mxu1 %v1185_v45  ;;  %v760_v13 = vadd.f32 %v6591_v21, %v525_v49 }
 0x2f3   :  { %6048 = vmatprep.subr.mxu1 %v6768_v3 }
 0x2f4   :  { %6049 = vmatpush3.msra.mxu1 %v1180_v46  ;;  %v1175_v47 = vld [vmem:[#allocation2 + $0x20] sm:$0xff] }
 0x2f5   :  { %6050 = vmatprep.subr.mxu1 %v6768_v3 }
 0x2f6   :  { %6051 = vmatpush3.msra.mxu1 %v1175_v47 }
 0x2f7   :  { %6053 = vmatmul.mubr.msk.f32.vlgmr.msra.gmra.mxu1 %vm527_vm11, %v6742_v44 }
 0x2f8   :  { %2024 = vmatprep.mubr.f32.mxu1 %v6768_v3  ;;  %v1219_v50 = vpop.permute.xlu1 %1218 }
 0x385   :  { %v1290_v34 = vpop.f32.mrf.mxu1 }
 0x386   :  { %v1291_v52 = vadd.f32 %v1290_v34, %v1219_v50 }
 0x387   :  { %v1292_v53 = vpop.f32.mrf.mxu1 }
 0x388   :  { %v1436_v54 = vadd.f32 %v1291_v52, %v607_v51  ;;  %v1293_v56 = vadd.f32 %v1292_v53, %v1219_v50 }
 0x38a   :  { %v1439_v57 = vmax.f32 %v1436_v54, 0.0  ;;  %v1437_v59 = vadd.f32 %v1293_v56, %v609_v55 }
 0x38c   :  { %v1442_v60 = vmul.f32 %v1439_v57, %v6483_v16  ;;  %v1440_v44 = vmax.f32 %v1437_v59, 0.0 }
 0x38e   :  { %v1443_v61 = vmul.f32 %v1440_v44, %v6481_v15  ;;  %1448 = vrot.lane.b32.xlu1 %v1442_v60, %s6317_s4 }
 0x390   :  { %1450 = vrot.lane.b32.xlu0 %v1443_v61, %s6317_s4 }
 0x3a3   :  { %v1361_v63 = vpop.f32.mrf.mxu0 }
 0x3a4   :  { %v1362_v7 = vadd.f32 %v1361_v63, %v1219_v50 }
 0x3a5   :  { %v1363_v2 = vpop.f32.mrf.mxu0 }
 0x3a6   :  { %v1438_v4 = vadd.f32 %v1362_v7, %v684_v0  ;;  %v1364_v5 = vadd.f32 %v1363_v2, %v1219_v50 }
 0x3a8   :  { %v1441_v62 = vmax.f32 %v1438_v4, 0.0  ;;  %v1462_v58 = vadd.f32 %v1364_v5, %v686_v1 }
 0x3aa   :  { %v1444_v6 = vmul.f32 %v1441_v62, %v6489_v17  ;;  %v1466_v8 = vmul.f32 %v1441_v62, %v6585_v11  ;;  %v1464_v9 = vmax.f32 %v1462_v58, 0.0 }
 0x3ac   :  { %1472 = vrot.lane.b32.xlu0 %v1466_v8, %s6318_s26  ;;  %1452 = vrot.lane.b32.xlu1 %v1444_v6, %s6317_s4  ;;  %v1467_v10 = vmul.f32 %v1464_v9, %v6601_v29 }
 0x3b0   :  { %1474 = vrot.lane.b32.xlu0 %v1467_v10, %s6318_s26 }
 0x3b7   :  { %v1432_v12 = vpop.f32.mrf.mxu1 }
 0x3b8   :  { %v1433_v14 = vadd.f32 %v1432_v12, %v1219_v50 }
 0x3b9   :  { %v6054_v18 = vpop.f32.mrf.mxu1 }
 0x3ba   :  { %v1463_v19 = vadd.f32 %v1433_v14, %v760_v13 }
 0x3bc   :  { %v1465_v20 = vmax.f32 %v1463_v19, 0.0 }
 0x3be   :  { %v1468_v22 = vmul.f32 %v1465_v20, %v6597_v28 }
 0x3c0   :  { %1476 = vrot.lane.b32.xlu1 %v1468_v22, %s6318_s26 }
 0x400   :  { %v1449_v23 = vpop.permute.xlu1 %1448 }
 0x401   :  { %1459 = vst.msk [vmem:[#allocation4] sm:$0xff] %vm784_vm13, %v1449_v23 }
 0x402   :  { %v1451_v24 = vpop.permute.xlu0 %1450 }
 0x403   :  { %v6821_v25 = vsel %vm778_vm14, %v1449_v23, %v1451_v24 }
 0x404   :  { %1460 = vst [vmem:[#allocation4 + $0x8] sm:$0xff] %v6821_v25 }
 0x408   :  { %v6824_v26 = vld [vmem:[#allocation4] sm:$0xff] }
 0x409   :  { %1798 = vrot.lane.b32.xlu1 %v6824_v26, %s6298_s15  ;;  %1758 = vrot.lane.b32.xlu0 %v6824_v26, %s6299_s16 }
 0x40d   :  { %1718 = vrot.lane.b32.xlu1 %v6824_v26, %s6300_s17  ;;  %1678 = vrot.lane.b32.xlu0 %v6824_v26, %s6301_s18 }
 0x411   :  { %1638 = vrot.lane.b32.xlu1 %v6824_v26, %s6302_s19  ;;  %1598 = vrot.lane.b32.xlu0 %v6824_v26, %s6303_s20 }
 0x415   :  { %1558 = vrot.lane.b32.xlu1 %v6824_v26, %s6304_s21  ;;  %1518 = vrot.lane.b32.xlu0 %v6824_v26, %s6305_s22 }
 0x419   :  { %1800 = vrot.lane.b32.xlu1 %v6821_v25, %s6298_s15  ;;  %1760 = vrot.lane.b32.xlu0 %v6821_v25, %s6299_s16 }
 0x41d   :  { %1720 = vrot.lane.b32.xlu1 %v6821_v25, %s6300_s17  ;;  %1680 = vrot.lane.b32.xlu0 %v6821_v25, %s6301_s18 }
 0x41e   :  { %v1473_v21 = vpop.permute.xlu0 %1472  ;;  %v1453_v27 = vpop.permute.xlu1 %1452 }
 0x41f   :  { %v1455_v30 = vsel %vm778_vm14, %v1451_v24, %v1453_v27 }
 0x420   :  { %1461 = vst.msk [vmem:[#allocation4 + $0x10] sm:$0xff] %vm787_vm15, %v1455_v30 }
 0x421   :  { %1640 = vrot.lane.b32.xlu1 %v6821_v25, %s6302_s19  ;;  %1600 = vrot.lane.b32.xlu0 %v6821_v25, %s6303_s20 }
 0x422   :  { %v1475_v31 = vpop.permute.xlu0 %1474 }
 0x423   :  { %v1478_v32 = vsel %vm814_vm9, %v1473_v21, %v1475_v31 }
 0x424   :  { %1483 = vst.msk [vmem:[#allocation4 + $0x18] sm:$0xff] %vm784_vm13, %v1478_v32 }
 0x425   :  { %1560 = vrot.lane.b32.xlu1 %v6821_v25, %s6304_s21  ;;  %1520 = vrot.lane.b32.xlu0 %v6821_v25, %s6305_s22 }
 0x427   :  { %v1754_v33 = vld [vmem:[#allocation4 + $0x10] sm:$0xff] }
 0x428   :  { %1491 = vst.msk [vmem:[#allocation2 + $0x10] sm:$0xff] %vm107_vm0, %v1754_v33 }
 0x42b   :  { %v1812_v39 = vld [vmem:[#allocation4 + $0x18] sm:$0xff] }
 0x432   :  { %v1477_v35 = vpop.permute.xlu1 %1476 }
 0x433   :  { %v1479_v36 = vsel %vm814_vm9, %v1475_v31, %v1477_v35  ;;  %1485 = vst.msk [vmem:[#allocation4 + $0x28] sm:$0xff] %vm787_vm15, %v1477_v35 }
 0x434   :  { %1484 = vst [vmem:[#allocation4 + $0x20] sm:$0xff] %v1479_v36 }
 0x43a   :  { %v1814_v37 = vld [vmem:[#allocation4 + $0x28] sm:$0xff] }
 0x43b   :  { %1822 = vrot.lane.b32.xlu0 %v1814_v37, %s6307_s27  ;;  %1782 = vrot.lane.b32.xlu1 %v1814_v37, %s6308_s30 }
 0x43f   :  { %1742 = vrot.lane.b32.xlu0 %v1814_v37, %s6309_s10  ;;  %1662 = vrot.lane.b32.xlu1 %v1814_v37, %s6311_s0 }
 0x443   :  { %1702 = vrot.lane.b32.xlu0 %v1814_v37, %s6310_s11  ;;  %1582 = vrot.lane.b32.xlu1 %v1814_v37, %s8551_s13 }
 0x447   :  { %1622 = vrot.lane.b32.xlu0 %v1814_v37, %s6312_s12  ;;  %1762 = vrot.lane.b32.xlu1 %v1754_v33, %s6299_s16 }
 0x44b   :  { %1802 = vrot.lane.b32.xlu0 %v1754_v33, %s6298_s15  ;;  %1682 = vrot.lane.b32.xlu1 %v1754_v33, %s6301_s18 }
 0x44f   :  { %1722 = vrot.lane.b32.xlu0 %v1754_v33, %s6300_s17  ;;  %1602 = vrot.lane.b32.xlu1 %v1754_v33, %s6303_s20 }
 0x453   :  { %1642 = vrot.lane.b32.xlu0 %v1754_v33, %s6302_s19  ;;  %1522 = vrot.lane.b32.xlu1 %v1754_v33, %s6305_s22 }
 0x457   :  { %1562 = vrot.lane.b32.xlu0 %v1754_v33, %s6304_s21  ;;  %1820 = vrot.lane.b32.xlu1 %v1479_v36, %s6307_s27 }
 0x45b   :  { %1818 = vrot.lane.b32.xlu1 %v1812_v39, %s6307_s27  ;;  %1780 = vrot.lane.b32.xlu0 %v1479_v36, %s6308_s30 }
 0x45f   :  { %1778 = vrot.lane.b32.xlu0 %v1812_v39, %s6308_s30  ;;  %1740 = vrot.lane.b32.xlu1 %v1479_v36, %s6309_s10 }
 0x463   :  { %1698 = vrot.lane.b32.xlu0 %v1812_v39, %s6310_s11  ;;  %1738 = vrot.lane.b32.xlu1 %v1812_v39, %s6309_s10 }
 0x467   :  { %1658 = vrot.lane.b32.xlu0 %v1812_v39, %s6311_s0  ;;  %1700 = vrot.lane.b32.xlu1 %v1479_v36, %s6310_s11 }
 0x46b   :  { %1660 = vrot.lane.b32.xlu1 %v1479_v36, %s6311_s0  ;;  %1620 = vrot.lane.b32.xlu0 %v1479_v36, %s6312_s12 }
 0x46f   :  { %1618 = vrot.lane.b32.xlu1 %v1812_v39, %s6312_s12  ;;  %1578 = vrot.lane.b32.xlu0 %v1812_v39, %s8551_s13 }
 0x473   :  { %1580 = vrot.lane.b32.xlu1 %v1479_v36, %s8551_s13  ;;  %1540 = vrot.lane.b32.xlu0 %v1479_v36, %s6314_s14 }
 0x477   :  { %1538 = vrot.lane.b32.xlu1 %v1812_v39, %s6314_s14  ;;  %1498 = vrot.lane.b32.xlu0 %v1812_v39, %s8549_s23  ;;  %v7009_v39 = vld [vmem:[%s8527_s6 + $0x8] sm:$0xff] }
 0x47b   :  { %1542 = vrot.lane.b32.xlu0 %v1814_v37, %s6314_s14  ;;  %1500 = vrot.lane.b32.xlu1 %v1479_v36, %s8549_s23  ;;  %v1759_v41 = vpop.permute.xlu0 %1758  ;;  %v1799_v42 = vpop.permute.xlu1 %1798 }
 0x47f   :  { %1883 = vperm.xlu0 %6249, %v5734_v40   ;;  %1502 = vrot.lane.b32.xlu1 %v1814_v37, %s8549_s23  ;;  %v1679_v45 = vpop.permute.xlu0 %1678  ;;  %v1719_v46 = vpop.permute.xlu1 %1718 }
 0x483   :  { %2107 = vperm.xlu1 %6248, %v5739_v43   ;;  %v1599_v47 = vpop.permute.xlu0 %1598  ;;  %v1639_v48 = vpop.permute.xlu1 %1638 }
 0x487   :  { %v6906_v38 = vpop.permute.xlu0 %1518  ;;  %v6908_v49 = vpop.permute.xlu1 %1558 }
 0x48b   :  { %v1761_v50 = vpop.permute.xlu0 %1760  ;;  %v1801_v34 = vpop.permute.xlu1 %1800 }
 0x48c   :  { %v6934_v5 = vsel %vm438_vm1, %v1799_v42, %v1801_v34  ;;  %v6942_v58 = vsel %vm8554_vm2, %v1759_v41, %v1761_v50 }
 0x48f   :  { %v1681_v51 = vpop.permute.xlu0 %1680  ;;  %v1721_v52 = vpop.permute.xlu1 %1720 }
 0x490   :  { %v6952_v10 = vsel %vm8580_vm6, %v1719_v46, %v1721_v52 }
 0x493   :  { %v1601_v53 = vpop.permute.xlu0 %1600  ;;  %v1641_v54 = vpop.permute.xlu1 %1640 }
 0x497   :  { %v1521_v55 = vpop.permute.xlu0 %1520  ;;  %v1561_v56 = vpop.permute.xlu1 %1560 }
 0x4ad   :  { %v1823_v57 = vpop.permute.xlu0 %1822  ;;  %v6910_v59 = vpop.permute.xlu1 %1782 }
 0x4ae   :  { %1831 = vst.msk [vmem:[#allocation2 + $0x160] sm:$0xff] %vm8576_vm8, %v1823_v57  ;;  %vm8582_vm8 = vmmov %vm8581_vm7 }
 0x4af   :  { %1791 = vst.msk [vmem:[#allocation2 + $0x138] sm:$0xff] %vm8577_vm3, %v6910_v59  ;;  %v6960_v13 = vsel %vm8582_vm8, %v1679_v45, %v1681_v51  ;;  %vm8583_vm3 = vcmask 891904  }
 0x4b1   :  { %v6915_v60 = vpop.permute.xlu0 %1742  ;;  %v6917_v44 = vpop.permute.xlu1 %1662 }
 0x4b2   :  { %1751 = vst.msk [vmem:[#allocation2 + $0x110] sm:$0xff] %vm8578_vm4, %v6915_v60  ;;  %vm8584_vm4 = vmmov %vm8583_vm3 }
 0x4b3   :  { %v6970_v20 = vsel %vm8584_vm4, %v1639_v48, %v1641_v54 }
 0x4b5   :  { %v6921_v61 = vpop.permute.xlu0 %1702  ;;  %v6923_v63 = vpop.permute.xlu1 %1582  ;;  %v7017_v42 = vld [vmem:[#allocation2 + $0x160] sm:$0xff] }
 0x4b6   :  { %v7025_v45 = vld [vmem:[#allocation2 + $0x138] sm:$0xff] }
 0x4b9   :  { %v6925_v0 = vpop.permute.xlu0 %1622  ;;  %v1763_v7 = vpop.permute.xlu1 %1762  ;;  %v7029_v48 = vld [vmem:[#allocation2 + $0x110] sm:$0xff] }
 0x4ba   :  { %1771 = vst.msk [vmem:[#allocation2 + $0x128] sm:$0xff] %vm107_vm0, %v1763_v7  ;;  %v6938_v62 = vsel %vm8554_vm2, %v1761_v50, %v1763_v7 }
 0x4bd   :  { %v1803_v2 = vpop.permute.xlu0 %1802  ;;  %v1683_v1 = vpop.permute.xlu1 %1682 }
 0x4be   :  { %v6929_v4 = vsel %vm438_vm1, %v1801_v34, %v1803_v2  ;;  %1811 = vst.msk [vmem:[#allocation2 + $0x150] sm:$0xff] %vm107_vm0, %v1803_v2  ;;  %1691 = vst.msk [vmem:[#allocation2 + $0xd8] sm:$0xff] %vm107_vm0, %v1683_v1  ;;  %v6956_v12 = vsel %vm8581_vm7, %v1681_v51, %v1683_v1  ;;  %vm8587_vm7 = vcmask 1031168  }
 0x4bf   :  { %1903 = vmatprep.subr.mxu0 %v6929_v4  ;;  %vm8588_vm8 = vmmov %vm8587_vm7 }
 0x4c0   :  { %1904 = vmatpush1.msra.mxu0 %v6934_v5  ;;  %v6991_v31 = vsel %vm8588_vm8, %v6908_v49, %v1561_v56 }
 0x4c1   :  { %v1723_v6 = vpop.permute.xlu0 %1722  ;;  %v1603_v8 = vpop.permute.xlu1 %1602  ;;  %1905 = vmatprep.subr.mxu0 %v6938_v62 }
 0x4c2   :  { %v6946_v9 = vsel %vm8579_vm5, %v1721_v52, %v1723_v6  ;;  %1731 = vst.msk [vmem:[#allocation2 + $0x100] sm:$0xff] %vm107_vm0, %v1723_v6  ;;  %1611 = vst.msk [vmem:[#allocation2 + $0x88] sm:$0xff] %vm107_vm0, %v1603_v8  ;;  %1906 = vmatpush1.msra.mxu0 %v6942_v58  ;;  %vm8585_vm5 = vcmask 900096  }
 0x4c3   :  { %1907 = vmatprep.subr.mxu0 %v6946_v9  ;;  %v6974_v22 = vsel %vm8585_vm5, %v1601_v53, %v1603_v8  ;;  %vm8586_vm6 = vmmov %vm8585_vm5  ;;  %vm8591_vm5 = vcmask 1006592  }
 0x4c4   :  { %1908 = vmatpush1.msra.mxu0 %v6952_v10  ;;  %v6978_v23 = vsel %vm8586_vm6, %v1599_v47, %v1601_v53  ;;  %vm8592_vm6 = vmmov 0   ;;  %vm8594_vm8 = vmmov %vm8591_vm5 }
 0x4c5   :  { %v1643_v14 = vpop.permute.xlu0 %1642  ;;  %v1523_v18 = vpop.permute.xlu1 %1522  ;;  %1909 = vmatprep.subr.mxu0 %v6956_v12 }
 0x4c6   :  { %v6964_v19 = vsel %vm8583_vm3, %v1641_v54, %v1643_v14  ;;  %1651 = vst.msk [vmem:[#allocation2 + $0xb0] sm:$0xff] %vm107_vm0, %v1643_v14  ;;  %1531 = vst.msk [vmem:[#allocation2 + $0x38] sm:$0xff] %vm107_vm0, %v1523_v18  ;;  %1910 = vmatpush1.msra.mxu0 %v6960_v13  ;;  %vm8589_vm3 = vcmask 1039360  }
 0x4c7   :  { %1911 = vmatprep.subr.mxu0 %v6964_v19  ;;  %v6996_v32 = vsel %vm8589_vm3, %v1521_v55, %v1523_v18  ;;  %vm8590_vm4 = vmmov %vm8589_vm3  ;;  %vm8595_vm3 = vcmask 97280  }
 0x4c8   :  { %1912 = vmatpush1.msra.mxu0 %v6970_v20  ;;  %v7001_v33 = vsel %vm8590_vm4, %v6906_v38, %v1521_v55 }
 0x4c9   :  { %v1563_v24 = vpop.permute.xlu0 %1562  ;;  %v1821_v21 = vpop.permute.xlu1 %1820  ;;  %1913 = vmatprep.subr.mxu0 %v6974_v22 }
 0x4ca   :  { %v6982_v27 = vsel %vm8587_vm7, %v1561_v56, %v1563_v24  ;;  %1571 = vst.msk [vmem:[#allocation2 + $0x60] sm:$0xff] %vm107_vm0, %v1563_v24  ;;  %v6986_v30 = vsel %vm8548_vm10, %v1821_v21, %v1823_v57  ;;  %1914 = vmatpush1.msra.mxu0 %v6978_v23  ;;  %vm8593_vm7 = vcmask 1014784  }
 0x4cb   :  { %1915 = vmatprep.subr.mxu0 %v6982_v27  ;;  %1974 = vmatprep.subr.mxu1 %v6986_v30  ;;  %vm8596_vm4 = vmmov %vm8593_vm7 }
 0x4cc   :  { %1916 = vmatpush1.msra.mxu0 %v6991_v31 }
 0x4cd   :  { %v1781_v35 = vpop.permute.xlu0 %1780  ;;  %v1819_v36 = vpop.permute.xlu1 %1818  ;;  %1917 = vmatprep.subr.mxu0 %v6996_v32 }
 0x4ce   :  { %v1824_v37 = vsel %vm8548_vm10, %v1819_v36, %v1821_v21  ;;  %1918 = vmatpush1.msra.mxu0 %v7001_v33  ;;  %v7038_v50 = vsel %vm8594_vm8, %v1781_v35, %v6910_v59  ;;  %vm8599_vm8 = vcmask 105472  }
 0x4cf   :  { %1829 = vst.msk [vmem:[#allocation2 + $0x150] sm:$0xff] %vm127_vm12, %v1824_v37  ;;  %1919 = vmatprep.subr.mxu0 %v6821_v25  ;;  %vm8602_vm10 = vmmov %vm8599_vm8 }
 0x4d0   :  { %1920 = vmatpush1.msra.mxu0 %v6824_v26 }
 0x4d1   :  { %v1779_v40 = vpop.permute.xlu0 %1778  ;;  %v1741_v41 = vpop.permute.xlu1 %1740  ;;  %5735 = vmatmul.mubr.msk.f32.vlgmr.msra.gmra.mxu0 %vm527_vm11, %v7009_v39  ;;  %6055 = vmatprep.subr.mxu0 %v6768_v3 }
 0x4d2   :  { %v1784_v43 = vsel %vm8591_vm5, %v1779_v40, %v1781_v35  ;;  %6056 = vmatpush3.msra.mxu0 %v7017_v42  ;;  %6073 = vmatprep.mubr.msk.f32.mxu0 %vm8592_vm6, %v6768_v3  ;;  %v7051_v54 = vsel %vm8596_vm4, %v1741_v41, %v6915_v60  ;;  %vm8597_vm5 = vcmask 523264  }
 0x4d3   :  { %1789 = vst.msk [vmem:[#allocation2 + $0x128] sm:$0xff] %vm127_vm12, %v1784_v43  ;;  %6057 = vmatprep.subr.mxu0 %v6768_v3  ;;  %vm8600_vm4 = vmmov %vm8597_vm5 }
 0x4d4   :  { %6058 = vmatpush3.msra.mxu0 %v7025_v45 }
 0x4d5   :  { %v1699_v46 = vpop.permute.xlu0 %1698  ;;  %v1739_v47 = vpop.permute.xlu1 %1738  ;;  %6059 = vmatprep.subr.mxu0 %v6768_v3 }
 0x4d6   :  { %1709 = vst.msk [vmem:[#allocation2 + $0xd8] sm:$0xff] %vm127_vm12, %v1699_v46  ;;  %v1744_v38 = vsel %vm8593_vm7, %v1739_v47, %v1741_v41  ;;  %v7033_v49 = vld [vmem:[#allocation2 + $0x150] sm:$0xff]  ;;  %6060 = vmatpush3.msra.mxu0 %v7029_v48  ;;  %vm8598_vm7 = vcmask 113664  }
 0x4d7   :  { %1749 = vst.msk [vmem:[#allocation2 + $0x100] sm:$0xff] %vm127_vm12, %v1744_v38  ;;  %1975 = vmatpush1.msra.mxu1 %v7033_v49  ;;  %6061 = vmatprep.subr.mxu0 %v6768_v3 }
 0x4d8   :  { %1976 = vmatprep.subr.mxu1 %v7038_v50 }
 0x4d9   :  { %v1659_v34 = vpop.permute.xlu0 %1658  ;;  %v1701_v51 = vpop.permute.xlu1 %1700 }
 0x4da   :  { %1669 = vst.msk [vmem:[#allocation2 + $0xb0] sm:$0xff] %vm127_vm12, %v1659_v34  ;;  %v1705_v52 = vsel %vm8595_vm3, %v1701_v51, %v6921_v61  ;;  %v7047_v53 = vld [vmem:[#allocation2 + $0x128] sm:$0xff]  ;;  %v7063_v7 = vsel %vm8595_vm3, %v1699_v46, %v1701_v51 }
 0x4db   :  { %1711 = vst.msk [vmem:[#allocation2 + $0xe8] sm:$0xff] %vm8597_vm5, %v1705_v52  ;;  %1977 = vmatpush1.msra.mxu1 %v7047_v53  ;;  %vm8601_vm5 = vmmov %vm8600_vm4 }
 0x4dc   :  { %1978 = vmatprep.subr.mxu1 %v7051_v54 }
 0x4dd   :  { %v1621_v55 = vpop.permute.xlu0 %1620  ;;  %v1661_v56 = vpop.permute.xlu1 %1660  ;;  %v7069_v60 = vld [vmem:[#allocation2 + $0xd8] sm:$0xff] }
 0x4de   :  { %v1625_v57 = vsel %vm8598_vm7, %v1621_v55, %v6925_v0  ;;  %v1665_v59 = vsel %vm8599_vm8, %v1661_v56, %v6917_v44  ;;  %v7060_v61 = vld [vmem:[#allocation2 + $0x100] sm:$0xff]  ;;  %v7072_v0 = vsel %vm8602_vm10, %v1659_v34, %v1661_v56  ;;  %vm8603_vm10 = vcmask 244736   ;;  %vm8604_vm8 = vmmov %vm8600_vm4 }
 0x4df   :  { %1631 = vst.msk [vmem:[#allocation2 + $0x98] sm:$0xff] %vm8600_vm4, %v1625_v57  ;;  %1979 = vmatpush1.msra.mxu1 %v7060_v61  ;;  %vm8605_vm3 = vmmov %vm8603_vm10  ;;  %vm8606_vm4 = vcmask 252928  }
 0x4e0   :  { %1671 = vst.msk [vmem:[#allocation2 + $0xc0] sm:$0xff] %vm8601_vm5, %v1665_v59  ;;  %1980 = vmatprep.subr.mxu1 %v7063_v7  ;;  %vm8607_vm5 = vmmov %vm8606_vm4 }
 0x4e1   :  { %v1579_v2 = vpop.permute.xlu0 %1578  ;;  %v1619_v44 = vpop.permute.xlu1 %1618  ;;  %1981 = vmatpush1.msra.mxu1 %v7069_v60  ;;  %v7075_v1 = vld [vmem:[#allocation2 + $0xb0] sm:$0xff] }
 0x4e2   :  { %1589 = vst.msk [vmem:[#allocation2 + $0x60] sm:$0xff] %vm127_vm12, %v1579_v2  ;;  %v7079_v6 = vsel %vm8598_vm7, %v1619_v44, %v1621_v55  ;;  %1629 = vst.msk [vmem:[#allocation2 + $0x88] sm:$0xff] %vm127_vm12, %v1619_v44  ;;  %v7082_v8 = vld [vmem:[#allocation2 + $0xe8] sm:$0xff]  ;;  %1982 = vmatprep.subr.mxu1 %v7072_v0 }
 0x4e3   :  { %6062 = vmatpush3.msra.mxu0 %v7082_v8  ;;  %1983 = vmatpush1.msra.mxu1 %v7075_v1  ;;  %vm8608_vm7 = vmmov %vm8604_vm8  ;;  %v7368_v44 = vld [vmem:[%s8528_s3 + $0x88] sm:$0xff] }
 0x4e4   :  { %6063 = vmatprep.subr.mxu0 %v6768_v3  ;;  %1984 = vmatprep.subr.mxu1 %v7079_v6 }
 0x4e5   :  { %v1541_v14 = vpop.permute.xlu0 %1540  ;;  %v1581_v18 = vpop.permute.xlu1 %1580 }
 0x4e6   :  { %v1585_v24 = vsel %vm8603_vm10, %v1581_v18, %v6923_v63  ;;  %v7096_v35 = vld [vmem:[#allocation2 + $0x98] sm:$0xff]  ;;  %v7102_v41 = vsel %vm8605_vm3, %v1579_v2, %v1581_v18  ;;  %vm8609_vm10 = vmmov %vm8608_vm7  ;;  %v98_v18 = vld [vmem:[%s8528_s3 + $0x100] sm:$0xff]  ;;  %vm8612_vm3 = vcmask 752640  }
 0x4e7   :  { %v7091_v21 = vld [vmem:[#allocation2 + $0xc0] sm:$0xff]  ;;  %1591 = vst.msk [vmem:[#allocation2 + $0x70] sm:$0xff] %vm8604_vm8, %v1585_v24  ;;  %vm8553_vm8 = vcmask 785408  }
 0x4e8   :  { %6064 = vmatpush3.msra.mxu0 %v7091_v21 }
 0x4e9   :  { %6065 = vmatprep.subr.mxu0 %v6768_v3  ;;  %v1499_v36 = vpop.permute.xlu0 %1498  ;;  %v1539_v37 = vpop.permute.xlu1 %1538  ;;  %v7099_v40 = vld [vmem:[#allocation2 + $0x88] sm:$0xff]  ;;  %v1848_v63 = vld [vmem:[#allocation2 + $0x60] sm:$0xff] }
 0x4ea   :  { %6066 = vmatpush3.msra.mxu0 %v7096_v35  ;;  %1509 = vst.msk [vmem:[#allocation2 + $0x10] sm:$0xff] %vm127_vm12, %v1499_v36  ;;  %1549 = vst.msk [vmem:[#allocation2 + $0x38] sm:$0xff] %vm127_vm12, %v1539_v37  ;;  %1985 = vmatpush1.msra.mxu1 %v7099_v40  ;;  %v1544_v43 = vsel %vm8606_vm4, %v1539_v37, %v1541_v14 }
 0x4eb   :  { %6067 = vmatprep.subr.mxu0 %v6768_v3  ;;  %1986 = vmatprep.subr.mxu1 %v7102_v41  ;;  %vm8613_vm4 = vmmov %vm8612_vm3 }
 0x4ec   :  { %1987 = vmatpush1.msra.mxu1 %v1848_v63 }
 0x4ed   :  { %v1543_v46 = vpop.permute.xlu0 %1542  ;;  %v1501_v47 = vpop.permute.xlu1 %1500  ;;  %1988 = vmatprep.subr.mxu1 %v1544_v43 }
 0x4ee   :  { %v1545_v38 = vsel %vm8607_vm5, %v1541_v14, %v1543_v46  ;;  %v7111_v34 = vld [vmem:[#allocation2 + $0x70] sm:$0xff]  ;;  %v1504_v55 = vsel %vm107_vm0, %v1499_v36, %v1501_v47  ;;  %v7393_v14 = vld [vmem:[#allocation5] sm:$0xff]  ;;  %vm8614_vm5 = vcmask 883712  }
 0x4ef   :  { %1551 = vst.msk [vmem:[#allocation2 + $0x48] sm:$0xff] %vm8608_vm7, %v1545_v38  ;;  %6068 = vmatpush3.msra.mxu0 %v7111_v34  ;;  %vm8615_vm7 = vmmov %vm8614_vm5 }
 0x4f0   :  { %6069 = vmatprep.subr.mxu0 %v6768_v3 }
 0x4f1   :  { %v1503_v51 = vpop.permute.xlu1 %1502  ;;  %v1843_v52 = vld [vmem:[#allocation2 + $0x38] sm:$0xff]  ;;  %v1838_v57 = vld [vmem:[#allocation2 + $0x10] sm:$0xff] }
 0x4f2   :  { %v1505_v56 = vsel %vm107_vm0, %v1501_v47, %v1503_v51  ;;  %1989 = vmatpush1.msra.mxu1 %v1843_v52 }
 0x4f3   :  { %1511 = vst.msk [vmem:[#allocation2 + $0x20] sm:$0xff] %vm8609_vm10, %v1505_v56  ;;  %1990 = vmatprep.subr.mxu1 %v1504_v55  ;;  %vm8616_vm10 = vcmask 891904  }
 0x4f4   :  { %1991 = vmatpush1.msra.mxu1 %v1838_v57 }
 0x4f5   :  { %5736 = vmatmul.mubr.msk.f32.vlgmr.msra.gmra.mxu1 %vm527_vm11, %v7009_v39  ;;  %2127 = vmatprep.subr.mxu1 %v6929_v4  ;;  %v5738_v4 = vld [vmem:[%s8527_s6 + $0x28] sm:$0xff] }
 0x4f6   :  { %v1845_v59 = vld [vmem:[#allocation2 + $0x48] sm:$0xff]  ;;  %2128 = vmatpush1.msra.mxu1 %v6934_v5  ;;  %2177 = vmatprep.mubr.f32.mxu1 %v6768_v3  ;;  %v7193_v5 = vld [vmem:[%s8528_s3 + $0xf0] sm:$0xff] }
 0x4f7   :  { %6070 = vmatpush3.msra.mxu0 %v1845_v59  ;;  %2129 = vmatprep.subr.mxu1 %v6938_v62  ;;  %v7200_v62 = vld [vmem:[%s8528_s3 + $0x70] sm:$0xff] }
 0x4f8   :  { %6071 = vmatprep.subr.mxu0 %v6768_v3  ;;  %2130 = vmatpush1.msra.mxu1 %v6942_v58  ;;  %v7206_v58 = vld [vmem:[%s8528_s3 + $0xe8] sm:$0xff] }
 0x4f9   :  { %2131 = vmatprep.subr.mxu1 %v6946_v9  ;;  %v7213_v9 = vld [vmem:[%s8528_s3 + $0x68] sm:$0xff] }
 0x4fa   :  { %v1840_v2 = vld [vmem:[#allocation2 + $0x20] sm:$0xff]  ;;  %2132 = vmatpush1.msra.mxu1 %v6952_v10  ;;  %v1884_v24 = vpop.permute.xlu0 %1883 }
 0x4fb   :  { %6072 = vmatpush3.msra.mxu0 %v1840_v2  ;;  %2133 = vmatprep.subr.mxu1 %v6956_v12  ;;  %v7221_v10 = vld [vmem:[%s8528_s3 + $0xe0] sm:$0xff] }
 0x4fc   :  { %6074 = vmatmul.mubr.msk.f32.vlgmr.msra.gmra.mxu0 %vm527_vm11, %v7009_v39  ;;  %2198 = vmatprep.subr.mxu0 %v6986_v30  ;;  %v7227_v12 = vld [vmem:[%s8528_s3 + $0x60] sm:$0xff]  ;;  %v7295_v39 = vld [vmem:[%s8528_s3 + $0xb0] sm:$0xff] }
 0x4fd   :  { %2199 = vmatpush1.msra.mxu0 %v7033_v49  ;;  %2134 = vmatpush1.msra.mxu1 %v6960_v13  ;;  %v7235_v13 = vld [vmem:[%s8528_s3 + $0xd8] sm:$0xff]  ;;  %v7271_v30 = vld [vmem:[%s8528_s3 + $0xc0] sm:$0xff] }
 0x4fe   :  { %2200 = vmatprep.subr.mxu0 %v7038_v50  ;;  %2135 = vmatprep.subr.mxu1 %v6964_v19  ;;  %v7241_v19 = vld [vmem:[%s8528_s3 + $0x58] sm:$0xff]  ;;  %v7317_v49 = vld [vmem:[%s8528_s3 + $0xa0] sm:$0xff] }
 0x4ff   :  { %2201 = vmatpush1.msra.mxu0 %v7047_v53  ;;  %2136 = vmatpush1.msra.mxu1 %v6970_v20  ;;  %v7247_v20 = vld [vmem:[%s8528_s3 + $0xd0] sm:$0xff]  ;;  %v7323_v50 = vld [vmem:[%s8528_s3 + $0x20] sm:$0xff]  ;;  %v7329_v53 = vld [vmem:[%s8528_s3 + $0x98] sm:$0xff] }
 0x500   :  { %2202 = vmatprep.subr.mxu0 %v7051_v54  ;;  %2137 = vmatprep.subr.mxu1 %v6974_v22  ;;  %v7253_v22 = vld [vmem:[%s8528_s3 + $0x50] sm:$0xff]  ;;  %v7334_v54 = vld [vmem:[%s8528_s3 + $0x118] sm:$0xff] }
 0x501   :  { %2203 = vmatpush1.msra.mxu0 %v7060_v61  ;;  %2138 = vmatpush1.msra.mxu1 %v6978_v23  ;;  %v7259_v23 = vld [vmem:[%s8528_s3 + $0xc8] sm:$0xff]  ;;  %v7340_v61 = vld [vmem:[%s8528_s3 + $0x18] sm:$0xff] }
 0x502   :  { %2204 = vmatprep.subr.mxu0 %v7063_v7  ;;  %2139 = vmatprep.subr.mxu1 %v6982_v27  ;;  %v7265_v27 = vld [vmem:[%s8528_s3 + $0x48] sm:$0xff]  ;;  %v7350_v7 = vld [vmem:[%s8528_s3 + $0x90] sm:$0xff] }
 0x503   :  { %2205 = vmatpush1.msra.mxu0 %v7069_v60  ;;  %2140 = vmatpush1.msra.mxu1 %v6991_v31  ;;  %v7277_v31 = vld [vmem:[%s8528_s3 + $0x40] sm:$0xff]  ;;  %v7355_v60 = vld [vmem:[%s8528_s3 + $0x10] sm:$0xff] }
 0x504   :  { %2206 = vmatprep.subr.mxu0 %v7072_v0  ;;  %2141 = vmatprep.subr.mxu1 %v6996_v32  ;;  %v7283_v32 = vld [vmem:[%s8528_s3 + $0xb8] sm:$0xff]  ;;  %v7360_v0 = vld [vmem:[%s8528_s3 + $0x110] sm:$0xff] }
 0x505   :  { %2207 = vmatpush1.msra.mxu0 %v7075_v1  ;;  %2142 = vmatpush1.msra.mxu1 %v7001_v33  ;;  %v7289_v33 = vld [vmem:[%s8528_s3 + $0x38] sm:$0xff]  ;;  %v7375_v1 = vld [vmem:[%s8528_s3 + $0x8] sm:$0xff] }
 0x506   :  { %2208 = vmatprep.subr.mxu0 %v7079_v6  ;;  %2143 = vmatprep.subr.mxu1 %v6821_v25  ;;  %v7183_v25 = vld [vmem:[%s8528_s3 + $0xf8] sm:$0xff]  ;;  %v7381_v6 = vld [vmem:[%s8528_s3 + $0x80] sm:$0xff] }
 0x507   :  { %2209 = vmatpush1.msra.mxu0 %v7099_v40  ;;  %2144 = vmatpush1.msra.mxu1 %v6824_v26  ;;  %v7188_v26 = vld [vmem:[%s8528_s3 + $0x78] sm:$0xff] }
 0x508   :  { %2210 = vmatprep.subr.mxu0 %v7102_v41  ;;  %5740 = vmatmul.mubr.msk.f32.vlgmr.msra.gmra.mxu1 %vm527_vm11, %v5738_v4 }
 0x509   :  { %2211 = vmatpush1.msra.mxu0 %v1848_v63  ;;  %6076 = vmatprep.subr.mxu1 %v6768_v3 }
 0x50a   :  { %2212 = vmatprep.subr.mxu0 %v1544_v43  ;;  %6077 = vmatpush3.msra.mxu1 %v7017_v42  ;;  %v7300_v42 = vld [vmem:[%s8528_s3 + $0x30] sm:$0xff] }
 0x50b   :  { %2213 = vmatpush1.msra.mxu0 %v1843_v52  ;;  %2248 = vmatprep.mubr.f32.mxu0 %v6768_v3 }
 0x50c   :  { %2214 = vmatprep.subr.mxu0 %v1504_v55  ;;  %6078 = vmatprep.subr.mxu1 %v6768_v3 }
 0x50d   :  { %2215 = vmatpush1.msra.mxu0 %v1838_v57  ;;  %6079 = vmatpush3.msra.mxu1 %v7025_v45  ;;  %v7307_v45 = vld [vmem:[%s8528_s3 + $0xa8] sm:$0xff] }
 0x50e   :  { %5741 = vmatmul.mubr.msk.f32.vlgmr.msra.gmra.mxu0 %vm527_vm11, %v5738_v4  ;;  %6080 = vmatprep.subr.mxu1 %v6768_v3 }
 0x50f   :  { %6081 = vmatpush3.msra.mxu1 %v7029_v48  ;;  %6094 = vmatprep.mubr.msk.f32.mxu1 %vm8592_vm6, %v6768_v3  ;;  %v7312_v48 = vld [vmem:[%s8528_s3 + $0x28] sm:$0xff] }
 0x510   :  { %6082 = vmatprep.subr.mxu1 %v6768_v3  ;;  %5813 = vmatprep.subr.mxu0 %v7183_v25 }
 0x511   :  { %6083 = vmatpush3.msra.mxu1 %v7082_v8  ;;  %5814 = vmatpush3.msra.mxu0 %v7188_v26  ;;  %v99_v8 = vld [vmem:[%s8528_s3 + $0x108] sm:$0xff] }
 0x512   :  { %6084 = vmatprep.subr.mxu1 %v6768_v3  ;;  %5815 = vmatprep.subr.mxu0 %v7193_v5 }
 0x513   :  { %6085 = vmatpush3.msra.mxu1 %v7091_v21  ;;  %5816 = vmatpush3.msra.mxu0 %v7200_v62 }
 0x514   :  { %6086 = vmatprep.subr.mxu1 %v6768_v3  ;;  %5817 = vmatprep.subr.mxu0 %v7206_v58 }
 0x515   :  { %6087 = vmatpush3.msra.mxu1 %v7096_v35  ;;  %5818 = vmatpush3.msra.mxu0 %v7213_v9 }
 0x516   :  { %6088 = vmatprep.subr.mxu1 %v6768_v3  ;;  %5819 = vmatprep.subr.mxu0 %v7221_v10 }
 0x517   :  { %6089 = vmatpush3.msra.mxu1 %v7111_v34  ;;  %5820 = vmatpush3.msra.mxu0 %v7227_v12 }
 0x518   :  { %6090 = vmatprep.subr.mxu1 %v6768_v3  ;;  %5821 = vmatprep.subr.mxu0 %v7235_v13 }
 0x519   :  { %6091 = vmatpush3.msra.mxu1 %v1845_v59  ;;  %5822 = vmatpush3.msra.mxu0 %v7241_v19 }
 0x51a   :  { %6092 = vmatprep.subr.mxu1 %v6768_v3  ;;  %5823 = vmatprep.subr.mxu0 %v7247_v20 }
 0x51b   :  { %6093 = vmatpush3.msra.mxu1 %v1840_v2  ;;  %5824 = vmatpush3.msra.mxu0 %v7253_v22 }
 0x51c   :  { %6095 = vmatmul.mubr.msk.f32.vlgmr.msra.gmra.mxu1 %vm527_vm11, %v5738_v4  ;;  %6097 = vmatprep.subr.mxu1 %v6768_v3 }
 0x51d   :  { %6105 = vmatprep.mubr.msk.f32.mxu1 %vm8592_vm6, %v6768_v3  ;;  %5825 = vmatprep.subr.mxu0 %v7259_v23 }
 0x51e   :  { %5826 = vmatpush3.msra.mxu0 %v7265_v27  ;;  %6098 = vmatpush3.msra.mxu1 %v7334_v54 }
 0x51f   :  { %5827 = vmatprep.subr.mxu0 %v7271_v30  ;;  %6099 = vmatprep.subr.mxu1 %v6768_v3 }
 0x520   :  { %5828 = vmatpush3.msra.mxu0 %v7277_v31  ;;  %6100 = vmatpush3.msra.mxu1 %v7360_v0 }
 0x521   :  { %5829 = vmatprep.subr.mxu0 %v7283_v32  ;;  %6101 = vmatprep.subr.mxu1 %v6768_v3  ;;  %v7387_v3 = vld [vmem:[%s8528_s3] sm:$0xff] }
 0x522   :  { %5830 = vmatpush3.msra.mxu0 %v7289_v33  ;;  %6102 = vmatpush3.msra.mxu1 %v99_v8 }
 0x523   :  { %5831 = vmatprep.subr.mxu0 %v7295_v39  ;;  %6103 = vmatprep.subr.mxu1 %v7393_v14 }
 0x524   :  { %5832 = vmatpush3.msra.mxu0 %v7300_v42  ;;  %6104 = vmatpush3.msra.mxu1 %v98_v18 }
 0x525   :  { %5833 = vmatprep.subr.mxu0 %v7307_v45  ;;  %5853 = vmatprep.subr.mxu1 %v7183_v25 }
 0x526   :  { %5834 = vmatpush3.msra.mxu0 %v7312_v48 }
 0x527   :  { %5835 = vmatprep.subr.mxu0 %v7317_v49 }
 0x528   :  { %5836 = vmatpush3.msra.mxu0 %v7323_v50 }
 0x529   :  { %5837 = vmatprep.subr.mxu0 %v7329_v53 }
 0x52a   :  { %5838 = vmatpush3.msra.mxu0 %v7340_v61 }
 0x52b   :  { %5839 = vmatprep.subr.mxu0 %v7350_v7 }
 0x52c   :  { %5840 = vmatpush3.msra.mxu0 %v7355_v60 }
 0x52d   :  { %5841 = vmatprep.subr.mxu0 %v7368_v44 }
 0x52e   :  { %5842 = vmatpush3.msra.mxu0 %v7375_v1 }
 0x52f   :  { %5843 = vmatprep.subr.mxu0 %v7381_v6 }
 0x530   :  { %5844 = vmatpush3.msra.mxu0 %v7387_v3 }
 0x531   :  { %6108 = vmatprep.subr.mxu0 %v7393_v14 }
 0x591   :  { %v1955_v21 = vpop.f32.mrf.mxu0 }
 0x592   :  { %v1956_v35 = vadd.f32 %v1955_v21, %v1884_v24 }
 0x593   :  { %v1957_v36 = vpop.f32.mrf.mxu0 }
 0x594   :  { %v2469_v37 = vmax.f32 %v1956_v35, 0.0  ;;  %v1958_v40 = vadd.f32 %v1957_v36, %v1884_v24  ;;  %v2108_v36 = vpop.permute.xlu1 %2107 }
 0x596   :  { %v2472_v41 = vmul.f32 %v2469_v37, %v6483_v16  ;;  %v2470_v63 = vmax.f32 %v1958_v40, 0.0 }
 0x598   :  { %v2473_v43 = vmul.f32 %v2470_v63, %v6481_v15  ;;  %2478 = vrot.lane.b32.xlu1 %v2472_v41, %s6317_s4 }
 0x59a   :  { %2480 = vrot.lane.b32.xlu0 %v2473_v43, %s6317_s4 }
 0x5b5   :  { %v2026_v46 = vpop.f32.mrf.mxu1 }
 0x5b6   :  { %v2027_v47 = vadd.f32 %v2026_v46, %v1884_v24 }
 0x5b7   :  { %v2028_v38 = vpop.f32.mrf.mxu1 }
 0x5b8   :  { %v2471_v34 = vmax.f32 %v2027_v47, 0.0  ;;  %v2029_v51 = vadd.f32 %v2028_v38, %v1884_v24 }
 0x5ba   :  { %v2474_v52 = vmul.f32 %v2471_v34, %v6489_v17  ;;  %v2651_v55 = vmul.f32 %v2471_v34, %v6585_v11  ;;  %v2649_v56 = vmax.f32 %v2029_v51, 0.0  ;;  %v3331_v51 = vld [vmem:[#allocation4 + $0x28] sm:$0xff] }
 0x5bc   :  { %v2097_v57 = vpop.f32.mrf.mxu0  ;;  %2657 = vrot.lane.b32.xlu0 %v2651_v55, %s6318_s26  ;;  %2482 = vrot.lane.b32.xlu1 %v2474_v52, %s6317_s4  ;;  %v2652_v2 = vmul.f32 %v2649_v56, %v6601_v29  ;;  %v3330_v52 = vld [vmem:[#allocation4 + $0x20] sm:$0xff] }
 0x5bd   :  { %v2098_v59 = vadd.f32 %v2097_v57, %v1884_v24 }
 0x5be   :  { %v6075_v4 = vpop.f32.mrf.mxu0 }
 0x5bf   :  { %v2650_v25 = vmax.f32 %v2098_v59, 0.0 }
 0x5c0   :  { %2659 = vrot.lane.b32.xlu0 %v2652_v2, %s6318_s26 }
 0x5c1   :  { %v2653_v21 = vmul.f32 %v2650_v25, %v6597_v28 }
 0x5c3   :  { %2661 = vrot.lane.b32.xlu1 %v2653_v21, %s6318_s26 }
 0x5c8   :  { %v2179_v35 = vpop.f32.mrf.mxu1 }
 0x5c9   :  { %v2180_v41 = vadd.f32 %v2179_v35, %v2108_v36 }
 0x5ca   :  { %v2181_v37 = vpop.f32.mrf.mxu1 }
 0x5cb   :  { %v2182_v40 = vadd.f32 %v2181_v37, %v2108_v36 }
 0x5cd   :  { %2392 = vmatprep.mubr.f32.mxu0 %v2182_v40 }
 0x5ce   :  { %v2250_v63 = vpop.f32.mrf.mxu0  ;;  %2393 = vmatmul.mubr.f32.vlgmr.msra.gmra.mxu0 %v2180_v41 }
 0x5cf   :  { %v2251_v43 = vadd.f32 %v2250_v63, %v2108_v36  ;;  %6109 = vmatpush3.msra.mxu0 %v7334_v54  ;;  %6116 = vmatprep.mubr.msk.f32.mxu0 %vm8592_vm6, %v7393_v14  ;;  %v3287_v54 = vld [vmem:[#allocation4 + $0x8] sm:$0xff] }
 0x5d0   :  { %v2252_v24 = vpop.f32.mrf.mxu0  ;;  %6110 = vmatprep.subr.mxu0 %v7393_v14 }
 0x5d1   :  { %v2253_v46 = vadd.f32 %v2252_v24, %v2108_v36  ;;  %6106 = vmatmul.mubr.msk.f32.vlgmr.msra.gmra.mxu1 %vm107_vm0, %v2251_v43  ;;  %6111 = vmatpush3.msra.mxu0 %v7360_v0 }
 0x5d2   :  { %5854 = vmatpush3.msra.mxu1 %v7188_v26  ;;  %6112 = vmatprep.subr.mxu0 %v7393_v14 }
 0x5d3   :  { %v6250_v47 = vpack.i.bf16 %v2251_v43, %v2253_v46  ;;  %5855 = vmatprep.subr.mxu1 %v7193_v5  ;;  %6113 = vmatpush3.msra.mxu0 %v99_v8 }
 0x5d4   :  { %5856 = vmatpush3.msra.mxu1 %v7200_v62  ;;  %6114 = vmatprep.subr.mxu0 %v7393_v14 }
 0x5d5   :  { %6251 = vrot.lane.b32.xlu0 %v6250_v47, %s6320_s29  ;;  %5857 = vmatprep.subr.mxu1 %v7206_v58 }
 0x5d6   :  { %5858 = vmatpush3.msra.mxu1 %v7213_v9  ;;  %6115 = vmatpush3.msra.mxu0 %v98_v18  ;;  %v3288_v18 = vld [vmem:[#allocation4 + $0x10] sm:$0xff] }
 0x5d7   :  { %5859 = vmatprep.subr.mxu1 %v7221_v10 }
 0x5d8   :  { %5860 = vmatpush3.msra.mxu1 %v7227_v12 }
 0x5d9   :  { %5861 = vmatprep.subr.mxu1 %v7235_v13 }
 0x5da   :  { %5862 = vmatpush3.msra.mxu1 %v7241_v19 }
 0x5db   :  { %5863 = vmatprep.subr.mxu1 %v7247_v20 }
 0x5dc   :  { %v2321_v26 = vpop.f32.mrf.mxu1  ;;  %5864 = vmatpush3.msra.mxu1 %v7253_v22 }
 0x5dd   :  { %v2322_v5 = vadd.f32 %v2321_v26, %v2108_v36  ;;  %5865 = vmatprep.subr.mxu1 %v7259_v23 }
 0x5de   :  { %v6096_v62 = vpop.f32.mrf.mxu1  ;;  %5866 = vmatpush3.msra.mxu1 %v7265_v27 }
 0x5df   :  { %2498 = vrot.lane.b32.xlu1 %v2322_v5, %s6320_s29  ;;  %5867 = vmatprep.subr.mxu1 %v7271_v30 }
 0x5e0   :  { %5868 = vmatpush3.msra.mxu1 %v7277_v31 }
 0x5e1   :  { %5869 = vmatprep.subr.mxu1 %v7283_v32 }
 0x5e2   :  { %5870 = vmatpush3.msra.mxu1 %v7289_v33 }
 0x5e3   :  { %5871 = vmatprep.subr.mxu1 %v7295_v39 }
 0x5e4   :  { %5872 = vmatpush3.msra.mxu1 %v7300_v42 }
 0x5e5   :  { %5873 = vmatprep.subr.mxu1 %v7307_v45 }
 0x5e6   :  { %5874 = vmatpush3.msra.mxu1 %v7312_v48 }
 0x5e7   :  { %5875 = vmatprep.subr.mxu1 %v7317_v49 }
 0x5e8   :  { %5876 = vmatpush3.msra.mxu1 %v7323_v50 }
 0x5e9   :  { %5877 = vmatprep.subr.mxu1 %v7329_v53  ;;  %v5747_v53 = vld [vmem:[%s8526_s7 + $0x10] sm:$0xff] }
 0x5ea   :  { %5878 = vmatpush3.msra.mxu1 %v7340_v61 }
 0x5eb   :  { %5879 = vmatprep.subr.mxu1 %v7350_v7 }
 0x5ec   :  { %5880 = vmatpush3.msra.mxu1 %v7355_v60  ;;  %v3286_v60 = vld [vmem:[#allocation4] sm:$0xff] }
 0x5ed   :  { %5881 = vmatprep.subr.mxu1 %v7368_v44  ;;  %v3329_v44 = vld [vmem:[#allocation4 + $0x18] sm:$0xff] }
 0x5ee   :  { %5882 = vmatpush3.msra.mxu1 %v7375_v1 }
 0x5ef   :  { %5883 = vmatprep.subr.mxu1 %v7381_v6 }
 0x5f0   :  { %5884 = vmatpush3.msra.mxu1 %v7387_v3 }
 0x60a   :  { %v2479_v58 = vpop.permute.xlu1 %2478 }
 0x60b   :  { %2489 = vst.msk [vmem:[#allocation3] sm:$0xff] %vm784_vm13, %v2479_v58 }
 0x60c   :  { %v2481_v10 = vpop.permute.xlu0 %2480 }
 0x60d   :  { %v7470_v12 = vsel %vm778_vm14, %v2479_v58, %v2481_v10 }
 0x612   :  { %v7455_v9 = vld [vmem:[#allocation3] sm:$0xff] }
 0x613   :  { %2983 = vrot.lane.b32.xlu0 %v7455_v9, %s6298_s15  ;;  %2943 = vrot.lane.b32.xlu1 %v7455_v9, %s6299_s16 }
 0x617   :  { %2903 = vrot.lane.b32.xlu1 %v7455_v9, %s6300_s17  ;;  %2783 = vrot.lane.b32.xlu0 %v7455_v9, %s6303_s20 }
 0x61b   :  { %2863 = vrot.lane.b32.xlu1 %v7455_v9, %s6301_s18  ;;  %2703 = vrot.lane.b32.xlu0 %v7455_v9, %s6305_s22 }
 0x61f   :  { %2823 = vrot.lane.b32.xlu1 %v7455_v9, %s6302_s19  ;;  %2985 = vrot.lane.b32.xlu0 %v7470_v12, %s6298_s15 }
 0x623   :  { %2743 = vrot.lane.b32.xlu1 %v7455_v9, %s6304_s21 }
 0x62e   :  { %v2658_v13 = vpop.permute.xlu0 %2657  ;;  %v2483_v19 = vpop.permute.xlu1 %2482 }
 0x62f   :  { %v2485_v20 = vsel %vm778_vm14, %v2481_v10, %v2483_v19 }
 0x630   :  { %2491 = vst.msk [vmem:[#allocation3 + $0x10] sm:$0xff] %vm787_vm15, %v2485_v20 }
 0x632   :  { %v2660_v22 = vpop.permute.xlu0 %2659 }
 0x633   :  { %v2663_v23 = vsel %vm814_vm9, %v2658_v13, %v2660_v22 }
 0x634   :  { %2668 = vst.msk [vmem:[#allocation3 + $0x18] sm:$0xff] %vm784_vm13, %v2663_v23 }
 0x635   :  { %v2662_v27 = vpop.permute.xlu1 %2661 }
 0x636   :  { %2670 = vst.msk [vmem:[#allocation3 + $0x28] sm:$0xff] %vm787_vm15, %v2662_v27  ;;  %v2664_v49 = vsel %vm814_vm9, %v2660_v22, %v2662_v27 }
 0x637   :  { %v2979_v30 = vld [vmem:[#allocation3 + $0x10] sm:$0xff] }
 0x638   :  { %2987 = vrot.lane.b32.xlu1 %v2979_v30, %s6298_s15  ;;  %2947 = vrot.lane.b32.xlu0 %v2979_v30, %s6299_s16  ;;  %2676 = vst.msk [vmem:[#allocation2 + $0x10] sm:$0xff] %vm107_vm0, %v2979_v30 }
 0x63b   :  { %v2997_v48 = vld [vmem:[#allocation3 + $0x18] sm:$0xff] }
 0x63c   :  { %2945 = vrot.lane.b32.xlu1 %v7470_v12, %s6299_s16  ;;  %2907 = vrot.lane.b32.xlu0 %v2979_v30, %s6300_s17 }
 0x63d   :  { %v2999_v50 = vld [vmem:[#allocation3 + $0x28] sm:$0xff] }
 0x640   :  { %2905 = vrot.lane.b32.xlu1 %v7470_v12, %s6300_s17  ;;  %2867 = vrot.lane.b32.xlu0 %v2979_v30, %s6301_s18 }
 0x644   :  { %2865 = vrot.lane.b32.xlu1 %v7470_v12, %s6301_s18  ;;  %2827 = vrot.lane.b32.xlu0 %v2979_v30, %s6302_s19 }
 0x647   :  { %v6252_v31 = vpop.permute.xlu0 %6251 }
 0x648   :  { %2825 = vrot.lane.b32.xlu1 %v7470_v12, %s6302_s19  ;;  %2785 = vrot.lane.b32.xlu0 %v7470_v12, %s6303_s20  ;;  %v6254_v32 = vunpack.i.h.bf16 %v6252_v31  ;;  %v6253_v33 = vunpack.i.l.bf16 %v6252_v31 }
 0x64a   :  { %v2501_v45 = vsel %vm8553_vm8, %v6254_v32, %v6253_v33 }
 0x64c   :  { %2787 = vrot.lane.b32.xlu1 %v2979_v30, %s6303_s20  ;;  %2747 = vrot.lane.b32.xlu0 %v2979_v30, %s6304_s21 }
 0x650   :  { %2745 = vrot.lane.b32.xlu1 %v7470_v12, %s6304_s21  ;;  %2705 = vrot.lane.b32.xlu0 %v7470_v12, %s6305_s22 }
 0x651   :  { %v2499_v39 = vpop.permute.xlu1 %2498 }
 0x652   :  { %6117 = vmatmul.mubr.msk.f32.vlgmr.msra.gmra.mxu0 %vm107_vm0, %v2499_v39  ;;  %v2502_v42 = vsel %vm8553_vm8, %v6253_v33, %v2499_v39  ;;  %vm8617_vm8 = vmmov %vm8616_vm10 }
 0x653   :  { %2571 = vmatprep.mubr.f32.mxu1 %v2502_v42  ;;  %3138 = vmatprep.mubr.f32.mxu0 %v7393_v14 }
 0x654   :  { %2572 = vmatmul.mubr.f32.vlgmr.msra.gmra.mxu1 %v2501_v45  ;;  %3003 = vrot.lane.b32.xlu0 %v2997_v48, %s6307_s27 }
 0x655   :  { %2707 = vrot.lane.b32.xlu1 %v2979_v30, %s6305_s22  ;;  %3209 = vmatprep.mubr.f32.mxu1 %v7393_v14 }
 0x658   :  { %2963 = vrot.lane.b32.xlu0 %v2997_v48, %s6308_s30 }
 0x659   :  { %2883 = vrot.lane.b32.xlu1 %v2997_v48, %s6310_s11 }
 0x65c   :  { %2923 = vrot.lane.b32.xlu0 %v2997_v48, %s6309_s10 }
 0x65d   :  { %2803 = vrot.lane.b32.xlu1 %v2997_v48, %s6312_s12 }
 0x660   :  { %2843 = vrot.lane.b32.xlu0 %v2997_v48, %s6311_s0 }
 0x661   :  { %2723 = vrot.lane.b32.xlu1 %v2997_v48, %s6314_s14 }
 0x664   :  { %2763 = vrot.lane.b32.xlu0 %v2997_v48, %s8610_s24 }
 0x665   :  { %3005 = vrot.lane.b32.xlu1 %v2664_v49, %s6307_s27 }
 0x668   :  { %3007 = vrot.lane.b32.xlu0 %v2999_v50, %s6307_s27 }
 0x669   :  { %2965 = vrot.lane.b32.xlu1 %v2664_v49, %s6308_s30 }
 0x66c   :  { %2967 = vrot.lane.b32.xlu0 %v2999_v50, %s6308_s30 }
 0x66d   :  { %2925 = vrot.lane.b32.xlu1 %v2664_v49, %s6309_s10 }
 0x670   :  { %2927 = vrot.lane.b32.xlu0 %v2999_v50, %s6309_s10 }
 0x671   :  { %2845 = vrot.lane.b32.xlu1 %v2664_v49, %s6311_s0 }
 0x674   :  { %2885 = vrot.lane.b32.xlu0 %v2664_v49, %s6310_s11 }
 0x675   :  { %2765 = vrot.lane.b32.xlu1 %v2664_v49, %s8610_s24 }
 0x678   :  { %2805 = vrot.lane.b32.xlu0 %v2664_v49, %s6312_s12 }
 0x679   :  { %2683 = vrot.lane.b32.xlu1 %v2997_v48, %s8611_s5 }
 0x67c   :  { %2725 = vrot.lane.b32.xlu0 %v2664_v49, %s6314_s14 }
 0x67d   :  { %2887 = vrot.lane.b32.xlu1 %v2999_v50, %s6310_s11 }
 0x680   :  { %2685 = vrot.lane.b32.xlu0 %v2664_v49, %s8611_s5 }
 0x681   :  { %2807 = vrot.lane.b32.xlu1 %v2999_v50, %s6312_s12 }
 0x684   :  { %2847 = vrot.lane.b32.xlu0 %v2999_v50, %s6311_s0 }
 0x685   :  { %2727 = vrot.lane.b32.xlu1 %v2999_v50, %s6314_s14  ;;  %v2944_v61 = vpop.permute.xlu1 %2943  ;;  %v2984_v38 = vpop.permute.xlu0 %2983 }
 0x688   :  { %2767 = vrot.lane.b32.xlu0 %v2999_v50, %s8610_s24 }
 0x689   :  { %3068 = vperm.xlu1 %6248, %v5747_v53   ;;  %v2904_v34 = vpop.permute.xlu1 %2903  ;;  %v2784_v55 = vpop.permute.xlu0 %2783  ;;  %v7578_v53 = vld [vmem:[%s8527_s6 + $0x10] sm:$0xff] }
 0x68c   :  { %2687 = vrot.lane.b32.xlu0 %v2999_v50, %s8611_s5 }
 0x68d   :  { %3294 = vrot.lane.b32.xlu1 %v3287_v54, %s6302_s19  ;;  %v2864_v56 = vpop.permute.xlu1 %2863  ;;  %v2704_v57 = vpop.permute.xlu0 %2703 }
 0x68e   :  { %v5845_v7 = vpop.f32.mrf.mxu0 }
 0x690   :  { %v5846_v0 = vpop.f32.mrf.mxu0  ;;  %3292 = vrot.lane.b32.xlu0 %v3286_v60, %s6302_s19 }
 0x691   :  { %v2464_v1 = vpop.f32.mrf.mxu1  ;;  %v5847_v6 = vadd.f32 %v5846_v0, %v5845_v7  ;;  %3335 = vrot.lane.b32.xlu1 %v3329_v44, %s6311_s0  ;;  %v2824_v59 = vpop.permute.xlu1 %2823 }
 0x692   :  { %v2986_v2 = vpop.permute.xlu0 %2985 }
 0x693   :  { %v2465_v3 = vadd.f32 %v5847_v6, %v2464_v1  ;;  %v6107_v8 = vpop.f32.mrf.mxu1  ;;  %v2989_v36 = vsel %vm438_vm1, %v2984_v38, %v2986_v2 }
 0x694   :  { %3296 = vrot.lane.b32.xlu0 %v3288_v18, %s6302_s19 }
 0x695   :  { %2468 = vst [vmem:[%s8529_s9] sm:$0xf] %v2465_v3  ;;  %3339 = vrot.lane.b32.xlu1 %v3331_v51, %s6311_s0  ;;  %v2744_v4 = vpop.permute.xlu1 %2743 }
 0x698   :  { %3337 = vrot.lane.b32.xlu0 %v3330_v52, %s6311_s0 }
 0x6aa   :  { %v2948_v25 = vpop.permute.xlu0 %2947  ;;  %v2988_v21 = vpop.permute.xlu1 %2987 }
 0x6ab   :  { %2956 = vst.msk [vmem:[#allocation2 + $0x128] sm:$0xff] %vm107_vm0, %v2948_v25  ;;  %v2990_v35 = vsel %vm438_vm1, %v2986_v2, %v2988_v21  ;;  %2996 = vst.msk [vmem:[#allocation2 + $0x150] sm:$0xff] %vm107_vm0, %v2988_v21 }
 0x6ac   :  { %3088 = vmatprep.subr.mxu0 %v2990_v35 }
 0x6ad   :  { %3089 = vmatpush1.msra.mxu0 %v2989_v36 }
 0x6ae   :  { %v2908_v37 = vpop.permute.xlu0 %2907  ;;  %v2946_v40 = vpop.permute.xlu1 %2945 }
 0x6af   :  { %2916 = vst.msk [vmem:[#allocation2 + $0x100] sm:$0xff] %vm107_vm0, %v2908_v37  ;;  %v2949_v41 = vsel %vm8554_vm2, %v2944_v61, %v2946_v40  ;;  %v2950_v63 = vsel %vm8554_vm2, %v2946_v40, %v2948_v25 }
 0x6b0   :  { %3090 = vmatprep.subr.mxu0 %v2950_v63 }
 0x6b1   :  { %3091 = vmatpush1.msra.mxu0 %v2949_v41 }
 0x6b2   :  { %v2868_v43 = vpop.permute.xlu0 %2867  ;;  %v2906_v24 = vpop.permute.xlu1 %2905 }
 0x6b3   :  { %2876 = vst.msk [vmem:[#allocation2 + $0xd8] sm:$0xff] %vm107_vm0, %v2868_v43  ;;  %v2909_v46 = vsel %vm8612_vm3, %v2904_v34, %v2906_v24  ;;  %v2910_v47 = vsel %vm8613_vm4, %v2906_v24, %v2908_v37  ;;  %vm8618_vm3 = vcmask 900096  }
 0x6b4   :  { %3092 = vmatprep.subr.mxu0 %v2910_v47  ;;  %vm8619_vm4 = vmmov %vm8618_vm3 }
 0x6b5   :  { %3093 = vmatpush1.msra.mxu0 %v2909_v46 }
 0x6b6   :  { %v2828_v26 = vpop.permute.xlu0 %2827  ;;  %v2866_v5 = vpop.permute.xlu1 %2865 }
 0x6b7   :  { %2836 = vst.msk [vmem:[#allocation2 + $0xb0] sm:$0xff] %vm107_vm0, %v2828_v26  ;;  %v2869_v62 = vsel %vm8614_vm5, %v2864_v56, %v2866_v5  ;;  %v2870_v58 = vsel %vm8615_vm7, %v2866_v5, %v2868_v43  ;;  %vm8620_vm5 = vcmask 1031168  }
 0x6b8   :  { %3094 = vmatprep.subr.mxu0 %v2870_v58  ;;  %vm8621_vm7 = vmmov %vm8620_vm5 }
 0x6b9   :  { %3095 = vmatpush1.msra.mxu0 %v2869_v62 }
 0x6ba   :  { %v2786_v10 = vpop.permute.xlu0 %2785  ;;  %v2826_v13 = vpop.permute.xlu1 %2825 }
 0x6bb   :  { %v2829_v19 = vsel %vm8616_vm10, %v2824_v59, %v2826_v13  ;;  %v2830_v20 = vsel %vm8617_vm8, %v2826_v13, %v2828_v26  ;;  %v2789_v30 = vsel %vm8619_vm4, %v2784_v55, %v2786_v10  ;;  %vm8622_vm8 = vcmask 1039360  }
 0x6bc   :  { %3096 = vmatprep.subr.mxu0 %v2830_v20  ;;  %vm8623_vm10 = vmmov %vm8622_vm8 }
 0x6bd   :  { %3097 = vmatpush1.msra.mxu0 %v2829_v19 }
 0x6be   :  { %v2748_v22 = vpop.permute.xlu0 %2747  ;;  %v2788_v23 = vpop.permute.xlu1 %2787 }
 0x6bf   :  { %2756 = vst.msk [vmem:[#allocation2 + $0x60] sm:$0xff] %vm107_vm0, %v2748_v22  ;;  %v2790_v27 = vsel %vm8618_vm3, %v2786_v10, %v2788_v23  ;;  %2796 = vst.msk [vmem:[#allocation2 + $0x88] sm:$0xff] %vm107_vm0, %v2788_v23  ;;  %vm8624_vm3 = vcmask 998400  }
 0x6c0   :  { %3098 = vmatprep.subr.mxu0 %v2790_v27  ;;  %vm8625_vm4 = vmmov %vm8624_vm3 }
 0x6c1   :  { %3099 = vmatpush1.msra.mxu0 %v2789_v30 }
 0x6c2   :  { %v2706_v31 = vpop.permute.xlu0 %2705  ;;  %v2746_v32 = vpop.permute.xlu1 %2745 }
 0x6c3   :  { %v2749_v33 = vsel %vm8620_vm5, %v2744_v4, %v2746_v32  ;;  %v2750_v39 = vsel %vm8621_vm7, %v2746_v32, %v2748_v22  ;;  %v2709_v49 = vsel %vm8623_vm10, %v2704_v57, %v2706_v31  ;;  %vm8626_vm5 = vcmask 523264  }
 0x6c4   :  { %3100 = vmatprep.subr.mxu0 %v2750_v39  ;;  %vm8627_vm7 = vcmask 1006592   ;;  %vm8629_vm10 = vmmov %vm8626_vm5 }
 0x6c5   :  { %3101 = vmatpush1.msra.mxu0 %v2749_v33 }
 0x6c6   :  { %v3004_v42 = vpop.permute.xlu0 %3003 }
 0x6c7   :  { %v2708_v45 = vpop.permute.xlu1 %2707 }
 0x6c8   :  { %v2710_v48 = vsel %vm8622_vm8, %v2706_v31, %v2708_v45  ;;  %2716 = vst.msk [vmem:[#allocation2 + $0x38] sm:$0xff] %vm107_vm0, %v2708_v45  ;;  %vm8628_vm8 = vmmov %vm8627_vm7 }
 0x6c9   :  { %3102 = vmatprep.subr.mxu0 %v2710_v48 }
 0x6ca   :  { %v2964_v50 = vpop.permute.xlu0 %2963  ;;  %3103 = vmatpush1.msra.mxu0 %v2709_v49 }
 0x6cb   :  { %v2884_v54 = vpop.permute.xlu1 %2883  ;;  %3104 = vmatprep.subr.mxu0 %v7470_v12 }
 0x6cc   :  { %2894 = vst.msk [vmem:[#allocation2 + $0xd8] sm:$0xff] %vm127_vm12, %v2884_v54  ;;  %3105 = vmatpush1.msra.mxu0 %v7455_v9 }
 0x6cd   :  { %5748 = vmatmul.mubr.msk.f32.vlgmr.msra.gmra.mxu0 %vm527_vm11, %v7578_v53  ;;  %6119 = vmatprep.subr.mxu0 %v7393_v14 }
 0x6ce   :  { %v2924_v61 = vpop.permute.xlu0 %2923  ;;  %6137 = vmatprep.mubr.msk.f32.mxu0 %vm8592_vm6, %v7393_v14 }
 0x6cf   :  { %v2804_v7 = vpop.permute.xlu1 %2803 }
 0x6d0   :  { %2814 = vst.msk [vmem:[#allocation2 + $0x88] sm:$0xff] %vm127_vm12, %v2804_v7 }
 0x6d2   :  { %v2844_v60 = vpop.permute.xlu0 %2843 }
 0x6d3   :  { %2854 = vst.msk [vmem:[#allocation2 + $0xb0] sm:$0xff] %vm127_vm12, %v2844_v60  ;;  %v2724_v12 = vpop.permute.xlu1 %2723  ;;  %v3048_v41 = vld [vmem:[#allocation2 + $0xd8] sm:$0xff] }
 0x6d4   :  { %2734 = vst.msk [vmem:[#allocation2 + $0x38] sm:$0xff] %vm127_vm12, %v2724_v12 }
 0x6d6   :  { %v2764_v0 = vpop.permute.xlu0 %2763 }
 0x6d7   :  { %2774 = vst.msk [vmem:[#allocation2 + $0x60] sm:$0xff] %vm127_vm12, %v2764_v0  ;;  %v3006_v9 = vpop.permute.xlu1 %3005  ;;  %v3038_v26 = vld [vmem:[#allocation2 + $0x88] sm:$0xff] }
 0x6d8   :  { %v3009_v44 = vsel %vm8624_vm3, %v3004_v42, %v3006_v9  ;;  %vm8630_vm3 = vcmask 1014784  }
 0x6d9   :  { %3014 = vst.msk [vmem:[#allocation2 + $0x150] sm:$0xff] %vm127_vm12, %v3009_v44 }
 0x6da   :  { %v3008_v1 = vpop.permute.xlu0 %3007  ;;  %v3043_v46 = vld [vmem:[#allocation2 + $0xb0] sm:$0xff] }
 0x6db   :  { %v3010_v6 = vsel %vm8625_vm4, %v3006_v9, %v3008_v1  ;;  %3016 = vst.msk [vmem:[#allocation2 + $0x160] sm:$0xff] %vm8626_vm5, %v3008_v1  ;;  %v2966_v3 = vpop.permute.xlu1 %2965  ;;  %vm8631_vm4 = vmmov %vm8630_vm3  ;;  %v3028_v20 = vld [vmem:[#allocation2 + $0x38] sm:$0xff] }
 0x6dc   :  { %v2969_v8 = vsel %vm8627_vm7, %v2964_v50, %v2966_v3  ;;  %3159 = vmatprep.subr.mxu1 %v3010_v6  ;;  %vm8632_vm7 = vcmask 97280  }
 0x6dd   :  { %2974 = vst.msk [vmem:[#allocation2 + $0x128] sm:$0xff] %vm127_vm12, %v2969_v8 }
 0x6de   :  { %v2968_v18 = vpop.permute.xlu0 %2967  ;;  %v3033_v13 = vld [vmem:[#allocation2 + $0x60] sm:$0xff] }
 0x6df   :  { %v2970_v38 = vsel %vm8628_vm8, %v2966_v3, %v2968_v18  ;;  %2976 = vst.msk [vmem:[#allocation2 + $0x138] sm:$0xff] %vm8629_vm10, %v2968_v18  ;;  %v2926_v34 = vpop.permute.xlu1 %2925  ;;  %vm8633_vm8 = vcmask 105472   ;;  %vm8634_vm10 = vcmask 113664  }
 0x6e0   :  { %v2929_v51 = vsel %vm8630_vm3, %v2924_v61, %v2926_v34  ;;  %v3063_v52 = vld [vmem:[#allocation2 + $0x150] sm:$0xff]  ;;  %vm8635_vm3 = vcmask 244736  }
 0x6e1   :  { %2934 = vst.msk [vmem:[#allocation2 + $0x100] sm:$0xff] %vm127_vm12, %v2929_v51  ;;  %3160 = vmatpush1.msra.mxu1 %v3063_v52 }
 0x6e2   :  { %v2928_v55 = vpop.permute.xlu0 %2927  ;;  %v3065_v56 = vld [vmem:[#allocation2 + $0x160] sm:$0xff]  ;;  %3161 = vmatprep.subr.mxu1 %v2970_v38 }
 0x6e3   :  { %v2930_v57 = vsel %vm8631_vm4, %v2926_v34, %v2928_v55  ;;  %2936 = vst.msk [vmem:[#allocation2 + $0x110] sm:$0xff] %vm8626_vm5, %v2928_v55  ;;  %v2846_v59 = vpop.permute.xlu1 %2845  ;;  %6120 = vmatpush3.msra.mxu0 %v3065_v56  ;;  %vm8636_vm4 = vcmask 252928   ;;  %vm8637_vm5 = vmmov %vm8632_vm7 }
 0x6e4   :  { %6121 = vmatprep.subr.mxu0 %v7393_v14  ;;  %v3058_v2 = vld [vmem:[#allocation2 + $0x128] sm:$0xff]  ;;  %v2849_v63 = vsel %vm8633_vm8, %v2844_v60, %v2846_v59  ;;  %vm8639_vm8 = vmmov %vm8634_vm10 }
 0x6e5   :  { %3162 = vmatpush1.msra.mxu1 %v3058_v2 }
 0x6e6   :  { %v2886_v4 = vpop.permute.xlu0 %2885  ;;  %v3060_v25 = vld [vmem:[#allocation2 + $0x138] sm:$0xff]  ;;  %3163 = vmatprep.subr.mxu1 %v2930_v57 }
 0x6e7   :  { %v2889_v21 = vsel %vm8632_vm7, %v2884_v54, %v2886_v4  ;;  %v2766_v35 = vpop.permute.xlu1 %2765  ;;  %6122 = vmatpush3.msra.mxu0 %v3060_v25  ;;  %vm8638_vm7 = vcmask 523264  }
 0x6e8   :  { %6123 = vmatprep.subr.mxu0 %v7393_v14  ;;  %v3053_v36 = vld [vmem:[#allocation2 + $0x100] sm:$0xff]  ;;  %v2769_v5 = vsel %vm8635_vm3, %v2764_v0, %v2766_v35  ;;  %vm8641_vm3 = vcmask 105472  }
 0x6e9   :  { %3164 = vmatpush1.msra.mxu1 %v3053_v36 }
 0x6ea   :  { %v2806_v37 = vpop.permute.xlu0 %2805  ;;  %v3055_v40 = vld [vmem:[#allocation2 + $0x110] sm:$0xff]  ;;  %3165 = vmatprep.subr.mxu1 %v2889_v21 }
 0x6eb   :  { %v2809_v43 = vsel %vm8634_vm10, %v2804_v7, %v2806_v37  ;;  %v2684_v24 = vpop.permute.xlu1 %2683  ;;  %6124 = vmatpush3.msra.mxu0 %v3055_v40  ;;  %3166 = vmatpush1.msra.mxu1 %v3048_v41  ;;  %vm8640_vm10 = vmmov %vm8638_vm7 }
 0x6ec   :  { %2694 = vst.msk [vmem:[#allocation2 + $0x10] sm:$0xff] %vm127_vm12, %v2684_v24  ;;  %3167 = vmatprep.subr.mxu1 %v2849_v63  ;;  %6125 = vmatprep.subr.mxu0 %v7393_v14 }
 0x6ed   :  { %3168 = vmatpush1.msra.mxu1 %v3043_v46 }
 0x6ee   :  { %v2726_v47 = vpop.permute.xlu0 %2725  ;;  %3169 = vmatprep.subr.mxu1 %v2809_v43 }
 0x6ef   :  { %v2729_v62 = vsel %vm8636_vm4, %v2724_v12, %v2726_v47  ;;  %v2888_v58 = vpop.permute.xlu1 %2887  ;;  %3170 = vmatpush1.msra.mxu1 %v3038_v26  ;;  %vm8642_vm4 = vmmov %vm8638_vm7 }
 0x6f0   :  { %v2890_v10 = vsel %vm8637_vm5, %v2886_v4, %v2888_v58  ;;  %3171 = vmatprep.subr.mxu1 %v2769_v5  ;;  %vm8643_vm5 = vcmask 252928  }
 0x6f1   :  { %2896 = vst.msk [vmem:[#allocation2 + $0xe8] sm:$0xff] %vm8638_vm7, %v2890_v10  ;;  %3172 = vmatpush1.msra.mxu1 %v3033_v13  ;;  %vm8644_vm7 = vmmov %vm8642_vm4 }
 0x6f2   :  { %v2686_v19 = vpop.permute.xlu0 %2685  ;;  %3173 = vmatprep.subr.mxu1 %v2729_v62 }
 0x6f3   :  { %v2689_v22 = vsel %vm107_vm0, %v2684_v24, %v2686_v19  ;;  %v2808_v23 = vpop.permute.xlu1 %2807  ;;  %3174 = vmatpush1.msra.mxu1 %v3028_v20  ;;  %v3023_v30 = vld [vmem:[#allocation2 + $0x10] sm:$0xff] }
 0x6f4   :  { %v2810_v27 = vsel %vm8639_vm8, %v2806_v37, %v2808_v23  ;;  %3175 = vmatprep.subr.mxu1 %v2689_v22  ;;  %vm8645_vm8 = vcmask 244736  }
 0x6f5   :  { %2816 = vst.msk [vmem:[#allocation2 + $0x98] sm:$0xff] %vm8640_vm10, %v2810_v27  ;;  %3176 = vmatpush1.msra.mxu1 %v3023_v30  ;;  %vm8646_vm10 = vmmov %vm8642_vm4 }
 0x6f6   :  { %v2848_v31 = vpop.permute.xlu0 %2847  ;;  %5749 = vmatmul.mubr.msk.f32.vlgmr.msra.gmra.mxu1 %vm527_vm11, %v7578_v53 }
 0x6f7   :  { %v2850_v32 = vsel %vm8641_vm3, %v2846_v59, %v2848_v31  ;;  %v2728_v33 = vpop.permute.xlu1 %2727  ;;  %3839 = vmatprep.mubr.f32.mxu1 %v7393_v14  ;;  %vm8647_vm3 = vmmov %vm8642_vm4 }
 0x6f8   :  { %2856 = vst.msk [vmem:[#allocation2 + $0xc0] sm:$0xff] %vm8642_vm4, %v2850_v32  ;;  %v2730_v39 = vsel %vm8643_vm5, %v2726_v47, %v2728_v33  ;;  %v3050_v42 = vld [vmem:[#allocation2 + $0xe8] sm:$0xff]  ;;  %vm8648_vm4 = vcmask 891904  }
 0x6f9   :  { %2736 = vst.msk [vmem:[#allocation2 + $0x48] sm:$0xff] %vm8644_vm7, %v2730_v39  ;;  %6126 = vmatpush3.msra.mxu0 %v3050_v42  ;;  %vm8649_vm5 = vmmov %vm8648_vm4  ;;  %vm8650_vm7 = vcmask 105472  }
 0x6fa   :  { %v2768_v45 = vpop.permute.xlu0 %2767  ;;  %6127 = vmatprep.subr.mxu0 %v7393_v14 }
 0x6fb   :  { %v2770_v48 = vsel %vm8645_vm8, %v2766_v35, %v2768_v45  ;;  %vm8651_vm8 = vmmov %vm8650_vm7 }
 0x6fc   :  { %2776 = vst.msk [vmem:[#allocation2 + $0x70] sm:$0xff] %vm8646_vm10, %v2770_v48  ;;  %v3040_v61 = vld [vmem:[#allocation2 + $0x98] sm:$0xff]  ;;  %vm8652_vm10 = vcmask 752640  }
 0x6fe   :  { %v2688_v49 = vpop.permute.xlu0 %2687 }
 0x6ff   :  { %v2690_v50 = vsel %vm107_vm0, %v2686_v19, %v2688_v49  ;;  %v3045_v54 = vld [vmem:[#allocation2 + $0xc0] sm:$0xff] }
 0x700   :  { %2696 = vst.msk [vmem:[#allocation2 + $0x20] sm:$0xff] %vm8647_vm3, %v2690_v50  ;;  %6128 = vmatpush3.msra.mxu0 %v3045_v54  ;;  %v3030_v60 = vld [vmem:[#allocation2 + $0x48] sm:$0xff]  ;;  %vm8653_vm3 = vmmov %vm8652_vm10 }
 0x701   :  { %6129 = vmatprep.subr.mxu0 %v7393_v14 }
 0x702   :  { %6130 = vmatpush3.msra.mxu0 %v3040_v61  ;;  %v3293_v18 = vpop.permute.xlu0 %3292 }
 0x703   :  { %6131 = vmatprep.subr.mxu0 %v7393_v14  ;;  %v3035_v7 = vld [vmem:[#allocation2 + $0x70] sm:$0xff] }
 0x704   :  { %6132 = vmatpush3.msra.mxu0 %v3035_v7  ;;  %v3069_v8 = vpop.permute.xlu1 %3068 }
 0x705   :  { %6133 = vmatprep.subr.mxu0 %v7393_v14 }
 0x706   :  { %6134 = vmatpush3.msra.mxu0 %v3030_v60  ;;  %v3297_v51 = vpop.permute.xlu0 %3296 }
 0x707   :  { %6135 = vmatprep.subr.mxu0 %v7393_v14  ;;  %v3025_v12 = vld [vmem:[#allocation2 + $0x20] sm:$0xff] }
 0x708   :  { %6136 = vmatpush3.msra.mxu0 %v3025_v12  ;;  %v3295_v38 = vpop.permute.xlu1 %3294 }
 0x709   :  { %6138 = vmatmul.mubr.msk.f32.vlgmr.msra.gmra.mxu0 %vm527_vm11, %v7578_v53  ;;  %v3298_v53 = vsel %vm8648_vm4, %v3293_v18, %v3295_v38  ;;  %v3299_v59 = vsel %vm8649_vm5, %v3295_v38, %v3297_v51  ;;  %vm8654_vm4 = vcmask 883712  }
 0x70a   :  { %3910 = vmatprep.mubr.f32.mxu0 %v7393_v14  ;;  %v3338_v37 = vpop.permute.xlu0 %3337  ;;  %vm8655_vm5 = vmmov %vm8654_vm4 }
 0x70c   :  { %v3336_v40 = vpop.permute.xlu1 %3335 }
 0x70d   :  { %v3341_v47 = vsel %vm8650_vm7, %v3336_v40, %v3338_v37  ;;  %vm8656_vm7 = vcmask 891904  }
 0x710   :  { %v3340_v20 = vpop.permute.xlu1 %3339 }
 0x711   :  { %v3342_v27 = vsel %vm8651_vm8, %v3338_v37, %v3340_v20  ;;  %vm8657_vm8 = vmmov %vm8656_vm7 }
 0x712   :  { %v2643_v0 = vpop.f32.mrf.mxu0 }
 0x714   :  { %v5885_v9 = vpop.f32.mrf.mxu1  ;;  %v6118_v44 = vpop.f32.mrf.mxu0 }
 0x716   :  { %v5886_v1 = vpop.f32.mrf.mxu1 }
 0x717   :  { %v5887_v6 = vadd.f32 %v5886_v1, %v5885_v9  ;;  %v5752_v1 = vld [vmem:[%s8526_s7 + $0x18] sm:$0xff] }
 0x719   :  { %v2644_v3 = vadd.f32 %v5887_v6, %v2643_v0 }
 0x71b   :  { %5745 = vst [vmem:[%s8529_s9 + $0x4] sm:$0xf] %v2644_v3 }
 0x78d   :  { %v3140_v34 = vpop.f32.mrf.mxu0 }
 0x78e   :  { %v3141_v52 = vadd.f32 %v3140_v34, %v3069_v8 }
 0x78f   :  { %v3142_v55 = vpop.f32.mrf.mxu0 }
 0x790   :  { %v3303_v56 = vadd.f32 %v3298_v53, %v3141_v52  ;;  %v3143_v57 = vadd.f32 %v3142_v55, %v3069_v8 }
 0x792   :  { %v3306_v2 = vmax.f32 %v3303_v56, 0.0  ;;  %v3304_v4 = vadd.f32 %v3299_v59, %v3143_v57 }
 0x794   :  { %v3309_v25 = vmul.f32 %v3306_v2, %v6483_v16  ;;  %v3307_v21 = vmax.f32 %v3304_v4, 0.0 }
 0x796   :  { %v3310_v35 = vmul.f32 %v3307_v21, %v6481_v15  ;;  %3315 = vrot.lane.b32.xlu0 %v3309_v25, %s6317_s4 }
 0x798   :  { %3317 = vrot.lane.b32.xlu1 %v3310_v35, %s6317_s4 }
 0x7b6   :  { %v3211_v36 = vpop.f32.mrf.mxu1 }
 0x7b7   :  { %v3212_v41 = vadd.f32 %v3211_v36, %v3069_v8 }
 0x7b8   :  { %v3213_v63 = vpop.f32.mrf.mxu1 }
 0x7b9   :  { %v3305_v43 = vadd.f32 %v3297_v51, %v3212_v41  ;;  %v3346_v24 = vadd.f32 %v3336_v40, %v3212_v41  ;;  %v3214_v46 = vadd.f32 %v3213_v63, %v3069_v8 }
 0x7bb   :  { %v3308_v26 = vmax.f32 %v3305_v43, 0.0  ;;  %v3349_v5 = vmax.f32 %v3346_v24, 0.0  ;;  %v3347_v62 = vadd.f32 %v3341_v47, %v3214_v46 }
 0x7bd   :  { %v3311_v58 = vmul.f32 %v3308_v26, %v6489_v17  ;;  %v3352_v10 = vmul.f32 %v3349_v5, %v6585_v11  ;;  %v3350_v13 = vmax.f32 %v3347_v62, 0.0 }
 0x7bf   :  { %3319 = vrot.lane.b32.xlu0 %v3311_v58, %s6317_s4  ;;  %3358 = vrot.lane.b32.xlu1 %v3352_v10, %s6318_s26  ;;  %v3353_v19 = vmul.f32 %v3350_v13, %v6601_v29 }
 0x7c3   :  { %3360 = vrot.lane.b32.xlu1 %v3353_v19, %s6318_s26 }
 0x7c9   :  { %v3282_v22 = vpop.f32.mrf.mxu0 }
 0x7ca   :  { %v3283_v23 = vadd.f32 %v3282_v22, %v3069_v8 }
 0x7cb   :  { %v6139_v30 = vpop.f32.mrf.mxu0 }
 0x7cc   :  { %v3348_v31 = vadd.f32 %v3342_v27, %v3283_v23 }
 0x7ce   :  { %v3351_v32 = vmax.f32 %v3348_v31, 0.0 }
 0x7d0   :  { %v3354_v33 = vmul.f32 %v3351_v32, %v6597_v28  ;;  %v7811_v32 = vld [vmem:[%s8527_s6 + $0x18] sm:$0xff] }
 0x7d2   :  { %3362 = vrot.lane.b32.xlu0 %v3354_v33, %s6318_s26 }
 0x808   :  { %v3316_v39 = vpop.permute.xlu0 %3315 }
 0x809   :  { %3326 = vst.msk [vmem:[#allocation5] sm:$0xff] %vm784_vm13, %v3316_v39 }
 0x80a   :  { %v3318_v42 = vpop.permute.xlu1 %3317 }
 0x80b   :  { %v7658_v45 = vsel %vm778_vm14, %v3316_v39, %v3318_v42 }
 0x80c   :  { %3327 = vst [vmem:[#allocation5 + $0x8] sm:$0xff] %v7658_v45 }
 0x810   :  { %v7661_v48 = vld [vmem:[#allocation5] sm:$0xff] }
 0x811   :  { %3644 = vrot.lane.b32.xlu1 %v7661_v48, %s6299_s16  ;;  %3684 = vrot.lane.b32.xlu0 %v7661_v48, %s6298_s15 }
 0x815   :  { %3564 = vrot.lane.b32.xlu1 %v7661_v48, %s6301_s18  ;;  %3604 = vrot.lane.b32.xlu0 %v7661_v48, %s6300_s17 }
 0x819   :  { %3484 = vrot.lane.b32.xlu1 %v7661_v48, %s6303_s20  ;;  %3524 = vrot.lane.b32.xlu0 %v7661_v48, %s6302_s19 }
 0x81d   :  { %3404 = vrot.lane.b32.xlu1 %v7661_v48, %s6305_s22  ;;  %3444 = vrot.lane.b32.xlu0 %v7661_v48, %s6304_s21 }
 0x821   :  { %3686 = vrot.lane.b32.xlu0 %v7658_v45, %s6298_s15  ;;  %3646 = vrot.lane.b32.xlu1 %v7658_v45, %s6299_s16 }
 0x825   :  { %3606 = vrot.lane.b32.xlu0 %v7658_v45, %s6300_s17  ;;  %3566 = vrot.lane.b32.xlu1 %v7658_v45, %s6301_s18 }
 0x829   :  { %3526 = vrot.lane.b32.xlu0 %v7658_v45, %s6302_s19  ;;  %3486 = vrot.lane.b32.xlu1 %v7658_v45, %s6303_s20 }
 0x82d   :  { %3446 = vrot.lane.b32.xlu0 %v7658_v45, %s6304_s21  ;;  %3406 = vrot.lane.b32.xlu1 %v7658_v45, %s6305_s22 }
 0x831   :  { %v3320_v49 = vpop.permute.xlu0 %3319  ;;  %v3359_v50 = vpop.permute.xlu1 %3358 }
 0x832   :  { %v3322_v54 = vsel %vm778_vm14, %v3318_v42, %v3320_v49 }
 0x833   :  { %3328 = vst.msk [vmem:[#allocation5 + $0x10] sm:$0xff] %vm787_vm15, %v3322_v54 }
 0x835   :  { %v3361_v61 = vpop.permute.xlu1 %3360 }
 0x836   :  { %v3364_v7 = vsel %vm814_vm9, %v3359_v50, %v3361_v61 }
 0x837   :  { %3369 = vst.msk [vmem:[#allocation5 + $0x18] sm:$0xff] %vm784_vm13, %v3364_v7 }
 0x83a   :  { %v7699_v60 = vld [vmem:[#allocation5 + $0x10] sm:$0xff] }
 0x83b   :  { %3648 = vrot.lane.b32.xlu0 %v7699_v60, %s6299_s16  ;;  %3688 = vrot.lane.b32.xlu1 %v7699_v60, %s6298_s15  ;;  %3377 = vst.msk [vmem:[#allocation2 + $0x10] sm:$0xff] %vm107_vm0, %v7699_v60 }
 0x83e   :  { %v7741_v44 = vld [vmem:[#allocation5 + $0x18] sm:$0xff] }
 0x83f   :  { %3568 = vrot.lane.b32.xlu0 %v7699_v60, %s6301_s18  ;;  %3608 = vrot.lane.b32.xlu1 %v7699_v60, %s6300_s17 }
 0x843   :  { %3488 = vrot.lane.b32.xlu0 %v7699_v60, %s6303_s20  ;;  %3528 = vrot.lane.b32.xlu1 %v7699_v60, %s6302_s19 }
 0x844   :  { %v3363_v12 = vpop.permute.xlu0 %3362 }
 0x845   :  { %v7716_v0 = vsel %vm814_vm9, %v3361_v61, %v3363_v12  ;;  %3371 = vst.msk [vmem:[#allocation5 + $0x28] sm:$0xff] %vm787_vm15, %v3363_v12 }
 0x847   :  { %3408 = vrot.lane.b32.xlu0 %v7699_v60, %s6305_s22  ;;  %3448 = vrot.lane.b32.xlu1 %v7699_v60, %s6304_s21 }
 0x84c   :  { %v7723_v9 = vld [vmem:[#allocation5 + $0x28] sm:$0xff] }
 0x84d   :  { %3668 = vrot.lane.b32.xlu0 %v7723_v9, %s6308_s30  ;;  %3708 = vrot.lane.b32.xlu1 %v7723_v9, %s6307_s27 }
 0x851   :  { %3548 = vrot.lane.b32.xlu0 %v7723_v9, %s6311_s0  ;;  %3628 = vrot.lane.b32.xlu1 %v7723_v9, %s6309_s10 }
 0x855   :  { %3468 = vrot.lane.b32.xlu0 %v7723_v9, %s8610_s24  ;;  %3588 = vrot.lane.b32.xlu1 %v7723_v9, %s6310_s11 }
 0x859   :  { %3508 = vrot.lane.b32.xlu1 %v7723_v9, %s6312_s12  ;;  %3706 = vrot.lane.b32.xlu0 %v7716_v0, %s6307_s27 }
 0x85d   :  { %3666 = vrot.lane.b32.xlu1 %v7716_v0, %s6308_s30  ;;  %3704 = vrot.lane.b32.xlu0 %v7741_v44, %s6307_s27 }
 0x861   :  { %3626 = vrot.lane.b32.xlu0 %v7716_v0, %s6309_s10  ;;  %3664 = vrot.lane.b32.xlu1 %v7741_v44, %s6308_s30 }
 0x865   :  { %3624 = vrot.lane.b32.xlu0 %v7741_v44, %s6309_s10  ;;  %3584 = vrot.lane.b32.xlu1 %v7741_v44, %s6310_s11 }
 0x869   :  { %3586 = vrot.lane.b32.xlu0 %v7716_v0, %s6310_s11  ;;  %3544 = vrot.lane.b32.xlu1 %v7741_v44, %s6311_s0 }
 0x86d   :  { %3546 = vrot.lane.b32.xlu0 %v7716_v0, %s6311_s0  ;;  %3506 = vrot.lane.b32.xlu1 %v7716_v0, %s6312_s12 }
 0x871   :  { %3504 = vrot.lane.b32.xlu0 %v7741_v44, %s6312_s12  ;;  %3464 = vrot.lane.b32.xlu1 %v7741_v44, %s8610_s24 }
 0x875   :  { %3466 = vrot.lane.b32.xlu0 %v7716_v0, %s8610_s24  ;;  %3426 = vrot.lane.b32.xlu1 %v7716_v0, %s6314_s14 }
 0x879   :  { %3424 = vrot.lane.b32.xlu0 %v7741_v44, %s6314_s14  ;;  %3384 = vrot.lane.b32.xlu1 %v7741_v44, %s8611_s5 }
 0x87d   :  { %3386 = vrot.lane.b32.xlu0 %v7716_v0, %s8611_s5  ;;  %3428 = vrot.lane.b32.xlu1 %v7723_v9, %s6314_s14 }
 0x881   :  { %3388 = vrot.lane.b32.xlu0 %v7723_v9, %s8611_s5  ;;  %3769 = vperm.xlu1 %6248, %v5752_v1  }
 0x883   :  { %v3685_v6 = vpop.permute.xlu0 %3684  ;;  %v3645_v3 = vpop.permute.xlu1 %3644 }
 0x887   :  { %v3605_v8 = vpop.permute.xlu0 %3604  ;;  %v3565_v18 = vpop.permute.xlu1 %3564 }
 0x88b   :  { %v3525_v38 = vpop.permute.xlu0 %3524  ;;  %v3485_v34 = vpop.permute.xlu1 %3484 }
 0x88f   :  { %v3445_v51 = vpop.permute.xlu0 %3444  ;;  %v3405_v52 = vpop.permute.xlu1 %3404 }
 0x893   :  { %v3687_v53 = vpop.permute.xlu0 %3686  ;;  %v3647_v55 = vpop.permute.xlu1 %3646 }
 0x894   :  { %v3690_v37 = vsel %vm438_vm1, %v3685_v6, %v3687_v53  ;;  %v3650_v41 = vsel %vm8554_vm2, %v3645_v3, %v3647_v55 }
 0x897   :  { %v3607_v56 = vpop.permute.xlu0 %3606  ;;  %v3567_v57 = vpop.permute.xlu1 %3566 }
 0x898   :  { %v3610_v46 = vsel %vm8653_vm3, %v3605_v8, %v3607_v56  ;;  %v3570_v26 = vsel %vm8655_vm5, %v3565_v18, %v3567_v57 }
 0x89b   :  { %v3527_v59 = vpop.permute.xlu0 %3526  ;;  %v3487_v2 = vpop.permute.xlu1 %3486 }
 0x89c   :  { %v3530_v10 = vsel %vm8657_vm8, %v3525_v38, %v3527_v59 }
 0x89f   :  { %v3447_v4 = vpop.permute.xlu0 %3446  ;;  %v3407_v25 = vpop.permute.xlu1 %3406 }
 0x8ad   :  { %v3649_v21 = vpop.permute.xlu0 %3648  ;;  %v3689_v35 = vpop.permute.xlu1 %3688 }
 0x8ae   :  { %3657 = vst.msk [vmem:[#allocation2 + $0x128] sm:$0xff] %vm107_vm0, %v3649_v21  ;;  %v3691_v36 = vsel %vm438_vm1, %v3687_v53, %v3689_v35  ;;  %3697 = vst.msk [vmem:[#allocation2 + $0x150] sm:$0xff] %vm107_vm0, %v3689_v35  ;;  %v3651_v40 = vsel %vm8554_vm2, %v3647_v55, %v3649_v21 }
 0x8af   :  { %3789 = vmatprep.subr.mxu1 %v3691_v36 }
 0x8b0   :  { %3790 = vmatpush1.msra.mxu1 %v3690_v37 }
 0x8b1   :  { %v3569_v63 = vpop.permute.xlu0 %3568  ;;  %v3609_v43 = vpop.permute.xlu1 %3608  ;;  %3791 = vmatprep.subr.mxu1 %v3651_v40 }
 0x8b2   :  { %3577 = vst.msk [vmem:[#allocation2 + $0xd8] sm:$0xff] %vm107_vm0, %v3569_v63  ;;  %v3611_v24 = vsel %vm8652_vm10, %v3607_v56, %v3609_v43  ;;  %3617 = vst.msk [vmem:[#allocation2 + $0x100] sm:$0xff] %vm107_vm0, %v3609_v43  ;;  %3792 = vmatpush1.msra.mxu1 %v3650_v41  ;;  %v3571_v47 = vsel %vm8654_vm4, %v3567_v57, %v3569_v63  ;;  %vm8658_vm10 = vcmask 900096   ;;  %vm8660_vm4 = vcmask 1031168  }
 0x8b3   :  { %3793 = vmatprep.subr.mxu1 %v3611_v24  ;;  %vm8659_vm3 = vmmov %vm8658_vm10 }
 0x8b4   :  { %3794 = vmatpush1.msra.mxu1 %v3610_v46  ;;  %v3490_v19 = vsel %vm8659_vm3, %v3485_v34, %v3487_v2  ;;  %vm8661_vm5 = vmmov %vm8660_vm4 }
 0x8b5   :  { %v3489_v5 = vpop.permute.xlu0 %3488  ;;  %v3529_v62 = vpop.permute.xlu1 %3528  ;;  %3795 = vmatprep.subr.mxu1 %v3571_v47  ;;  %v3450_v27 = vsel %vm8661_vm5, %v3445_v51, %v3447_v4  ;;  %vm8667_vm5 = vcmask 998400  }
 0x8b6   :  { %3497 = vst.msk [vmem:[#allocation2 + $0x88] sm:$0xff] %vm107_vm0, %v3489_v5  ;;  %v3531_v58 = vsel %vm8656_vm7, %v3527_v59, %v3529_v62  ;;  %3537 = vst.msk [vmem:[#allocation2 + $0xb0] sm:$0xff] %vm107_vm0, %v3529_v62  ;;  %3796 = vmatpush1.msra.mxu1 %v3570_v26  ;;  %v3491_v13 = vsel %vm8658_vm10, %v3487_v2, %v3489_v5  ;;  %vm8662_vm7 = vcmask 1039360   ;;  %vm8664_vm10 = vcmask 523264  }
 0x8b7   :  { %3797 = vmatprep.subr.mxu1 %v3531_v58  ;;  %vm8663_vm8 = vmmov %vm8662_vm7 }
 0x8b8   :  { %3798 = vmatpush1.msra.mxu1 %v3530_v10  ;;  %v3410_v31 = vsel %vm8663_vm8, %v3405_v52, %v3407_v25  ;;  %vm8665_vm3 = vmmov %vm8664_vm10  ;;  %vm8669_vm8 = vcmask 1006592  }
 0x8b9   :  { %v3409_v20 = vpop.permute.xlu0 %3408  ;;  %v3449_v22 = vpop.permute.xlu1 %3448  ;;  %3799 = vmatprep.subr.mxu1 %v3491_v13 }
 0x8ba   :  { %3417 = vst.msk [vmem:[#allocation2 + $0x38] sm:$0xff] %vm107_vm0, %v3409_v20  ;;  %v3451_v23 = vsel %vm8660_vm4, %v3447_v4, %v3449_v22  ;;  %3457 = vst.msk [vmem:[#allocation2 + $0x60] sm:$0xff] %vm107_vm0, %v3449_v22  ;;  %3800 = vmatpush1.msra.mxu1 %v3490_v19  ;;  %v3411_v30 = vsel %vm8662_vm7, %v3407_v25, %v3409_v20 }
 0x8bb   :  { %3801 = vmatprep.subr.mxu1 %v3451_v23  ;;  %vm8666_vm4 = vmmov %vm8665_vm3 }
 0x8bc   :  { %3802 = vmatpush1.msra.mxu1 %v3450_v27  ;;  %vm8668_vm7 = vmmov %vm8667_vm5 }
 0x8bd   :  { %3803 = vmatprep.subr.mxu1 %v3411_v30 }
 0x8be   :  { %3804 = vmatpush1.msra.mxu1 %v3410_v31 }
 0x8bf   :  { %v3669_v33 = vpop.permute.xlu0 %3668  ;;  %v3709_v39 = vpop.permute.xlu1 %3708  ;;  %3805 = vmatprep.subr.mxu1 %v7658_v45 }
 0x8c0   :  { %3677 = vst.msk [vmem:[#allocation2 + $0x138] sm:$0xff] %vm8664_vm10, %v3669_v33  ;;  %3806 = vmatpush1.msra.mxu1 %v7661_v48  ;;  %vm8670_vm10 = vcmask 1014784  }
 0x8c1   :  { %3717 = vst.msk [vmem:[#allocation2 + $0x160] sm:$0xff] %vm8665_vm3, %v3709_v39  ;;  %5753 = vmatmul.mubr.msk.f32.vlgmr.msra.gmra.mxu1 %vm527_vm11, %v7811_v32  ;;  %6140 = vmatprep.subr.mxu1 %v7393_v14  ;;  %vm8671_vm3 = vmmov %vm8669_vm8 }
 0x8c2   :  { %6158 = vmatprep.mubr.msk.f32.mxu1 %vm8592_vm6, %v7393_v14 }
 0x8c3   :  { %v3549_v42 = vpop.permute.xlu0 %3548  ;;  %v3629_v49 = vpop.permute.xlu1 %3628 }
 0x8c4   :  { %3637 = vst.msk [vmem:[#allocation2 + $0x110] sm:$0xff] %vm8666_vm4, %v3629_v49  ;;  %vm8672_vm4 = vcmask 97280  }
 0x8c7   :  { %v7823_v50 = vpop.permute.xlu0 %3468  ;;  %v3589_v45 = vpop.permute.xlu1 %3588  ;;  %v3761_v48 = vld [vmem:[#allocation2 + $0x138] sm:$0xff] }
 0x8c8   :  { %v3766_v54 = vld [vmem:[#allocation2 + $0x160] sm:$0xff] }
 0x8c9   :  { %6141 = vmatpush3.msra.mxu1 %v3766_v54 }
 0x8ca   :  { %6142 = vmatprep.subr.mxu1 %v7393_v14 }
 0x8cb   :  { %6143 = vmatpush3.msra.mxu1 %v3761_v48  ;;  %v3707_v61 = vpop.permute.xlu0 %3706  ;;  %v3509_v7 = vpop.permute.xlu1 %3508  ;;  %v3756_v12 = vld [vmem:[#allocation2 + $0x110] sm:$0xff] }
 0x8cc   :  { %6144 = vmatprep.subr.mxu1 %v7393_v14  ;;  %v3711_v1 = vsel %vm8667_vm5, %v3707_v61, %v3709_v39  ;;  %vm8673_vm5 = vmmov %vm8670_vm10 }
 0x8cd   :  { %6145 = vmatpush3.msra.mxu1 %v3756_v12  ;;  %3860 = vmatprep.subr.mxu0 %v3711_v1 }
 0x8ce   :  { %6146 = vmatprep.subr.mxu1 %v7393_v14 }
 0x8cf   :  { %v3705_v6 = vpop.permute.xlu0 %3704  ;;  %v3667_v3 = vpop.permute.xlu1 %3666 }
 0x8d0   :  { %v3710_v8 = vsel %vm8668_vm7, %v3705_v6, %v3707_v61  ;;  %v3671_v56 = vsel %vm8671_vm3, %v3667_v3, %v3669_v33  ;;  %vm8674_vm7 = vcmask 523264   ;;  %vm8677_vm3 = vmmov %vm8672_vm4 }
 0x8d1   :  { %3715 = vst.msk [vmem:[#allocation2 + $0x150] sm:$0xff] %vm127_vm12, %v3710_v8  ;;  %vm8678_vm2 = vmmov %vm8674_vm7 }
 0x8d3   :  { %v3627_v18 = vpop.permute.xlu0 %3626  ;;  %v3665_v38 = vpop.permute.xlu1 %3664 }
 0x8d4   :  { %v3670_v34 = vsel %vm8669_vm8, %v3665_v38, %v3667_v3  ;;  %v3631_v25 = vsel %vm8673_vm5, %v3627_v18, %v3629_v49  ;;  %vm8675_vm8 = vcmask 105472  }
 0x8d5   :  { %3675 = vst.msk [vmem:[#allocation2 + $0x128] sm:$0xff] %vm127_vm12, %v3670_v34  ;;  %vm8680_vm5 = vmmov %vm8675_vm8 }
 0x8d7   :  { %v3625_v51 = vpop.permute.xlu0 %3624  ;;  %v3585_v52 = vpop.permute.xlu1 %3584 }
 0x8d8   :  { %v3630_v53 = vsel %vm8670_vm10, %v3625_v51, %v3627_v18  ;;  %3595 = vst.msk [vmem:[#allocation2 + $0xd8] sm:$0xff] %vm127_vm12, %v3585_v52  ;;  %v3764_v55 = vld [vmem:[#allocation2 + $0x150] sm:$0xff]  ;;  %vm8676_vm10 = vcmask 113664  }
 0x8d9   :  { %3635 = vst.msk [vmem:[#allocation2 + $0x100] sm:$0xff] %vm127_vm12, %v3630_v53  ;;  %3861 = vmatpush1.msra.mxu0 %v3764_v55 }
 0x8da   :  { %3862 = vmatprep.subr.mxu0 %v3671_v56 }
 0x8db   :  { %v3587_v57 = vpop.permute.xlu0 %3586  ;;  %v3545_v59 = vpop.permute.xlu1 %3544 }
 0x8dc   :  { %v3591_v2 = vsel %vm8672_vm4, %v3587_v57, %v3589_v45  ;;  %3555 = vst.msk [vmem:[#allocation2 + $0xb0] sm:$0xff] %vm127_vm12, %v3545_v59  ;;  %v3759_v4 = vld [vmem:[#allocation2 + $0x128] sm:$0xff]  ;;  %v3590_v41 = vsel %vm8677_vm3, %v3585_v52, %v3587_v57  ;;  %vm8679_vm4 = vmmov %vm8678_vm2  ;;  %vm8685_vm3 = vcmask 252928  }
 0x8dd   :  { %3597 = vst.msk [vmem:[#allocation2 + $0xe8] sm:$0xff] %vm8674_vm7, %v3591_v2  ;;  %3863 = vmatpush1.msra.mxu0 %v3759_v4  ;;  %vm8681_vm7 = vmmov %vm8676_vm10 }
 0x8de   :  { %3864 = vmatprep.subr.mxu0 %v3631_v25 }
 0x8df   :  { %v3547_v21 = vpop.permute.xlu0 %3546  ;;  %v3507_v35 = vpop.permute.xlu1 %3506  ;;  %v3749_v63 = vld [vmem:[#allocation2 + $0xd8] sm:$0xff] }
 0x8e0   :  { %v3551_v36 = vsel %vm8675_vm8, %v3547_v21, %v3549_v42  ;;  %v3511_v37 = vsel %vm8676_vm10, %v3507_v35, %v3509_v7  ;;  %v3754_v40 = vld [vmem:[#allocation2 + $0x100] sm:$0xff]  ;;  %v3550_v43 = vsel %vm8680_vm5, %v3545_v59, %v3547_v21  ;;  %vm8683_vm8 = vmmov %vm8679_vm4 }
 0x8e1   :  { %3557 = vst.msk [vmem:[#allocation2 + $0xc0] sm:$0xff] %vm8678_vm2, %v3551_v36  ;;  %3865 = vmatpush1.msra.mxu0 %v3754_v40  ;;  %vm8682_vm2 = vcmask 244736   ;;  %vm8687_vm5 = vmmov %vm8683_vm8 }
 0x8e2   :  { %3517 = vst.msk [vmem:[#allocation2 + $0x98] sm:$0xff] %vm8679_vm4, %v3511_v37  ;;  %3866 = vmatprep.subr.mxu0 %v3590_v41  ;;  %vm8684_vm10 = vmmov %vm8682_vm2 }
 0x8e3   :  { %v3505_v24 = vpop.permute.xlu0 %3504  ;;  %v3465_v46 = vpop.permute.xlu1 %3464  ;;  %3867 = vmatpush1.msra.mxu0 %v3749_v63  ;;  %v3744_v47 = vld [vmem:[#allocation2 + $0xb0] sm:$0xff]  ;;  %vm8686_vm4 = vmmov %vm8685_vm3 }
 0x8e4   :  { %v3510_v26 = vsel %vm8681_vm7, %v3505_v24, %v3507_v35  ;;  %3515 = vst.msk [vmem:[#allocation2 + $0x88] sm:$0xff] %vm127_vm12, %v3505_v24  ;;  %3475 = vst.msk [vmem:[#allocation2 + $0x60] sm:$0xff] %vm127_vm12, %v3465_v46  ;;  %v3751_v5 = vld [vmem:[#allocation2 + $0xe8] sm:$0xff]  ;;  %3868 = vmatprep.subr.mxu0 %v3550_v43 }
 0x8e5   :  { %6147 = vmatpush3.msra.mxu1 %v3751_v5  ;;  %3869 = vmatpush1.msra.mxu0 %v3744_v47  ;;  %vm8688_vm7 = vmmov %vm8687_vm5 }
 0x8e6   :  { %6148 = vmatprep.subr.mxu1 %v7393_v14  ;;  %3870 = vmatprep.subr.mxu0 %v3510_v26 }
 0x8e7   :  { %v3467_v62 = vpop.permute.xlu0 %3466  ;;  %v3427_v58 = vpop.permute.xlu1 %3426 }
 0x8e8   :  { %v3471_v10 = vsel %vm8682_vm2, %v3467_v62, %v7823_v50  ;;  %v3746_v13 = vld [vmem:[#allocation2 + $0xc0] sm:$0xff]  ;;  %v3470_v27 = vsel %vm8684_vm10, %v3465_v46, %v3467_v62  ;;  %vm8689_vm2 = vcmask 744448   ;;  %vm8691_vm10 = vcmask 752640  }
 0x8e9   :  { %3477 = vst.msk [vmem:[#allocation2 + $0x70] sm:$0xff] %vm8683_vm8, %v3471_v10  ;;  %6149 = vmatpush3.msra.mxu1 %v3746_v13  ;;  %v3741_v19 = vld [vmem:[#allocation2 + $0x98] sm:$0xff]  ;;  %vm8690_vm8 = vmmov %vm8689_vm2 }
 0x8ea   :  { %6150 = vmatprep.subr.mxu1 %v7393_v14 }
 0x8eb   :  { %v3425_v20 = vpop.permute.xlu0 %3424  ;;  %6151 = vmatpush3.msra.mxu1 %v3741_v19  ;;  %v3385_v22 = vpop.permute.xlu1 %3384  ;;  %v3739_v23 = vld [vmem:[#allocation2 + $0x88] sm:$0xff]  ;;  %v3734_v30 = vld [vmem:[#allocation2 + $0x60] sm:$0xff] }
 0x8ec   :  { %3435 = vst.msk [vmem:[#allocation2 + $0x38] sm:$0xff] %vm127_vm12, %v3425_v20  ;;  %3395 = vst.msk [vmem:[#allocation2 + $0x10] sm:$0xff] %vm127_vm12, %v3385_v22  ;;  %3871 = vmatpush1.msra.mxu0 %v3739_v23  ;;  %6152 = vmatprep.subr.mxu1 %v7393_v14  ;;  %v3430_v31 = vsel %vm8685_vm3, %v3425_v20, %v3427_v58  ;;  %v4648_v23 = vld [vmem:[#allocation5 + $0x8] sm:$0xff] }
 0x8ed   :  { %3872 = vmatprep.subr.mxu0 %v3470_v27  ;;  %v4673_v27 = vld [vmem:[%s8530_s1] sm:$0xff]  ;;  %vm8692_vm3 = vmmov %vm8691_vm10 }
 0x8ee   :  { %3873 = vmatpush1.msra.mxu0 %v3734_v30 }
 0x8ef   :  { %v3387_v33 = vpop.permute.xlu0 %3386  ;;  %v3429_v39 = vpop.permute.xlu1 %3428  ;;  %3874 = vmatprep.subr.mxu0 %v3430_v31  ;;  %v4647_v31 = vld [vmem:[#allocation5] sm:$0xff] }
 0x8f0   :  { %v3431_v42 = vsel %vm8686_vm4, %v3427_v58, %v3429_v39  ;;  %v3736_v49 = vld [vmem:[#allocation2 + $0x70] sm:$0xff]  ;;  %v3390_v54 = vsel %vm107_vm0, %v3385_v22, %v3387_v33  ;;  %v5757_v22 = vld [vmem:[%s8526_s7 + $0x20] sm:$0xff]  ;;  %vm8693_vm4 = vcmask 883712  }
 0x8f1   :  { %3437 = vst.msk [vmem:[#allocation2 + $0x48] sm:$0xff] %vm8687_vm5, %v3431_v42  ;;  %6153 = vmatpush3.msra.mxu1 %v3736_v49  ;;  %v4674_v49 = vld [vmem:[%s8530_s1 + $0x8] sm:$0xff]  ;;  %vm8694_vm5 = vmmov %vm8693_vm4 }
 0x8f2   :  { %6154 = vmatprep.subr.mxu1 %v7393_v14 }
 0x8f3   :  { %v3389_v50 = vpop.permute.xlu0 %3388  ;;  %v3729_v45 = vld [vmem:[#allocation2 + $0x38] sm:$0xff]  ;;  %v3724_v61 = vld [vmem:[#allocation2 + $0x10] sm:$0xff] }
 0x8f4   :  { %v3391_v48 = vsel %vm107_vm0, %v3387_v33, %v3389_v50  ;;  %3875 = vmatpush1.msra.mxu0 %v3729_v45  ;;  %v4675_v33 = vld [vmem:[%s8530_s1 + $0x10] sm:$0xff]  ;;  %v5761_v50 = vld [vmem:[%s8530_s1 + $0x18] sm:$0xff] }
 0x8f5   :  { %3397 = vst.msk [vmem:[#allocation2 + $0x20] sm:$0xff] %vm8688_vm7, %v3391_v48  ;;  %3876 = vmatprep.subr.mxu0 %v3390_v54  ;;  %vm8695_vm7 = vcmask 891904  }
 0x8f6   :  { %3877 = vmatpush1.msra.mxu0 %v3724_v61 }
 0x8f7   :  { %5754 = vmatmul.mubr.msk.f32.vlgmr.msra.gmra.mxu0 %vm527_vm11, %v7811_v32 }
 0x8f8   :  { %v3731_v7 = vld [vmem:[#allocation2 + $0x48] sm:$0xff]  ;;  %4499 = vmatprep.mubr.f32.mxu0 %v7393_v14 }
 0x8f9   :  { %6155 = vmatpush3.msra.mxu1 %v3731_v7 }
 0x8fa   :  { %6156 = vmatprep.subr.mxu1 %v7393_v14 }
 0x8fc   :  { %v3726_v12 = vld [vmem:[#allocation2 + $0x20] sm:$0xff]  ;;  %v3770_v1 = vpop.permute.xlu1 %3769 }
 0x8fd   :  { %6157 = vmatpush3.msra.mxu1 %v3726_v12 }
 0x8fe   :  { %6159 = vmatmul.mubr.msk.f32.vlgmr.msra.gmra.mxu1 %vm527_vm11, %v7811_v32 }
 0x8ff   :  { %4570 = vmatprep.mubr.f32.mxu1 %v7393_v14 }
 0x981   :  { %v3841_v6 = vpop.f32.mrf.mxu1 }
 0x982   :  { %v3842_v3 = vadd.f32 %v3841_v6, %v3770_v1 }
 0x983   :  { %v3843_v8 = vpop.f32.mrf.mxu1 }
 0x984   :  { %v3987_v18 = vmax.f32 %v3842_v3, 0.0  ;;  %v3844_v38 = vadd.f32 %v3843_v8, %v3770_v1 }
 0x986   :  { %v3990_v34 = vmul.f32 %v3987_v18, %v6483_v16  ;;  %v3988_v51 = vmax.f32 %v3844_v38, 0.0 }
 0x988   :  { %v3991_v52 = vmul.f32 %v3988_v51, %v6481_v15  ;;  %3996 = vrot.lane.b32.xlu0 %v3990_v34, %s6317_s4 }
 0x98a   :  { %3998 = vrot.lane.b32.xlu1 %v3991_v52, %s6317_s4 }
 0x9b7   :  { %v3912_v53 = vpop.f32.mrf.mxu0 }
 0x9b8   :  { %v3913_v55 = vadd.f32 %v3912_v53, %v3770_v1 }
 0x9b9   :  { %v3914_v32 = vpop.f32.mrf.mxu0 }
 0x9ba   :  { %v3989_v56 = vmax.f32 %v3913_v55, 0.0  ;;  %v3915_v57 = vadd.f32 %v3914_v32, %v3770_v1 }
 0x9bc   :  { %v3992_v59 = vmul.f32 %v3989_v56, %v6489_v17  ;;  %v4012_v2 = vmul.f32 %v3989_v56, %v6585_v11  ;;  %v4010_v4 = vmax.f32 %v3915_v57, 0.0 }
 0x9be   :  { %v3983_v25 = vpop.f32.mrf.mxu1  ;;  %4018 = vrot.lane.b32.xlu1 %v4012_v2, %s6318_s26  ;;  %4000 = vrot.lane.b32.xlu0 %v3992_v59, %s6317_s4  ;;  %v4013_v35 = vmul.f32 %v4010_v4, %v6601_v29 }
 0x9bf   :  { %v3984_v21 = vadd.f32 %v3983_v25, %v3770_v1 }
 0x9c0   :  { %v6160_v36 = vpop.f32.mrf.mxu1 }
 0x9c1   :  { %v4011_v37 = vmax.f32 %v3984_v21, 0.0 }
 0x9c2   :  { %4020 = vrot.lane.b32.xlu1 %v4013_v35, %s6318_s26 }
 0x9c3   :  { %v4014_v40 = vmul.f32 %v4011_v37, %v6597_v28 }
 0x9c5   :  { %4022 = vrot.lane.b32.xlu0 %v4014_v40, %s6318_s26 }
 0x9fa   :  { %v3997_v41 = vpop.permute.xlu0 %3996 }
 0x9fb   :  { %4007 = vst.msk [vmem:[#allocation3] sm:$0xff] %vm784_vm13, %v3997_v41 }
 0x9fc   :  { %v3999_v43 = vpop.permute.xlu1 %3998 }
 0x9fd   :  { %v7901_v24 = vsel %vm778_vm14, %v3997_v41, %v3999_v43 }
 0xa02   :  { %v7886_v63 = vld [vmem:[#allocation3] sm:$0xff] }
 0xa03   :  { %4344 = vrot.lane.b32.xlu0 %v7886_v63, %s6298_s15  ;;  %4304 = vrot.lane.b32.xlu1 %v7886_v63, %s6299_s16 }
 0xa07   :  { %4264 = vrot.lane.b32.xlu1 %v7886_v63, %s6300_s17  ;;  %4144 = vrot.lane.b32.xlu0 %v7886_v63, %s6303_s20 }
 0xa0b   :  { %4224 = vrot.lane.b32.xlu1 %v7886_v63, %s6301_s18  ;;  %4064 = vrot.lane.b32.xlu0 %v7886_v63, %s6305_s22 }
 0xa0f   :  { %4184 = vrot.lane.b32.xlu1 %v7886_v63, %s6302_s19  ;;  %4346 = vrot.lane.b32.xlu0 %v7901_v24, %s6298_s15 }
 0xa13   :  { %4104 = vrot.lane.b32.xlu1 %v7886_v63, %s6304_s21 }
 0xa30   :  { %v4019_v46 = vpop.permute.xlu1 %4018  ;;  %v4001_v47 = vpop.permute.xlu0 %4000 }
 0xa31   :  { %v4003_v26 = vsel %vm778_vm14, %v3999_v43, %v4001_v47 }
 0xa32   :  { %4009 = vst.msk [vmem:[#allocation3 + $0x10] sm:$0xff] %vm787_vm15, %v4003_v26 }
 0xa34   :  { %v4021_v5 = vpop.permute.xlu1 %4020 }
 0xa35   :  { %v4024_v62 = vsel %vm814_vm9, %v4019_v46, %v4021_v5 }
 0xa36   :  { %4029 = vst.msk [vmem:[#allocation3 + $0x18] sm:$0xff] %vm784_vm13, %v4024_v62 }
 0xa37   :  { %v4023_v58 = vpop.permute.xlu0 %4022 }
 0xa38   :  { %4031 = vst.msk [vmem:[#allocation3 + $0x28] sm:$0xff] %vm787_vm15, %v4023_v58  ;;  %v4025_v19 = vsel %vm814_vm9, %v4021_v5, %v4023_v58  ;;  %v8029_v58 = vld [vmem:[%s8527_s6 + $0x20] sm:$0xff] }
 0xa39   :  { %v4340_v10 = vld [vmem:[#allocation3 + $0x10] sm:$0xff] }
 0xa3a   :  { %4348 = vrot.lane.b32.xlu1 %v4340_v10, %s6298_s15  ;;  %4308 = vrot.lane.b32.xlu0 %v4340_v10, %s6299_s16  ;;  %4037 = vst.msk [vmem:[#allocation2 + $0x10] sm:$0xff] %vm107_vm0, %v4340_v10 }
 0xa3d   :  { %v4358_v13 = vld [vmem:[#allocation3 + $0x18] sm:$0xff] }
 0xa3e   :  { %4306 = vrot.lane.b32.xlu1 %v7901_v24, %s6299_s16  ;;  %4268 = vrot.lane.b32.xlu0 %v4340_v10, %s6300_s17 }
 0xa3f   :  { %v4360_v20 = vld [vmem:[#allocation3 + $0x28] sm:$0xff] }
 0xa42   :  { %4266 = vrot.lane.b32.xlu1 %v7901_v24, %s6300_s17  ;;  %4228 = vrot.lane.b32.xlu0 %v4340_v10, %s6301_s18 }
 0xa46   :  { %4226 = vrot.lane.b32.xlu1 %v7901_v24, %s6301_s18  ;;  %4188 = vrot.lane.b32.xlu0 %v4340_v10, %s6302_s19 }
 0xa4a   :  { %4186 = vrot.lane.b32.xlu1 %v7901_v24, %s6302_s19  ;;  %4146 = vrot.lane.b32.xlu0 %v7901_v24, %s6303_s20 }
 0xa4e   :  { %4148 = vrot.lane.b32.xlu1 %v4340_v10, %s6303_s20  ;;  %4108 = vrot.lane.b32.xlu0 %v4340_v10, %s6304_s21 }
 0xa52   :  { %4106 = vrot.lane.b32.xlu1 %v7901_v24, %s6304_s21  ;;  %4066 = vrot.lane.b32.xlu0 %v7901_v24, %s6305_s22 }
 0xa56   :  { %4364 = vrot.lane.b32.xlu0 %v4358_v13, %s6307_s27  ;;  %4068 = vrot.lane.b32.xlu1 %v4340_v10, %s6305_s22 }
 0xa5a   :  { %4324 = vrot.lane.b32.xlu0 %v4358_v13, %s6308_s30  ;;  %4244 = vrot.lane.b32.xlu1 %v4358_v13, %s6310_s11 }
 0xa5e   :  { %4284 = vrot.lane.b32.xlu0 %v4358_v13, %s6309_s10  ;;  %4164 = vrot.lane.b32.xlu1 %v4358_v13, %s6312_s12 }
 0xa62   :  { %4204 = vrot.lane.b32.xlu0 %v4358_v13, %s6311_s0  ;;  %4084 = vrot.lane.b32.xlu1 %v4358_v13, %s6314_s14 }
 0xa66   :  { %4124 = vrot.lane.b32.xlu0 %v4358_v13, %s8610_s24  ;;  %4366 = vrot.lane.b32.xlu1 %v4025_v19, %s6307_s27 }
 0xa6a   :  { %4368 = vrot.lane.b32.xlu0 %v4360_v20, %s6307_s27  ;;  %4326 = vrot.lane.b32.xlu1 %v4025_v19, %s6308_s30 }
 0xa6e   :  { %4328 = vrot.lane.b32.xlu0 %v4360_v20, %s6308_s30  ;;  %4286 = vrot.lane.b32.xlu1 %v4025_v19, %s6309_s10 }
 0xa72   :  { %4288 = vrot.lane.b32.xlu0 %v4360_v20, %s6309_s10  ;;  %4206 = vrot.lane.b32.xlu1 %v4025_v19, %s6311_s0 }
 0xa75   :  { %v4305_v30 = vpop.permute.xlu1 %4304  ;;  %v4345_v39 = vpop.permute.xlu0 %4344 }
 0xa76   :  { %4246 = vrot.lane.b32.xlu0 %v4025_v19, %s6310_s11  ;;  %4126 = vrot.lane.b32.xlu1 %v4025_v19, %s8610_s24 }
 0xa79   :  { %v4265_v42 = vpop.permute.xlu1 %4264  ;;  %v4145_v45 = vpop.permute.xlu0 %4144 }
 0xa7a   :  { %4166 = vrot.lane.b32.xlu0 %v4025_v19, %s6312_s12  ;;  %4044 = vrot.lane.b32.xlu1 %v4358_v13, %s8611_s5 }
 0xa7d   :  { %v4225_v54 = vpop.permute.xlu1 %4224  ;;  %v4065_v48 = vpop.permute.xlu0 %4064 }
 0xa7e   :  { %4248 = vrot.lane.b32.xlu1 %v4360_v20, %s6310_s11  ;;  %4086 = vrot.lane.b32.xlu0 %v4025_v19, %s6314_s14 }
 0xa81   :  { %v4185_v61 = vpop.permute.xlu1 %4184 }
 0xa82   :  { %4168 = vrot.lane.b32.xlu1 %v4360_v20, %s6312_s12  ;;  %4046 = vrot.lane.b32.xlu0 %v4025_v19, %s8611_s5 }
 0xa85   :  { %v4105_v7 = vpop.permute.xlu1 %4104 }
 0xa86   :  { %4088 = vrot.lane.b32.xlu1 %v4360_v20, %s6314_s14  ;;  %4208 = vrot.lane.b32.xlu0 %v4360_v20, %s6311_s0 }
 0xa8a   :  { %4429 = vperm.xlu1 %6248, %v5757_v22   ;;  %4128 = vrot.lane.b32.xlu0 %v4360_v20, %s8610_s24 }
 0xa8e   :  { %4655 = vrot.lane.b32.xlu1 %v4648_v23, %s6302_s19  ;;  %4048 = vrot.lane.b32.xlu0 %v4360_v20, %s8611_s5 }
 0xa92   :  { %4679 = vrot.lane.b32.xlu1 %v4673_v27, %s6302_s19  ;;  %4653 = vrot.lane.b32.xlu0 %v4647_v31, %s6302_s19 }
 0xa96   :  { %4683 = vrot.lane.b32.xlu1 %v4675_v33, %s6302_s19  ;;  %4657 = vrot.lane.b32.xlu0 %v7699_v60, %s6302_s19  ;;  %v5763_v60 = vld [vmem:[%s8530_s1 + $0x28] sm:$0xff] }
 0xa9a   :  { %4718 = vrot.lane.b32.xlu1 %v7716_v0, %s6311_s0  ;;  %4681 = vrot.lane.b32.xlu0 %v4674_v49, %s6302_s19  ;;  %v5762_v0 = vld [vmem:[%s8530_s1 + $0x20] sm:$0xff] }
 0xa9e   :  { %4716 = vrot.lane.b32.xlu0 %v7741_v44, %s6311_s0  ;;  %4743 = vrot.lane.b32.xlu1 %v5761_v50, %s6311_s0  ;;  %v4347_v44 = vpop.permute.xlu0 %4346 }
 0xaa2   :  { %4720 = vrot.lane.b32.xlu0 %v7723_v9, %s6311_s0  ;;  %4747 = vrot.lane.b32.xlu1 %v5763_v60, %s6311_s0  ;;  %v4350_v9 = vsel %vm438_vm1, %v4345_v39, %v4347_v44 }
 0xaa6   :  { %4745 = vrot.lane.b32.xlu0 %v5762_v0, %s6311_s0 }
 0xaac   :  { %v4349_v12 = vpop.permute.xlu1 %4348  ;;  %v4309_v1 = vpop.permute.xlu0 %4308 }
 0xaad   :  { %v4351_v6 = vsel %vm438_vm1, %v4347_v44, %v4349_v12  ;;  %4357 = vst.msk [vmem:[#allocation2 + $0x150] sm:$0xff] %vm107_vm0, %v4349_v12  ;;  %4317 = vst.msk [vmem:[#allocation2 + $0x128] sm:$0xff] %vm107_vm0, %v4309_v1 }
 0xaae   :  { %4449 = vmatprep.subr.mxu0 %v4351_v6 }
 0xaaf   :  { %4450 = vmatpush1.msra.mxu0 %v4350_v9 }
 0xab0   :  { %v4307_v3 = vpop.permute.xlu1 %4306  ;;  %v4269_v8 = vpop.permute.xlu0 %4268 }
 0xab1   :  { %v4310_v18 = vsel %vm8689_vm2, %v4305_v30, %v4307_v3  ;;  %v4311_v38 = vsel %vm8690_vm8, %v4307_v3, %v4309_v1  ;;  %4277 = vst.msk [vmem:[#allocation2 + $0x100] sm:$0xff] %vm107_vm0, %v4269_v8  ;;  %vm8696_vm2 = vmmov %vm8695_vm7  ;;  %vm8697_vm8 = vcmask 900096  }
 0xab2   :  { %4451 = vmatprep.subr.mxu0 %v4311_v38 }
 0xab3   :  { %4452 = vmatpush1.msra.mxu0 %v4310_v18 }
 0xab4   :  { %v4267_v34 = vpop.permute.xlu1 %4266  ;;  %v4229_v51 = vpop.permute.xlu0 %4228 }
 0xab5   :  { %v4270_v52 = vsel %vm8691_vm10, %v4265_v42, %v4267_v34  ;;  %v4271_v53 = vsel %vm8692_vm3, %v4267_v34, %v4269_v8  ;;  %4237 = vst.msk [vmem:[#allocation2 + $0xd8] sm:$0xff] %vm107_vm0, %v4229_v51  ;;  %vm8698_vm10 = vmmov %vm8697_vm8  ;;  %vm8699_vm3 = vcmask 1031168  }
 0xab6   :  { %4453 = vmatprep.subr.mxu0 %v4271_v53 }
 0xab7   :  { %4454 = vmatpush1.msra.mxu0 %v4270_v52 }
 0xab8   :  { %v4227_v55 = vpop.permute.xlu1 %4226  ;;  %v4189_v32 = vpop.permute.xlu0 %4188 }
 0xab9   :  { %v4230_v56 = vsel %vm8693_vm4, %v4225_v54, %v4227_v55  ;;  %v4231_v57 = vsel %vm8694_vm5, %v4227_v55, %v4229_v51  ;;  %4197 = vst.msk [vmem:[#allocation2 + $0xb0] sm:$0xff] %vm107_vm0, %v4189_v32  ;;  %vm8700_vm4 = vmmov %vm8699_vm3  ;;  %vm8701_vm5 = vcmask 1039360  }
 0xaba   :  { %4455 = vmatprep.subr.mxu0 %v4231_v57 }
 0xabb   :  { %4456 = vmatpush1.msra.mxu0 %v4230_v56 }
 0xabc   :  { %v4187_v59 = vpop.permute.xlu1 %4186  ;;  %v4147_v2 = vpop.permute.xlu0 %4146 }
 0xabd   :  { %v4190_v4 = vsel %vm8695_vm7, %v4185_v61, %v4187_v59  ;;  %v4191_v25 = vsel %vm8696_vm2, %v4187_v59, %v4189_v32  ;;  %v4150_v37 = vsel %vm8698_vm10, %v4145_v45, %v4147_v2  ;;  %vm8702_vm7 = vmmov %vm8701_vm5  ;;  %vm8703_vm2 = vcmask 998400  }
 0xabe   :  { %4457 = vmatprep.subr.mxu0 %v4191_v25  ;;  %vm8705_vm10 = vmmov %vm8703_vm2 }
 0xabf   :  { %4458 = vmatpush1.msra.mxu0 %v4190_v4 }
 0xac0   :  { %v4149_v21 = vpop.permute.xlu1 %4148  ;;  %v4109_v35 = vpop.permute.xlu0 %4108 }
 0xac1   :  { %v4151_v36 = vsel %vm8697_vm8, %v4147_v2, %v4149_v21  ;;  %4157 = vst.msk [vmem:[#allocation2 + $0x88] sm:$0xff] %vm107_vm0, %v4149_v21  ;;  %4117 = vst.msk [vmem:[#allocation2 + $0x60] sm:$0xff] %vm107_vm0, %v4109_v35  ;;  %vm8704_vm8 = vcmask 1006592  }
 0xac2   :  { %4459 = vmatprep.subr.mxu0 %v4151_v36 }
 0xac3   :  { %4460 = vmatpush1.msra.mxu0 %v4150_v37 }
 0xac4   :  { %v4107_v40 = vpop.permute.xlu1 %4106  ;;  %v4067_v41 = vpop.permute.xlu0 %4066 }
 0xac5   :  { %v4110_v43 = vsel %vm8699_vm3, %v4105_v7, %v4107_v40  ;;  %v4111_v46 = vsel %vm8700_vm4, %v4107_v40, %v4109_v35  ;;  %v4070_v62 = vsel %vm8702_vm7, %v4065_v48, %v4067_v41  ;;  %vm8706_vm3 = vcmask 523264  }
 0xac6   :  { %4461 = vmatprep.subr.mxu0 %v4111_v46  ;;  %vm8707_vm4 = vcmask 1014784   ;;  %vm8709_vm7 = vmmov %vm8706_vm3 }
 0xac7   :  { %4462 = vmatpush1.msra.mxu0 %v4110_v43 }
 0xac8   :  { %v4069_v47 = vpop.permute.xlu1 %4068  ;;  %v4365_v26 = vpop.permute.xlu0 %4364 }
 0xac9   :  { %v4071_v5 = vsel %vm8701_vm5, %v4067_v41, %v4069_v47  ;;  %4077 = vst.msk [vmem:[#allocation2 + $0x38] sm:$0xff] %vm107_vm0, %v4069_v47  ;;  %vm8708_vm5 = vmmov %vm8704_vm8 }
 0xaca   :  { %4463 = vmatprep.subr.mxu0 %v4071_v5 }
 0xacb   :  { %4464 = vmatpush1.msra.mxu0 %v4070_v62 }
 0xacc   :  { %v4245_v10 = vpop.permute.xlu1 %4244  ;;  %v4325_v13 = vpop.permute.xlu0 %4324  ;;  %4465 = vmatprep.subr.mxu0 %v7901_v24 }
 0xacd   :  { %4255 = vst.msk [vmem:[#allocation2 + $0xd8] sm:$0xff] %vm127_vm12, %v4245_v10  ;;  %4466 = vmatpush1.msra.mxu0 %v7886_v63 }
 0xace   :  { %5758 = vmatmul.mubr.msk.f32.vlgmr.msra.gmra.mxu0 %vm527_vm11, %v8029_v58  ;;  %6161 = vmatprep.subr.mxu0 %v7393_v14 }
 0xacf   :  { %6179 = vmatprep.mubr.msk.f32.mxu0 %vm8592_vm6, %v7393_v14 }
 0xad0   :  { %v4165_v19 = vpop.permute.xlu1 %4164  ;;  %v4285_v20 = vpop.permute.xlu0 %4284 }
 0xad1   :  { %4175 = vst.msk [vmem:[#allocation2 + $0x88] sm:$0xff] %vm127_vm12, %v4165_v19 }
 0xad4   :  { %v8040_v22 = vpop.permute.xlu1 %4084  ;;  %v4205_v23 = vpop.permute.xlu0 %4204  ;;  %v4409_v3 = vld [vmem:[#allocation2 + $0xd8] sm:$0xff] }
 0xad5   :  { %4095 = vst.msk [vmem:[#allocation2 + $0x38] sm:$0xff] %vm127_vm12, %v8040_v22  ;;  %4215 = vst.msk [vmem:[#allocation2 + $0xb0] sm:$0xff] %vm127_vm12, %v4205_v23 }
 0xad8   :  { %v4367_v63 = vpop.permute.xlu1 %4366  ;;  %v4125_v24 = vpop.permute.xlu0 %4124  ;;  %v4399_v53 = vld [vmem:[#allocation2 + $0x88] sm:$0xff] }
 0xad9   :  { %v4370_v27 = vsel %vm8703_vm2, %v4365_v26, %v4367_v63  ;;  %4135 = vst.msk [vmem:[#allocation2 + $0x60] sm:$0xff] %vm127_vm12, %v4125_v24  ;;  %vm8710_vm2 = vmmov %vm8707_vm4 }
 0xada   :  { %4375 = vst.msk [vmem:[#allocation2 + $0x150] sm:$0xff] %vm127_vm12, %v4370_v27 }
 0xadc   :  { %v4327_v30 = vpop.permute.xlu1 %4326  ;;  %v4369_v31 = vpop.permute.xlu0 %4368  ;;  %v4404_v52 = vld [vmem:[#allocation2 + $0xb0] sm:$0xff]  ;;  %v4389_v4 = vld [vmem:[#allocation2 + $0x38] sm:$0xff] }
 0xadd   :  { %v4330_v33 = vsel %vm8704_vm8, %v4325_v13, %v4327_v30  ;;  %v4371_v39 = vsel %vm8705_vm10, %v4367_v63, %v4369_v31  ;;  %4377 = vst.msk [vmem:[#allocation2 + $0x160] sm:$0xff] %vm8706_vm3, %v4369_v31  ;;  %vm8711_vm8 = vmmov %vm8706_vm3  ;;  %vm8712_vm10 = vcmask 97280   ;;  %vm8713_vm3 = vcmask 105472  }
 0xade   :  { %4335 = vst.msk [vmem:[#allocation2 + $0x128] sm:$0xff] %vm127_vm12, %v4330_v33  ;;  %4520 = vmatprep.subr.mxu1 %v4371_v39 }
 0xae0   :  { %v4287_v42 = vpop.permute.xlu1 %4286  ;;  %v4329_v49 = vpop.permute.xlu0 %4328  ;;  %v4394_v2 = vld [vmem:[#allocation2 + $0x60] sm:$0xff] }
 0xae1   :  { %v4290_v50 = vsel %vm8707_vm4, %v4285_v20, %v4287_v42  ;;  %v4331_v45 = vsel %vm8708_vm5, %v4327_v30, %v4329_v49  ;;  %4337 = vst.msk [vmem:[#allocation2 + $0x138] sm:$0xff] %vm8709_vm7, %v4329_v49  ;;  %v4424_v54 = vld [vmem:[#allocation2 + $0x150] sm:$0xff]  ;;  %vm8714_vm4 = vcmask 113664   ;;  %vm8715_vm5 = vcmask 244736   ;;  %vm8716_vm7 = vmmov %vm8712_vm10 }
 0xae2   :  { %4295 = vst.msk [vmem:[#allocation2 + $0x100] sm:$0xff] %vm127_vm12, %v4290_v50  ;;  %4521 = vmatpush1.msra.mxu1 %v4424_v54 }
 0xae3   :  { %4522 = vmatprep.subr.mxu1 %v4331_v45 }
 0xae4   :  { %v4207_v60 = vpop.permute.xlu1 %4206  ;;  %v4289_v48 = vpop.permute.xlu0 %4288  ;;  %v4426_v61 = vld [vmem:[#allocation2 + $0x160] sm:$0xff] }
 0xae5   :  { %v4291_v0 = vsel %vm8710_vm2, %v4287_v42, %v4289_v48  ;;  %4297 = vst.msk [vmem:[#allocation2 + $0x110] sm:$0xff] %vm8711_vm8, %v4289_v48  ;;  %6162 = vmatpush3.msra.mxu0 %v4426_v61  ;;  %v4419_v44 = vld [vmem:[#allocation2 + $0x128] sm:$0xff]  ;;  %v4210_v8 = vsel %vm8713_vm3, %v4205_v23, %v4207_v60  ;;  %vm8717_vm2 = vcmask 252928   ;;  %vm8719_vm3 = vmmov %vm8711_vm8 }
 0xae6   :  { %6163 = vmatprep.subr.mxu0 %v7393_v14  ;;  %4523 = vmatpush1.msra.mxu1 %v4419_v44 }
 0xae7   :  { %4524 = vmatprep.subr.mxu1 %v4291_v0 }
 0xae8   :  { %v4127_v7 = vpop.permute.xlu1 %4126  ;;  %v4247_v12 = vpop.permute.xlu0 %4246  ;;  %v4421_v1 = vld [vmem:[#allocation2 + $0x138] sm:$0xff] }
 0xae9   :  { %v4250_v6 = vsel %vm8712_vm10, %v4245_v10, %v4247_v12  ;;  %6164 = vmatpush3.msra.mxu0 %v4421_v1  ;;  %v4414_v9 = vld [vmem:[#allocation2 + $0x100] sm:$0xff]  ;;  %v4130_v55 = vsel %vm8715_vm5, %v4125_v24, %v4127_v7  ;;  %vm8718_vm10 = vmmov %vm8714_vm4  ;;  %vm8721_vm5 = vcmask 105472  }
 0xaea   :  { %6165 = vmatprep.subr.mxu0 %v7393_v14  ;;  %4525 = vmatpush1.msra.mxu1 %v4414_v9 }
 0xaeb   :  { %4526 = vmatprep.subr.mxu1 %v4250_v6 }
 0xaec   :  { %v4045_v18 = vpop.permute.xlu1 %4044  ;;  %v4167_v38 = vpop.permute.xlu0 %4166  ;;  %v4416_v34 = vld [vmem:[#allocation2 + $0x110] sm:$0xff]  ;;  %4527 = vmatpush1.msra.mxu1 %v4409_v3 }
 0xaed   :  { %4055 = vst.msk [vmem:[#allocation2 + $0x10] sm:$0xff] %vm127_vm12, %v4045_v18  ;;  %v4170_v51 = vsel %vm8714_vm4, %v4165_v19, %v4167_v38  ;;  %6166 = vmatpush3.msra.mxu0 %v4416_v34  ;;  %4528 = vmatprep.subr.mxu1 %v4210_v8  ;;  %vm8720_vm4 = vmmov %vm8717_vm2 }
 0xaee   :  { %4529 = vmatpush1.msra.mxu1 %v4404_v52  ;;  %6167 = vmatprep.subr.mxu0 %v7393_v14 }
 0xaef   :  { %4530 = vmatprep.subr.mxu1 %v4170_v51 }
 0xaf0   :  { %v4249_v32 = vpop.permute.xlu1 %4248  ;;  %v4087_v56 = vpop.permute.xlu0 %4086  ;;  %4531 = vmatpush1.msra.mxu1 %v4399_v53 }
 0xaf1   :  { %v4251_v57 = vsel %vm8716_vm7, %v4247_v12, %v4249_v32  ;;  %v4090_v59 = vsel %vm8717_vm2, %v8040_v22, %v4087_v56  ;;  %4532 = vmatprep.subr.mxu1 %v4130_v55  ;;  %vm8722_vm7 = vmmov %vm8719_vm3 }
 0xaf2   :  { %4257 = vst.msk [vmem:[#allocation2 + $0xe8] sm:$0xff] %vm8711_vm8, %v4251_v57  ;;  %4533 = vmatpush1.msra.mxu1 %v4394_v2  ;;  %vm8723_vm2 = vmmov %vm8719_vm3  ;;  %vm8724_vm8 = vcmask 244736  }
 0xaf3   :  { %4534 = vmatprep.subr.mxu1 %v4090_v59 }
 0xaf4   :  { %v4169_v25 = vpop.permute.xlu1 %4168  ;;  %v4047_v21 = vpop.permute.xlu0 %4046  ;;  %4535 = vmatpush1.msra.mxu1 %v4389_v4  ;;  %v4384_v37 = vld [vmem:[#allocation2 + $0x10] sm:$0xff] }
 0xaf5   :  { %v4171_v35 = vsel %vm8718_vm10, %v4167_v38, %v4169_v25  ;;  %v4050_v36 = vsel %vm107_vm0, %v4045_v18, %v4047_v21  ;;  %vm8725_vm10 = vmmov %vm8723_vm2 }
 0xaf6   :  { %4177 = vst.msk [vmem:[#allocation2 + $0x98] sm:$0xff] %vm8719_vm3, %v4171_v35  ;;  %4536 = vmatprep.subr.mxu1 %v4050_v36  ;;  %vm8726_vm3 = vmmov %vm8723_vm2 }
 0xaf7   :  { %4537 = vmatpush1.msra.mxu1 %v4384_v37 }
 0xaf8   :  { %v4089_v40 = vpop.permute.xlu1 %4088  ;;  %v4209_v41 = vpop.permute.xlu0 %4208  ;;  %5759 = vmatmul.mubr.msk.f32.vlgmr.msra.gmra.mxu1 %vm527_vm11, %v8029_v58 }
 0xaf9   :  { %v4091_v43 = vsel %vm8720_vm4, %v4087_v56, %v4089_v40  ;;  %v4211_v46 = vsel %vm8721_vm5, %v4207_v60, %v4209_v41  ;;  %v4411_v47 = vld [vmem:[#allocation2 + $0xe8] sm:$0xff]  ;;  %5241 = vmatprep.mubr.f32.mxu1 %v7393_v14  ;;  %vm8727_vm4 = vcmask 891904  }
 0xafa   :  { %4097 = vst.msk [vmem:[#allocation2 + $0x48] sm:$0xff] %vm8722_vm7, %v4091_v43  ;;  %6168 = vmatpush3.msra.mxu0 %v4411_v47  ;;  %vm8728_vm5 = vmmov %vm8727_vm4 }
 0xafb   :  { %4217 = vst.msk [vmem:[#allocation2 + $0xc0] sm:$0xff] %vm8723_vm2, %v4211_v46  ;;  %6169 = vmatprep.subr.mxu0 %v7393_v14  ;;  %vm8729_vm7 = vmmov %vm8727_vm4 }
 0xafc   :  { %v4129_v26 = vpop.permute.xlu0 %4128  ;;  %vm8730_vm2 = vmmov %vm8727_vm4 }
 0xafd   :  { %v4131_v5 = vsel %vm8724_vm8, %v4127_v7, %v4129_v26  ;;  %v4401_v19 = vld [vmem:[#allocation2 + $0x98] sm:$0xff]  ;;  %vm8731_vm8 = vcmask 105472  }
 0xafe   :  { %4137 = vst.msk [vmem:[#allocation2 + $0x70] sm:$0xff] %vm8725_vm10, %v4131_v5  ;;  %vm8732_vm10 = vmmov %vm8731_vm8 }
 0xb00   :  { %v4049_v62 = vpop.permute.xlu0 %4048 }
 0xb01   :  { %v4051_v10 = vsel %vm107_vm0, %v4047_v21, %v4049_v62  ;;  %v4391_v22 = vld [vmem:[#allocation2 + $0x48] sm:$0xff] }
 0xb02   :  { %v4406_v13 = vld [vmem:[#allocation2 + $0xc0] sm:$0xff]  ;;  %4057 = vst.msk [vmem:[#allocation2 + $0x20] sm:$0xff] %vm8726_vm3, %v4051_v10  ;;  %vm8733_vm3 = vmmov %vm8731_vm8 }
 0xb03   :  { %6170 = vmatpush3.msra.mxu0 %v4406_v13 }
 0xb04   :  { %6171 = vmatprep.subr.mxu0 %v7393_v14  ;;  %v4654_v24 = vpop.permute.xlu0 %4653 }
 0xb05   :  { %6172 = vmatpush3.msra.mxu0 %v4401_v19  ;;  %v4396_v20 = vld [vmem:[#allocation2 + $0x70] sm:$0xff]  ;;  %v4430_v63 = vpop.permute.xlu1 %4429 }
 0xb06   :  { %6173 = vmatprep.subr.mxu0 %v7393_v14 }
 0xb07   :  { %6174 = vmatpush3.msra.mxu0 %v4396_v20 }
 0xb08   :  { %6175 = vmatprep.subr.mxu0 %v7393_v14  ;;  %v4658_v30 = vpop.permute.xlu0 %4657 }
 0xb09   :  { %6176 = vmatpush3.msra.mxu0 %v4391_v22  ;;  %v4386_v23 = vld [vmem:[#allocation2 + $0x20] sm:$0xff]  ;;  %v4656_v27 = vpop.permute.xlu1 %4655 }
 0xb0a   :  { %6177 = vmatprep.subr.mxu0 %v7393_v14  ;;  %v4659_v42 = vsel %vm8727_vm4, %v4654_v24, %v4656_v27  ;;  %v4660_v54 = vsel %vm8728_vm5, %v4656_v27, %v4658_v30  ;;  %vm8734_vm4 = vmmov %vm8733_vm3 }
 0xb0b   :  { %6178 = vmatpush3.msra.mxu0 %v4386_v23  ;;  %vm8739_vm5 = vmmov %vm8730_vm2 }
 0xb0c   :  { %6180 = vmatmul.mubr.msk.f32.vlgmr.msra.gmra.mxu0 %vm527_vm11, %v8029_v58  ;;  %v4682_v60 = vpop.permute.xlu0 %4681 }
 0xb0d   :  { %5312 = vmatprep.mubr.f32.mxu0 %v7393_v14  ;;  %v4680_v33 = vpop.permute.xlu1 %4679 }
 0xb0e   :  { %v4685_v58 = vsel %vm8729_vm7, %v4680_v33, %v4682_v60  ;;  %vm8740_vm7 = vcmask 1039360  }
 0xb10   :  { %v4717_v3 = vpop.permute.xlu0 %4716 }
 0xb11   :  { %v4684_v0 = vpop.permute.xlu1 %4683 }
 0xb12   :  { %v4686_v12 = vsel %vm8730_vm2, %v4682_v60, %v4684_v0  ;;  %vm8741_vm2 = vcmask 1031168  }
 0xb14   :  { %v4721_v51 = vpop.permute.xlu0 %4720 }
 0xb15   :  { %v4719_v18 = vpop.permute.xlu1 %4718 }
 0xb16   :  { %v4722_v55 = vsel %vm8731_vm8, %v4717_v3, %v4719_v18 }
 0xb18   :  { %v4746_v25 = vpop.permute.xlu0 %4745 }
 0xb8e   :  { %v4501_v31 = vpop.f32.mrf.mxu0 }
 0xb8f   :  { %v4502_v39 = vadd.f32 %v4501_v31, %v4430_v63 }
 0xb90   :  { %v4503_v49 = vpop.f32.mrf.mxu0 }
 0xb91   :  { %v4664_v50 = vadd.f32 %v4659_v42, %v4502_v39  ;;  %v4504_v45 = vadd.f32 %v4503_v49, %v4430_v63  ;;  %v5765_v42 = vld [vmem:[%s8526_s7 + $0x30] sm:$0xff] }
 0xb93   :  { %v4667_v48 = vmax.f32 %v4664_v50, 0.0  ;;  %v4665_v61 = vadd.f32 %v4660_v54, %v4504_v45 }
 0xb95   :  { %v4670_v44 = vmul.f32 %v4667_v48, %v6483_v16  ;;  %v4668_v7 = vmax.f32 %v4665_v61, 0.0 }
 0xb97   :  { %v4690_v1 = vadd.f32 %v4685_v58, %v4670_v44  ;;  %v4671_v6 = vmul.f32 %v4668_v7, %v6481_v15  ;;  %v4744_v15 = vpop.permute.xlu1 %4743 }
 0xb98   :  { %v4749_v37 = vsel %vm8732_vm10, %v4744_v15, %v4746_v25 }
 0xb99   :  { %v4691_v9 = vadd.f32 %v4686_v12, %v4671_v6  ;;  %4696 = vrot.lane.b32.xlu0 %v4690_v1, %s6317_s4 }
 0xb9b   :  { %4698 = vrot.lane.b32.xlu1 %v4691_v9, %s6317_s4  ;;  %v4748_v47 = vpop.permute.xlu1 %4747 }
 0xb9c   :  { %v4750_v5 = vsel %vm8734_vm4, %v4746_v25, %v4748_v47 }
 0xbb8   :  { %v4572_v8 = vpop.f32.mrf.mxu1 }
 0xbb9   :  { %v4573_v38 = vadd.f32 %v4572_v8, %v4430_v63 }
 0xbba   :  { %v4574_v34 = vpop.f32.mrf.mxu1 }
 0xbbb   :  { %v4666_v52 = vadd.f32 %v4658_v30, %v4573_v38  ;;  %v4727_v53 = vadd.f32 %v4717_v3, %v4573_v38  ;;  %v4575_v16 = vadd.f32 %v4574_v34, %v4430_v63 }
 0xbbd   :  { %v4669_v32 = vmax.f32 %v4666_v52, 0.0  ;;  %v4730_v56 = vmax.f32 %v4727_v53, 0.0  ;;  %v4728_v57 = vadd.f32 %v4722_v55, %v4575_v16 }
 0xbbf   :  { %v4672_v59 = vmul.f32 %v4669_v32, %v6489_v17  ;;  %v4731_v2 = vmax.f32 %v4728_v57, 0.0  ;;  %v4733_v4 = vmul.f32 %v4730_v56, %v6585_v11  ;;  %v4723_v17 = vsel %vm8733_vm3, %v4719_v18, %v4721_v51 }
 0xbc1   :  { %v4692_v21 = vadd.f32 %v4684_v0, %v4672_v59  ;;  %v4754_v35 = vadd.f32 %v4744_v15, %v4733_v4  ;;  %v4734_v36 = vmul.f32 %v4731_v2, %v6601_v29 }
 0xbc3   :  { %4700 = vrot.lane.b32.xlu0 %v4692_v21, %s6317_s4  ;;  %4760 = vrot.lane.b32.xlu1 %v4754_v35, %s6318_s26  ;;  %v4755_v40 = vadd.f32 %v4749_v37, %v4734_v36 }
 0xbc7   :  { %4762 = vrot.lane.b32.xlu1 %v4755_v40, %s6318_s26 }
 0xbcc   :  { %v4643_v41 = vpop.f32.mrf.mxu0 }
 0xbcd   :  { %v4644_v43 = vadd.f32 %v4643_v41, %v4430_v63 }
 0xbce   :  { %v6181_v46 = vpop.f32.mrf.mxu0 }
 0xbcf   :  { %v4729_v11 = vadd.f32 %v4723_v17, %v4644_v43  ;;  %v8222_v17 = vld [vmem:[%s8527_s6 + $0x30] sm:$0xff] }
 0xbd1   :  { %v4732_v26 = vmax.f32 %v4729_v11, 0.0 }
 0xbd3   :  { %v4735_v29 = vmul.f32 %v4732_v26, %v6597_v28 }
 0xbd5   :  { %v4756_v62 = vadd.f32 %v4750_v5, %v4735_v29 }
 0xbd7   :  { %4764 = vrot.lane.b32.xlu0 %v4756_v62, %s6318_s26 }
 0xc0b   :  { %v4697_v10 = vpop.permute.xlu0 %4696 }
 0xc0c   :  { %4707 = vst.msk [vmem:[#allocation3] sm:$0xff] %vm784_vm13, %v4697_v10 }
 0xc0d   :  { %v4699_v13 = vpop.permute.xlu1 %4698 }
 0xc0e   :  { %v8114_v19 = vsel %vm778_vm14, %v4697_v10, %v4699_v13 }
 0xc13   :  { %v8116_v20 = vld [vmem:[#allocation3] sm:$0xff] }
 0xc14   :  { %5086 = vrot.lane.b32.xlu0 %v8116_v20, %s6298_s15  ;;  %5046 = vrot.lane.b32.xlu1 %v8116_v20, %s6299_s16 }
 0xc18   :  { %5006 = vrot.lane.b32.xlu0 %v8116_v20, %s6300_s17  ;;  %4966 = vrot.lane.b32.xlu1 %v8116_v20, %s6301_s18 }
 0xc1c   :  { %4926 = vrot.lane.b32.xlu0 %v8116_v20, %s6302_s19  ;;  %4886 = vrot.lane.b32.xlu1 %v8116_v20, %s6303_s20 }
 0xc20   :  { %4846 = vrot.lane.b32.xlu0 %v8116_v20, %s6304_s21  ;;  %4806 = vrot.lane.b32.xlu1 %v8116_v20, %s6305_s22 }
 0xc24   :  { %5088 = vrot.lane.b32.xlu0 %v8114_v19, %s6298_s15  ;;  %5048 = vrot.lane.b32.xlu1 %v8114_v19, %s6299_s16 }
 0xc28   :  { %5008 = vrot.lane.b32.xlu0 %v8114_v19, %s6300_s17  ;;  %4968 = vrot.lane.b32.xlu1 %v8114_v19, %s6301_s18 }
 0xc2c   :  { %4928 = vrot.lane.b32.xlu0 %v8114_v19, %s6302_s19  ;;  %4888 = vrot.lane.b32.xlu1 %v8114_v19, %s6303_s20 }
 0xc30   :  { %4848 = vrot.lane.b32.xlu0 %v8114_v19, %s6304_s21  ;;  %4808 = vrot.lane.b32.xlu1 %v8114_v19, %s6305_s22 }
 0xc35   :  { %v4761_v28 = vpop.permute.xlu1 %4760  ;;  %v4701_v22 = vpop.permute.xlu0 %4700 }
 0xc36   :  { %v4703_v23 = vsel %vm778_vm14, %v4699_v13, %v4701_v22  ;;  %vm8737_vm14 = vcmask 752640  }
 0xc37   :  { %4709 = vst.msk [vmem:[#allocation3 + $0x10] sm:$0xff] %vm787_vm15, %v4703_v23  ;;  %vm8743_vm10 = vmmov %vm8737_vm14 }
 0xc39   :  { %v4763_v63 = vpop.permute.xlu1 %4762 }
 0xc3a   :  { %v4766_v24 = vsel %vm814_vm9, %v4761_v28, %v4763_v63 }
 0xc3b   :  { %4771 = vst.msk [vmem:[#allocation3 + $0x18] sm:$0xff] %vm784_vm13, %v4766_v24  ;;  %vm8736_vm13 = vcmask 883712  }
 0xc3c   :  { %vm8744_vm3 = vmmov %vm8736_vm13 }
 0xc3e   :  { %v5082_v27 = vld [vmem:[#allocation3 + $0x10] sm:$0xff] }
 0xc3f   :  { %5090 = vrot.lane.b32.xlu1 %v5082_v27, %s6298_s15  ;;  %5050 = vrot.lane.b32.xlu0 %v5082_v27, %s6299_s16  ;;  %4779 = vst.msk [vmem:[#allocation2 + $0x10] sm:$0xff] %vm107_vm0, %v5082_v27 }
 0xc42   :  { %v5100_v39 = vld [vmem:[#allocation3 + $0x18] sm:$0xff] }
 0xc43   :  { %5010 = vrot.lane.b32.xlu1 %v5082_v27, %s6300_s17  ;;  %4970 = vrot.lane.b32.xlu0 %v5082_v27, %s6301_s18 }
 0xc47   :  { %4930 = vrot.lane.b32.xlu1 %v5082_v27, %s6302_s19  ;;  %4890 = vrot.lane.b32.xlu0 %v5082_v27, %s6303_s20 }
 0xc49   :  { %v4765_v30 = vpop.permute.xlu0 %4764 }
 0xc4a   :  { %v4767_v31 = vsel %vm814_vm9, %v4763_v63, %v4765_v30  ;;  %4773 = vst.msk [vmem:[#allocation3 + $0x28] sm:$0xff] %vm787_vm15, %v4765_v30  ;;  %vm8735_vm9 = vcmask 744448   ;;  %vm8738_vm15 = vcmask 900096  }
 0xc4b   :  { %4850 = vrot.lane.b32.xlu1 %v5082_v27, %s6304_s21  ;;  %4810 = vrot.lane.b32.xlu0 %v5082_v27, %s6305_s22  ;;  %vm8742_vm8 = vmmov %vm8735_vm9 }
 0xc4c   :  { %vm8746_vm4 = vmmov %vm8738_vm15 }
 0xc51   :  { %v5102_v33 = vld [vmem:[#allocation3 + $0x28] sm:$0xff] }
 0xc52   :  { %5110 = vrot.lane.b32.xlu1 %v5102_v33, %s6307_s27  ;;  %5070 = vrot.lane.b32.xlu0 %v5102_v33, %s6308_s30 }
 0xc56   :  { %5030 = vrot.lane.b32.xlu1 %v5102_v33, %s6309_s10  ;;  %4950 = vrot.lane.b32.xlu0 %v5102_v33, %s6311_s0 }
 0xc5a   :  { %4990 = vrot.lane.b32.xlu1 %v5102_v33, %s6310_s11  ;;  %4870 = vrot.lane.b32.xlu0 %v5102_v33, %s8610_s24 }
 0xc5e   :  { %4910 = vrot.lane.b32.xlu1 %v5102_v33, %s6312_s12  ;;  %5108 = vrot.lane.b32.xlu0 %v4767_v31, %s6307_s27 }
 0xc62   :  { %5106 = vrot.lane.b32.xlu0 %v5100_v39, %s6307_s27  ;;  %5068 = vrot.lane.b32.xlu1 %v4767_v31, %s6308_s30 }
 0xc66   :  { %5066 = vrot.lane.b32.xlu1 %v5100_v39, %s6308_s30  ;;  %5028 = vrot.lane.b32.xlu0 %v4767_v31, %s6309_s10 }
 0xc6a   :  { %4986 = vrot.lane.b32.xlu1 %v5100_v39, %s6310_s11  ;;  %5026 = vrot.lane.b32.xlu0 %v5100_v39, %s6309_s10 }
 0xc6e   :  { %4946 = vrot.lane.b32.xlu1 %v5100_v39, %s6311_s0  ;;  %4988 = vrot.lane.b32.xlu0 %v4767_v31, %s6310_s11 }
 0xc72   :  { %4948 = vrot.lane.b32.xlu0 %v4767_v31, %s6311_s0  ;;  %4908 = vrot.lane.b32.xlu1 %v4767_v31, %s6312_s12 }
 0xc76   :  { %4906 = vrot.lane.b32.xlu0 %v5100_v39, %s6312_s12  ;;  %4866 = vrot.lane.b32.xlu1 %v5100_v39, %s8610_s24 }
 0xc7a   :  { %4868 = vrot.lane.b32.xlu0 %v4767_v31, %s8610_s24  ;;  %4828 = vrot.lane.b32.xlu1 %v4767_v31, %s6314_s14 }
 0xc7e   :  { %4826 = vrot.lane.b32.xlu0 %v5100_v39, %s6314_s14  ;;  %4786 = vrot.lane.b32.xlu1 %v5100_v39, %s8611_s5 }
 0xc82   :  { %4830 = vrot.lane.b32.xlu1 %v5102_v33, %s6314_s14  ;;  %4788 = vrot.lane.b32.xlu0 %v4767_v31, %s8611_s5 }
 0xc86   :  { %5171 = vperm.xlu1 %6248, %v5765_v42   ;;  %4790 = vrot.lane.b32.xlu0 %v5102_v33, %s8611_s5  ;;  %v5047_v49 = vpop.permute.xlu1 %5046  ;;  %v5087_v50 = vpop.permute.xlu0 %5086 }
 0xc8a   :  { %v4967_v45 = vpop.permute.xlu1 %4966  ;;  %v5007_v54 = vpop.permute.xlu0 %5006 }
 0xc8e   :  { %v4887_v60 = vpop.permute.xlu1 %4886  ;;  %v4927_v48 = vpop.permute.xlu0 %4926 }
 0xc92   :  { %v4807_v61 = vpop.permute.xlu1 %4806  ;;  %v4847_v58 = vpop.permute.xlu0 %4846 }
 0xc96   :  { %v5049_v0 = vpop.permute.xlu1 %5048  ;;  %v5089_v44 = vpop.permute.xlu0 %5088 }
 0xc97   :  { %v5052_v7 = vsel %vm8735_vm9, %v5047_v49, %v5049_v0  ;;  %v5092_v12 = vsel %vm438_vm1, %v5087_v50, %v5089_v44  ;;  %vm8747_vm9 = vmmov %vm8741_vm2 }
 0xc9a   :  { %v4969_v1 = vpop.permute.xlu1 %4968  ;;  %v5009_v6 = vpop.permute.xlu0 %5008 }
 0xc9b   :  { %v4972_v9 = vsel %vm8736_vm13, %v4967_v45, %v4969_v1  ;;  %v5012_v3 = vsel %vm8737_vm14, %v5007_v54, %v5009_v6  ;;  %vm8748_vm13 = vmmov %vm8740_vm7  ;;  %vm8749_vm14 = vcmask 523264  }
 0xc9e   :  { %v4889_v8 = vpop.permute.xlu1 %4888  ;;  %v4929_v18 = vpop.permute.xlu0 %4928 }
 0xc9f   :  { %v4892_v38 = vsel %vm8738_vm15, %v4887_v60, %v4889_v8  ;;  %v4932_v34 = vsel %vm8739_vm5, %v4927_v48, %v4929_v18  ;;  %vm8750_vm15 = vmmov %vm8749_vm14 }
 0xca2   :  { %v4809_v51 = vpop.permute.xlu1 %4808  ;;  %v4849_v52 = vpop.permute.xlu0 %4848 }
 0xca3   :  { %v4812_v53 = vsel %vm8740_vm7, %v4807_v61, %v4809_v51  ;;  %v4852_v16 = vsel %vm8741_vm2, %v4847_v58, %v4849_v52  ;;  %vm8752_vm7 = vcmask 998400   ;;  %vm8753_vm2 = vcmask 1006592  }
 0xcb1   :  { %v5091_v55 = vpop.permute.xlu1 %5090  ;;  %v5051_v32 = vpop.permute.xlu0 %5050 }
 0xcb2   :  { %v5093_v56 = vsel %vm438_vm1, %v5089_v44, %v5091_v55  ;;  %5099 = vst.msk [vmem:[#allocation2 + $0x150] sm:$0xff] %vm107_vm0, %v5091_v55  ;;  %v5053_v57 = vsel %vm8742_vm8, %v5049_v0, %v5051_v32  ;;  %5059 = vst.msk [vmem:[#allocation2 + $0x128] sm:$0xff] %vm107_vm0, %v5051_v32 }
 0xcb3   :  { %5191 = vmatprep.subr.mxu1 %v5093_v56  ;;  %vm8745_vm1 = vmmov %vm8739_vm5 }
 0xcb4   :  { %5192 = vmatpush1.msra.mxu1 %v5092_v12  ;;  %vm8751_vm5 = vmmov %vm8749_vm14 }
 0xcb5   :  { %v5011_v15 = vpop.permute.xlu1 %5010  ;;  %v4971_v59 = vpop.permute.xlu0 %4970  ;;  %5193 = vmatprep.subr.mxu1 %v5053_v57  ;;  %vm8754_vm8 = vmmov %vm8752_vm7 }
 0xcb6   :  { %v5013_v2 = vsel %vm8743_vm10, %v5009_v6, %v5011_v15  ;;  %5019 = vst.msk [vmem:[#allocation2 + $0x100] sm:$0xff] %vm107_vm0, %v5011_v15  ;;  %v4973_v4 = vsel %vm8744_vm3, %v4969_v1, %v4971_v59  ;;  %4979 = vst.msk [vmem:[#allocation2 + $0xd8] sm:$0xff] %vm107_vm0, %v4971_v59  ;;  %5194 = vmatpush1.msra.mxu1 %v5052_v7  ;;  %vm8756_vm3 = vcmask 1014784  }
 0xcb7   :  { %5195 = vmatprep.subr.mxu1 %v5013_v2  ;;  %vm8755_vm10 = vmmov %vm8753_vm2 }
 0xcb8   :  { %5196 = vmatpush1.msra.mxu1 %v5012_v3 }
 0xcb9   :  { %v4931_v25 = vpop.permute.xlu1 %4930  ;;  %v4891_v21 = vpop.permute.xlu0 %4890  ;;  %5197 = vmatprep.subr.mxu1 %v4973_v4 }
 0xcba   :  { %v4933_v35 = vsel %vm8745_vm1, %v4929_v18, %v4931_v25  ;;  %4939 = vst.msk [vmem:[#allocation2 + $0xb0] sm:$0xff] %vm107_vm0, %v4931_v25  ;;  %v4893_v36 = vsel %vm8746_vm4, %v4889_v8, %v4891_v21  ;;  %4899 = vst.msk [vmem:[#allocation2 + $0x88] sm:$0xff] %vm107_vm0, %v4891_v21  ;;  %5198 = vmatpush1.msra.mxu1 %v4972_v9  ;;  %vm8758_vm4 = vcmask 97280  }
 0xcbb   :  { %5199 = vmatprep.subr.mxu1 %v4933_v35  ;;  %vm8757_vm1 = vmmov %vm8756_vm3 }
 0xcbc   :  { %5200 = vmatpush1.msra.mxu1 %v4932_v34 }
 0xcbd   :  { %v4851_v37 = vpop.permute.xlu1 %4850  ;;  %v4811_v40 = vpop.permute.xlu0 %4810  ;;  %5201 = vmatprep.subr.mxu1 %v4893_v36 }
 0xcbe   :  { %v4853_v41 = vsel %vm8747_vm9, %v4849_v52, %v4851_v37  ;;  %4859 = vst.msk [vmem:[#allocation2 + $0x60] sm:$0xff] %vm107_vm0, %v4851_v37  ;;  %v4813_v43 = vsel %vm8748_vm13, %v4809_v51, %v4811_v40  ;;  %4819 = vst.msk [vmem:[#allocation2 + $0x38] sm:$0xff] %vm107_vm0, %v4811_v40  ;;  %5202 = vmatpush1.msra.mxu1 %v4892_v38 }
 0xcbf   :  { %5203 = vmatprep.subr.mxu1 %v4853_v41  ;;  %vm8759_vm9 = vmmov %vm8758_vm4 }
 0xcc0   :  { %5204 = vmatpush1.msra.mxu1 %v4852_v16  ;;  %vm8760_vm13 = vmmov %vm8751_vm5 }
 0xcc1   :  { %5205 = vmatprep.subr.mxu1 %v4813_v43  ;;  %v6262_v43 = vld [vmem:[%s8528_s3 + $0xf8] sm:$0xff] }
 0xcc2   :  { %5206 = vmatpush1.msra.mxu1 %v4812_v53 }
 0xcc3   :  { %5207 = vmatprep.subr.mxu1 %v8114_v19 }
 0xcc4   :  { %v5111_v46 = vpop.permute.xlu1 %5110  ;;  %v5071_v11 = vpop.permute.xlu0 %5070  ;;  %5208 = vmatpush1.msra.mxu1 %v8116_v20 }
 0xcc5   :  { %5119 = vst.msk [vmem:[#allocation2 + $0x160] sm:$0xff] %vm8749_vm14, %v5111_v46  ;;  %5766 = vmatmul.mubr.msk.f32.vlgmr.msra.gmra.mxu1 %vm527_vm11, %v8222_v17  ;;  %6182 = vmatprep.subr.mxu1 %v7393_v14  ;;  %vm8761_vm14 = vcmask 113664  }
 0xcc6   :  { %5079 = vst.msk [vmem:[#allocation2 + $0x138] sm:$0xff] %vm8750_vm15, %v5071_v11  ;;  %6200 = vmatprep.mubr.msk.f32.mxu1 %vm8592_vm6, %v7393_v14  ;;  %vm8762_vm15 = vcmask 105472  }
 0xcc8   :  { %v5031_v47 = vpop.permute.xlu1 %5030  ;;  %v4951_v26 = vpop.permute.xlu0 %4950 }
 0xcc9   :  { %5039 = vst.msk [vmem:[#allocation2 + $0x110] sm:$0xff] %vm8751_vm5, %v5031_v47  ;;  %vm8763_vm5 = vmmov %vm8762_vm15 }
 0xccc   :  { %v4991_v5 = vpop.permute.xlu1 %4990  ;;  %v8234_v29 = vpop.permute.xlu0 %4870  ;;  %v5168_v62 = vld [vmem:[#allocation2 + $0x160] sm:$0xff] }
 0xccd   :  { %6183 = vmatpush3.msra.mxu1 %v5168_v62  ;;  %v5163_v10 = vld [vmem:[#allocation2 + $0x138] sm:$0xff]  ;;  %v8310_v62 = vld [vmem:[%s8528_s3 + $0x68] sm:$0xff] }
 0xcce   :  { %6184 = vmatprep.subr.mxu1 %v7393_v14 }
 0xccf   :  { %6185 = vmatpush3.msra.mxu1 %v5163_v10  ;;  %v8316_v10 = vld [vmem:[%s8528_s3 + $0xe0] sm:$0xff] }
 0xcd0   :  { %v4911_v13 = vpop.permute.xlu1 %4910  ;;  %v5109_v19 = vpop.permute.xlu0 %5108  ;;  %6186 = vmatprep.subr.mxu1 %v7393_v14  ;;  %v5158_v20 = vld [vmem:[#allocation2 + $0x110] sm:$0xff] }
 0xcd1   :  { %v5113_v28 = vsel %vm8752_vm7, %v5109_v19, %v5111_v46  ;;  %6187 = vmatpush3.msra.mxu1 %v5158_v20  ;;  %vm8764_vm7 = vmmov %vm8760_vm13  ;;  %v8343_v20 = vld [vmem:[%s8528_s3 + $0x118] sm:$0xff] }
 0xcd2   :  { %5262 = vmatprep.subr.mxu0 %v5113_v28  ;;  %6188 = vmatprep.subr.mxu1 %v7393_v14  ;;  %v8349_v28 = vld [vmem:[%s8528_s3 + $0xd0] sm:$0xff] }
 0xcd4   :  { %v5069_v22 = vpop.permute.xlu1 %5068  ;;  %v5107_v23 = vpop.permute.xlu0 %5106 }
 0xcd5   :  { %v5073_v63 = vsel %vm8753_vm2, %v5069_v22, %v5071_v11  ;;  %v5112_v24 = vsel %vm8754_vm8, %v5107_v23, %v5109_v19  ;;  %vm8765_vm2 = vmmov %vm8764_vm7  ;;  %v8285_v11 = vld [vmem:[%s8528_s3 + $0x78] sm:$0xff]  ;;  %v6275_v23 = vld [vmem:[%s8528_s3 + $0x110] sm:$0xff] }
 0xcd6   :  { %5117 = vst.msk [vmem:[#allocation2 + $0x150] sm:$0xff] %vm127_vm12, %v5112_v24  ;;  %vm8766_vm8 = vmmov %vm8761_vm14  ;;  %v8330_v19 = vld [vmem:[%s8528_s3 + $0xd8] sm:$0xff]  ;;  %v8372_v24 = vld [vmem:[%s8528_s3 + $0x48] sm:$0xff] }
 0xcd8   :  { %v5067_v27 = vpop.permute.xlu1 %5066  ;;  %v5029_v30 = vpop.permute.xlu0 %5028 }
 0xcd9   :  { %v5072_v31 = vsel %vm8755_vm10, %v5067_v27, %v5069_v22  ;;  %v5033_v33 = vsel %vm8756_vm3, %v5029_v30, %v5031_v47  ;;  %vm8767_vm10 = vcmask 244736   ;;  %v8291_v47 = vld [vmem:[%s8528_s3 + $0xf0] sm:$0xff]  ;;  %v6278_v27 = vld [vmem:[%s8528_s3 + $0x108] sm:$0xff] }
 0xcda   :  { %5077 = vst.msk [vmem:[#allocation2 + $0x128] sm:$0xff] %vm127_vm12, %v5072_v31  ;;  %vm8768_vm3 = vmmov %vm8767_vm10  ;;  %v8356_v22 = vld [vmem:[%s8528_s3 + $0x50] sm:$0xff]  ;;  %v8388_v31 = vld [vmem:[%s8528_s3 + $0x40] sm:$0xff] }
 0xcdc   :  { %v4987_v39 = vpop.permute.xlu1 %4986  ;;  %v5027_v42 = vpop.permute.xlu0 %5026 }
 0xcdd   :  { %4997 = vst.msk [vmem:[#allocation2 + $0xd8] sm:$0xff] %vm127_vm12, %v4987_v39  ;;  %v5032_v49 = vsel %vm8757_vm1, %v5027_v42, %v5029_v30  ;;  %v5166_v50 = vld [vmem:[#allocation2 + $0x150] sm:$0xff]  ;;  %vm8769_vm1 = vmmov %vm8765_vm2  ;;  %v8381_v30 = vld [vmem:[%s8528_s3 + $0xc0] sm:$0xff] }
 0xcde   :  { %5037 = vst.msk [vmem:[#allocation2 + $0x100] sm:$0xff] %vm127_vm12, %v5032_v49  ;;  %5263 = vmatpush1.msra.mxu0 %v5166_v50  ;;  %v8405_v42 = vld [vmem:[%s8528_s3 + $0x38] sm:$0xff]  ;;  %v8411_v49 = vld [vmem:[%s8528_s3 + $0xb0] sm:$0xff] }
 0xcdf   :  { %5264 = vmatprep.subr.mxu0 %v5073_v63  ;;  %v8365_v63 = vld [vmem:[%s8528_s3 + $0xc8] sm:$0xff]  ;;  %v8417_v50 = vld [vmem:[%s8528_s3 + $0x30] sm:$0xff] }
 0xce0   :  { %v4947_v45 = vpop.permute.xlu1 %4946  ;;  %v4989_v54 = vpop.permute.xlu0 %4988 }
 0xce1   :  { %4957 = vst.msk [vmem:[#allocation2 + $0xb0] sm:$0xff] %vm127_vm12, %v4947_v45  ;;  %v4992_v60 = vsel %vm8758_vm4, %v4987_v39, %v4989_v54  ;;  %v4993_v48 = vsel %vm8759_vm9, %v4989_v54, %v4991_v5  ;;  %v5161_v61 = vld [vmem:[#allocation2 + $0x128] sm:$0xff]  ;;  %vm8770_vm4 = vcmask 252928   ;;  %v8397_v39 = vld [vmem:[%s8528_s3 + $0xb8] sm:$0xff] }
 0xce2   :  { %4999 = vst.msk [vmem:[#allocation2 + $0xe8] sm:$0xff] %vm8760_vm13, %v4993_v48  ;;  %5265 = vmatpush1.msra.mxu0 %v5161_v61  ;;  %vm8771_vm9 = vmmov %vm8770_vm4  ;;  %v8304_v5 = vld [vmem:[%s8528_s3 + $0xe8] sm:$0xff]  ;;  %v8441_v48 = vld [vmem:[%s8528_s3 + $0x20] sm:$0xff] }
 0xce3   :  { %5266 = vmatprep.subr.mxu0 %v5033_v33  ;;  %vm8772_vm13 = vmmov %vm8769_vm1  ;;  %v6281_v33 = vld [vmem:[%s8528_s3 + $0x100] sm:$0xff]  ;;  %v8429_v54 = vld [vmem:[%s8528_s3 + $0x28] sm:$0xff] }
 0xce4   :  { %v4909_v58 = vpop.permute.xlu1 %4908  ;;  %v4949_v0 = vpop.permute.xlu0 %4948  ;;  %v5151_v6 = vld [vmem:[#allocation2 + $0xd8] sm:$0xff] }
 0xce5   :  { %v4913_v44 = vsel %vm8761_vm14, %v4909_v58, %v4911_v13  ;;  %v4952_v7 = vsel %vm8762_vm15, %v4947_v45, %v4949_v0  ;;  %v4953_v12 = vsel %vm8763_vm5, %v4949_v0, %v4951_v26  ;;  %v5156_v1 = vld [vmem:[#allocation2 + $0x100] sm:$0xff]  ;;  %v8298_v26 = vld [vmem:[%s8528_s3 + $0x70] sm:$0xff]  ;;  %v8423_v45 = vld [vmem:[%s8528_s3 + $0xa8] sm:$0xff] }
 0xce6   :  { %4919 = vst.msk [vmem:[#allocation2 + $0x98] sm:$0xff] %vm8764_vm7, %v4913_v44  ;;  %5267 = vmatpush1.msra.mxu0 %v5156_v1  ;;  %v8324_v13 = vld [vmem:[%s8528_s3 + $0x60] sm:$0xff]  ;;  %v8447_v61 = vld [vmem:[%s8528_s3 + $0x98] sm:$0xff]  ;;  %v8459_v0 = vld [vmem:[%s8528_s3 + $0x90] sm:$0xff] }
 0xce7   :  { %4959 = vst.msk [vmem:[#allocation2 + $0xc0] sm:$0xff] %vm8765_vm2, %v4953_v12  ;;  %5268 = vmatprep.subr.mxu0 %v4992_v60  ;;  %v8435_v60 = vld [vmem:[%s8528_s3 + $0xa0] sm:$0xff]  ;;  %v6293_v44 = vld [vmem:[%s8528_s3 + $0x10] sm:$0xff]  ;;  %v6295_v12 = vld [vmem:[%s8528_s3 + $0x8] sm:$0xff] }
 0xce8   :  { %v4867_v9 = vpop.permute.xlu1 %4866  ;;  %v4907_v3 = vpop.permute.xlu0 %4906  ;;  %5269 = vmatpush1.msra.mxu0 %v5151_v6  ;;  %v5146_v8 = vld [vmem:[#allocation2 + $0xb0] sm:$0xff]  ;;  %v6296_v1 = vld [vmem:[%s8528_s3 + $0x80] sm:$0xff] }
 0xce9   :  { %4877 = vst.msk [vmem:[#allocation2 + $0x60] sm:$0xff] %vm127_vm12, %v4867_v9  ;;  %v4912_v18 = vsel %vm8766_vm8, %v4907_v3, %v4909_v58  ;;  %4917 = vst.msk [vmem:[#allocation2 + $0x88] sm:$0xff] %vm127_vm12, %v4907_v3  ;;  %v5153_v38 = vld [vmem:[#allocation2 + $0xe8] sm:$0xff]  ;;  %5270 = vmatprep.subr.mxu0 %v4952_v7  ;;  %v8453_v58 = vld [vmem:[%s8528_s3 + $0x18] sm:$0xff] }
 0xcea   :  { %6189 = vmatpush3.msra.mxu1 %v5153_v38  ;;  %5271 = vmatpush1.msra.mxu0 %v5146_v8  ;;  %v6294_v7 = vld [vmem:[%s8528_s3 + $0x88] sm:$0xff]  ;;  %v6297_v6 = vld [vmem:[%s8528_s3] sm:$0xff] }
 0xceb   :  { %6190 = vmatprep.subr.mxu1 %v7393_v14  ;;  %5272 = vmatprep.subr.mxu0 %v4912_v18 }
 0xcec   :  { %v4829_v34 = vpop.permute.xlu1 %4828  ;;  %v4869_v51 = vpop.permute.xlu0 %4868 }
 0xced   :  { %v4872_v52 = vsel %vm8767_vm10, %v4867_v9, %v4869_v51  ;;  %v4873_v53 = vsel %vm8768_vm3, %v4869_v51, %v8234_v29  ;;  %v5143_v55 = vld [vmem:[#allocation2 + $0x98] sm:$0xff] }
 0xcee   :  { %v5148_v16 = vld [vmem:[#allocation2 + $0xc0] sm:$0xff]  ;;  %4879 = vst.msk [vmem:[#allocation2 + $0x70] sm:$0xff] %vm8769_vm1, %v4873_v53 }
 0xcef   :  { %6191 = vmatpush3.msra.mxu1 %v5148_v16 }
 0xcf0   :  { %6192 = vmatprep.subr.mxu1 %v7393_v14  ;;  %v4787_v32 = vpop.permute.xlu1 %4786  ;;  %v4827_v56 = vpop.permute.xlu0 %4826  ;;  %v5141_v57 = vld [vmem:[#allocation2 + $0x88] sm:$0xff]  ;;  %v5136_v59 = vld [vmem:[#allocation2 + $0x60] sm:$0xff] }
 0xcf1   :  { %6193 = vmatpush3.msra.mxu1 %v5143_v55  ;;  %4797 = vst.msk [vmem:[#allocation2 + $0x10] sm:$0xff] %vm127_vm12, %v4787_v32  ;;  %v4832_v15 = vsel %vm8770_vm4, %v4827_v56, %v4829_v34  ;;  %4837 = vst.msk [vmem:[#allocation2 + $0x38] sm:$0xff] %vm127_vm12, %v4827_v56  ;;  %5273 = vmatpush1.msra.mxu0 %v5141_v57 }
 0xcf2   :  { %6194 = vmatprep.subr.mxu1 %v7393_v14  ;;  %5274 = vmatprep.subr.mxu0 %v4872_v52  ;;  %vm8773_vm12 = vmmov %vm8769_vm1 }
 0xcf3   :  { %5275 = vmatpush1.msra.mxu0 %v5136_v59 }
 0xcf4   :  { %v4831_v2 = vpop.permute.xlu1 %4830  ;;  %v4789_v4 = vpop.permute.xlu0 %4788  ;;  %5276 = vmatprep.subr.mxu0 %v4832_v15 }
 0xcf5   :  { %v4833_v25 = vsel %vm8771_vm9, %v4829_v34, %v4831_v2  ;;  %v4792_v21 = vsel %vm107_vm0, %v4787_v32, %v4789_v4  ;;  %v5138_v35 = vld [vmem:[#allocation2 + $0x70] sm:$0xff] }
 0xcf6   :  { %4839 = vst.msk [vmem:[#allocation2 + $0x48] sm:$0xff] %vm8772_vm13, %v4833_v25  ;;  %6195 = vmatpush3.msra.mxu1 %v5138_v35 }
 0xcf7   :  { %6196 = vmatprep.subr.mxu1 %v7393_v14 }
 0xcf8   :  { %v4791_v36 = vpop.permute.xlu0 %4790  ;;  %v5131_v37 = vld [vmem:[#allocation2 + $0x38] sm:$0xff]  ;;  %v5126_v41 = vld [vmem:[#allocation2 + $0x10] sm:$0xff] }
 0xcf9   :  { %v4793_v40 = vsel %vm107_vm0, %v4789_v4, %v4791_v36  ;;  %5277 = vmatpush1.msra.mxu0 %v5131_v37 }
 0xcfa   :  { %4799 = vst.msk [vmem:[#allocation2 + $0x20] sm:$0xff] %vm8773_vm12, %v4793_v40  ;;  %5278 = vmatprep.subr.mxu0 %v4792_v21 }
 0xcfb   :  { %5279 = vmatpush1.msra.mxu0 %v5126_v41 }
 0xcfc   :  { %5767 = vmatmul.mubr.msk.f32.vlgmr.msra.gmra.mxu0 %vm527_vm11, %v8222_v17  ;;  %5933 = vmatprep.subr.mxu0 %v6262_v43 }
 0xcfd   :  { %v5133_v46 = vld [vmem:[#allocation2 + $0x48] sm:$0xff]  ;;  %5934 = vmatpush3.msra.mxu0 %v8285_v11 }
 0xcfe   :  { %6197 = vmatpush3.msra.mxu1 %v5133_v46  ;;  %5935 = vmatprep.subr.mxu0 %v8291_v47 }
 0xcff   :  { %6198 = vmatprep.subr.mxu1 %v7393_v14  ;;  %5936 = vmatpush3.msra.mxu0 %v8298_v26 }
 0xd00   :  { %5937 = vmatprep.subr.mxu0 %v8304_v5 }
 0xd01   :  { %v5128_v29 = vld [vmem:[#allocation2 + $0x20] sm:$0xff]  ;;  %5938 = vmatpush3.msra.mxu0 %v8310_v62  ;;  %v5172_v3 = vpop.permute.xlu1 %5171 }
 0xd02   :  { %6199 = vmatpush3.msra.mxu1 %v5128_v29  ;;  %5939 = vmatprep.subr.mxu0 %v8316_v10 }
 0xd03   :  { %6201 = vmatmul.mubr.msk.f32.vlgmr.msra.gmra.mxu1 %vm527_vm11, %v8222_v17  ;;  %5940 = vmatpush3.msra.mxu0 %v8324_v13  ;;  %v8337_v17 = vld [vmem:[%s8528_s3 + $0x58] sm:$0xff]  ;;  %vm8774_vm11 = vcmask 785408  }
 0xd04   :  { %5941 = vmatprep.subr.mxu0 %v8330_v19  ;;  %6203 = vmatprep.subr.mxu1 %v7393_v14 }
 0xd05   :  { %5942 = vmatpush3.msra.mxu0 %v8337_v17  ;;  %6204 = vmatpush3.msra.mxu1 %v8343_v20 }
 0xd06   :  { %5943 = vmatprep.subr.mxu0 %v8349_v28  ;;  %6205 = vmatprep.subr.mxu1 %v7393_v14 }
 0xd07   :  { %5944 = vmatpush3.msra.mxu0 %v8356_v22  ;;  %6206 = vmatpush3.msra.mxu1 %v6275_v23 }
 0xd08   :  { %5945 = vmatprep.subr.mxu0 %v8365_v63  ;;  %6207 = vmatprep.subr.mxu1 %v7393_v14 }
 0xd09   :  { %5946 = vmatpush3.msra.mxu0 %v8372_v24  ;;  %6208 = vmatpush3.msra.mxu1 %v6278_v27 }
 0xd0a   :  { %5947 = vmatprep.subr.mxu0 %v8381_v30  ;;  %6209 = vmatprep.subr.mxu1 %v7393_v14 }
 0xd0b   :  { %5948 = vmatpush3.msra.mxu0 %v8388_v31  ;;  %6210 = vmatpush3.msra.mxu1 %v6281_v33 }
 0xd0c   :  { %5949 = vmatprep.subr.mxu0 %v8397_v39  ;;  %6211 = vmatprep.mubr.msk.f32.mxu1 %vm8592_vm6, %v7393_v14 }
 0xd0d   :  { %5950 = vmatpush3.msra.mxu0 %v8405_v42  ;;  %5973 = vmatprep.subr.mxu1 %v6262_v43 }
 0xd0e   :  { %5951 = vmatprep.subr.mxu0 %v8411_v49 }
 0xd0f   :  { %5952 = vmatpush3.msra.mxu0 %v8417_v50 }
 0xd10   :  { %5953 = vmatprep.subr.mxu0 %v8423_v45 }
 0xd11   :  { %5954 = vmatpush3.msra.mxu0 %v8429_v54 }
 0xd12   :  { %5955 = vmatprep.subr.mxu0 %v8435_v60 }
 0xd13   :  { %5956 = vmatpush3.msra.mxu0 %v8441_v48 }
 0xd14   :  { %5957 = vmatprep.subr.mxu0 %v8447_v61 }
 0xd15   :  { %5958 = vmatpush3.msra.mxu0 %v8453_v58 }
 0xd16   :  { %5959 = vmatprep.subr.mxu0 %v8459_v0 }
 0xd17   :  { %5960 = vmatpush3.msra.mxu0 %v6293_v44 }
 0xd18   :  { %5961 = vmatprep.subr.mxu0 %v6294_v7 }
 0xd19   :  { %5962 = vmatpush3.msra.mxu0 %v6295_v12 }
 0xd1a   :  { %5963 = vmatprep.subr.mxu0 %v6296_v1 }
 0xd1b   :  { %5964 = vmatpush3.msra.mxu0 %v6297_v6 }
 0xd1c   :  { %6214 = vmatprep.subr.mxu0 %v7393_v14 }
 0xd85   :  { %v5243_v9 = vpop.f32.mrf.mxu1 }
 0xd86   :  { %v5244_v38 = vadd.f32 %v5243_v9, %v5172_v3 }
 0xd87   :  { %v5245_v8 = vpop.f32.mrf.mxu1 }
 0xd88   :  { %v5246_v18 = vadd.f32 %v5245_v8, %v5172_v3 }
 0xd8a   :  { %5456 = vmatprep.mubr.f32.mxu0 %v5246_v18 }
 0xd8b   :  { %5457 = vmatmul.mubr.f32.vlgmr.msra.gmra.mxu0 %v5244_v38 }
 0xd8c   :  { %6215 = vmatpush3.msra.mxu0 %v8343_v20  ;;  %6222 = vmatprep.mubr.msk.f32.mxu0 %vm8592_vm6, %v7393_v14  ;;  %vm8775_vm6 = vmmov %vm8774_vm11 }
 0xd8d   :  { %6216 = vmatprep.subr.mxu0 %v7393_v14 }
 0xd8e   :  { %6217 = vmatpush3.msra.mxu0 %v6275_v23 }
 0xd8f   :  { %6218 = vmatprep.subr.mxu0 %v7393_v14 }
 0xd90   :  { %6219 = vmatpush3.msra.mxu0 %v6278_v27 }
 0xd91   :  { %6220 = vmatprep.subr.mxu0 %v7393_v14 }
 0xd92   :  { %6221 = vmatpush3.msra.mxu0 %v6281_v33 }
 0xdbc   :  { %v5314_v34 = vpop.f32.mrf.mxu0 }
 0xdbd   :  { %v5315_v51 = vadd.f32 %v5314_v34, %v5172_v3 }
 0xdbe   :  { %v5316_v52 = vpop.f32.mrf.mxu0 }
 0xdbf   :  { %v5317_v53 = vadd.f32 %v5316_v52, %v5172_v3  ;;  %6212 = vmatmul.mubr.msk.f32.vlgmr.msra.gmra.mxu1 %vm107_vm0, %v5315_v51 }
 0xdc0   :  { %5974 = vmatpush3.msra.mxu1 %v8285_v11 }
 0xdc1   :  { %v6255_v16 = vpack.i.bf16 %v5315_v51, %v5317_v53  ;;  %5975 = vmatprep.subr.mxu1 %v8291_v47 }
 0xdc2   :  { %5976 = vmatpush3.msra.mxu1 %v8298_v26 }
 0xdc3   :  { %v5385_v55 = vpop.f32.mrf.mxu1  ;;  %6256 = vrot.lane.b32.xlu0 %v6255_v16, %s6320_s29  ;;  %5977 = vmatprep.subr.mxu1 %v8304_v5 }
 0xdc4   :  { %v5386_v14 = vadd.f32 %v5385_v55, %v5172_v3  ;;  %5978 = vmatpush3.msra.mxu1 %v8310_v62 }
 0xdc5   :  { %v6202_v32 = vpop.f32.mrf.mxu1  ;;  %5979 = vmatprep.subr.mxu1 %v8316_v10 }
 0xdc6   :  { %5539 = vrot.lane.b32.xlu1 %v5386_v14, %s6320_s29  ;;  %5980 = vmatpush3.msra.mxu1 %v8324_v13 }
 0xdc7   :  { %5981 = vmatprep.subr.mxu1 %v8330_v19 }
 0xdc8   :  { %5982 = vmatpush3.msra.mxu1 %v8337_v17 }
 0xdc9   :  { %5983 = vmatprep.subr.mxu1 %v8349_v28 }
 0xdca   :  { %5984 = vmatpush3.msra.mxu1 %v8356_v22 }
 0xdcb   :  { %5985 = vmatprep.subr.mxu1 %v8365_v63 }
 0xdcc   :  { %5986 = vmatpush3.msra.mxu1 %v8372_v24 }
 0xdcd   :  { %5987 = vmatprep.subr.mxu1 %v8381_v30 }
 0xdce   :  { %5988 = vmatpush3.msra.mxu1 %v8388_v31 }
 0xdcf   :  { %5989 = vmatprep.subr.mxu1 %v8397_v39 }
 0xdd0   :  { %5990 = vmatpush3.msra.mxu1 %v8405_v42 }
 0xdd1   :  { %5991 = vmatprep.subr.mxu1 %v8411_v49 }
 0xdd2   :  { %5992 = vmatpush3.msra.mxu1 %v8417_v50 }
 0xdd3   :  { %5993 = vmatprep.subr.mxu1 %v8423_v45 }
 0xdd4   :  { %5994 = vmatpush3.msra.mxu1 %v8429_v54 }
 0xdd5   :  { %5995 = vmatprep.subr.mxu1 %v8435_v60 }
 0xdd6   :  { %5996 = vmatpush3.msra.mxu1 %v8441_v48 }
 0xdd7   :  { %5997 = vmatprep.subr.mxu1 %v8447_v61 }
 0xdd8   :  { %5998 = vmatpush3.msra.mxu1 %v8453_v58 }
 0xdd9   :  { %5999 = vmatprep.subr.mxu1 %v8459_v0 }
 0xdda   :  { %6000 = vmatpush3.msra.mxu1 %v6293_v44 }
 0xddb   :  { %6001 = vmatprep.subr.mxu1 %v6294_v7 }
 0xddc   :  { %6002 = vmatpush3.msra.mxu1 %v6295_v12 }
 0xddd   :  { %6003 = vmatprep.subr.mxu1 %v6296_v1 }
 0xdde   :  { %6004 = vmatpush3.msra.mxu1 %v6297_v6 }
 0xe35   :  { %v6257_v56 = vpop.permute.xlu0 %6256 }
 0xe36   :  { %v6259_v57 = vunpack.i.h.bf16 %v6257_v56  ;;  %v6258_v15 = vunpack.i.l.bf16 %v6257_v56 }
 0xe38   :  { %v5540_v59 = vpop.permute.xlu1 %5539  ;;  %v5541_v4 = vsel %vm8775_vm6, %v6259_v57, %v6258_v15 }
 0xe39   :  { %6223 = vmatmul.mubr.msk.f32.vlgmr.msra.gmra.mxu0 %vm107_vm0, %v5540_v59  ;;  %v5542_v2 = vsel %vm8774_vm11, %v6258_v15, %v5540_v59 }
 0xe3a   :  { %5611 = vmatprep.mubr.f32.mxu1 %v5542_v2 }
 0xe3b   :  { %5612 = vmatmul.mubr.f32.vlgmr.msra.gmra.mxu1 %v5541_v4 }
 0xe4b   :  { %v5965_v25 = vpop.f32.mrf.mxu0 }
 0xe4d   :  { %v5966_v21 = vpop.f32.mrf.mxu0 }
 0xe4e   :  { %v5967_v35 = vadd.f32 %v5966_v21, %v5965_v25 }
 0xe7f   :  { %v5528_v36 = vpop.f32.mrf.mxu1 }
 0xe80   :  { %v5529_v37 = vadd.f32 %v5967_v35, %v5528_v36 }
 0xe81   :  { %v6213_v40 = vpop.f32.mrf.mxu1 }
 0xe82   :  { %5532 = vst [vmem:[%s8531_s8] sm:$0xf] %v5529_v37 }
 0xef9   :  { %v5683_v41 = vpop.f32.mrf.mxu0 }
 0xefb   :  { %v6224_v43 = vpop.f32.mrf.mxu0  ;;  %v6005_v46 = vpop.f32.mrf.mxu1 }
 0xefd   :  { %v6006_v11 = vpop.f32.mrf.mxu1 }
 0xefe   :  { %v6007_v47 = vadd.f32 %v6006_v11, %v6005_v46 }
 0xf00   :  { %v5684_v26 = vadd.f32 %v6007_v47, %v5683_v41 }
 0xf02   :  { %5771 = vst [vmem:[%s8531_s8 + $0x4] sm:$0xf] %v5684_v26 }

</bundles_post_ra>
